<compile_context>
chip_gen: v6e
topology: v6e:2x2x1
jax: 0.10.0
libtpu: 0.0.40
codegen_flags: <defaults>
</compile_context>

<pallas_src>
import functools
import math

import jax
import jax.numpy as jnp
from jax.experimental import pallas as pl
from jax.experimental.pallas import tpu as pltpu

NEG_SLOPE = 0.01      # nn.LeakyReLU() default negative_slope
LANES = 128


def _round_up(v, m):
    return ((v + m - 1) // m) * m


def _stage_plan(spatial, in_kernel, hid_kernel):
    """Static per-stage geometry mirroring ReConvNet.forward (parse=False)."""
    stages = []
    p_in = in_kernel // 2
    stages.append(dict(s_in=spatial, pad_a=p_in, pad_b=p_in, k=in_kernel, pool=False))
    s = spatial + 2 * p_in - in_kernel + 1            # inconv output (not pooled)
    hp = hid_kernel // 2
    while s > hid_kernel:                             # torch: while X.shape[-1] > hid_kernel
        stages.append(dict(s_in=s, pad_a=hp, pad_b=hp, k=hid_kernel, pool=True))
        s = (s + 2 * hp - hid_kernel + 1) // 2        # same-conv then MaxPool2d(2)
    pad_a = math.ceil((hid_kernel - s) / 2)
    pad_b = math.floor((hid_kernel - s) / 2) + 1
    # TODO(synk): when pad_a != pad_b PyTorch picks the pad ordering at random
    # (torch.rand); we take the deterministic (pad_a, pad_b, pad_a, pad_b) branch,
    # identical to the original whenever pad_a == pad_b (as in this config).
    stages.append(dict(s_in=s, pad_a=pad_a, pad_b=pad_b, k=hid_kernel, pool=True))
    s_final = (s + pad_a + pad_b - hid_kernel + 1) // 2
    return stages, s_final


def _stage_geometry(stages):
    """Tight flat-buffer geometry: row stride == padded width (no alignment junk)."""
    geo = []
    for st in stages:
        s, pa, pb, k = st["s_in"], st["pad_a"], st["pad_b"], st["k"]
        wa = pa + s + pb                        # padded width == flat row stride
        rows = pa + s + pb                      # padded height (square)
        ho = rows - k + 1                       # conv output spatial (square)
        l = (ho - 1) * wa + ho                  # flat rows spanning the conv output
        l_store = (l - 1 - wa) if st["pool"] else l   # pooled stages store the 2x2 max
        geo.append(dict(s_in=s, pa=pa, pb=pb, k=k, pool=st["pool"],
                        wa=wa, rows=rows, ho=ho, l=l, l_store=l_store))
    return geo


def _make_fused_kernel(geo):
    n_stages = len(geo)

    def kernel(x_ref, w_in_ref, b_in_ref, w_re_ref, b_re_ref, out_ref,
               pad0_ref, pad_ref, conv_ref):

        def fill_pad(g, dst_ref, read_row):
            """Write the *entire* flat region the conv reads (data + zero halo),
            one padded image-row span at a time -- no full-buffer memset and no
            state carried across grid steps."""
            s, pa, pb, wa, rows = g["s_in"], g["pa"], g["pb"], g["wa"], g["rows"]
            pc = dst_ref.shape[-1]
            head = pa * wa + pa                          # top halo + row 0's left pad
            if head:
                dst_ref[pl.ds(0, head), :] = jnp.zeros((head, pc), jnp.float32)
            gap = wa - s                                 # right pad + next row's left pad
            zgap = jnp.zeros((gap, pc), jnp.float32) if gap else None
            for y in range(s):
                base = (pa + y) * wa + pa
                dst_ref[pl.ds(base, s), :] = read_row(y)
                if gap:
                    dst_ref[pl.ds(base + s, gap), :] = zgap
            tail = rows * wa - ((pa + s) * wa + pa)      # remaining bottom halo
            if tail:
                dst_ref[pl.ds((pa + s) * wa + pa, tail), :] = \
                    jnp.zeros((tail, pc), jnp.float32)

        def conv_stage(g, src_ref, w_ref, b_ref, dst_ref):
            """k*k conv as k*k accumulated MXU matmuls over row-shifted views of
            the flat padded buffer, fused with bias + LeakyReLU.  For pooled
            stages the 2x2 max-pool is folded into the epilogue before the
            single store, so consumers only need one stride-2 read per row."""
            k, wa, l = g["k"], g["wa"], g["l"]
            acc = None
            for i in range(k):
                for j in range(k):
                    lhs = src_ref[pl.ds(i * wa + j, l), :]          # (l, P*Cin)
                    part = jnp.dot(lhs, w_ref[i * k + j],
                                   preferred_element_type=jnp.float32)
                    acc = part if acc is None else acc + part
            act = acc + b_ref[...]                                   # (1, 128) bcast
            act = jnp.where(act >= 0.0, act, NEG_SLOPE * act)        # LeakyReLU
            if g["pool"]:
                # horizontal pair-max, then vertical pair-max -> 2x2 window max
                # at every flat position oy*wa + ox.
                hmax = jnp.maximum(act[:l - 1, :], act[1:, :])
                vh = jnp.maximum(hmax[:l - 1 - wa, :], hmax[wa:, :])
                dst_ref[pl.ds(0, l - 1 - wa), :] = vh
            else:
                dst_ref[pl.ds(0, l), :] = act

        # ---- stage 0: inconv + LeakyReLU --------------------------------------
        g0 = geo[0]
        s0 = g0["s_in"]
        fill_pad(g0, pad0_ref, lambda y: x_ref[pl.ds(y * s0, s0), :])
        conv_stage(g0, pad0_ref, w_in_ref, b_in_ref, conv_ref)
        gprev = g0

        # ---- stages 1..n-1: (copy | pooled read) -> pad -> reconv + LReLU -----
        for t in range(1, n_stages):
            g = geo[t]
            s, wp = g["s_in"], gprev["wa"]
            if gprev["pool"]:
                # previous epilogue already stored the 2x2-window max; pooled
                # row y is a single stride-2 read.
                read_row = lambda y, wp=wp, s=s: conv_ref[
                    pl.ds(2 * y * wp, s, stride=2), :]
            else:
                read_row = lambda y, wp=wp, s=s: conv_ref[pl.ds(y * wp, s), :]
            fill_pad(g, pad_ref, read_row)
            conv_stage(g, pad_ref, w_re_ref, b_re_ref,
                       out_ref if t == n_stages - 1 else conv_ref)
            gprev = g

    return kernel


def reconvnet_forward(x_nchw, params, in_kernel, hid_kernel):
    """ReConvNet.forward (parse=False): returns (X.squeeze()[:, :10], X)."""
    B, in_dim, H, W = x_nchw.shape
    assert H == W, "square spatial input assumed"
    hid_dim = params["w_in"].shape[0]
    assert hid_dim >= 10, "X.squeeze()[:, :10] requires hid_dim >= 10"
    assert LANES % hid_dim == 0, "lane packing assumes hid_dim divides 128"
    P = LANES // hid_dim                      # samples packed onto the lane axis

    stages, s_final = _stage_plan(H, in_kernel, hid_kernel)
    assert s_final == 1, "final feature map must be 1x1 for .squeeze()[:, :10]"
    geo = _stage_geometry(stages)

    # ---- pack weights ONCE: block-diagonal over the P lane-packed samples ------
    def pack_w(w):
        co, ci, kh, kw = w.shape
        wt = jnp.transpose(w, (2, 3, 1, 0)).reshape(kh * kw, ci, co).astype(jnp.float32)
        eye = jnp.eye(P, dtype=jnp.float32)
        return jnp.einsum("tio,pq->tpiqo", wt, eye).reshape(kh * kw, P * ci, P * co)

    w_in = pack_w(params["w_in"])             # (k*k, P*in_dim,  P*hid_dim)
    w_re = pack_w(params["w_re"])             # (k*k, P*hid_dim, P*hid_dim)
    b_in = jnp.tile(params["b_in"].astype(jnp.float32), P).reshape(1, P * hid_dim)
    b_re = jnp.tile(params["b_re"].astype(jnp.float32), P).reshape(1, P * hid_dim)

    # ---- pack the batch onto the lane axis: lane = sample*Cin + channel --------
    Bp = _round_up(B, P)
    G = Bp // P
    x = jnp.transpose(x_nchw, (0, 2, 3, 1)).astype(jnp.float32)        # (B, H, W, Cin)
    if Bp != B:
        x = jnp.pad(x, ((0, Bp - B), (0, 0), (0, 0), (0, 0)))
    x = x.reshape(G, P, H * W, in_dim)
    x = jnp.transpose(x, (0, 2, 1, 3)).reshape(G, H * W, P * in_dim)

    # ---- VMEM scratch: input pad buffer, shared hidden pad buffer, conv buffer -
    pad0_rows = geo[0]["rows"] * geo[0]["wa"]
    pad_rows = max(g["rows"] * g["wa"] for g in geo[1:])
    conv_rows = max(g["l_store"] for g in geo[:-1])   # last stage writes out_ref
    scratch = [
        pltpu.VMEM((_round_up(pad0_rows, 8), P * in_dim), jnp.float32),
        pltpu.VMEM((_round_up(pad_rows, 8), P * hid_dim), jnp.float32),
        pltpu.VMEM((_round_up(conv_rows, 8), P * hid_dim), jnp.float32),
    ]

    flops = 0
    for idx, g in enumerate(geo):
        cin = in_dim if idx == 0 else hid_dim
        flops += 2 * g["ho"] * g["ho"] * g["k"] * g["k"] * cin * hid_dim
    flops *= Bp

    kernel = _make_fused_kernel(geo)

    out = pl.pallas_call(
        kernel,
        out_shape=jax.ShapeDtypeStruct((G, 1, P * hid_dim), jnp.float32),
        grid=(G,),
        in_specs=[
            pl.BlockSpec((None, H * W, P * in_dim), lambda g: (g, 0, 0)),
            pl.BlockSpec(w_in.shape, lambda g: (0, 0, 0)),
            pl.BlockSpec((1, P * hid_dim), lambda g: (0, 0)),
            pl.BlockSpec(w_re.shape, lambda g: (0, 0, 0)),
            pl.BlockSpec((1, P * hid_dim), lambda g: (0, 0)),
        ],
        out_specs=pl.BlockSpec((None, 1, P * hid_dim), lambda g: (g, 0, 0)),
        scratch_shapes=scratch,
        compiler_params=pltpu.CompilerParams(
            dimension_semantics=("parallel",),        # v7x: 2 TCs split the grid steps
            vmem_limit_bytes=32 * 1024 * 1024,
        ),
        cost_estimate=pl.CostEstimate(
            flops=int(flops),
            transcendentals=0,
            bytes_accessed=int(4 * (x.size + w_in.size + w_re.size
                                    + b_in.size + b_re.size + G * P * hid_dim)),
        ),
    )(x, w_in, b_in, w_re, b_re)

    feats = out.reshape(Bp, hid_dim)[:B]      # lane order = (sample, channel)
    logits = feats[:, :10]                    # X.squeeze()[:, :10]
    feat_nchw = feats[:, :, None, None]       # X: (B, hid_dim, 1, 1)
    return logits, feat_nchw


# ----------------------------------------------------------------------------
# Pure-JAX reference for validation
# ----------------------------------------------------------------------------
def _ref_forward(x_nchw, params, in_kernel, hid_kernel):
    def conv(x, w, b, pad):
        y = jax.lax.conv_general_dilated(
            x, jnp.transpose(w, (2, 3, 1, 0)), (1, 1),
            [(pad[0], pad[1]), (pad[0], pad[1])],
            dimension_numbers=("NHWC", "HWIO", "NHWC"))
        y = y + b.reshape(1, 1, 1, -1)
        return jnp.where(y >= 0, y, NEG_SLOPE * y)

    def pool(x):
        return jax.lax.reduce_window(x, -jnp.inf, jax.lax.max,
                                     (1, 2, 2, 1), (1, 2, 2, 1), "VALID")

    x = jnp.transpose(x_nchw, (0, 2, 3, 1)).astype(jnp.float32)
    p_in = in_kernel // 2
    x = conv(x, params["w_in"], params["b_in"], (p_in, p_in))
    hp = hid_kernel // 2
    while x.shape[2] > hid_kernel:
        x = pool(conv(x, params["w_re"], params["b_re"], (hp, hp)))
    pad_a = math.ceil((hid_kernel - x.shape[2]) / 2)
    pad_b = math.floor((hid_kernel - x.shape[2]) / 2) + 1
    x = pool(conv(x, params["w_re"], params["b_re"], (pad_a, pad_b)))
    return x.reshape(x.shape[0], x.shape[3])[:, :10], jnp.transpose(x, (0, 3, 1, 2))


if __name__ == "__main__":
    # B=16 -> two grid steps of 8 lane-packed samples each (both v7x cores busy).
    B, IN_DIM, HID_DIM, SPATIAL = 16, 4, 16, 16
    IN_KERNEL, HID_KERNEL = 3, 3

    key = jax.random.PRNGKey(0)
    k1, k2, k3, k4, k5 = jax.random.split(key, 5)
    params = {
        "w_in": 0.1 * jax.random.normal(k1, (HID_DIM, IN_DIM, IN_KERNEL, IN_KERNEL), jnp.float32),
        "b_in": 0.1 * jax.random.normal(k2, (HID_DIM,), jnp.float32),
        "w_re": 0.1 * jax.random.normal(k3, (HID_DIM, HID_DIM, HID_KERNEL, HID_KERNEL), jnp.float32),
        "b_re": 0.1 * jax.random.normal(k4, (HID_DIM,), jnp.float32),
    }
    x = jax.random.normal(k5, (B, IN_DIM, SPATIAL, SPATIAL), jnp.float32)

    fwd = jax.jit(functools.partial(reconvnet_forward,
                                    in_kernel=IN_KERNEL, hid_kernel=HID_KERNEL))
    logits, feat = fwd(x, params)
    logits = jax.block_until_ready(logits)
    feat = jax.block_until_ready(feat)

    ref_logits, ref_feat = _ref_forward(x, params, IN_KERNEL, HID_KERNEL)
    assert logits.shape == (B, 10), logits.shape
    assert feat.shape == (B, HID_DIM, 1, 1), feat.shape
    assert jnp.allclose(logits, ref_logits, atol=1e-3, rtol=1e-3), \
        float(jnp.max(jnp.abs(logits - ref_logits)))
    assert jnp.allclose(feat, ref_feat, atol=1e-3, rtol=1e-3)
    print("KERNEL_OK")
</pallas_src>

<mosaic_0001>
module attributes {stable_mosaic.version = 11 : i64} {
  func.func @kernel(%arg0: i32, %arg1: memref<1x256x32xf32, #tpu.memory_space<vmem>>, %arg2: memref<9x32x128xf32, #tpu.memory_space<vmem>>, %arg3: memref<1x128xf32, #tpu.memory_space<vmem>>, %arg4: memref<9x128x128xf32, #tpu.memory_space<vmem>>, %arg5: memref<1x128xf32, #tpu.memory_space<vmem>>, %arg6: memref<1x1x128xf32, #tpu.memory_space<vmem>>, %arg7: memref<328x32xf32, #tpu.memory_space<vmem>>, %arg8: memref<328x128xf32, #tpu.memory_space<vmem>>, %arg9: memref<288x128xf32, #tpu.memory_space<vmem>>) attributes {dimension_semantics = [#tpu.dimension_semantics<parallel>], iteration_bounds = array<i64: 2>, scalar_prefetch = 0 : i64, scratch_operands = 3 : i64, tpu.core_type = #tpu.core_type<tc>, window_params = [{transform_indices = @transform_0, window_bounds = array<i64: 1, 256, 32>}, {pipeline_mode = #tpu.pipeline_mode<synchronous>, transform_indices = @transform_1, window_bounds = array<i64: 9, 32, 128>}, {pipeline_mode = #tpu.pipeline_mode<synchronous>, transform_indices = @transform_2, window_bounds = array<i64: 1, 128>}, {pipeline_mode = #tpu.pipeline_mode<synchronous>, transform_indices = @transform_3, window_bounds = array<i64: 9, 128, 128>}, {pipeline_mode = #tpu.pipeline_mode<synchronous>, transform_indices = @transform_4, window_bounds = array<i64: 1, 128>}, {transform_indices = @transform_5, window_bounds = array<i64: 1, 1, 128>}]} {
    %cst = arith.constant 0.000000e+00 : f32
    %0 = vector.broadcast %cst : f32 to vector<19x32xf32>
    %c0 = arith.constant 0 : index
    %c0_0 = arith.constant 0 : index
    %1 = vector.load %arg7[%c0, %c0_0] : memref<328x32xf32, #tpu.memory_space<vmem>>, vector<19x32xf32>
    tpu.vector_store %arg7[%c0, %c0_0], %0 {strides = array<i32>} : memref<328x32xf32, #tpu.memory_space<vmem>>, vector<19x32xf32>,
    %cst_1 = arith.constant 0.000000e+00 : f32
    %2 = vector.broadcast %cst_1 : f32 to vector<2x32xf32>
    %c0_2 = arith.constant 0 : index
    %c0_3 = arith.constant 0 : index
    %c0_4 = arith.constant 0 : index
    %3 = vector.load %arg1[%c0_2, %c0_3, %c0_4] : memref<1x256x32xf32, #tpu.memory_space<vmem>>, vector<1x16x32xf32>
    %4 = vector.shape_cast %3 : vector<1x16x32xf32> to vector<16x32xf32>
    %c19 = arith.constant 19 : index
    %c0_5 = arith.constant 0 : index
    %5 = vector.load %arg7[%c19, %c0_5] : memref<328x32xf32, #tpu.memory_space<vmem>>, vector<16x32xf32>
    tpu.vector_store %arg7[%c19, %c0_5], %4 {strides = array<i32>} : memref<328x32xf32, #tpu.memory_space<vmem>>, vector<16x32xf32>,
    %c35 = arith.constant 35 : index
    %c0_6 = arith.constant 0 : index
    %6 = vector.load %arg7[%c35, %c0_6] : memref<328x32xf32, #tpu.memory_space<vmem>>, vector<2x32xf32>
    tpu.vector_store %arg7[%c35, %c0_6], %2 {strides = array<i32>} : memref<328x32xf32, #tpu.memory_space<vmem>>, vector<2x32xf32>,
    %c0_7 = arith.constant 0 : index
    %c16 = arith.constant 16 : index
    %c0_8 = arith.constant 0 : index
    %7 = vector.load %arg1[%c0_7, %c16, %c0_8] : memref<1x256x32xf32, #tpu.memory_space<vmem>>, vector<1x16x32xf32>
    %8 = vector.shape_cast %7 : vector<1x16x32xf32> to vector<16x32xf32>
    %c37 = arith.constant 37 : index
    %c0_9 = arith.constant 0 : index
    %9 = vector.load %arg7[%c37, %c0_9] : memref<328x32xf32, #tpu.memory_space<vmem>>, vector<16x32xf32>
    tpu.vector_store %arg7[%c37, %c0_9], %8 {strides = array<i32>} : memref<328x32xf32, #tpu.memory_space<vmem>>, vector<16x32xf32>,
    %c53 = arith.constant 53 : index
    %c0_10 = arith.constant 0 : index
    %10 = vector.load %arg7[%c53, %c0_10] : memref<328x32xf32, #tpu.memory_space<vmem>>, vector<2x32xf32>
    tpu.vector_store %arg7[%c53, %c0_10], %2 {strides = array<i32>} : memref<328x32xf32, #tpu.memory_space<vmem>>, vector<2x32xf32>,
    %c0_11 = arith.constant 0 : index
    %c32 = arith.constant 32 : index
    %c0_12 = arith.constant 0 : index
    %11 = vector.load %arg1[%c0_11, %c32, %c0_12] : memref<1x256x32xf32, #tpu.memory_space<vmem>>, vector<1x16x32xf32>
    %12 = vector.shape_cast %11 : vector<1x16x32xf32> to vector<16x32xf32>
    %c55 = arith.constant 55 : index
    %c0_13 = arith.constant 0 : index
    %13 = vector.load %arg7[%c55, %c0_13] : memref<328x32xf32, #tpu.memory_space<vmem>>, vector<16x32xf32>
    tpu.vector_store %arg7[%c55, %c0_13], %12 {strides = array<i32>} : memref<328x32xf32, #tpu.memory_space<vmem>>, vector<16x32xf32>,
    %c71 = arith.constant 71 : index
    %c0_14 = arith.constant 0 : index
    %14 = vector.load %arg7[%c71, %c0_14] : memref<328x32xf32, #tpu.memory_space<vmem>>, vector<2x32xf32>
    tpu.vector_store %arg7[%c71, %c0_14], %2 {strides = array<i32>} : memref<328x32xf32, #tpu.memory_space<vmem>>, vector<2x32xf32>,
    %c0_15 = arith.constant 0 : index
    %c48 = arith.constant 48 : index
    %c0_16 = arith.constant 0 : index
    %15 = vector.load %arg1[%c0_15, %c48, %c0_16] : memref<1x256x32xf32, #tpu.memory_space<vmem>>, vector<1x16x32xf32>
    %16 = vector.shape_cast %15 : vector<1x16x32xf32> to vector<16x32xf32>
    %c73 = arith.constant 73 : index
    %c0_17 = arith.constant 0 : index
    %17 = vector.load %arg7[%c73, %c0_17] : memref<328x32xf32, #tpu.memory_space<vmem>>, vector<16x32xf32>
    tpu.vector_store %arg7[%c73, %c0_17], %16 {strides = array<i32>} : memref<328x32xf32, #tpu.memory_space<vmem>>, vector<16x32xf32>,
    %c89 = arith.constant 89 : index
    %c0_18 = arith.constant 0 : index
    %18 = vector.load %arg7[%c89, %c0_18] : memref<328x32xf32, #tpu.memory_space<vmem>>, vector<2x32xf32>
    tpu.vector_store %arg7[%c89, %c0_18], %2 {strides = array<i32>} : memref<328x32xf32, #tpu.memory_space<vmem>>, vector<2x32xf32>,
    %c0_19 = arith.constant 0 : index
    %c64 = arith.constant 64 : index
    %c0_20 = arith.constant 0 : index
    %19 = vector.load %arg1[%c0_19, %c64, %c0_20] : memref<1x256x32xf32, #tpu.memory_space<vmem>>, vector<1x16x32xf32>
    %20 = vector.shape_cast %19 : vector<1x16x32xf32> to vector<16x32xf32>
    %c91 = arith.constant 91 : index
    %c0_21 = arith.constant 0 : index
    %21 = vector.load %arg7[%c91, %c0_21] : memref<328x32xf32, #tpu.memory_space<vmem>>, vector<16x32xf32>
    tpu.vector_store %arg7[%c91, %c0_21], %20 {strides = array<i32>} : memref<328x32xf32, #tpu.memory_space<vmem>>, vector<16x32xf32>,
    %c107 = arith.constant 107 : index
    %c0_22 = arith.constant 0 : index
    %22 = vector.load %arg7[%c107, %c0_22] : memref<328x32xf32, #tpu.memory_space<vmem>>, vector<2x32xf32>
    tpu.vector_store %arg7[%c107, %c0_22], %2 {strides = array<i32>} : memref<328x32xf32, #tpu.memory_space<vmem>>, vector<2x32xf32>,
    %c0_23 = arith.constant 0 : index
    %c80 = arith.constant 80 : index
    %c0_24 = arith.constant 0 : index
    %23 = vector.load %arg1[%c0_23, %c80, %c0_24] : memref<1x256x32xf32, #tpu.memory_space<vmem>>, vector<1x16x32xf32>
    %24 = vector.shape_cast %23 : vector<1x16x32xf32> to vector<16x32xf32>
    %c109 = arith.constant 109 : index
    %c0_25 = arith.constant 0 : index
    %25 = vector.load %arg7[%c109, %c0_25] : memref<328x32xf32, #tpu.memory_space<vmem>>, vector<16x32xf32>
    tpu.vector_store %arg7[%c109, %c0_25], %24 {strides = array<i32>} : memref<328x32xf32, #tpu.memory_space<vmem>>, vector<16x32xf32>,
    %c125 = arith.constant 125 : index
    %c0_26 = arith.constant 0 : index
    %26 = vector.load %arg7[%c125, %c0_26] : memref<328x32xf32, #tpu.memory_space<vmem>>, vector<2x32xf32>
    tpu.vector_store %arg7[%c125, %c0_26], %2 {strides = array<i32>} : memref<328x32xf32, #tpu.memory_space<vmem>>, vector<2x32xf32>,
    %c0_27 = arith.constant 0 : index
    %c96 = arith.constant 96 : index
    %c0_28 = arith.constant 0 : index
    %27 = vector.load %arg1[%c0_27, %c96, %c0_28] : memref<1x256x32xf32, #tpu.memory_space<vmem>>, vector<1x16x32xf32>
    %28 = vector.shape_cast %27 : vector<1x16x32xf32> to vector<16x32xf32>
    %c127 = arith.constant 127 : index
    %c0_29 = arith.constant 0 : index
    %29 = vector.load %arg7[%c127, %c0_29] : memref<328x32xf32, #tpu.memory_space<vmem>>, vector<16x32xf32>
    tpu.vector_store %arg7[%c127, %c0_29], %28 {strides = array<i32>} : memref<328x32xf32, #tpu.memory_space<vmem>>, vector<16x32xf32>,
    %c143 = arith.constant 143 : index
    %c0_30 = arith.constant 0 : index
    %30 = vector.load %arg7[%c143, %c0_30] : memref<328x32xf32, #tpu.memory_space<vmem>>, vector<2x32xf32>
    tpu.vector_store %arg7[%c143, %c0_30], %2 {strides = array<i32>} : memref<328x32xf32, #tpu.memory_space<vmem>>, vector<2x32xf32>,
    %c0_31 = arith.constant 0 : index
    %c112 = arith.constant 112 : index
    %c0_32 = arith.constant 0 : index
    %31 = vector.load %arg1[%c0_31, %c112, %c0_32] : memref<1x256x32xf32, #tpu.memory_space<vmem>>, vector<1x16x32xf32>
    %32 = vector.shape_cast %31 : vector<1x16x32xf32> to vector<16x32xf32>
    %c145 = arith.constant 145 : index
    %c0_33 = arith.constant 0 : index
    %33 = vector.load %arg7[%c145, %c0_33] : memref<328x32xf32, #tpu.memory_space<vmem>>, vector<16x32xf32>
    tpu.vector_store %arg7[%c145, %c0_33], %32 {strides = array<i32>} : memref<328x32xf32, #tpu.memory_space<vmem>>, vector<16x32xf32>,
    %c161 = arith.constant 161 : index
    %c0_34 = arith.constant 0 : index
    %34 = vector.load %arg7[%c161, %c0_34] : memref<328x32xf32, #tpu.memory_space<vmem>>, vector<2x32xf32>
    tpu.vector_store %arg7[%c161, %c0_34], %2 {strides = array<i32>} : memref<328x32xf32, #tpu.memory_space<vmem>>, vector<2x32xf32>,
    %c0_35 = arith.constant 0 : index
    %c128 = arith.constant 128 : index
    %c0_36 = arith.constant 0 : index
    %35 = vector.load %arg1[%c0_35, %c128, %c0_36] : memref<1x256x32xf32, #tpu.memory_space<vmem>>, vector<1x16x32xf32>
    %36 = vector.shape_cast %35 : vector<1x16x32xf32> to vector<16x32xf32>
    %c163 = arith.constant 163 : index
    %c0_37 = arith.constant 0 : index
    %37 = vector.load %arg7[%c163, %c0_37] : memref<328x32xf32, #tpu.memory_space<vmem>>, vector<16x32xf32>
    tpu.vector_store %arg7[%c163, %c0_37], %36 {strides = array<i32>} : memref<328x32xf32, #tpu.memory_space<vmem>>, vector<16x32xf32>,
    %c179 = arith.constant 179 : index
    %c0_38 = arith.constant 0 : index
    %38 = vector.load %arg7[%c179, %c0_38] : memref<328x32xf32, #tpu.memory_space<vmem>>, vector<2x32xf32>
    tpu.vector_store %arg7[%c179, %c0_38], %2 {strides = array<i32>} : memref<328x32xf32, #tpu.memory_space<vmem>>, vector<2x32xf32>,
    %c0_39 = arith.constant 0 : index
    %c144 = arith.constant 144 : index
    %c0_40 = arith.constant 0 : index
    %39 = vector.load %arg1[%c0_39, %c144, %c0_40] : memref<1x256x32xf32, #tpu.memory_space<vmem>>, vector<1x16x32xf32>
    %40 = vector.shape_cast %39 : vector<1x16x32xf32> to vector<16x32xf32>
    %c181 = arith.constant 181 : index
    %c0_41 = arith.constant 0 : index
    %41 = vector.load %arg7[%c181, %c0_41] : memref<328x32xf32, #tpu.memory_space<vmem>>, vector<16x32xf32>
    tpu.vector_store %arg7[%c181, %c0_41], %40 {strides = array<i32>} : memref<328x32xf32, #tpu.memory_space<vmem>>, vector<16x32xf32>,
    %c197 = arith.constant 197 : index
    %c0_42 = arith.constant 0 : index
    %42 = vector.load %arg7[%c197, %c0_42] : memref<328x32xf32, #tpu.memory_space<vmem>>, vector<2x32xf32>
    tpu.vector_store %arg7[%c197, %c0_42], %2 {strides = array<i32>} : memref<328x32xf32, #tpu.memory_space<vmem>>, vector<2x32xf32>,
    %c0_43 = arith.constant 0 : index
    %c160 = arith.constant 160 : index
    %c0_44 = arith.constant 0 : index
    %43 = vector.load %arg1[%c0_43, %c160, %c0_44] : memref<1x256x32xf32, #tpu.memory_space<vmem>>, vector<1x16x32xf32>
    %44 = vector.shape_cast %43 : vector<1x16x32xf32> to vector<16x32xf32>
    %c199 = arith.constant 199 : index
    %c0_45 = arith.constant 0 : index
    %45 = vector.load %arg7[%c199, %c0_45] : memref<328x32xf32, #tpu.memory_space<vmem>>, vector<16x32xf32>
    tpu.vector_store %arg7[%c199, %c0_45], %44 {strides = array<i32>} : memref<328x32xf32, #tpu.memory_space<vmem>>, vector<16x32xf32>,
    %c215 = arith.constant 215 : index
    %c0_46 = arith.constant 0 : index
    %46 = vector.load %arg7[%c215, %c0_46] : memref<328x32xf32, #tpu.memory_space<vmem>>, vector<2x32xf32>
    tpu.vector_store %arg7[%c215, %c0_46], %2 {strides = array<i32>} : memref<328x32xf32, #tpu.memory_space<vmem>>, vector<2x32xf32>,
    %c0_47 = arith.constant 0 : index
    %c176 = arith.constant 176 : index
    %c0_48 = arith.constant 0 : index
    %47 = vector.load %arg1[%c0_47, %c176, %c0_48] : memref<1x256x32xf32, #tpu.memory_space<vmem>>, vector<1x16x32xf32>
    %48 = vector.shape_cast %47 : vector<1x16x32xf32> to vector<16x32xf32>
    %c217 = arith.constant 217 : index
    %c0_49 = arith.constant 0 : index
    %49 = vector.load %arg7[%c217, %c0_49] : memref<328x32xf32, #tpu.memory_space<vmem>>, vector<16x32xf32>
    tpu.vector_store %arg7[%c217, %c0_49], %48 {strides = array<i32>} : memref<328x32xf32, #tpu.memory_space<vmem>>, vector<16x32xf32>,
    %c233 = arith.constant 233 : index
    %c0_50 = arith.constant 0 : index
    %50 = vector.load %arg7[%c233, %c0_50] : memref<328x32xf32, #tpu.memory_space<vmem>>, vector<2x32xf32>
    tpu.vector_store %arg7[%c233, %c0_50], %2 {strides = array<i32>} : memref<328x32xf32, #tpu.memory_space<vmem>>, vector<2x32xf32>,
    %c0_51 = arith.constant 0 : index
    %c192 = arith.constant 192 : index
    %c0_52 = arith.constant 0 : index
    %51 = vector.load %arg1[%c0_51, %c192, %c0_52] : memref<1x256x32xf32, #tpu.memory_space<vmem>>, vector<1x16x32xf32>
    %52 = vector.shape_cast %51 : vector<1x16x32xf32> to vector<16x32xf32>
    %c235 = arith.constant 235 : index
    %c0_53 = arith.constant 0 : index
    %53 = vector.load %arg7[%c235, %c0_53] : memref<328x32xf32, #tpu.memory_space<vmem>>, vector<16x32xf32>
    tpu.vector_store %arg7[%c235, %c0_53], %52 {strides = array<i32>} : memref<328x32xf32, #tpu.memory_space<vmem>>, vector<16x32xf32>,
    %c251 = arith.constant 251 : index
    %c0_54 = arith.constant 0 : index
    %54 = vector.load %arg7[%c251, %c0_54] : memref<328x32xf32, #tpu.memory_space<vmem>>, vector<2x32xf32>
    tpu.vector_store %arg7[%c251, %c0_54], %2 {strides = array<i32>} : memref<328x32xf32, #tpu.memory_space<vmem>>, vector<2x32xf32>,
    %c0_55 = arith.constant 0 : index
    %c208 = arith.constant 208 : index
    %c0_56 = arith.constant 0 : index
    %55 = vector.load %arg1[%c0_55, %c208, %c0_56] : memref<1x256x32xf32, #tpu.memory_space<vmem>>, vector<1x16x32xf32>
    %56 = vector.shape_cast %55 : vector<1x16x32xf32> to vector<16x32xf32>
    %c253 = arith.constant 253 : index
    %c0_57 = arith.constant 0 : index
    %57 = vector.load %arg7[%c253, %c0_57] : memref<328x32xf32, #tpu.memory_space<vmem>>, vector<16x32xf32>
    tpu.vector_store %arg7[%c253, %c0_57], %56 {strides = array<i32>} : memref<328x32xf32, #tpu.memory_space<vmem>>, vector<16x32xf32>,
    %c269 = arith.constant 269 : index
    %c0_58 = arith.constant 0 : index
    %58 = vector.load %arg7[%c269, %c0_58] : memref<328x32xf32, #tpu.memory_space<vmem>>, vector<2x32xf32>
    tpu.vector_store %arg7[%c269, %c0_58], %2 {strides = array<i32>} : memref<328x32xf32, #tpu.memory_space<vmem>>, vector<2x32xf32>,
    %c0_59 = arith.constant 0 : index
    %c224 = arith.constant 224 : index
    %c0_60 = arith.constant 0 : index
    %59 = vector.load %arg1[%c0_59, %c224, %c0_60] : memref<1x256x32xf32, #tpu.memory_space<vmem>>, vector<1x16x32xf32>
    %60 = vector.shape_cast %59 : vector<1x16x32xf32> to vector<16x32xf32>
    %c271 = arith.constant 271 : index
    %c0_61 = arith.constant 0 : index
    %61 = vector.load %arg7[%c271, %c0_61] : memref<328x32xf32, #tpu.memory_space<vmem>>, vector<16x32xf32>
    tpu.vector_store %arg7[%c271, %c0_61], %60 {strides = array<i32>} : memref<328x32xf32, #tpu.memory_space<vmem>>, vector<16x32xf32>,
    %c287 = arith.constant 287 : index
    %c0_62 = arith.constant 0 : index
    %62 = vector.load %arg7[%c287, %c0_62] : memref<328x32xf32, #tpu.memory_space<vmem>>, vector<2x32xf32>
    tpu.vector_store %arg7[%c287, %c0_62], %2 {strides = array<i32>} : memref<328x32xf32, #tpu.memory_space<vmem>>, vector<2x32xf32>,
    %c0_63 = arith.constant 0 : index
    %c240 = arith.constant 240 : index
    %c0_64 = arith.constant 0 : index
    %63 = vector.load %arg1[%c0_63, %c240, %c0_64] : memref<1x256x32xf32, #tpu.memory_space<vmem>>, vector<1x16x32xf32>
    %64 = vector.shape_cast %63 : vector<1x16x32xf32> to vector<16x32xf32>
    %c289 = arith.constant 289 : index
    %c0_65 = arith.constant 0 : index
    %65 = vector.load %arg7[%c289, %c0_65] : memref<328x32xf32, #tpu.memory_space<vmem>>, vector<16x32xf32>
    tpu.vector_store %arg7[%c289, %c0_65], %64 {strides = array<i32>} : memref<328x32xf32, #tpu.memory_space<vmem>>, vector<16x32xf32>,
    %c305 = arith.constant 305 : index
    %c0_66 = arith.constant 0 : index
    %66 = vector.load %arg7[%c305, %c0_66] : memref<328x32xf32, #tpu.memory_space<vmem>>, vector<2x32xf32>
    tpu.vector_store %arg7[%c305, %c0_66], %2 {strides = array<i32>} : memref<328x32xf32, #tpu.memory_space<vmem>>, vector<2x32xf32>,
    %cst_67 = arith.constant 0.000000e+00 : f32
    %67 = vector.broadcast %cst_67 : f32 to vector<17x32xf32>
    %c307 = arith.constant 307 : index
    %c0_68 = arith.constant 0 : index
    %68 = vector.load %arg7[%c307, %c0_68] : memref<328x32xf32, #tpu.memory_space<vmem>>, vector<17x32xf32>
    tpu.vector_store %arg7[%c307, %c0_68], %67 {strides = array<i32>} : memref<328x32xf32, #tpu.memory_space<vmem>>, vector<17x32xf32>,
    %c0_69 = arith.constant 0 : index
    %c0_70 = arith.constant 0 : index
    %69 = vector.load %arg7[%c0_69, %c0_70] : memref<328x32xf32, #tpu.memory_space<vmem>>, vector<286x32xf32>
    %c0_71 = arith.constant 0 : index
    %c0_72 = arith.constant 0 : index
    %c0_73 = arith.constant 0 : index
    %70 = vector.load %arg2[%c0_71, %c0_72, %c0_73] : memref<9x32x128xf32, #tpu.memory_space<vmem>>, vector<1x32x128xf32>
    %71 = vector.shape_cast %70 : vector<1x32x128xf32> to vector<32x128xf32>
    %cst_74 = arith.constant dense<0.000000e+00> : vector<286x128xf32>
    %72 = tpu.matmul %69, %71, %cst_74 {dimension_numbers = #tpu.dot_dimension_numbers<[1], [0], [0], [1], [0, 0, 1, 1], [], []>} : vector<286x32xf32>, vector<32x128xf32>, vector<286x128xf32> -> vector<286x128xf32>
    %c1 = arith.constant 1 : index
    %c0_75 = arith.constant 0 : index
    %73 = vector.load %arg7[%c1, %c0_75] : memref<328x32xf32, #tpu.memory_space<vmem>>, vector<286x32xf32>
    %c1_76 = arith.constant 1 : index
    %c0_77 = arith.constant 0 : index
    %c0_78 = arith.constant 0 : index
    %74 = vector.load %arg2[%c1_76, %c0_77, %c0_78] : memref<9x32x128xf32, #tpu.memory_space<vmem>>, vector<1x32x128xf32>
    %75 = vector.shape_cast %74 : vector<1x32x128xf32> to vector<32x128xf32>
    %cst_79 = arith.constant dense<0.000000e+00> : vector<286x128xf32>
    %76 = tpu.matmul %73, %75, %cst_79 {dimension_numbers = #tpu.dot_dimension_numbers<[1], [0], [0], [1], [0, 0, 1, 1], [], []>} : vector<286x32xf32>, vector<32x128xf32>, vector<286x128xf32> -> vector<286x128xf32>
    %77 = arith.addf %72, %76 : vector<286x128xf32>
    %c2 = arith.constant 2 : index
    %c0_80 = arith.constant 0 : index
    %78 = vector.load %arg7[%c2, %c0_80] : memref<328x32xf32, #tpu.memory_space<vmem>>, vector<286x32xf32>
    %c2_81 = arith.constant 2 : index
    %c0_82 = arith.constant 0 : index
    %c0_83 = arith.constant 0 : index
    %79 = vector.load %arg2[%c2_81, %c0_82, %c0_83] : memref<9x32x128xf32, #tpu.memory_space<vmem>>, vector<1x32x128xf32>
    %80 = vector.shape_cast %79 : vector<1x32x128xf32> to vector<32x128xf32>
    %cst_84 = arith.constant dense<0.000000e+00> : vector<286x128xf32>
    %81 = tpu.matmul %78, %80, %cst_84 {dimension_numbers = #tpu.dot_dimension_numbers<[1], [0], [0], [1], [0, 0, 1, 1], [], []>} : vector<286x32xf32>, vector<32x128xf32>, vector<286x128xf32> -> vector<286x128xf32>
    %82 = arith.addf %77, %81 : vector<286x128xf32>
    %c18 = arith.constant 18 : index
    %c0_85 = arith.constant 0 : index
    %83 = vector.load %arg7[%c18, %c0_85] : memref<328x32xf32, #tpu.memory_space<vmem>>, vector<286x32xf32>
    %c3 = arith.constant 3 : index
    %c0_86 = arith.constant 0 : index
    %c0_87 = arith.constant 0 : index
    %84 = vector.load %arg2[%c3, %c0_86, %c0_87] : memref<9x32x128xf32, #tpu.memory_space<vmem>>, vector<1x32x128xf32>
    %85 = vector.shape_cast %84 : vector<1x32x128xf32> to vector<32x128xf32>
    %cst_88 = arith.constant dense<0.000000e+00> : vector<286x128xf32>
    %86 = tpu.matmul %83, %85, %cst_88 {dimension_numbers = #tpu.dot_dimension_numbers<[1], [0], [0], [1], [0, 0, 1, 1], [], []>} : vector<286x32xf32>, vector<32x128xf32>, vector<286x128xf32> -> vector<286x128xf32>
    %87 = arith.addf %82, %86 : vector<286x128xf32>
    %c19_89 = arith.constant 19 : index
    %c0_90 = arith.constant 0 : index
    %88 = vector.load %arg7[%c19_89, %c0_90] : memref<328x32xf32, #tpu.memory_space<vmem>>, vector<286x32xf32>
    %c4 = arith.constant 4 : index
    %c0_91 = arith.constant 0 : index
    %c0_92 = arith.constant 0 : index
    %89 = vector.load %arg2[%c4, %c0_91, %c0_92] : memref<9x32x128xf32, #tpu.memory_space<vmem>>, vector<1x32x128xf32>
    %90 = vector.shape_cast %89 : vector<1x32x128xf32> to vector<32x128xf32>
    %cst_93 = arith.constant dense<0.000000e+00> : vector<286x128xf32>
    %91 = tpu.matmul %88, %90, %cst_93 {dimension_numbers = #tpu.dot_dimension_numbers<[1], [0], [0], [1], [0, 0, 1, 1], [], []>} : vector<286x32xf32>, vector<32x128xf32>, vector<286x128xf32> -> vector<286x128xf32>
    %92 = arith.addf %87, %91 : vector<286x128xf32>
    %c20 = arith.constant 20 : index
    %c0_94 = arith.constant 0 : index
    %93 = vector.load %arg7[%c20, %c0_94] : memref<328x32xf32, #tpu.memory_space<vmem>>, vector<286x32xf32>
    %c5 = arith.constant 5 : index
    %c0_95 = arith.constant 0 : index
    %c0_96 = arith.constant 0 : index
    %94 = vector.load %arg2[%c5, %c0_95, %c0_96] : memref<9x32x128xf32, #tpu.memory_space<vmem>>, vector<1x32x128xf32>
    %95 = vector.shape_cast %94 : vector<1x32x128xf32> to vector<32x128xf32>
    %cst_97 = arith.constant dense<0.000000e+00> : vector<286x128xf32>
    %96 = tpu.matmul %93, %95, %cst_97 {dimension_numbers = #tpu.dot_dimension_numbers<[1], [0], [0], [1], [0, 0, 1, 1], [], []>} : vector<286x32xf32>, vector<32x128xf32>, vector<286x128xf32> -> vector<286x128xf32>
    %97 = arith.addf %92, %96 : vector<286x128xf32>
    %c36 = arith.constant 36 : index
    %c0_98 = arith.constant 0 : index
    %98 = vector.load %arg7[%c36, %c0_98] : memref<328x32xf32, #tpu.memory_space<vmem>>, vector<286x32xf32>
    %c6 = arith.constant 6 : index
    %c0_99 = arith.constant 0 : index
    %c0_100 = arith.constant 0 : index
    %99 = vector.load %arg2[%c6, %c0_99, %c0_100] : memref<9x32x128xf32, #tpu.memory_space<vmem>>, vector<1x32x128xf32>
    %100 = vector.shape_cast %99 : vector<1x32x128xf32> to vector<32x128xf32>
    %cst_101 = arith.constant dense<0.000000e+00> : vector<286x128xf32>
    %101 = tpu.matmul %98, %100, %cst_101 {dimension_numbers = #tpu.dot_dimension_numbers<[1], [0], [0], [1], [0, 0, 1, 1], [], []>} : vector<286x32xf32>, vector<32x128xf32>, vector<286x128xf32> -> vector<286x128xf32>
    %102 = arith.addf %97, %101 : vector<286x128xf32>
    %c37_102 = arith.constant 37 : index
    %c0_103 = arith.constant 0 : index
    %103 = vector.load %arg7[%c37_102, %c0_103] : memref<328x32xf32, #tpu.memory_space<vmem>>, vector<286x32xf32>
    %c7 = arith.constant 7 : index
    %c0_104 = arith.constant 0 : index
    %c0_105 = arith.constant 0 : index
    %104 = vector.load %arg2[%c7, %c0_104, %c0_105] : memref<9x32x128xf32, #tpu.memory_space<vmem>>, vector<1x32x128xf32>
    %105 = vector.shape_cast %104 : vector<1x32x128xf32> to vector<32x128xf32>
    %cst_106 = arith.constant dense<0.000000e+00> : vector<286x128xf32>
    %106 = tpu.matmul %103, %105, %cst_106 {dimension_numbers = #tpu.dot_dimension_numbers<[1], [0], [0], [1], [0, 0, 1, 1], [], []>} : vector<286x32xf32>, vector<32x128xf32>, vector<286x128xf32> -> vector<286x128xf32>
    %107 = arith.addf %102, %106 : vector<286x128xf32>
    %c38 = arith.constant 38 : index
    %c0_107 = arith.constant 0 : index
    %108 = vector.load %arg7[%c38, %c0_107] : memref<328x32xf32, #tpu.memory_space<vmem>>, vector<286x32xf32>
    %c8 = arith.constant 8 : index
    %c0_108 = arith.constant 0 : index
    %c0_109 = arith.constant 0 : index
    %109 = vector.load %arg2[%c8, %c0_108, %c0_109] : memref<9x32x128xf32, #tpu.memory_space<vmem>>, vector<1x32x128xf32>
    %110 = vector.shape_cast %109 : vector<1x32x128xf32> to vector<32x128xf32>
    %cst_110 = arith.constant dense<0.000000e+00> : vector<286x128xf32>
    %111 = tpu.matmul %108, %110, %cst_110 {dimension_numbers = #tpu.dot_dimension_numbers<[1], [0], [0], [1], [0, 0, 1, 1], [], []>} : vector<286x32xf32>, vector<32x128xf32>, vector<286x128xf32> -> vector<286x128xf32>
    %112 = arith.addf %107, %111 : vector<286x128xf32>
    %c0_111 = arith.constant 0 : index
    %c0_112 = arith.constant 0 : index
    %113 = vector.load %arg3[%c0_111, %c0_112] : memref<1x128xf32, #tpu.memory_space<vmem>>, vector<1x128xf32>
    %114 = vector.broadcast %113 : vector<1x128xf32> to vector<286x128xf32>
    %115 = arith.addf %112, %114 : vector<286x128xf32>
    %cst_113 = arith.constant 0.000000e+00 : f32
    %116 = vector.broadcast %cst_113 : f32 to vector<286x128xf32>
    %117 = arith.cmpf oge, %115, %116 : vector<286x128xf32>
    %cst_114 = arith.constant 0.00999999977 : f32
    %118 = vector.broadcast %cst_114 : f32 to vector<286x128xf32>
    %119 = arith.mulf %118, %115 : vector<286x128xf32>
    %120 = arith.select %117, %115, %119 : vector<286x128xi1>, vector<286x128xf32>
    %c0_115 = arith.constant 0 : index
    %c0_116 = arith.constant 0 : index
    %121 = vector.load %arg9[%c0_115, %c0_116] : memref<288x128xf32, #tpu.memory_space<vmem>>, vector<286x128xf32>
    tpu.vector_store %arg9[%c0_115, %c0_116], %120 {strides = array<i32>} : memref<288x128xf32, #tpu.memory_space<vmem>>, vector<286x128xf32>,
    %cst_117 = arith.constant 0.000000e+00 : f32
    %122 = vector.broadcast %cst_117 : f32 to vector<19x128xf32>
    %c0_118 = arith.constant 0 : index
    %c0_119 = arith.constant 0 : index
    %123 = vector.load %arg8[%c0_118, %c0_119] : memref<328x128xf32, #tpu.memory_space<vmem>>, vector<19x128xf32>
    tpu.vector_store %arg8[%c0_118, %c0_119], %122 {strides = array<i32>} : memref<328x128xf32, #tpu.memory_space<vmem>>, vector<19x128xf32>,
    %cst_120 = arith.constant 0.000000e+00 : f32
    %124 = vector.broadcast %cst_120 : f32 to vector<2x128xf32>
    %c0_121 = arith.constant 0 : index
    %c0_122 = arith.constant 0 : index
    %125 = vector.load %arg9[%c0_121, %c0_122] : memref<288x128xf32, #tpu.memory_space<vmem>>, vector<16x128xf32>
    %c19_123 = arith.constant 19 : index
    %c0_124 = arith.constant 0 : index
    %126 = vector.load %arg8[%c19_123, %c0_124] : memref<328x128xf32, #tpu.memory_space<vmem>>, vector<16x128xf32>
    tpu.vector_store %arg8[%c19_123, %c0_124], %125 {strides = array<i32>} : memref<328x128xf32, #tpu.memory_space<vmem>>, vector<16x128xf32>,
    %c35_125 = arith.constant 35 : index
    %c0_126 = arith.constant 0 : index
    %127 = vector.load %arg8[%c35_125, %c0_126] : memref<328x128xf32, #tpu.memory_space<vmem>>, vector<2x128xf32>
    tpu.vector_store %arg8[%c35_125, %c0_126], %124 {strides = array<i32>} : memref<328x128xf32, #tpu.memory_space<vmem>>, vector<2x128xf32>,
    %c18_127 = arith.constant 18 : index
    %c0_128 = arith.constant 0 : index
    %128 = vector.load %arg9[%c18_127, %c0_128] : memref<288x128xf32, #tpu.memory_space<vmem>>, vector<16x128xf32>
    %c37_129 = arith.constant 37 : index
    %c0_130 = arith.constant 0 : index
    %129 = vector.load %arg8[%c37_129, %c0_130] : memref<328x128xf32, #tpu.memory_space<vmem>>, vector<16x128xf32>
    tpu.vector_store %arg8[%c37_129, %c0_130], %128 {strides = array<i32>} : memref<328x128xf32, #tpu.memory_space<vmem>>, vector<16x128xf32>,
    %c53_131 = arith.constant 53 : index
    %c0_132 = arith.constant 0 : index
    %130 = vector.load %arg8[%c53_131, %c0_132] : memref<328x128xf32, #tpu.memory_space<vmem>>, vector<2x128xf32>
    tpu.vector_store %arg8[%c53_131, %c0_132], %124 {strides = array<i32>} : memref<328x128xf32, #tpu.memory_space<vmem>>, vector<2x128xf32>,
    %c36_133 = arith.constant 36 : index
    %c0_134 = arith.constant 0 : index
    %131 = vector.load %arg9[%c36_133, %c0_134] : memref<288x128xf32, #tpu.memory_space<vmem>>, vector<16x128xf32>
    %c55_135 = arith.constant 55 : index
    %c0_136 = arith.constant 0 : index
    %132 = vector.load %arg8[%c55_135, %c0_136] : memref<328x128xf32, #tpu.memory_space<vmem>>, vector<16x128xf32>
    tpu.vector_store %arg8[%c55_135, %c0_136], %131 {strides = array<i32>} : memref<328x128xf32, #tpu.memory_space<vmem>>, vector<16x128xf32>,
    %c71_137 = arith.constant 71 : index
    %c0_138 = arith.constant 0 : index
    %133 = vector.load %arg8[%c71_137, %c0_138] : memref<328x128xf32, #tpu.memory_space<vmem>>, vector<2x128xf32>
    tpu.vector_store %arg8[%c71_137, %c0_138], %124 {strides = array<i32>} : memref<328x128xf32, #tpu.memory_space<vmem>>, vector<2x128xf32>,
    %c54 = arith.constant 54 : index
    %c0_139 = arith.constant 0 : index
    %134 = vector.load %arg9[%c54, %c0_139] : memref<288x128xf32, #tpu.memory_space<vmem>>, vector<16x128xf32>
    %c73_140 = arith.constant 73 : index
    %c0_141 = arith.constant 0 : index
    %135 = vector.load %arg8[%c73_140, %c0_141] : memref<328x128xf32, #tpu.memory_space<vmem>>, vector<16x128xf32>
    tpu.vector_store %arg8[%c73_140, %c0_141], %134 {strides = array<i32>} : memref<328x128xf32, #tpu.memory_space<vmem>>, vector<16x128xf32>,
    %c89_142 = arith.constant 89 : index
    %c0_143 = arith.constant 0 : index
    %136 = vector.load %arg8[%c89_142, %c0_143] : memref<328x128xf32, #tpu.memory_space<vmem>>, vector<2x128xf32>
    tpu.vector_store %arg8[%c89_142, %c0_143], %124 {strides = array<i32>} : memref<328x128xf32, #tpu.memory_space<vmem>>, vector<2x128xf32>,
    %c72 = arith.constant 72 : index
    %c0_144 = arith.constant 0 : index
    %137 = vector.load %arg9[%c72, %c0_144] : memref<288x128xf32, #tpu.memory_space<vmem>>, vector<16x128xf32>
    %c91_145 = arith.constant 91 : index
    %c0_146 = arith.constant 0 : index
    %138 = vector.load %arg8[%c91_145, %c0_146] : memref<328x128xf32, #tpu.memory_space<vmem>>, vector<16x128xf32>
    tpu.vector_store %arg8[%c91_145, %c0_146], %137 {strides = array<i32>} : memref<328x128xf32, #tpu.memory_space<vmem>>, vector<16x128xf32>,
    %c107_147 = arith.constant 107 : index
    %c0_148 = arith.constant 0 : index
    %139 = vector.load %arg8[%c107_147, %c0_148] : memref<328x128xf32, #tpu.memory_space<vmem>>, vector<2x128xf32>
    tpu.vector_store %arg8[%c107_147, %c0_148], %124 {strides = array<i32>} : memref<328x128xf32, #tpu.memory_space<vmem>>, vector<2x128xf32>,
    %c90 = arith.constant 90 : index
    %c0_149 = arith.constant 0 : index
    %140 = vector.load %arg9[%c90, %c0_149] : memref<288x128xf32, #tpu.memory_space<vmem>>, vector<16x128xf32>
    %c109_150 = arith.constant 109 : index
    %c0_151 = arith.constant 0 : index
    %141 = vector.load %arg8[%c109_150, %c0_151] : memref<328x128xf32, #tpu.memory_space<vmem>>, vector<16x128xf32>
    tpu.vector_store %arg8[%c109_150, %c0_151], %140 {strides = array<i32>} : memref<328x128xf32, #tpu.memory_space<vmem>>, vector<16x128xf32>,
    %c125_152 = arith.constant 125 : index
    %c0_153 = arith.constant 0 : index
    %142 = vector.load %arg8[%c125_152, %c0_153] : memref<328x128xf32, #tpu.memory_space<vmem>>, vector<2x128xf32>
    tpu.vector_store %arg8[%c125_152, %c0_153], %124 {strides = array<i32>} : memref<328x128xf32, #tpu.memory_space<vmem>>, vector<2x128xf32>,
    %c108 = arith.constant 108 : index
    %c0_154 = arith.constant 0 : index
    %143 = vector.load %arg9[%c108, %c0_154] : memref<288x128xf32, #tpu.memory_space<vmem>>, vector<16x128xf32>
    %c127_155 = arith.constant 127 : index
    %c0_156 = arith.constant 0 : index
    %144 = vector.load %arg8[%c127_155, %c0_156] : memref<328x128xf32, #tpu.memory_space<vmem>>, vector<16x128xf32>
    tpu.vector_store %arg8[%c127_155, %c0_156], %143 {strides = array<i32>} : memref<328x128xf32, #tpu.memory_space<vmem>>, vector<16x128xf32>,
    %c143_157 = arith.constant 143 : index
    %c0_158 = arith.constant 0 : index
    %145 = vector.load %arg8[%c143_157, %c0_158] : memref<328x128xf32, #tpu.memory_space<vmem>>, vector<2x128xf32>
    tpu.vector_store %arg8[%c143_157, %c0_158], %124 {strides = array<i32>} : memref<328x128xf32, #tpu.memory_space<vmem>>, vector<2x128xf32>,
    %c126 = arith.constant 126 : index
    %c0_159 = arith.constant 0 : index
    %146 = vector.load %arg9[%c126, %c0_159] : memref<288x128xf32, #tpu.memory_space<vmem>>, vector<16x128xf32>
    %c145_160 = arith.constant 145 : index
    %c0_161 = arith.constant 0 : index
    %147 = vector.load %arg8[%c145_160, %c0_161] : memref<328x128xf32, #tpu.memory_space<vmem>>, vector<16x128xf32>
    tpu.vector_store %arg8[%c145_160, %c0_161], %146 {strides = array<i32>} : memref<328x128xf32, #tpu.memory_space<vmem>>, vector<16x128xf32>,
    %c161_162 = arith.constant 161 : index
    %c0_163 = arith.constant 0 : index
    %148 = vector.load %arg8[%c161_162, %c0_163] : memref<328x128xf32, #tpu.memory_space<vmem>>, vector<2x128xf32>
    tpu.vector_store %arg8[%c161_162, %c0_163], %124 {strides = array<i32>} : memref<328x128xf32, #tpu.memory_space<vmem>>, vector<2x128xf32>,
    %c144_164 = arith.constant 144 : index
    %c0_165 = arith.constant 0 : index
    %149 = vector.load %arg9[%c144_164, %c0_165] : memref<288x128xf32, #tpu.memory_space<vmem>>, vector<16x128xf32>
    %c163_166 = arith.constant 163 : index
    %c0_167 = arith.constant 0 : index
    %150 = vector.load %arg8[%c163_166, %c0_167] : memref<328x128xf32, #tpu.memory_space<vmem>>, vector<16x128xf32>
    tpu.vector_store %arg8[%c163_166, %c0_167], %149 {strides = array<i32>} : memref<328x128xf32, #tpu.memory_space<vmem>>, vector<16x128xf32>,
    %c179_168 = arith.constant 179 : index
    %c0_169 = arith.constant 0 : index
    %151 = vector.load %arg8[%c179_168, %c0_169] : memref<328x128xf32, #tpu.memory_space<vmem>>, vector<2x128xf32>
    tpu.vector_store %arg8[%c179_168, %c0_169], %124 {strides = array<i32>} : memref<328x128xf32, #tpu.memory_space<vmem>>, vector<2x128xf32>,
    %c162 = arith.constant 162 : index
    %c0_170 = arith.constant 0 : index
    %152 = vector.load %arg9[%c162, %c0_170] : memref<288x128xf32, #tpu.memory_space<vmem>>, vector<16x128xf32>
    %c181_171 = arith.constant 181 : index
    %c0_172 = arith.constant 0 : index
    %153 = vector.load %arg8[%c181_171, %c0_172] : memref<328x128xf32, #tpu.memory_space<vmem>>, vector<16x128xf32>
    tpu.vector_store %arg8[%c181_171, %c0_172], %152 {strides = array<i32>} : memref<328x128xf32, #tpu.memory_space<vmem>>, vector<16x128xf32>,
    %c197_173 = arith.constant 197 : index
    %c0_174 = arith.constant 0 : index
    %154 = vector.load %arg8[%c197_173, %c0_174] : memref<328x128xf32, #tpu.memory_space<vmem>>, vector<2x128xf32>
    tpu.vector_store %arg8[%c197_173, %c0_174], %124 {strides = array<i32>} : memref<328x128xf32, #tpu.memory_space<vmem>>, vector<2x128xf32>,
    %c180 = arith.constant 180 : index
    %c0_175 = arith.constant 0 : index
    %155 = vector.load %arg9[%c180, %c0_175] : memref<288x128xf32, #tpu.memory_space<vmem>>, vector<16x128xf32>
    %c199_176 = arith.constant 199 : index
    %c0_177 = arith.constant 0 : index
    %156 = vector.load %arg8[%c199_176, %c0_177] : memref<328x128xf32, #tpu.memory_space<vmem>>, vector<16x128xf32>
    tpu.vector_store %arg8[%c199_176, %c0_177], %155 {strides = array<i32>} : memref<328x128xf32, #tpu.memory_space<vmem>>, vector<16x128xf32>,
    %c215_178 = arith.constant 215 : index
    %c0_179 = arith.constant 0 : index
    %157 = vector.load %arg8[%c215_178, %c0_179] : memref<328x128xf32, #tpu.memory_space<vmem>>, vector<2x128xf32>
    tpu.vector_store %arg8[%c215_178, %c0_179], %124 {strides = array<i32>} : memref<328x128xf32, #tpu.memory_space<vmem>>, vector<2x128xf32>,
    %c198 = arith.constant 198 : index
    %c0_180 = arith.constant 0 : index
    %158 = vector.load %arg9[%c198, %c0_180] : memref<288x128xf32, #tpu.memory_space<vmem>>, vector<16x128xf32>
    %c217_181 = arith.constant 217 : index
    %c0_182 = arith.constant 0 : index
    %159 = vector.load %arg8[%c217_181, %c0_182] : memref<328x128xf32, #tpu.memory_space<vmem>>, vector<16x128xf32>
    tpu.vector_store %arg8[%c217_181, %c0_182], %158 {strides = array<i32>} : memref<328x128xf32, #tpu.memory_space<vmem>>, vector<16x128xf32>,
    %c233_183 = arith.constant 233 : index
    %c0_184 = arith.constant 0 : index
    %160 = vector.load %arg8[%c233_183, %c0_184] : memref<328x128xf32, #tpu.memory_space<vmem>>, vector<2x128xf32>
    tpu.vector_store %arg8[%c233_183, %c0_184], %124 {strides = array<i32>} : memref<328x128xf32, #tpu.memory_space<vmem>>, vector<2x128xf32>,
    %c216 = arith.constant 216 : index
    %c0_185 = arith.constant 0 : index
    %161 = vector.load %arg9[%c216, %c0_185] : memref<288x128xf32, #tpu.memory_space<vmem>>, vector<16x128xf32>
    %c235_186 = arith.constant 235 : index
    %c0_187 = arith.constant 0 : index
    %162 = vector.load %arg8[%c235_186, %c0_187] : memref<328x128xf32, #tpu.memory_space<vmem>>, vector<16x128xf32>
    tpu.vector_store %arg8[%c235_186, %c0_187], %161 {strides = array<i32>} : memref<328x128xf32, #tpu.memory_space<vmem>>, vector<16x128xf32>,
    %c251_188 = arith.constant 251 : index
    %c0_189 = arith.constant 0 : index
    %163 = vector.load %arg8[%c251_188, %c0_189] : memref<328x128xf32, #tpu.memory_space<vmem>>, vector<2x128xf32>
    tpu.vector_store %arg8[%c251_188, %c0_189], %124 {strides = array<i32>} : memref<328x128xf32, #tpu.memory_space<vmem>>, vector<2x128xf32>,
    %c234 = arith.constant 234 : index
    %c0_190 = arith.constant 0 : index
    %164 = vector.load %arg9[%c234, %c0_190] : memref<288x128xf32, #tpu.memory_space<vmem>>, vector<16x128xf32>
    %c253_191 = arith.constant 253 : index
    %c0_192 = arith.constant 0 : index
    %165 = vector.load %arg8[%c253_191, %c0_192] : memref<328x128xf32, #tpu.memory_space<vmem>>, vector<16x128xf32>
    tpu.vector_store %arg8[%c253_191, %c0_192], %164 {strides = array<i32>} : memref<328x128xf32, #tpu.memory_space<vmem>>, vector<16x128xf32>,
    %c269_193 = arith.constant 269 : index
    %c0_194 = arith.constant 0 : index
    %166 = vector.load %arg8[%c269_193, %c0_194] : memref<328x128xf32, #tpu.memory_space<vmem>>, vector<2x128xf32>
    tpu.vector_store %arg8[%c269_193, %c0_194], %124 {strides = array<i32>} : memref<328x128xf32, #tpu.memory_space<vmem>>, vector<2x128xf32>,
    %c252 = arith.constant 252 : index
    %c0_195 = arith.constant 0 : index
    %167 = vector.load %arg9[%c252, %c0_195] : memref<288x128xf32, #tpu.memory_space<vmem>>, vector<16x128xf32>
    %c271_196 = arith.constant 271 : index
    %c0_197 = arith.constant 0 : index
    %168 = vector.load %arg8[%c271_196, %c0_197] : memref<328x128xf32, #tpu.memory_space<vmem>>, vector<16x128xf32>
    tpu.vector_store %arg8[%c271_196, %c0_197], %167 {strides = array<i32>} : memref<328x128xf32, #tpu.memory_space<vmem>>, vector<16x128xf32>,
    %c287_198 = arith.constant 287 : index
    %c0_199 = arith.constant 0 : index
    %169 = vector.load %arg8[%c287_198, %c0_199] : memref<328x128xf32, #tpu.memory_space<vmem>>, vector<2x128xf32>
    tpu.vector_store %arg8[%c287_198, %c0_199], %124 {strides = array<i32>} : memref<328x128xf32, #tpu.memory_space<vmem>>, vector<2x128xf32>,
    %c270 = arith.constant 270 : index
    %c0_200 = arith.constant 0 : index
    %170 = vector.load %arg9[%c270, %c0_200] : memref<288x128xf32, #tpu.memory_space<vmem>>, vector<16x128xf32>
    %c289_201 = arith.constant 289 : index
    %c0_202 = arith.constant 0 : index
    %171 = vector.load %arg8[%c289_201, %c0_202] : memref<328x128xf32, #tpu.memory_space<vmem>>, vector<16x128xf32>
    tpu.vector_store %arg8[%c289_201, %c0_202], %170 {strides = array<i32>} : memref<328x128xf32, #tpu.memory_space<vmem>>, vector<16x128xf32>,
    %c305_203 = arith.constant 305 : index
    %c0_204 = arith.constant 0 : index
    %172 = vector.load %arg8[%c305_203, %c0_204] : memref<328x128xf32, #tpu.memory_space<vmem>>, vector<2x128xf32>
    tpu.vector_store %arg8[%c305_203, %c0_204], %124 {strides = array<i32>} : memref<328x128xf32, #tpu.memory_space<vmem>>, vector<2x128xf32>,
    %cst_205 = arith.constant 0.000000e+00 : f32
    %173 = vector.broadcast %cst_205 : f32 to vector<17x128xf32>
    %c307_206 = arith.constant 307 : index
    %c0_207 = arith.constant 0 : index
    %174 = vector.load %arg8[%c307_206, %c0_207] : memref<328x128xf32, #tpu.memory_space<vmem>>, vector<17x128xf32>
    tpu.vector_store %arg8[%c307_206, %c0_207], %173 {strides = array<i32>} : memref<328x128xf32, #tpu.memory_space<vmem>>, vector<17x128xf32>,
    %c0_208 = arith.constant 0 : index
    %c0_209 = arith.constant 0 : index
    %175 = vector.load %arg8[%c0_208, %c0_209] : memref<328x128xf32, #tpu.memory_space<vmem>>, vector<286x128xf32>
    %c0_210 = arith.constant 0 : index
    %c0_211 = arith.constant 0 : index
    %c0_212 = arith.constant 0 : index
    %176 = vector.load %arg4[%c0_210, %c0_211, %c0_212] : memref<9x128x128xf32, #tpu.memory_space<vmem>>, vector<1x128x128xf32>
    %177 = vector.shape_cast %176 : vector<1x128x128xf32> to vector<128x128xf32>
    %cst_213 = arith.constant dense<0.000000e+00> : vector<286x128xf32>
    %178 = tpu.matmul %175, %177, %cst_213 {dimension_numbers = #tpu.dot_dimension_numbers<[1], [0], [0], [1], [0, 0, 1, 1], [], []>} : vector<286x128xf32>, vector<128x128xf32>, vector<286x128xf32> -> vector<286x128xf32>
    %c1_214 = arith.constant 1 : index
    %c0_215 = arith.constant 0 : index
    %179 = vector.load %arg8[%c1_214, %c0_215] : memref<328x128xf32, #tpu.memory_space<vmem>>, vector<286x128xf32>
    %c1_216 = arith.constant 1 : index
    %c0_217 = arith.constant 0 : index
    %c0_218 = arith.constant 0 : index
    %180 = vector.load %arg4[%c1_216, %c0_217, %c0_218] : memref<9x128x128xf32, #tpu.memory_space<vmem>>, vector<1x128x128xf32>
    %181 = vector.shape_cast %180 : vector<1x128x128xf32> to vector<128x128xf32>
    %cst_219 = arith.constant dense<0.000000e+00> : vector<286x128xf32>
    %182 = tpu.matmul %179, %181, %cst_219 {dimension_numbers = #tpu.dot_dimension_numbers<[1], [0], [0], [1], [0, 0, 1, 1], [], []>} : vector<286x128xf32>, vector<128x128xf32>, vector<286x128xf32> -> vector<286x128xf32>
    %183 = arith.addf %178, %182 : vector<286x128xf32>
    %c2_220 = arith.constant 2 : index
    %c0_221 = arith.constant 0 : index
    %184 = vector.load %arg8[%c2_220, %c0_221] : memref<328x128xf32, #tpu.memory_space<vmem>>, vector<286x128xf32>
    %c2_222 = arith.constant 2 : index
    %c0_223 = arith.constant 0 : index
    %c0_224 = arith.constant 0 : index
    %185 = vector.load %arg4[%c2_222, %c0_223, %c0_224] : memref<9x128x128xf32, #tpu.memory_space<vmem>>, vector<1x128x128xf32>
    %186 = vector.shape_cast %185 : vector<1x128x128xf32> to vector<128x128xf32>
    %cst_225 = arith.constant dense<0.000000e+00> : vector<286x128xf32>
    %187 = tpu.matmul %184, %186, %cst_225 {dimension_numbers = #tpu.dot_dimension_numbers<[1], [0], [0], [1], [0, 0, 1, 1], [], []>} : vector<286x128xf32>, vector<128x128xf32>, vector<286x128xf32> -> vector<286x128xf32>
    %188 = arith.addf %183, %187 : vector<286x128xf32>
    %c18_226 = arith.constant 18 : index
    %c0_227 = arith.constant 0 : index
    %189 = vector.load %arg8[%c18_226, %c0_227] : memref<328x128xf32, #tpu.memory_space<vmem>>, vector<286x128xf32>
    %c3_228 = arith.constant 3 : index
    %c0_229 = arith.constant 0 : index
    %c0_230 = arith.constant 0 : index
    %190 = vector.load %arg4[%c3_228, %c0_229, %c0_230] : memref<9x128x128xf32, #tpu.memory_space<vmem>>, vector<1x128x128xf32>
    %191 = vector.shape_cast %190 : vector<1x128x128xf32> to vector<128x128xf32>
    %cst_231 = arith.constant dense<0.000000e+00> : vector<286x128xf32>
    %192 = tpu.matmul %189, %191, %cst_231 {dimension_numbers = #tpu.dot_dimension_numbers<[1], [0], [0], [1], [0, 0, 1, 1], [], []>} : vector<286x128xf32>, vector<128x128xf32>, vector<286x128xf32> -> vector<286x128xf32>
    %193 = arith.addf %188, %192 : vector<286x128xf32>
    %c19_232 = arith.constant 19 : index
    %c0_233 = arith.constant 0 : index
    %194 = vector.load %arg8[%c19_232, %c0_233] : memref<328x128xf32, #tpu.memory_space<vmem>>, vector<286x128xf32>
    %c4_234 = arith.constant 4 : index
    %c0_235 = arith.constant 0 : index
    %c0_236 = arith.constant 0 : index
    %195 = vector.load %arg4[%c4_234, %c0_235, %c0_236] : memref<9x128x128xf32, #tpu.memory_space<vmem>>, vector<1x128x128xf32>
    %196 = vector.shape_cast %195 : vector<1x128x128xf32> to vector<128x128xf32>
    %cst_237 = arith.constant dense<0.000000e+00> : vector<286x128xf32>
    %197 = tpu.matmul %194, %196, %cst_237 {dimension_numbers = #tpu.dot_dimension_numbers<[1], [0], [0], [1], [0, 0, 1, 1], [], []>} : vector<286x128xf32>, vector<128x128xf32>, vector<286x128xf32> -> vector<286x128xf32>
    %198 = arith.addf %193, %197 : vector<286x128xf32>
    %c20_238 = arith.constant 20 : index
    %c0_239 = arith.constant 0 : index
    %199 = vector.load %arg8[%c20_238, %c0_239] : memref<328x128xf32, #tpu.memory_space<vmem>>, vector<286x128xf32>
    %c5_240 = arith.constant 5 : index
    %c0_241 = arith.constant 0 : index
    %c0_242 = arith.constant 0 : index
    %200 = vector.load %arg4[%c5_240, %c0_241, %c0_242] : memref<9x128x128xf32, #tpu.memory_space<vmem>>, vector<1x128x128xf32>
    %201 = vector.shape_cast %200 : vector<1x128x128xf32> to vector<128x128xf32>
    %cst_243 = arith.constant dense<0.000000e+00> : vector<286x128xf32>
    %202 = tpu.matmul %199, %201, %cst_243 {dimension_numbers = #tpu.dot_dimension_numbers<[1], [0], [0], [1], [0, 0, 1, 1], [], []>} : vector<286x128xf32>, vector<128x128xf32>, vector<286x128xf32> -> vector<286x128xf32>
    %203 = arith.addf %198, %202 : vector<286x128xf32>
    %c36_244 = arith.constant 36 : index
    %c0_245 = arith.constant 0 : index
    %204 = vector.load %arg8[%c36_244, %c0_245] : memref<328x128xf32, #tpu.memory_space<vmem>>, vector<286x128xf32>
    %c6_246 = arith.constant 6 : index
    %c0_247 = arith.constant 0 : index
    %c0_248 = arith.constant 0 : index
    %205 = vector.load %arg4[%c6_246, %c0_247, %c0_248] : memref<9x128x128xf32, #tpu.memory_space<vmem>>, vector<1x128x128xf32>
    %206 = vector.shape_cast %205 : vector<1x128x128xf32> to vector<128x128xf32>
    %cst_249 = arith.constant dense<0.000000e+00> : vector<286x128xf32>
    %207 = tpu.matmul %204, %206, %cst_249 {dimension_numbers = #tpu.dot_dimension_numbers<[1], [0], [0], [1], [0, 0, 1, 1], [], []>} : vector<286x128xf32>, vector<128x128xf32>, vector<286x128xf32> -> vector<286x128xf32>
    %208 = arith.addf %203, %207 : vector<286x128xf32>
    %c37_250 = arith.constant 37 : index
    %c0_251 = arith.constant 0 : index
    %209 = vector.load %arg8[%c37_250, %c0_251] : memref<328x128xf32, #tpu.memory_space<vmem>>, vector<286x128xf32>
    %c7_252 = arith.constant 7 : index
    %c0_253 = arith.constant 0 : index
    %c0_254 = arith.constant 0 : index
    %210 = vector.load %arg4[%c7_252, %c0_253, %c0_254] : memref<9x128x128xf32, #tpu.memory_space<vmem>>, vector<1x128x128xf32>
    %211 = vector.shape_cast %210 : vector<1x128x128xf32> to vector<128x128xf32>
    %cst_255 = arith.constant dense<0.000000e+00> : vector<286x128xf32>
    %212 = tpu.matmul %209, %211, %cst_255 {dimension_numbers = #tpu.dot_dimension_numbers<[1], [0], [0], [1], [0, 0, 1, 1], [], []>} : vector<286x128xf32>, vector<128x128xf32>, vector<286x128xf32> -> vector<286x128xf32>
    %213 = arith.addf %208, %212 : vector<286x128xf32>
    %c38_256 = arith.constant 38 : index
    %c0_257 = arith.constant 0 : index
    %214 = vector.load %arg8[%c38_256, %c0_257] : memref<328x128xf32, #tpu.memory_space<vmem>>, vector<286x128xf32>
    %c8_258 = arith.constant 8 : index
    %c0_259 = arith.constant 0 : index
    %c0_260 = arith.constant 0 : index
    %215 = vector.load %arg4[%c8_258, %c0_259, %c0_260] : memref<9x128x128xf32, #tpu.memory_space<vmem>>, vector<1x128x128xf32>
    %216 = vector.shape_cast %215 : vector<1x128x128xf32> to vector<128x128xf32>
    %cst_261 = arith.constant dense<0.000000e+00> : vector<286x128xf32>
    %217 = tpu.matmul %214, %216, %cst_261 {dimension_numbers = #tpu.dot_dimension_numbers<[1], [0], [0], [1], [0, 0, 1, 1], [], []>} : vector<286x128xf32>, vector<128x128xf32>, vector<286x128xf32> -> vector<286x128xf32>
    %218 = arith.addf %213, %217 : vector<286x128xf32>
    %c0_262 = arith.constant 0 : index
    %c0_263 = arith.constant 0 : index
    %219 = vector.load %arg5[%c0_262, %c0_263] : memref<1x128xf32, #tpu.memory_space<vmem>>, vector<1x128xf32>
    %220 = vector.broadcast %219 : vector<1x128xf32> to vector<286x128xf32>
    %221 = arith.addf %218, %220 : vector<286x128xf32>
    %cst_264 = arith.constant 0.000000e+00 : f32
    %222 = vector.broadcast %cst_264 : f32 to vector<286x128xf32>
    %223 = arith.cmpf oge, %221, %222 : vector<286x128xf32>
    %cst_265 = arith.constant 0.00999999977 : f32
    %224 = vector.broadcast %cst_265 : f32 to vector<286x128xf32>
    %225 = arith.mulf %224, %221 : vector<286x128xf32>
    %226 = arith.select %223, %221, %225 : vector<286x128xi1>, vector<286x128xf32>
    %227 = vector.extract_strided_slice %226 {offsets = [0, 0], sizes = [285, 128], strides = [1, 1]} : vector<286x128xf32> to vector<285x128xf32>
    %228 = vector.extract_strided_slice %226 {offsets = [1, 0], sizes = [285, 128], strides = [1, 1]} : vector<286x128xf32> to vector<285x128xf32>
    %229 = arith.maximumf %227, %228 : vector<285x128xf32>
    %230 = vector.extract_strided_slice %229 {offsets = [0, 0], sizes = [267, 128], strides = [1, 1]} : vector<285x128xf32> to vector<267x128xf32>
    %231 = vector.extract_strided_slice %229 {offsets = [18, 0], sizes = [267, 128], strides = [1, 1]} : vector<285x128xf32> to vector<267x128xf32>
    %232 = arith.maximumf %230, %231 : vector<267x128xf32>
    %c0_266 = arith.constant 0 : index
    %c0_267 = arith.constant 0 : index
    %233 = vector.load %arg9[%c0_266, %c0_267] : memref<288x128xf32, #tpu.memory_space<vmem>>, vector<267x128xf32>
    tpu.vector_store %arg9[%c0_266, %c0_267], %232 {strides = array<i32>} : memref<288x128xf32, #tpu.memory_space<vmem>>, vector<267x128xf32>,
    %cst_268 = arith.constant 0.000000e+00 : f32
    %234 = vector.broadcast %cst_268 : f32 to vector<11x128xf32>
    %c0_269 = arith.constant 0 : index
    %c0_270 = arith.constant 0 : index
    %235 = vector.load %arg8[%c0_269, %c0_270] : memref<328x128xf32, #tpu.memory_space<vmem>>, vector<11x128xf32>
    tpu.vector_store %arg8[%c0_269, %c0_270], %234 {strides = array<i32>} : memref<328x128xf32, #tpu.memory_space<vmem>>, vector<11x128xf32>,
    %cst_271 = arith.constant 0.000000e+00 : f32
    %236 = vector.broadcast %cst_271 : f32 to vector<2x128xf32>
    %c0_272 = arith.constant 0 : index
    %c0_273 = arith.constant 0 : index
    %237 = tpu.strided_load %arg9[%c0_272, %c0_273] {strides = array<i32: 2, 1>} : memref<288x128xf32, #tpu.memory_space<vmem>>, vector<8x128xf32>
    %c11 = arith.constant 11 : index
    %c0_274 = arith.constant 0 : index
    %238 = vector.load %arg8[%c11, %c0_274] : memref<328x128xf32, #tpu.memory_space<vmem>>, vector<8x128xf32>
    tpu.vector_store %arg8[%c11, %c0_274], %237 {strides = array<i32>} : memref<328x128xf32, #tpu.memory_space<vmem>>, vector<8x128xf32>,
    %c19_275 = arith.constant 19 : index
    %c0_276 = arith.constant 0 : index
    %239 = vector.load %arg8[%c19_275, %c0_276] : memref<328x128xf32, #tpu.memory_space<vmem>>, vector<2x128xf32>
    tpu.vector_store %arg8[%c19_275, %c0_276], %236 {strides = array<i32>} : memref<328x128xf32, #tpu.memory_space<vmem>>, vector<2x128xf32>,
    %c36_277 = arith.constant 36 : index
    %c0_278 = arith.constant 0 : index
    %240 = tpu.strided_load %arg9[%c36_277, %c0_278] {strides = array<i32: 2, 1>} : memref<288x128xf32, #tpu.memory_space<vmem>>, vector<8x128xf32>
    %c21 = arith.constant 21 : index
    %c0_279 = arith.constant 0 : index
    %241 = vector.load %arg8[%c21, %c0_279] : memref<328x128xf32, #tpu.memory_space<vmem>>, vector<8x128xf32>
    tpu.vector_store %arg8[%c21, %c0_279], %240 {strides = array<i32>} : memref<328x128xf32, #tpu.memory_space<vmem>>, vector<8x128xf32>,
    %c29 = arith.constant 29 : index
    %c0_280 = arith.constant 0 : index
    %242 = vector.load %arg8[%c29, %c0_280] : memref<328x128xf32, #tpu.memory_space<vmem>>, vector<2x128xf32>
    tpu.vector_store %arg8[%c29, %c0_280], %236 {strides = array<i32>} : memref<328x128xf32, #tpu.memory_space<vmem>>, vector<2x128xf32>,
    %c72_281 = arith.constant 72 : index
    %c0_282 = arith.constant 0 : index
    %243 = tpu.strided_load %arg9[%c72_281, %c0_282] {strides = array<i32: 2, 1>} : memref<288x128xf32, #tpu.memory_space<vmem>>, vector<8x128xf32>
    %c31 = arith.constant 31 : index
    %c0_283 = arith.constant 0 : index
    %244 = vector.load %arg8[%c31, %c0_283] : memref<328x128xf32, #tpu.memory_space<vmem>>, vector<8x128xf32>
    tpu.vector_store %arg8[%c31, %c0_283], %243 {strides = array<i32>} : memref<328x128xf32, #tpu.memory_space<vmem>>, vector<8x128xf32>,
    %c39 = arith.constant 39 : index
    %c0_284 = arith.constant 0 : index
    %245 = vector.load %arg8[%c39, %c0_284] : memref<328x128xf32, #tpu.memory_space<vmem>>, vector<2x128xf32>
    tpu.vector_store %arg8[%c39, %c0_284], %236 {strides = array<i32>} : memref<328x128xf32, #tpu.memory_space<vmem>>, vector<2x128xf32>,
    %c108_285 = arith.constant 108 : index
    %c0_286 = arith.constant 0 : index
    %246 = tpu.strided_load %arg9[%c108_285, %c0_286] {strides = array<i32: 2, 1>} : memref<288x128xf32, #tpu.memory_space<vmem>>, vector<8x128xf32>
    %c41 = arith.constant 41 : index
    %c0_287 = arith.constant 0 : index
    %247 = vector.load %arg8[%c41, %c0_287] : memref<328x128xf32, #tpu.memory_space<vmem>>, vector<8x128xf32>
    tpu.vector_store %arg8[%c41, %c0_287], %246 {strides = array<i32>} : memref<328x128xf32, #tpu.memory_space<vmem>>, vector<8x128xf32>,
    %c49 = arith.constant 49 : index
    %c0_288 = arith.constant 0 : index
    %248 = vector.load %arg8[%c49, %c0_288] : memref<328x128xf32, #tpu.memory_space<vmem>>, vector<2x128xf32>
    tpu.vector_store %arg8[%c49, %c0_288], %236 {strides = array<i32>} : memref<328x128xf32, #tpu.memory_space<vmem>>, vector<2x128xf32>,
    %c144_289 = arith.constant 144 : index
    %c0_290 = arith.constant 0 : index
    %249 = tpu.strided_load %arg9[%c144_289, %c0_290] {strides = array<i32: 2, 1>} : memref<288x128xf32, #tpu.memory_space<vmem>>, vector<8x128xf32>
    %c51 = arith.constant 51 : index
    %c0_291 = arith.constant 0 : index
    %250 = vector.load %arg8[%c51, %c0_291] : memref<328x128xf32, #tpu.memory_space<vmem>>, vector<8x128xf32>
    tpu.vector_store %arg8[%c51, %c0_291], %249 {strides = array<i32>} : memref<328x128xf32, #tpu.memory_space<vmem>>, vector<8x128xf32>,
    %c59 = arith.constant 59 : index
    %c0_292 = arith.constant 0 : index
    %251 = vector.load %arg8[%c59, %c0_292] : memref<328x128xf32, #tpu.memory_space<vmem>>, vector<2x128xf32>
    tpu.vector_store %arg8[%c59, %c0_292], %236 {strides = array<i32>} : memref<328x128xf32, #tpu.memory_space<vmem>>, vector<2x128xf32>,
    %c180_293 = arith.constant 180 : index
    %c0_294 = arith.constant 0 : index
    %252 = tpu.strided_load %arg9[%c180_293, %c0_294] {strides = array<i32: 2, 1>} : memref<288x128xf32, #tpu.memory_space<vmem>>, vector<8x128xf32>
    %c61 = arith.constant 61 : index
    %c0_295 = arith.constant 0 : index
    %253 = vector.load %arg8[%c61, %c0_295] : memref<328x128xf32, #tpu.memory_space<vmem>>, vector<8x128xf32>
    tpu.vector_store %arg8[%c61, %c0_295], %252 {strides = array<i32>} : memref<328x128xf32, #tpu.memory_space<vmem>>, vector<8x128xf32>,
    %c69 = arith.constant 69 : index
    %c0_296 = arith.constant 0 : index
    %254 = vector.load %arg8[%c69, %c0_296] : memref<328x128xf32, #tpu.memory_space<vmem>>, vector<2x128xf32>
    tpu.vector_store %arg8[%c69, %c0_296], %236 {strides = array<i32>} : memref<328x128xf32, #tpu.memory_space<vmem>>, vector<2x128xf32>,
    %c216_297 = arith.constant 216 : index
    %c0_298 = arith.constant 0 : index
    %255 = tpu.strided_load %arg9[%c216_297, %c0_298] {strides = array<i32: 2, 1>} : memref<288x128xf32, #tpu.memory_space<vmem>>, vector<8x128xf32>
    %c71_299 = arith.constant 71 : index
    %c0_300 = arith.constant 0 : index
    %256 = vector.load %arg8[%c71_299, %c0_300] : memref<328x128xf32, #tpu.memory_space<vmem>>, vector<8x128xf32>
    tpu.vector_store %arg8[%c71_299, %c0_300], %255 {strides = array<i32>} : memref<328x128xf32, #tpu.memory_space<vmem>>, vector<8x128xf32>,
    %c79 = arith.constant 79 : index
    %c0_301 = arith.constant 0 : index
    %257 = vector.load %arg8[%c79, %c0_301] : memref<328x128xf32, #tpu.memory_space<vmem>>, vector<2x128xf32>
    tpu.vector_store %arg8[%c79, %c0_301], %236 {strides = array<i32>} : memref<328x128xf32, #tpu.memory_space<vmem>>, vector<2x128xf32>,
    %c252_302 = arith.constant 252 : index
    %c0_303 = arith.constant 0 : index
    %258 = tpu.strided_load %arg9[%c252_302, %c0_303] {strides = array<i32: 2, 1>} : memref<288x128xf32, #tpu.memory_space<vmem>>, vector<8x128xf32>
    %c81 = arith.constant 81 : index
    %c0_304 = arith.constant 0 : index
    %259 = vector.load %arg8[%c81, %c0_304] : memref<328x128xf32, #tpu.memory_space<vmem>>, vector<8x128xf32>
    tpu.vector_store %arg8[%c81, %c0_304], %258 {strides = array<i32>} : memref<328x128xf32, #tpu.memory_space<vmem>>, vector<8x128xf32>,
    %c89_305 = arith.constant 89 : index
    %c0_306 = arith.constant 0 : index
    %260 = vector.load %arg8[%c89_305, %c0_306] : memref<328x128xf32, #tpu.memory_space<vmem>>, vector<2x128xf32>
    tpu.vector_store %arg8[%c89_305, %c0_306], %236 {strides = array<i32>} : memref<328x128xf32, #tpu.memory_space<vmem>>, vector<2x128xf32>,
    %cst_307 = arith.constant 0.000000e+00 : f32
    %261 = vector.broadcast %cst_307 : f32 to vector<9x128xf32>
    %c91_308 = arith.constant 91 : index
    %c0_309 = arith.constant 0 : index
    %262 = vector.load %arg8[%c91_308, %c0_309] : memref<328x128xf32, #tpu.memory_space<vmem>>, vector<9x128xf32>
    tpu.vector_store %arg8[%c91_308, %c0_309], %261 {strides = array<i32>} : memref<328x128xf32, #tpu.memory_space<vmem>>, vector<9x128xf32>,
    %c0_310 = arith.constant 0 : index
    %c0_311 = arith.constant 0 : index
    %263 = vector.load %arg8[%c0_310, %c0_311] : memref<328x128xf32, #tpu.memory_space<vmem>>, vector<78x128xf32>
    %c0_312 = arith.constant 0 : index
    %c0_313 = arith.constant 0 : index
    %c0_314 = arith.constant 0 : index
    %264 = vector.load %arg4[%c0_312, %c0_313, %c0_314] : memref<9x128x128xf32, #tpu.memory_space<vmem>>, vector<1x128x128xf32>
    %265 = vector.shape_cast %264 : vector<1x128x128xf32> to vector<128x128xf32>
    %cst_315 = arith.constant dense<0.000000e+00> : vector<78x128xf32>
    %266 = tpu.matmul %263, %265, %cst_315 {dimension_numbers = #tpu.dot_dimension_numbers<[1], [0], [0], [1], [0, 0, 1, 1], [], []>} : vector<78x128xf32>, vector<128x128xf32>, vector<78x128xf32> -> vector<78x128xf32>
    %c1_316 = arith.constant 1 : index
    %c0_317 = arith.constant 0 : index
    %267 = vector.load %arg8[%c1_316, %c0_317] : memref<328x128xf32, #tpu.memory_space<vmem>>, vector<78x128xf32>
    %c1_318 = arith.constant 1 : index
    %c0_319 = arith.constant 0 : index
    %c0_320 = arith.constant 0 : index
    %268 = vector.load %arg4[%c1_318, %c0_319, %c0_320] : memref<9x128x128xf32, #tpu.memory_space<vmem>>, vector<1x128x128xf32>
    %269 = vector.shape_cast %268 : vector<1x128x128xf32> to vector<128x128xf32>
    %cst_321 = arith.constant dense<0.000000e+00> : vector<78x128xf32>
    %270 = tpu.matmul %267, %269, %cst_321 {dimension_numbers = #tpu.dot_dimension_numbers<[1], [0], [0], [1], [0, 0, 1, 1], [], []>} : vector<78x128xf32>, vector<128x128xf32>, vector<78x128xf32> -> vector<78x128xf32>
    %271 = arith.addf %266, %270 : vector<78x128xf32>
    %c2_322 = arith.constant 2 : index
    %c0_323 = arith.constant 0 : index
    %272 = vector.load %arg8[%c2_322, %c0_323] : memref<328x128xf32, #tpu.memory_space<vmem>>, vector<78x128xf32>
    %c2_324 = arith.constant 2 : index
    %c0_325 = arith.constant 0 : index
    %c0_326 = arith.constant 0 : index
    %273 = vector.load %arg4[%c2_324, %c0_325, %c0_326] : memref<9x128x128xf32, #tpu.memory_space<vmem>>, vector<1x128x128xf32>
    %274 = vector.shape_cast %273 : vector<1x128x128xf32> to vector<128x128xf32>
    %cst_327 = arith.constant dense<0.000000e+00> : vector<78x128xf32>
    %275 = tpu.matmul %272, %274, %cst_327 {dimension_numbers = #tpu.dot_dimension_numbers<[1], [0], [0], [1], [0, 0, 1, 1], [], []>} : vector<78x128xf32>, vector<128x128xf32>, vector<78x128xf32> -> vector<78x128xf32>
    %276 = arith.addf %271, %275 : vector<78x128xf32>
    %c10 = arith.constant 10 : index
    %c0_328 = arith.constant 0 : index
    %277 = vector.load %arg8[%c10, %c0_328] : memref<328x128xf32, #tpu.memory_space<vmem>>, vector<78x128xf32>
    %c3_329 = arith.constant 3 : index
    %c0_330 = arith.constant 0 : index
    %c0_331 = arith.constant 0 : index
    %278 = vector.load %arg4[%c3_329, %c0_330, %c0_331] : memref<9x128x128xf32, #tpu.memory_space<vmem>>, vector<1x128x128xf32>
    %279 = vector.shape_cast %278 : vector<1x128x128xf32> to vector<128x128xf32>
    %cst_332 = arith.constant dense<0.000000e+00> : vector<78x128xf32>
    %280 = tpu.matmul %277, %279, %cst_332 {dimension_numbers = #tpu.dot_dimension_numbers<[1], [0], [0], [1], [0, 0, 1, 1], [], []>} : vector<78x128xf32>, vector<128x128xf32>, vector<78x128xf32> -> vector<78x128xf32>
    %281 = arith.addf %276, %280 : vector<78x128xf32>
    %c11_333 = arith.constant 11 : index
    %c0_334 = arith.constant 0 : index
    %282 = vector.load %arg8[%c11_333, %c0_334] : memref<328x128xf32, #tpu.memory_space<vmem>>, vector<78x128xf32>
    %c4_335 = arith.constant 4 : index
    %c0_336 = arith.constant 0 : index
    %c0_337 = arith.constant 0 : index
    %283 = vector.load %arg4[%c4_335, %c0_336, %c0_337] : memref<9x128x128xf32, #tpu.memory_space<vmem>>, vector<1x128x128xf32>
    %284 = vector.shape_cast %283 : vector<1x128x128xf32> to vector<128x128xf32>
    %cst_338 = arith.constant dense<0.000000e+00> : vector<78x128xf32>
    %285 = tpu.matmul %282, %284, %cst_338 {dimension_numbers = #tpu.dot_dimension_numbers<[1], [0], [0], [1], [0, 0, 1, 1], [], []>} : vector<78x128xf32>, vector<128x128xf32>, vector<78x128xf32> -> vector<78x128xf32>
    %286 = arith.addf %281, %285 : vector<78x128xf32>
    %c12 = arith.constant 12 : index
    %c0_339 = arith.constant 0 : index
    %287 = vector.load %arg8[%c12, %c0_339] : memref<328x128xf32, #tpu.memory_space<vmem>>, vector<78x128xf32>
    %c5_340 = arith.constant 5 : index
    %c0_341 = arith.constant 0 : index
    %c0_342 = arith.constant 0 : index
    %288 = vector.load %arg4[%c5_340, %c0_341, %c0_342] : memref<9x128x128xf32, #tpu.memory_space<vmem>>, vector<1x128x128xf32>
    %289 = vector.shape_cast %288 : vector<1x128x128xf32> to vector<128x128xf32>
    %cst_343 = arith.constant dense<0.000000e+00> : vector<78x128xf32>
    %290 = tpu.matmul %287, %289, %cst_343 {dimension_numbers = #tpu.dot_dimension_numbers<[1], [0], [0], [1], [0, 0, 1, 1], [], []>} : vector<78x128xf32>, vector<128x128xf32>, vector<78x128xf32> -> vector<78x128xf32>
    %291 = arith.addf %286, %290 : vector<78x128xf32>
    %c20_344 = arith.constant 20 : index
    %c0_345 = arith.constant 0 : index
    %292 = vector.load %arg8[%c20_344, %c0_345] : memref<328x128xf32, #tpu.memory_space<vmem>>, vector<78x128xf32>
    %c6_346 = arith.constant 6 : index
    %c0_347 = arith.constant 0 : index
    %c0_348 = arith.constant 0 : index
    %293 = vector.load %arg4[%c6_346, %c0_347, %c0_348] : memref<9x128x128xf32, #tpu.memory_space<vmem>>, vector<1x128x128xf32>
    %294 = vector.shape_cast %293 : vector<1x128x128xf32> to vector<128x128xf32>
    %cst_349 = arith.constant dense<0.000000e+00> : vector<78x128xf32>
    %295 = tpu.matmul %292, %294, %cst_349 {dimension_numbers = #tpu.dot_dimension_numbers<[1], [0], [0], [1], [0, 0, 1, 1], [], []>} : vector<78x128xf32>, vector<128x128xf32>, vector<78x128xf32> -> vector<78x128xf32>
    %296 = arith.addf %291, %295 : vector<78x128xf32>
    %c21_350 = arith.constant 21 : index
    %c0_351 = arith.constant 0 : index
    %297 = vector.load %arg8[%c21_350, %c0_351] : memref<328x128xf32, #tpu.memory_space<vmem>>, vector<78x128xf32>
    %c7_352 = arith.constant 7 : index
    %c0_353 = arith.constant 0 : index
    %c0_354 = arith.constant 0 : index
    %298 = vector.load %arg4[%c7_352, %c0_353, %c0_354] : memref<9x128x128xf32, #tpu.memory_space<vmem>>, vector<1x128x128xf32>
    %299 = vector.shape_cast %298 : vector<1x128x128xf32> to vector<128x128xf32>
    %cst_355 = arith.constant dense<0.000000e+00> : vector<78x128xf32>
    %300 = tpu.matmul %297, %299, %cst_355 {dimension_numbers = #tpu.dot_dimension_numbers<[1], [0], [0], [1], [0, 0, 1, 1], [], []>} : vector<78x128xf32>, vector<128x128xf32>, vector<78x128xf32> -> vector<78x128xf32>
    %301 = arith.addf %296, %300 : vector<78x128xf32>
    %c22 = arith.constant 22 : index
    %c0_356 = arith.constant 0 : index
    %302 = vector.load %arg8[%c22, %c0_356] : memref<328x128xf32, #tpu.memory_space<vmem>>, vector<78x128xf32>
    %c8_357 = arith.constant 8 : index
    %c0_358 = arith.constant 0 : index
    %c0_359 = arith.constant 0 : index
    %303 = vector.load %arg4[%c8_357, %c0_358, %c0_359] : memref<9x128x128xf32, #tpu.memory_space<vmem>>, vector<1x128x128xf32>
    %304 = vector.shape_cast %303 : vector<1x128x128xf32> to vector<128x128xf32>
    %cst_360 = arith.constant dense<0.000000e+00> : vector<78x128xf32>
    %305 = tpu.matmul %302, %304, %cst_360 {dimension_numbers = #tpu.dot_dimension_numbers<[1], [0], [0], [1], [0, 0, 1, 1], [], []>} : vector<78x128xf32>, vector<128x128xf32>, vector<78x128xf32> -> vector<78x128xf32>
    %306 = arith.addf %301, %305 : vector<78x128xf32>
    %c0_361 = arith.constant 0 : index
    %c0_362 = arith.constant 0 : index
    %307 = vector.load %arg5[%c0_361, %c0_362] : memref<1x128xf32, #tpu.memory_space<vmem>>, vector<1x128xf32>
    %308 = vector.broadcast %307 : vector<1x128xf32> to vector<78x128xf32>
    %309 = arith.addf %306, %308 : vector<78x128xf32>
    %cst_363 = arith.constant 0.000000e+00 : f32
    %310 = vector.broadcast %cst_363 : f32 to vector<78x128xf32>
    %311 = arith.cmpf oge, %309, %310 : vector<78x128xf32>
    %cst_364 = arith.constant 0.00999999977 : f32
    %312 = vector.broadcast %cst_364 : f32 to vector<78x128xf32>
    %313 = arith.mulf %312, %309 : vector<78x128xf32>
    %314 = arith.select %311, %309, %313 : vector<78x128xi1>, vector<78x128xf32>
    %315 = vector.extract_strided_slice %314 {offsets = [0, 0], sizes = [77, 128], strides = [1, 1]} : vector<78x128xf32> to vector<77x128xf32>
    %316 = vector.extract_strided_slice %314 {offsets = [1, 0], sizes = [77, 128], strides = [1, 1]} : vector<78x128xf32> to vector<77x128xf32>
    %317 = arith.maximumf %315, %316 : vector<77x128xf32>
    %318 = vector.extract_strided_slice %317 {offsets = [0, 0], sizes = [67, 128], strides = [1, 1]} : vector<77x128xf32> to vector<67x128xf32>
    %319 = vector.extract_strided_slice %317 {offsets = [10, 0], sizes = [67, 128], strides = [1, 1]} : vector<77x128xf32> to vector<67x128xf32>
    %320 = arith.maximumf %318, %319 : vector<67x128xf32>
    %c0_365 = arith.constant 0 : index
    %c0_366 = arith.constant 0 : index
    %321 = vector.load %arg9[%c0_365, %c0_366] : memref<288x128xf32, #tpu.memory_space<vmem>>, vector<67x128xf32>
    tpu.vector_store %arg9[%c0_365, %c0_366], %320 {strides = array<i32>} : memref<288x128xf32, #tpu.memory_space<vmem>>, vector<67x128xf32>,
    %cst_367 = arith.constant 0.000000e+00 : f32
    %322 = vector.broadcast %cst_367 : f32 to vector<7x128xf32>
    %c0_368 = arith.constant 0 : index
    %c0_369 = arith.constant 0 : index
    %323 = vector.load %arg8[%c0_368, %c0_369] : memref<328x128xf32, #tpu.memory_space<vmem>>, vector<7x128xf32>
    tpu.vector_store %arg8[%c0_368, %c0_369], %322 {strides = array<i32>} : memref<328x128xf32, #tpu.memory_space<vmem>>, vector<7x128xf32>,
    %cst_370 = arith.constant 0.000000e+00 : f32
    %324 = vector.broadcast %cst_370 : f32 to vector<2x128xf32>
    %c0_371 = arith.constant 0 : index
    %c0_372 = arith.constant 0 : index
    %325 = tpu.strided_load %arg9[%c0_371, %c0_372] {strides = array<i32: 2, 1>} : memref<288x128xf32, #tpu.memory_space<vmem>>, vector<4x128xf32>
    %c7_373 = arith.constant 7 : index
    %c0_374 = arith.constant 0 : index
    %326 = vector.load %arg8[%c7_373, %c0_374] : memref<328x128xf32, #tpu.memory_space<vmem>>, vector<4x128xf32>
    tpu.vector_store %arg8[%c7_373, %c0_374], %325 {strides = array<i32>} : memref<328x128xf32, #tpu.memory_space<vmem>>, vector<4x128xf32>,
    %c11_375 = arith.constant 11 : index
    %c0_376 = arith.constant 0 : index
    %327 = vector.load %arg8[%c11_375, %c0_376] : memref<328x128xf32, #tpu.memory_space<vmem>>, vector<2x128xf32>
    tpu.vector_store %arg8[%c11_375, %c0_376], %324 {strides = array<i32>} : memref<328x128xf32, #tpu.memory_space<vmem>>, vector<2x128xf32>,
    %c20_377 = arith.constant 20 : index
    %c0_378 = arith.constant 0 : index
    %328 = tpu.strided_load %arg9[%c20_377, %c0_378] {strides = array<i32: 2, 1>} : memref<288x128xf32, #tpu.memory_space<vmem>>, vector<4x128xf32>
    %c13 = arith.constant 13 : index
    %c0_379 = arith.constant 0 : index
    %329 = vector.load %arg8[%c13, %c0_379] : memref<328x128xf32, #tpu.memory_space<vmem>>, vector<4x128xf32>
    tpu.vector_store %arg8[%c13, %c0_379], %328 {strides = array<i32>} : memref<328x128xf32, #tpu.memory_space<vmem>>, vector<4x128xf32>,
    %c17 = arith.constant 17 : index
    %c0_380 = arith.constant 0 : index
    %330 = vector.load %arg8[%c17, %c0_380] : memref<328x128xf32, #tpu.memory_space<vmem>>, vector<2x128xf32>
    tpu.vector_store %arg8[%c17, %c0_380], %324 {strides = array<i32>} : memref<328x128xf32, #tpu.memory_space<vmem>>, vector<2x128xf32>,
    %c40 = arith.constant 40 : index
    %c0_381 = arith.constant 0 : index
    %331 = tpu.strided_load %arg9[%c40, %c0_381] {strides = array<i32: 2, 1>} : memref<288x128xf32, #tpu.memory_space<vmem>>, vector<4x128xf32>
    %c19_382 = arith.constant 19 : index
    %c0_383 = arith.constant 0 : index
    %332 = vector.load %arg8[%c19_382, %c0_383] : memref<328x128xf32, #tpu.memory_space<vmem>>, vector<4x128xf32>
    tpu.vector_store %arg8[%c19_382, %c0_383], %331 {strides = array<i32>} : memref<328x128xf32, #tpu.memory_space<vmem>>, vector<4x128xf32>,
    %c23 = arith.constant 23 : index
    %c0_384 = arith.constant 0 : index
    %333 = vector.load %arg8[%c23, %c0_384] : memref<328x128xf32, #tpu.memory_space<vmem>>, vector<2x128xf32>
    tpu.vector_store %arg8[%c23, %c0_384], %324 {strides = array<i32>} : memref<328x128xf32, #tpu.memory_space<vmem>>, vector<2x128xf32>,
    %c60 = arith.constant 60 : index
    %c0_385 = arith.constant 0 : index
    %334 = tpu.strided_load %arg9[%c60, %c0_385] {strides = array<i32: 2, 1>} : memref<288x128xf32, #tpu.memory_space<vmem>>, vector<4x128xf32>
    %c25 = arith.constant 25 : index
    %c0_386 = arith.constant 0 : index
    %335 = vector.load %arg8[%c25, %c0_386] : memref<328x128xf32, #tpu.memory_space<vmem>>, vector<4x128xf32>
    tpu.vector_store %arg8[%c25, %c0_386], %334 {strides = array<i32>} : memref<328x128xf32, #tpu.memory_space<vmem>>, vector<4x128xf32>,
    %c29_387 = arith.constant 29 : index
    %c0_388 = arith.constant 0 : index
    %336 = vector.load %arg8[%c29_387, %c0_388] : memref<328x128xf32, #tpu.memory_space<vmem>>, vector<2x128xf32>
    tpu.vector_store %arg8[%c29_387, %c0_388], %324 {strides = array<i32>} : memref<328x128xf32, #tpu.memory_space<vmem>>, vector<2x128xf32>,
    %cst_389 = arith.constant 0.000000e+00 : f32
    %337 = vector.broadcast %cst_389 : f32 to vector<5x128xf32>
    %c31_390 = arith.constant 31 : index
    %c0_391 = arith.constant 0 : index
    %338 = vector.load %arg8[%c31_390, %c0_391] : memref<328x128xf32, #tpu.memory_space<vmem>>, vector<5x128xf32>
    tpu.vector_store %arg8[%c31_390, %c0_391], %337 {strides = array<i32>} : memref<328x128xf32, #tpu.memory_space<vmem>>, vector<5x128xf32>,
    %c0_392 = arith.constant 0 : index
    %c0_393 = arith.constant 0 : index
    %339 = vector.load %arg8[%c0_392, %c0_393] : memref<328x128xf32, #tpu.memory_space<vmem>>, vector<22x128xf32>
    %c0_394 = arith.constant 0 : index
    %c0_395 = arith.constant 0 : index
    %c0_396 = arith.constant 0 : index
    %340 = vector.load %arg4[%c0_394, %c0_395, %c0_396] : memref<9x128x128xf32, #tpu.memory_space<vmem>>, vector<1x128x128xf32>
    %341 = vector.shape_cast %340 : vector<1x128x128xf32> to vector<128x128xf32>
    %cst_397 = arith.constant dense<0.000000e+00> : vector<22x128xf32>
    %342 = tpu.matmul %339, %341, %cst_397 {dimension_numbers = #tpu.dot_dimension_numbers<[1], [0], [0], [1], [0, 0, 1, 1], [], []>} : vector<22x128xf32>, vector<128x128xf32>, vector<22x128xf32> -> vector<22x128xf32>
    %c1_398 = arith.constant 1 : index
    %c0_399 = arith.constant 0 : index
    %343 = vector.load %arg8[%c1_398, %c0_399] : memref<328x128xf32, #tpu.memory_space<vmem>>, vector<22x128xf32>
    %c1_400 = arith.constant 1 : index
    %c0_401 = arith.constant 0 : index
    %c0_402 = arith.constant 0 : index
    %344 = vector.load %arg4[%c1_400, %c0_401, %c0_402] : memref<9x128x128xf32, #tpu.memory_space<vmem>>, vector<1x128x128xf32>
    %345 = vector.shape_cast %344 : vector<1x128x128xf32> to vector<128x128xf32>
    %cst_403 = arith.constant dense<0.000000e+00> : vector<22x128xf32>
    %346 = tpu.matmul %343, %345, %cst_403 {dimension_numbers = #tpu.dot_dimension_numbers<[1], [0], [0], [1], [0, 0, 1, 1], [], []>} : vector<22x128xf32>, vector<128x128xf32>, vector<22x128xf32> -> vector<22x128xf32>
    %347 = arith.addf %342, %346 : vector<22x128xf32>
    %c2_404 = arith.constant 2 : index
    %c0_405 = arith.constant 0 : index
    %348 = vector.load %arg8[%c2_404, %c0_405] : memref<328x128xf32, #tpu.memory_space<vmem>>, vector<22x128xf32>
    %c2_406 = arith.constant 2 : index
    %c0_407 = arith.constant 0 : index
    %c0_408 = arith.constant 0 : index
    %349 = vector.load %arg4[%c2_406, %c0_407, %c0_408] : memref<9x128x128xf32, #tpu.memory_space<vmem>>, vector<1x128x128xf32>
    %350 = vector.shape_cast %349 : vector<1x128x128xf32> to vector<128x128xf32>
    %cst_409 = arith.constant dense<0.000000e+00> : vector<22x128xf32>
    %351 = tpu.matmul %348, %350, %cst_409 {dimension_numbers = #tpu.dot_dimension_numbers<[1], [0], [0], [1], [0, 0, 1, 1], [], []>} : vector<22x128xf32>, vector<128x128xf32>, vector<22x128xf32> -> vector<22x128xf32>
    %352 = arith.addf %347, %351 : vector<22x128xf32>
    %c6_410 = arith.constant 6 : index
    %c0_411 = arith.constant 0 : index
    %353 = vector.load %arg8[%c6_410, %c0_411] : memref<328x128xf32, #tpu.memory_space<vmem>>, vector<22x128xf32>
    %c3_412 = arith.constant 3 : index
    %c0_413 = arith.constant 0 : index
    %c0_414 = arith.constant 0 : index
    %354 = vector.load %arg4[%c3_412, %c0_413, %c0_414] : memref<9x128x128xf32, #tpu.memory_space<vmem>>, vector<1x128x128xf32>
    %355 = vector.shape_cast %354 : vector<1x128x128xf32> to vector<128x128xf32>
    %cst_415 = arith.constant dense<0.000000e+00> : vector<22x128xf32>
    %356 = tpu.matmul %353, %355, %cst_415 {dimension_numbers = #tpu.dot_dimension_numbers<[1], [0], [0], [1], [0, 0, 1, 1], [], []>} : vector<22x128xf32>, vector<128x128xf32>, vector<22x128xf32> -> vector<22x128xf32>
    %357 = arith.addf %352, %356 : vector<22x128xf32>
    %c7_416 = arith.constant 7 : index
    %c0_417 = arith.constant 0 : index
    %358 = vector.load %arg8[%c7_416, %c0_417] : memref<328x128xf32, #tpu.memory_space<vmem>>, vector<22x128xf32>
    %c4_418 = arith.constant 4 : index
    %c0_419 = arith.constant 0 : index
    %c0_420 = arith.constant 0 : index
    %359 = vector.load %arg4[%c4_418, %c0_419, %c0_420] : memref<9x128x128xf32, #tpu.memory_space<vmem>>, vector<1x128x128xf32>
    %360 = vector.shape_cast %359 : vector<1x128x128xf32> to vector<128x128xf32>
    %cst_421 = arith.constant dense<0.000000e+00> : vector<22x128xf32>
    %361 = tpu.matmul %358, %360, %cst_421 {dimension_numbers = #tpu.dot_dimension_numbers<[1], [0], [0], [1], [0, 0, 1, 1], [], []>} : vector<22x128xf32>, vector<128x128xf32>, vector<22x128xf32> -> vector<22x128xf32>
    %362 = arith.addf %357, %361 : vector<22x128xf32>
    %c8_422 = arith.constant 8 : index
    %c0_423 = arith.constant 0 : index
    %363 = vector.load %arg8[%c8_422, %c0_423] : memref<328x128xf32, #tpu.memory_space<vmem>>, vector<22x128xf32>
    %c5_424 = arith.constant 5 : index
    %c0_425 = arith.constant 0 : index
    %c0_426 = arith.constant 0 : index
    %364 = vector.load %arg4[%c5_424, %c0_425, %c0_426] : memref<9x128x128xf32, #tpu.memory_space<vmem>>, vector<1x128x128xf32>
    %365 = vector.shape_cast %364 : vector<1x128x128xf32> to vector<128x128xf32>
    %cst_427 = arith.constant dense<0.000000e+00> : vector<22x128xf32>
    %366 = tpu.matmul %363, %365, %cst_427 {dimension_numbers = #tpu.dot_dimension_numbers<[1], [0], [0], [1], [0, 0, 1, 1], [], []>} : vector<22x128xf32>, vector<128x128xf32>, vector<22x128xf32> -> vector<22x128xf32>
    %367 = arith.addf %362, %366 : vector<22x128xf32>
    %c12_428 = arith.constant 12 : index
    %c0_429 = arith.constant 0 : index
    %368 = vector.load %arg8[%c12_428, %c0_429] : memref<328x128xf32, #tpu.memory_space<vmem>>, vector<22x128xf32>
    %c6_430 = arith.constant 6 : index
    %c0_431 = arith.constant 0 : index
    %c0_432 = arith.constant 0 : index
    %369 = vector.load %arg4[%c6_430, %c0_431, %c0_432] : memref<9x128x128xf32, #tpu.memory_space<vmem>>, vector<1x128x128xf32>
    %370 = vector.shape_cast %369 : vector<1x128x128xf32> to vector<128x128xf32>
    %cst_433 = arith.constant dense<0.000000e+00> : vector<22x128xf32>
    %371 = tpu.matmul %368, %370, %cst_433 {dimension_numbers = #tpu.dot_dimension_numbers<[1], [0], [0], [1], [0, 0, 1, 1], [], []>} : vector<22x128xf32>, vector<128x128xf32>, vector<22x128xf32> -> vector<22x128xf32>
    %372 = arith.addf %367, %371 : vector<22x128xf32>
    %c13_434 = arith.constant 13 : index
    %c0_435 = arith.constant 0 : index
    %373 = vector.load %arg8[%c13_434, %c0_435] : memref<328x128xf32, #tpu.memory_space<vmem>>, vector<22x128xf32>
    %c7_436 = arith.constant 7 : index
    %c0_437 = arith.constant 0 : index
    %c0_438 = arith.constant 0 : index
    %374 = vector.load %arg4[%c7_436, %c0_437, %c0_438] : memref<9x128x128xf32, #tpu.memory_space<vmem>>, vector<1x128x128xf32>
    %375 = vector.shape_cast %374 : vector<1x128x128xf32> to vector<128x128xf32>
    %cst_439 = arith.constant dense<0.000000e+00> : vector<22x128xf32>
    %376 = tpu.matmul %373, %375, %cst_439 {dimension_numbers = #tpu.dot_dimension_numbers<[1], [0], [0], [1], [0, 0, 1, 1], [], []>} : vector<22x128xf32>, vector<128x128xf32>, vector<22x128xf32> -> vector<22x128xf32>
    %377 = arith.addf %372, %376 : vector<22x128xf32>
    %c14 = arith.constant 14 : index
    %c0_440 = arith.constant 0 : index
    %378 = vector.load %arg8[%c14, %c0_440] : memref<328x128xf32, #tpu.memory_space<vmem>>, vector<22x128xf32>
    %c8_441 = arith.constant 8 : index
    %c0_442 = arith.constant 0 : index
    %c0_443 = arith.constant 0 : index
    %379 = vector.load %arg4[%c8_441, %c0_442, %c0_443] : memref<9x128x128xf32, #tpu.memory_space<vmem>>, vector<1x128x128xf32>
    %380 = vector.shape_cast %379 : vector<1x128x128xf32> to vector<128x128xf32>
    %cst_444 = arith.constant dense<0.000000e+00> : vector<22x128xf32>
    %381 = tpu.matmul %378, %380, %cst_444 {dimension_numbers = #tpu.dot_dimension_numbers<[1], [0], [0], [1], [0, 0, 1, 1], [], []>} : vector<22x128xf32>, vector<128x128xf32>, vector<22x128xf32> -> vector<22x128xf32>
    %382 = arith.addf %377, %381 : vector<22x128xf32>
    %c0_445 = arith.constant 0 : index
    %c0_446 = arith.constant 0 : index
    %383 = vector.load %arg5[%c0_445, %c0_446] : memref<1x128xf32, #tpu.memory_space<vmem>>, vector<1x128xf32>
    %384 = vector.broadcast %383 : vector<1x128xf32> to vector<22x128xf32>
    %385 = arith.addf %382, %384 : vector<22x128xf32>
    %cst_447 = arith.constant 0.000000e+00 : f32
    %386 = vector.broadcast %cst_447 : f32 to vector<22x128xf32>
    %387 = arith.cmpf oge, %385, %386 : vector<22x128xf32>
    %cst_448 = arith.constant 0.00999999977 : f32
    %388 = vector.broadcast %cst_448 : f32 to vector<22x128xf32>
    %389 = arith.mulf %388, %385 : vector<22x128xf32>
    %390 = arith.select %387, %385, %389 : vector<22x128xi1>, vector<22x128xf32>
    %391 = vector.extract_strided_slice %390 {offsets = [0, 0], sizes = [21, 128], strides = [1, 1]} : vector<22x128xf32> to vector<21x128xf32>
    %392 = vector.extract_strided_slice %390 {offsets = [1, 0], sizes = [21, 128], strides = [1, 1]} : vector<22x128xf32> to vector<21x128xf32>
    %393 = arith.maximumf %391, %392 : vector<21x128xf32>
    %394 = vector.extract_strided_slice %393 {offsets = [0, 0], sizes = [15, 128], strides = [1, 1]} : vector<21x128xf32> to vector<15x128xf32>
    %395 = vector.extract_strided_slice %393 {offsets = [6, 0], sizes = [15, 128], strides = [1, 1]} : vector<21x128xf32> to vector<15x128xf32>
    %396 = arith.maximumf %394, %395 : vector<15x128xf32>
    %c0_449 = arith.constant 0 : index
    %c0_450 = arith.constant 0 : index
    %397 = vector.load %arg9[%c0_449, %c0_450] : memref<288x128xf32, #tpu.memory_space<vmem>>, vector<15x128xf32>
    tpu.vector_store %arg9[%c0_449, %c0_450], %396 {strides = array<i32>} : memref<288x128xf32, #tpu.memory_space<vmem>>, vector<15x128xf32>,
    %cst_451 = arith.constant 0.000000e+00 : f32
    %398 = vector.broadcast %cst_451 : f32 to vector<5x128xf32>
    %c0_452 = arith.constant 0 : index
    %c0_453 = arith.constant 0 : index
    %399 = vector.load %arg8[%c0_452, %c0_453] : memref<328x128xf32, #tpu.memory_space<vmem>>, vector<5x128xf32>
    tpu.vector_store %arg8[%c0_452, %c0_453], %398 {strides = array<i32>} : memref<328x128xf32, #tpu.memory_space<vmem>>, vector<5x128xf32>,
    %cst_454 = arith.constant 0.000000e+00 : f32
    %400 = vector.broadcast %cst_454 : f32 to vector<2x128xf32>
    %c0_455 = arith.constant 0 : index
    %c0_456 = arith.constant 0 : index
    %401 = tpu.strided_load %arg9[%c0_455, %c0_456] {strides = array<i32: 2, 1>} : memref<288x128xf32, #tpu.memory_space<vmem>>, vector<2x128xf32>
    %c5_457 = arith.constant 5 : index
    %c0_458 = arith.constant 0 : index
    %402 = vector.load %arg8[%c5_457, %c0_458] : memref<328x128xf32, #tpu.memory_space<vmem>>, vector<2x128xf32>
    tpu.vector_store %arg8[%c5_457, %c0_458], %401 {strides = array<i32>} : memref<328x128xf32, #tpu.memory_space<vmem>>, vector<2x128xf32>,
    %c7_459 = arith.constant 7 : index
    %c0_460 = arith.constant 0 : index
    %403 = vector.load %arg8[%c7_459, %c0_460] : memref<328x128xf32, #tpu.memory_space<vmem>>, vector<2x128xf32>
    tpu.vector_store %arg8[%c7_459, %c0_460], %400 {strides = array<i32>} : memref<328x128xf32, #tpu.memory_space<vmem>>, vector<2x128xf32>,
    %c12_461 = arith.constant 12 : index
    %c0_462 = arith.constant 0 : index
    %404 = tpu.strided_load %arg9[%c12_461, %c0_462] {strides = array<i32: 2, 1>} : memref<288x128xf32, #tpu.memory_space<vmem>>, vector<2x128xf32>
    %c9 = arith.constant 9 : index
    %c0_463 = arith.constant 0 : index
    %405 = vector.load %arg8[%c9, %c0_463] : memref<328x128xf32, #tpu.memory_space<vmem>>, vector<2x128xf32>
    tpu.vector_store %arg8[%c9, %c0_463], %404 {strides = array<i32>} : memref<328x128xf32, #tpu.memory_space<vmem>>, vector<2x128xf32>,
    %c11_464 = arith.constant 11 : index
    %c0_465 = arith.constant 0 : index
    %406 = vector.load %arg8[%c11_464, %c0_465] : memref<328x128xf32, #tpu.memory_space<vmem>>, vector<2x128xf32>
    tpu.vector_store %arg8[%c11_464, %c0_465], %400 {strides = array<i32>} : memref<328x128xf32, #tpu.memory_space<vmem>>, vector<2x128xf32>,
    %cst_466 = arith.constant 0.000000e+00 : f32
    %407 = vector.broadcast %cst_466 : f32 to vector<3x128xf32>
    %c13_467 = arith.constant 13 : index
    %c0_468 = arith.constant 0 : index
    %408 = vector.load %arg8[%c13_467, %c0_468] : memref<328x128xf32, #tpu.memory_space<vmem>>, vector<3x128xf32>
    tpu.vector_store %arg8[%c13_467, %c0_468], %407 {strides = array<i32>} : memref<328x128xf32, #tpu.memory_space<vmem>>, vector<3x128xf32>,
    %c0_469 = arith.constant 0 : index
    %c0_470 = arith.constant 0 : index
    %409 = vector.load %arg8[%c0_469, %c0_470] : memref<328x128xf32, #tpu.memory_space<vmem>>, vector<6x128xf32>
    %c0_471 = arith.constant 0 : index
    %c0_472 = arith.constant 0 : index
    %c0_473 = arith.constant 0 : index
    %410 = vector.load %arg4[%c0_471, %c0_472, %c0_473] : memref<9x128x128xf32, #tpu.memory_space<vmem>>, vector<1x128x128xf32>
    %411 = vector.shape_cast %410 : vector<1x128x128xf32> to vector<128x128xf32>
    %cst_474 = arith.constant dense<0.000000e+00> : vector<6x128xf32>
    %412 = tpu.matmul %409, %411, %cst_474 {dimension_numbers = #tpu.dot_dimension_numbers<[1], [0], [0], [1], [0, 0, 1, 1], [], []>} : vector<6x128xf32>, vector<128x128xf32>, vector<6x128xf32> -> vector<6x128xf32>
    %c1_475 = arith.constant 1 : index
    %c0_476 = arith.constant 0 : index
    %413 = vector.load %arg8[%c1_475, %c0_476] : memref<328x128xf32, #tpu.memory_space<vmem>>, vector<6x128xf32>
    %c1_477 = arith.constant 1 : index
    %c0_478 = arith.constant 0 : index
    %c0_479 = arith.constant 0 : index
    %414 = vector.load %arg4[%c1_477, %c0_478, %c0_479] : memref<9x128x128xf32, #tpu.memory_space<vmem>>, vector<1x128x128xf32>
    %415 = vector.shape_cast %414 : vector<1x128x128xf32> to vector<128x128xf32>
    %cst_480 = arith.constant dense<0.000000e+00> : vector<6x128xf32>
    %416 = tpu.matmul %413, %415, %cst_480 {dimension_numbers = #tpu.dot_dimension_numbers<[1], [0], [0], [1], [0, 0, 1, 1], [], []>} : vector<6x128xf32>, vector<128x128xf32>, vector<6x128xf32> -> vector<6x128xf32>
    %417 = arith.addf %412, %416 : vector<6x128xf32>
    %c2_481 = arith.constant 2 : index
    %c0_482 = arith.constant 0 : index
    %418 = vector.load %arg8[%c2_481, %c0_482] : memref<328x128xf32, #tpu.memory_space<vmem>>, vector<6x128xf32>
    %c2_483 = arith.constant 2 : index
    %c0_484 = arith.constant 0 : index
    %c0_485 = arith.constant 0 : index
    %419 = vector.load %arg4[%c2_483, %c0_484, %c0_485] : memref<9x128x128xf32, #tpu.memory_space<vmem>>, vector<1x128x128xf32>
    %420 = vector.shape_cast %419 : vector<1x128x128xf32> to vector<128x128xf32>
    %cst_486 = arith.constant dense<0.000000e+00> : vector<6x128xf32>
    %421 = tpu.matmul %418, %420, %cst_486 {dimension_numbers = #tpu.dot_dimension_numbers<[1], [0], [0], [1], [0, 0, 1, 1], [], []>} : vector<6x128xf32>, vector<128x128xf32>, vector<6x128xf32> -> vector<6x128xf32>
    %422 = arith.addf %417, %421 : vector<6x128xf32>
    %c4_487 = arith.constant 4 : index
    %c0_488 = arith.constant 0 : index
    %423 = vector.load %arg8[%c4_487, %c0_488] : memref<328x128xf32, #tpu.memory_space<vmem>>, vector<6x128xf32>
    %c3_489 = arith.constant 3 : index
    %c0_490 = arith.constant 0 : index
    %c0_491 = arith.constant 0 : index
    %424 = vector.load %arg4[%c3_489, %c0_490, %c0_491] : memref<9x128x128xf32, #tpu.memory_space<vmem>>, vector<1x128x128xf32>
    %425 = vector.shape_cast %424 : vector<1x128x128xf32> to vector<128x128xf32>
    %cst_492 = arith.constant dense<0.000000e+00> : vector<6x128xf32>
    %426 = tpu.matmul %423, %425, %cst_492 {dimension_numbers = #tpu.dot_dimension_numbers<[1], [0], [0], [1], [0, 0, 1, 1], [], []>} : vector<6x128xf32>, vector<128x128xf32>, vector<6x128xf32> -> vector<6x128xf32>
    %427 = arith.addf %422, %426 : vector<6x128xf32>
    %c5_493 = arith.constant 5 : index
    %c0_494 = arith.constant 0 : index
    %428 = vector.load %arg8[%c5_493, %c0_494] : memref<328x128xf32, #tpu.memory_space<vmem>>, vector<6x128xf32>
    %c4_495 = arith.constant 4 : index
    %c0_496 = arith.constant 0 : index
    %c0_497 = arith.constant 0 : index
    %429 = vector.load %arg4[%c4_495, %c0_496, %c0_497] : memref<9x128x128xf32, #tpu.memory_space<vmem>>, vector<1x128x128xf32>
    %430 = vector.shape_cast %429 : vector<1x128x128xf32> to vector<128x128xf32>
    %cst_498 = arith.constant dense<0.000000e+00> : vector<6x128xf32>
    %431 = tpu.matmul %428, %430, %cst_498 {dimension_numbers = #tpu.dot_dimension_numbers<[1], [0], [0], [1], [0, 0, 1, 1], [], []>} : vector<6x128xf32>, vector<128x128xf32>, vector<6x128xf32> -> vector<6x128xf32>
    %432 = arith.addf %427, %431 : vector<6x128xf32>
    %c6_499 = arith.constant 6 : index
    %c0_500 = arith.constant 0 : index
    %433 = vector.load %arg8[%c6_499, %c0_500] : memref<328x128xf32, #tpu.memory_space<vmem>>, vector<6x128xf32>
    %c5_501 = arith.constant 5 : index
    %c0_502 = arith.constant 0 : index
    %c0_503 = arith.constant 0 : index
    %434 = vector.load %arg4[%c5_501, %c0_502, %c0_503] : memref<9x128x128xf32, #tpu.memory_space<vmem>>, vector<1x128x128xf32>
    %435 = vector.shape_cast %434 : vector<1x128x128xf32> to vector<128x128xf32>
    %cst_504 = arith.constant dense<0.000000e+00> : vector<6x128xf32>
    %436 = tpu.matmul %433, %435, %cst_504 {dimension_numbers = #tpu.dot_dimension_numbers<[1], [0], [0], [1], [0, 0, 1, 1], [], []>} : vector<6x128xf32>, vector<128x128xf32>, vector<6x128xf32> -> vector<6x128xf32>
    %437 = arith.addf %432, %436 : vector<6x128xf32>
    %c8_505 = arith.constant 8 : index
    %c0_506 = arith.constant 0 : index
    %438 = vector.load %arg8[%c8_505, %c0_506] : memref<328x128xf32, #tpu.memory_space<vmem>>, vector<6x128xf32>
    %c6_507 = arith.constant 6 : index
    %c0_508 = arith.constant 0 : index
    %c0_509 = arith.constant 0 : index
    %439 = vector.load %arg4[%c6_507, %c0_508, %c0_509] : memref<9x128x128xf32, #tpu.memory_space<vmem>>, vector<1x128x128xf32>
    %440 = vector.shape_cast %439 : vector<1x128x128xf32> to vector<128x128xf32>
    %cst_510 = arith.constant dense<0.000000e+00> : vector<6x128xf32>
    %441 = tpu.matmul %438, %440, %cst_510 {dimension_numbers = #tpu.dot_dimension_numbers<[1], [0], [0], [1], [0, 0, 1, 1], [], []>} : vector<6x128xf32>, vector<128x128xf32>, vector<6x128xf32> -> vector<6x128xf32>
    %442 = arith.addf %437, %441 : vector<6x128xf32>
    %c9_511 = arith.constant 9 : index
    %c0_512 = arith.constant 0 : index
    %443 = vector.load %arg8[%c9_511, %c0_512] : memref<328x128xf32, #tpu.memory_space<vmem>>, vector<6x128xf32>
    %c7_513 = arith.constant 7 : index
    %c0_514 = arith.constant 0 : index
    %c0_515 = arith.constant 0 : index
    %444 = vector.load %arg4[%c7_513, %c0_514, %c0_515] : memref<9x128x128xf32, #tpu.memory_space<vmem>>, vector<1x128x128xf32>
    %445 = vector.shape_cast %444 : vector<1x128x128xf32> to vector<128x128xf32>
    %cst_516 = arith.constant dense<0.000000e+00> : vector<6x128xf32>
    %446 = tpu.matmul %443, %445, %cst_516 {dimension_numbers = #tpu.dot_dimension_numbers<[1], [0], [0], [1], [0, 0, 1, 1], [], []>} : vector<6x128xf32>, vector<128x128xf32>, vector<6x128xf32> -> vector<6x128xf32>
    %447 = arith.addf %442, %446 : vector<6x128xf32>
    %c10_517 = arith.constant 10 : index
    %c0_518 = arith.constant 0 : index
    %448 = vector.load %arg8[%c10_517, %c0_518] : memref<328x128xf32, #tpu.memory_space<vmem>>, vector<6x128xf32>
    %c8_519 = arith.constant 8 : index
    %c0_520 = arith.constant 0 : index
    %c0_521 = arith.constant 0 : index
    %449 = vector.load %arg4[%c8_519, %c0_520, %c0_521] : memref<9x128x128xf32, #tpu.memory_space<vmem>>, vector<1x128x128xf32>
    %450 = vector.shape_cast %449 : vector<1x128x128xf32> to vector<128x128xf32>
    %cst_522 = arith.constant dense<0.000000e+00> : vector<6x128xf32>
    %451 = tpu.matmul %448, %450, %cst_522 {dimension_numbers = #tpu.dot_dimension_numbers<[1], [0], [0], [1], [0, 0, 1, 1], [], []>} : vector<6x128xf32>, vector<128x128xf32>, vector<6x128xf32> -> vector<6x128xf32>
    %452 = arith.addf %447, %451 : vector<6x128xf32>
    %c0_523 = arith.constant 0 : index
    %c0_524 = arith.constant 0 : index
    %453 = vector.load %arg5[%c0_523, %c0_524] : memref<1x128xf32, #tpu.memory_space<vmem>>, vector<1x128xf32>
    %454 = vector.broadcast %453 : vector<1x128xf32> to vector<6x128xf32>
    %455 = arith.addf %452, %454 : vector<6x128xf32>
    %cst_525 = arith.constant 0.000000e+00 : f32
    %456 = vector.broadcast %cst_525 : f32 to vector<6x128xf32>
    %457 = arith.cmpf oge, %455, %456 : vector<6x128xf32>
    %cst_526 = arith.constant 0.00999999977 : f32
    %458 = vector.broadcast %cst_526 : f32 to vector<6x128xf32>
    %459 = arith.mulf %458, %455 : vector<6x128xf32>
    %460 = arith.select %457, %455, %459 : vector<6x128xi1>, vector<6x128xf32>
    %461 = vector.extract_strided_slice %460 {offsets = [0, 0], sizes = [5, 128], strides = [1, 1]} : vector<6x128xf32> to vector<5x128xf32>
    %462 = vector.extract_strided_slice %460 {offsets = [1, 0], sizes = [5, 128], strides = [1, 1]} : vector<6x128xf32> to vector<5x128xf32>
    %463 = arith.maximumf %461, %462 : vector<5x128xf32>
    %464 = vector.extract_strided_slice %463 {offsets = [0, 0], sizes = [1, 128], strides = [1, 1]} : vector<5x128xf32> to vector<1x128xf32>
    %465 = vector.extract_strided_slice %463 {offsets = [4, 0], sizes = [1, 128], strides = [1, 1]} : vector<5x128xf32> to vector<1x128xf32>
    %466 = arith.maximumf %464, %465 : vector<1x128xf32>
    %c0_527 = arith.constant 0 : index
    %c0_528 = arith.constant 0 : index
    %c0_529 = arith.constant 0 : index
    %467 = vector.load %arg6[%c0_527, %c0_528, %c0_529] : memref<1x1x128xf32, #tpu.memory_space<vmem>>, vector<1x1x128xf32>
    %468 = vector.shape_cast %467 : vector<1x1x128xf32> to vector<1x128xf32>
    %469 = vector.shape_cast %466 : vector<1x128xf32> to vector<1x1x128xf32>
    tpu.vector_store %arg6[%c0_527, %c0_528, %c0_529], %469 {strides = array<i32>} : memref<1x1x128xf32, #tpu.memory_space<vmem>>, vector<1x1x128xf32>,
    return
  }
  func.func @transform_0(%arg0: i32) -> (i32, i32, i32) {
    %c0_i32 = arith.constant 0 : i32
    %c0_i32_0 = arith.constant 0 : i32
    %c0_i32_1 = arith.constant 0 : i32
    return %arg0, %c0_i32, %c0_i32_0 : i32, i32, i32
  }
  func.func @transform_1(%arg0: i32) -> (i32, i32, i32) {
    %c0_i32 = arith.constant 0 : i32
    %c0_i32_0 = arith.constant 0 : i32
    %c0_i32_1 = arith.constant 0 : i32
    %c0_i32_2 = arith.constant 0 : i32
    return %c0_i32, %c0_i32_0, %c0_i32_1 : i32, i32, i32
  }
  func.func @transform_2(%arg0: i32) -> (i32, i32) {
    %c0_i32 = arith.constant 0 : i32
    %c0_i32_0 = arith.constant 0 : i32
    %c0_i32_1 = arith.constant 0 : i32
    return %c0_i32, %c0_i32_0 : i32, i32
  }
  func.func @transform_3(%arg0: i32) -> (i32, i32, i32) {
    %c0_i32 = arith.constant 0 : i32
    %c0_i32_0 = arith.constant 0 : i32
    %c0_i32_1 = arith.constant 0 : i32
    %c0_i32_2 = arith.constant 0 : i32
    return %c0_i32, %c0_i32_0, %c0_i32_1 : i32, i32, i32
  }
  func.func @transform_4(%arg0: i32) -> (i32, i32) {
    %c0_i32 = arith.constant 0 : i32
    %c0_i32_0 = arith.constant 0 : i32
    %c0_i32_1 = arith.constant 0 : i32
    return %c0_i32, %c0_i32_0 : i32, i32
  }
  func.func @transform_5(%arg0: i32) -> (i32, i32, i32) {
    %c0_i32 = arith.constant 0 : i32
    %c0_i32_0 = arith.constant 0 : i32
    %c0_i32_1 = arith.constant 0 : i32
    return %arg0, %c0_i32, %c0_i32_0 : i32, i32, i32
  }
}

</mosaic_0001>

<bundles_post_ra>
// kernel: tile.13
= control target key start
LH: loop header
LB: loop body
LE: loop exit
PB: predicated region body
PF: predicated region fallthrough
CT: control target
= control target key end

     0   :  { %s22_s0 = inlined_call_operand.vmem [shape: f32[16], index: 0, kind: input, shape index: {}]   ;;  %s23_s1 = inlined_call_operand.vmem [shape: f32[8,16], index: 1, kind: output, shape index: {}]  }
   0x1   :  { %v4_v0 = vld [vmem:[%s22_s0] ss:$0 sm:$0xff] }
   0x2   :  { %5 = vst [vmem:[%s23_s1] sm:$0xff] %v4_v0 }

// kernel: tile.14
= control target key start
LH: loop header
LB: loop body
LE: loop exit
PB: predicated region body
PF: predicated region fallthrough
CT: control target
= control target key end

     0   :  { %s69_s10 = smov 112   ;;  %s70_s11 = smov 80   ;;  %vm3_vm0 = vcmask 130048   ;;  %vm9_vm1 = vcmask 1048448   ;;  %vm15_vm2 = vcmask 917248   ;;  %vm21_vm3 = vcmask 786048   ;;  %s113_s0 = inlined_call_operand.vmem [shape: f32[8,16], index: 0, kind: input, shape index: {}]   ;;  %s114_s1 = inlined_call_operand.vmem [shape: f32[1,128], index: 1, kind: output, shape index: {}]  }
   0x1   :  { %v55_v0 = vld [vmem:[%s113_s0 + $0x7] sm:$0x1]   ;;  %v57_v1 = vld [vmem:[%s113_s0 + $0x5] sm:$0x1]   ;;  %v56_v2 = vld [vmem:[%s113_s0 + $0x6] sm:$0x1]  }
   0x2   :  { %7 = vrot.lane.b32.xlu0 %v55_v0, %s69_s10  ;;  %19 = vrot.lane.b32.xlu1 %v57_v1, %s70_s11  ;;  %v58_v3 = vld [vmem:[%s113_s0 + $0x4] sm:$0x1]   ;;  %v2_v4 = vld [vmem:[%s113_s0] sm:$0x1]   ;;  %s71_s18 = smov 96   ;;  %s72_s19 = smov 64  }
   0x3   :  { %4 = vst.msk [vmem:[#allocation0] sm:$0x1] %vm3_vm0, %v2_v4   ;;  %v59_v5 = vld [vmem:[%s113_s0 + $0x3] sm:$0x1]   ;;  %v60_v6 = vld [vmem:[%s113_s0 + $0x2] sm:$0x1]  }
   0x4   :  { %s73_s24 = smov 48   ;;  %s74_s25 = smov 32   ;;  %v61_v7 = vld [vmem:[%s113_s0 + $0x1] sm:$0x1]   ;;  %vm27_vm4 = vcmask 654848   ;;  %vm33_vm5 = vcmask 523648  }
   0x5   :  { %s75_s0 = smov 16   ;;  %vm39_vm6 = vcmask 392448   ;;  %vm45_vm7 = vcmask 261248  }
   0x6   :  { %13 = vrot.lane.b32.xlu0 %v56_v2, %s71_s18  ;;  %25 = vrot.lane.b32.xlu1 %v58_v3, %s72_s19 }
   0xa   :  { %31 = vrot.lane.b32.xlu0 %v59_v5, %s73_s24  ;;  %37 = vrot.lane.b32.xlu1 %v60_v6, %s74_s25 }
   0xe   :  { %43 = vrot.lane.b32.xlu0 %v61_v7, %s75_s0 }
  0x74   :  { %v8_v8 = vpop.permute.xlu0 %7   ;;  %v20_v9 = vpop.permute.xlu1 %19  }
  0x75   :  { %10 = vst.msk [vmem:[#allocation0] sm:$0x1] %vm9_vm1, %v8_v8  }
  0x78   :  { %v14_v10 = vpop.permute.xlu0 %13   ;;  %v26_v11 = vpop.permute.xlu1 %25  }
  0x79   :  { %16 = vst.msk [vmem:[#allocation0] sm:$0x1] %vm15_vm2, %v14_v10  }
  0x7a   :  { %22 = vst.msk [vmem:[#allocation0] sm:$0x1] %vm21_vm3, %v20_v9  }
  0x7b   :  { %28 = vst.msk [vmem:[#allocation0] sm:$0x1] %vm27_vm4, %v26_v11  }
  0x7c   :  { %v32_v12 = vpop.permute.xlu0 %31   ;;  %v38_v13 = vpop.permute.xlu1 %37  }
  0x7d   :  { %34 = vst.msk [vmem:[#allocation0] sm:$0x1] %vm33_vm5, %v32_v12  }
  0x7e   :  { %40 = vst.msk [vmem:[#allocation0] sm:$0x1] %vm39_vm6, %v38_v13  }
  0x80   :  { %v44_v14 = vpop.permute.xlu0 %43  }
  0x81   :  { %46 = vst.msk [vmem:[#allocation0] sm:$0x1] %vm45_vm7, %v44_v14  }
  0x88   :  { %v51_v15 = vld [vmem:[#allocation0] sm:$0x1] }
  0x89   :  { %54 = vst [vmem:[%s114_s1] sm:$0x1] %v51_v15 }

// kernel: reconvnet_forward.1
= control target key start
LH: loop header
LB: loop body
LE: loop exit
PB: predicated region body
PF: predicated region fallthrough
CT: control target
= control target key end

     0   :  { %s15994_s18 = smov 0   ;;  %s21583_s0 = inlined_call_operand.vmem [shape: f32[2,256,32], index: 0, kind: input, shape index: {}]   ;;  %s21584_s1 = inlined_call_operand.vmem [shape: f32[9,32,128], index: 1, kind: input, shape index: {}]   ;;  %s21585_s2 = inlined_call_operand.vmem [shape: f32[1,128], index: 2, kind: input, shape index: {}]   ;;  %s21586_s3 = inlined_call_operand.vmem [shape: f32[9,128,128], index: 3, kind: input, shape index: {}]   ;;  %s21587_s4 = inlined_call_operand.vmem [shape: f32[1,128], index: 4, kind: input, shape index: {}]   ;;  %s21588_s5 = inlined_call_operand.vmem [shape: f32[2,1,128], index: 5, kind: output, shape index: {}]  }
   0x1 LB: > { %s11215_s19 = sadd.s32 4294967295, %s15960_s18   ;;  %p11219_p0 = scmp.ge.s32.totalorder %s15960_s18, 1  ;;  %s15960_s18 = sphi %s15994_s18, %s15_s18  }
   0x2   : > { %p187_p1 = scmp.lt.s32.totalorder %s15960_s18, 3 }
   0x4   : > { %p188_p2 = pnand %p11219_p0, %p187_p1 }
   0x6   : > { %191 = sbr.rel (%p188_p2) target bundleno = 2216 (0x8a8), region = 40 }
   0xb   : > { %v11225_v0 = vld [vmem:[%s21584_s1 + $0x38] sm:$0xff]  ;;  %v11224_v1 = vld [vmem:[%s21584_s1 + $0x30] sm:$0xff]  ;;  %vm221_vm0 = vcmask 261120   ;;  %vm224_vm1 = vcmask 256000   ;;  %v15962_v2 = vmov 0.0   ;;  %p16015_p3 = scmp.lt.s32.totalorder %s11215_s19, 1 }
   0xc   : > { %13484 = vmatprep.subr.mxu0 %v11225_v0  ;;  %15923 = vmatprep.subr.mxu1 %v11225_v0  ;;  %222 = vst.msk [vmem:[#allocation2] sm:$0xff] %vm221_vm0, %v15962_v2  ;;  %223 = vst.msk [vmem:[#allocation2 + $0x8] sm:$0xff] %vm221_vm0, %v15962_v2  ;;  %vm230_vm2 = vcmask 254976   ;;  %v11223_v3 = vld [vmem:[%s21584_s1 + $0x28] sm:$0xff]  ;;  %v11222_v4 = vld [vmem:[%s21584_s1 + $0x20] sm:$0xff]  ;;  %vm309_vm3 = vcmask 253952  }
   0xd   : > { %307 = vst.msk [vmem:[#allocation2 + $0x133] sm:$0xff] %vm221_vm0, %v15962_v2  ;;  %308 = vst.msk [vmem:[#allocation2 + $0x13b] sm:$0xff] %vm221_vm0, %v15962_v2  ;;  %13485 = vmatpush3.msra.mxu0 %v11225_v0  ;;  %15927 = vmatpush3.msra.mxu1 %v11225_v0  ;;  %s21946_s19 = smov (!%p16015_p3, %s11215_s19), 1  ;;  %v11301_v5 = vld [vmem:[%s21584_s1 + $0x58] sm:$0xff]  ;;  %v11300_v10 = vld [vmem:[%s21584_s1 + $0x50] sm:$0xff] }
   0xe   : > { %4295 = vst [vmem:[#allocation3] sm:$0xff] %v15962_v2  ;;  %4296 = vst [vmem:[#allocation3 + $0x8] sm:$0xff] %v15962_v2  ;;  %13486 = vmatprep.subr.mxu0 %v11224_v1  ;;  %15924 = vmatprep.subr.mxu1 %v11224_v1  ;;  %s12097_s29 = sshll.u32 %s21946_s19, 8  ;;  %v16059_v6 = vld [vmem:[%s21584_s1 + $0x18] sm:$0xff]  ;;  %v11299_v17 = vld [vmem:[%s21584_s1 + $0x48] sm:$0xff]  ;;  %s220_s25 = scalar_lea.vmem %s21588_s5, %s21946_s19 }
   0xf   : > { %4297 = vst [vmem:[#allocation3 + $0x10] sm:$0x7] %v15962_v2  ;;  %4302 = vst [vmem:[#allocation3 + $0x23] sm:$0x3] %v15962_v2  ;;  %13487 = vmatpush3.msra.mxu0 %v11224_v1  ;;  %15928 = vmatpush3.msra.mxu1 %v11224_v1  ;;  %s16054_s9 = scalar_lea.vmem %s21583_s0, %s12097_s29  ;;  %v11298_v35 = vld [vmem:[%s21584_s1 + $0x40] sm:$0xff]  ;;  %v349_v38 = vld [vmem:[%s21584_s1 + $0x10] sm:$0xff] }
  0x10   : > { %4307 = vst [vmem:[#allocation3 + $0x35] sm:$0x3] %v15962_v2  ;;  %4312 = vst [vmem:[#allocation3 + $0x47] sm:$0x3] %v15962_v2  ;;  %13488 = vmatprep.subr.mxu0 %v11223_v3  ;;  %15925 = vmatprep.subr.mxu1 %v11223_v3  ;;  %v226_v7 = vld [vmem:[%s16054_s9] sm:$0xff]  ;;  %v283_v8 = vld [vmem:[%s16054_s9 + $0xb8] sm:$0xff] }
  0x11   : > { %4317 = vst [vmem:[#allocation3 + $0x59] sm:$0x3] %v15962_v2  ;;  %4322 = vst [vmem:[#allocation3 + $0x6b] sm:$0x3] %v15962_v2  ;;  %13489 = vmatpush3.msra.mxu0 %v11223_v3  ;;  %15929 = vmatpush3.msra.mxu1 %v11223_v3  ;;  %v227_v9 = vld [vmem:[%s16054_s9 + $0x8] sm:$0xff]  ;;  %v287_v13 = vld [vmem:[%s16054_s9 + $0xc0] sm:$0xff] }
  0x12   : > { %4327 = vst [vmem:[#allocation3 + $0x7d] sm:$0x3] %v15962_v2  ;;  %4332 = vst [vmem:[#allocation3 + $0x8f] sm:$0x3] %v15962_v2  ;;  %13490 = vmatprep.subr.mxu0 %v11222_v4  ;;  %15926 = vmatprep.subr.mxu1 %v11222_v4  ;;  %v232_v14 = vld [vmem:[%s16054_s9 + $0x10] sm:$0xff]  ;;  %v288_v15 = vld [vmem:[%s16054_s9 + $0xc8] sm:$0xff] }
  0x13   : > { %4337 = vst [vmem:[#allocation3 + $0xa1] sm:$0x3] %v15962_v2  ;;  %4342 = vst [vmem:[#allocation3 + $0xb3] sm:$0x3] %v15962_v2  ;;  %13491 = vmatpush3.msra.mxu0 %v11222_v4  ;;  %v351_v11 = vld [vmem:[#allocation2 + $0x1] sm:$0xff]  ;;  %15930 = vmatpush3.msra.mxu1 %v11222_v4  ;;  %v233_v16 = vld [vmem:[%s16054_s9 + $0x18] sm:$0xff] }
  0x14   : > { %4347 = vst [vmem:[#allocation3 + $0xc5] sm:$0x3] %v15962_v2  ;;  %4352 = vst [vmem:[#allocation3 + $0xd7] sm:$0x3] %v15962_v2  ;;  %13492 = vmatprep.mubr.msk.f32.mxu0 %vm221_vm0, %v351_v11  ;;  %13608 = vmatprep.subr.mxu0 %v11301_v5  ;;  %v292_v18 = vld [vmem:[%s16054_s9 + $0xd0] sm:$0xff]  ;;  %v237_v19 = vld [vmem:[%s16054_s9 + $0x20] sm:$0xff] }
  0x15   : > { %4357 = vst [vmem:[#allocation3 + $0xe9] sm:$0x3] %v15962_v2  ;;  %4362 = vst [vmem:[#allocation3 + $0xfb] sm:$0x3] %v15962_v2  ;;  %v293_v20 = vld [vmem:[%s16054_s9 + $0xd8] sm:$0xff]  ;;  %13546 = vmatprep.subr.mxu1 %v16059_v6  ;;  %v238_v21 = vld [vmem:[%s16054_s9 + $0x28] sm:$0xff] }
  0x16   : > { %4367 = vst [vmem:[#allocation3 + $0x10d] sm:$0x3] %v15962_v2  ;;  %4372 = vst [vmem:[#allocation3 + $0x11f] sm:$0x3] %v15962_v2  ;;  %v297_v22 = vld [vmem:[%s16054_s9 + $0xe0] sm:$0xff]  ;;  %v298_v23 = vld [vmem:[%s16054_s9 + $0xe8] sm:$0xff] }
  0x17   : > { %4377 = vst [vmem:[#allocation3 + $0x131] sm:$0x3] %v15962_v2  ;;  %4378 = vst [vmem:[#allocation3 + $0x133] sm:$0xff] %v15962_v2  ;;  %v242_v24 = vld [vmem:[%s16054_s9 + $0x30] sm:$0xff]  ;;  %v243_v25 = vld [vmem:[%s16054_s9 + $0x38] sm:$0xff] }
  0x18   : > { %4379 = vst [vmem:[#allocation3 + $0x13b] sm:$0xff] %v15962_v2  ;;  %4380 = vst [vmem:[#allocation3 + $0x143] sm:$0x1] %v15962_v2  ;;  %v247_v26 = vld [vmem:[%s16054_s9 + $0x40] sm:$0xff]  ;;  %v248_v27 = vld [vmem:[%s16054_s9 + $0x48] sm:$0xff] }
  0x19   : > { %225 = vst.msk [vmem:[#allocation2 + $0x10] sm:$0x7] %vm224_vm1, %v15962_v2  ;;  %v252_v28 = vld [vmem:[%s16054_s9 + $0x50] sm:$0xff]  ;;  %v253_v29 = vld [vmem:[%s16054_s9 + $0x58] sm:$0xff]  ;;  %v257_v30 = vld [vmem:[%s16054_s9 + $0x60] sm:$0xff] }
  0x1a   : > { %286 = vst.msk [vmem:[#allocation2 + $0xe9] sm:$0x3] %vm230_vm2, %v15962_v2  ;;  %231 = vst.msk [vmem:[#allocation2 + $0x23] sm:$0x3] %vm230_vm2, %v15962_v2  ;;  %v16126_v43 = vld [vmem:[%s21584_s1 + $0x98] sm:$0xff]  ;;  %v348_v44 = vld [vmem:[%s21584_s1 + $0x8] sm:$0xff] }
  0x1b   : > { %236 = vst.msk [vmem:[#allocation2 + $0x35] sm:$0x3] %vm230_vm2, %v15962_v2  ;;  %241 = vst.msk [vmem:[#allocation2 + $0x47] sm:$0x3] %vm230_vm2, %v15962_v2  ;;  %v258_v49 = vld [vmem:[%s16054_s9 + $0x68] sm:$0xff]  ;;  %v262_v50 = vld [vmem:[%s16054_s9 + $0x70] sm:$0xff] }
  0x1c   : > { %246 = vst.msk [vmem:[#allocation2 + $0x59] sm:$0x3] %vm230_vm2, %v15962_v2  ;;  %251 = vst.msk [vmem:[#allocation2 + $0x6b] sm:$0x3] %vm230_vm2, %v15962_v2  ;;  %v347_v52 = vld [vmem:[%s21584_s1] sm:$0xff]  ;;  %v263_v53 = vld [vmem:[%s16054_s9 + $0x78] sm:$0xff] }
  0x1d   : > { %256 = vst.msk [vmem:[#allocation2 + $0x7d] sm:$0x3] %vm230_vm2, %v15962_v2  ;;  %261 = vst.msk [vmem:[#allocation2 + $0x8f] sm:$0x3] %vm230_vm2, %v15962_v2  ;;  %v267_v55 = vld [vmem:[%s16054_s9 + $0x80] sm:$0xff]  ;;  %v268_v56 = vld [vmem:[%s16054_s9 + $0x88] sm:$0xff] }
  0x1e   : > { %266 = vst.msk [vmem:[#allocation2 + $0xa1] sm:$0x3] %vm230_vm2, %v15962_v2  ;;  %271 = vst.msk [vmem:[#allocation2 + $0xb3] sm:$0x3] %vm230_vm2, %v15962_v2  ;;  %v272_v58 = vld [vmem:[%s16054_s9 + $0x90] sm:$0xff]  ;;  %v11341_v59 = vld [vmem:[%s21584_s1 + $0x78] sm:$0xff] }
  0x1f   : > { %276 = vst.msk [vmem:[#allocation2 + $0xc5] sm:$0x3] %vm230_vm2, %v15962_v2  ;;  %281 = vst.msk [vmem:[#allocation2 + $0xd7] sm:$0x3] %vm230_vm2, %v15962_v2  ;;  %v311_v60 = vld [vmem:[#allocation2] sm:$0xff]  ;;  %v273_v61 = vld [vmem:[%s16054_s9 + $0x98] sm:$0xff] }
  0x20   : > { %291 = vst.msk [vmem:[#allocation2 + $0xfb] sm:$0x3] %vm230_vm2, %v15962_v2  ;;  %296 = vst.msk [vmem:[#allocation2 + $0x10d] sm:$0x3] %vm230_vm2, %v15962_v2  ;;  %v352_v12 = vld [vmem:[#allocation2 + $0x9] sm:$0xff]  ;;  %v277_v62 = vld [vmem:[%s16054_s9 + $0xa0] sm:$0xff] }
  0x21   : > { %301 = vst.msk [vmem:[#allocation2 + $0x11f] sm:$0x3] %vm230_vm2, %v15962_v2  ;;  %306 = vst.msk [vmem:[#allocation2 + $0x131] sm:$0x3] %vm230_vm2, %v15962_v2  ;;  %13493 = vmatmul.mubr.msk.f32.vlgmr.msra.gmra.mxu0 %vm221_vm0, %v352_v12  ;;  %v278_v63 = vld [vmem:[%s16054_s9 + $0xa8] sm:$0xff]  ;;  %v282_v2 = vld [vmem:[%s16054_s9 + $0xb0] sm:$0xff] }
  0x22   : > { %228 = vst.msk [vmem:[#allocation2 + $0x13] sm:$0xff] %vm221_vm0, %v226_v7  ;;  %285 = vst.msk [vmem:[#allocation2 + $0xe1] sm:$0xff] %vm221_vm0, %v283_v8  ;;  %13609 = vmatpush3.msra.mxu0 %v11301_v5  ;;  %v312_v1 = vld [vmem:[#allocation2 + $0x8] sm:$0xff]  ;;  %v11340_v5 = vld [vmem:[%s21584_s1 + $0x70] sm:$0xff] }
  0x23   : > { %229 = vst.msk [vmem:[#allocation2 + $0x1b] sm:$0xff] %vm221_vm0, %v227_v9  ;;  %289 = vst.msk [vmem:[#allocation2 + $0xeb] sm:$0xff] %vm221_vm0, %v287_v13  ;;  %13610 = vmatprep.subr.mxu0 %v11300_v10 }
  0x24   : > { %234 = vst.msk [vmem:[#allocation2 + $0x25] sm:$0xff] %vm221_vm0, %v232_v14  ;;  %290 = vst.msk [vmem:[#allocation2 + $0xf3] sm:$0xff] %vm221_vm0, %v288_v15  ;;  %13611 = vmatpush3.msra.mxu0 %v11300_v10  ;;  %v11339_v10 = vld [vmem:[%s21584_s1 + $0x68] sm:$0xff]  ;;  %v11338_v15 = vld [vmem:[%s21584_s1 + $0x60] sm:$0xff] }
  0x25   : > { %235 = vst.msk [vmem:[#allocation2 + $0x2d] sm:$0xff] %vm221_vm0, %v233_v16  ;;  %294 = vst.msk [vmem:[#allocation2 + $0xfd] sm:$0xff] %vm221_vm0, %v292_v18  ;;  %13612 = vmatprep.subr.mxu0 %v11299_v17 }
  0x26   : > { %239 = vst.msk [vmem:[#allocation2 + $0x37] sm:$0xff] %vm221_vm0, %v237_v19  ;;  %295 = vst.msk [vmem:[#allocation2 + $0x105] sm:$0xff] %vm221_vm0, %v293_v20  ;;  %13613 = vmatpush3.msra.mxu0 %v11299_v17 }
  0x27   : > { %240 = vst.msk [vmem:[#allocation2 + $0x3f] sm:$0xff] %vm221_vm0, %v238_v21  ;;  %299 = vst.msk [vmem:[#allocation2 + $0x10f] sm:$0xff] %vm221_vm0, %v297_v22  ;;  %13614 = vmatprep.subr.mxu0 %v11298_v35 }
  0x28   : > { %300 = vst.msk [vmem:[#allocation2 + $0x117] sm:$0xff] %vm221_vm0, %v298_v23  ;;  %244 = vst.msk [vmem:[#allocation2 + $0x49] sm:$0xff] %vm221_vm0, %v242_v24  ;;  %13615 = vmatpush3.msra.mxu0 %v11298_v35 }
  0x29   : > { %245 = vst.msk [vmem:[#allocation2 + $0x51] sm:$0xff] %vm221_vm0, %v243_v25  ;;  %249 = vst.msk [vmem:[#allocation2 + $0x5b] sm:$0xff] %vm221_vm0, %v247_v26  ;;  %v353_v31 = vld [vmem:[#allocation2 + $0x11] sm:$0xff]  ;;  %v379_v32 = vld [vmem:[#allocation2 + $0xe1] sm:$0xff]  ;;  %13732 = vmatprep.subr.mxu0 %v16126_v43 }
  0x2a   : > { %250 = vst.msk [vmem:[#allocation2 + $0x63] sm:$0xff] %vm221_vm0, %v248_v27  ;;  %v354_v33 = vld [vmem:[#allocation2 + $0x19] sm:$0xff]  ;;  %254 = vst.msk [vmem:[#allocation2 + $0x6d] sm:$0xff] %vm221_vm0, %v252_v28  ;;  %13495 = vmatprep.mubr.msk.f32.mxu0 %vm221_vm0, %v353_v31  ;;  %13534 = vmatprep.mubr.msk.f32.mxu1 %vm221_vm0, %v379_v32  ;;  %v380_v34 = vld [vmem:[#allocation2 + $0xe9] sm:$0xff] }
  0x2b   : > { %255 = vst.msk [vmem:[#allocation2 + $0x75] sm:$0xff] %vm221_vm0, %v253_v29  ;;  %259 = vst.msk [vmem:[#allocation2 + $0x7f] sm:$0xff] %vm221_vm0, %v257_v30  ;;  %13496 = vmatmul.mubr.msk.f32.gmra.mxu0 %vm221_vm0, %v354_v33  ;;  %13535 = vmatmul.mubr.msk.f32.vlgmr.msra.gmra.mxu1 %vm221_vm0, %v380_v34  ;;  %v355_v36 = vld [vmem:[#allocation2 + $0x21] sm:$0xff]  ;;  %v381_v37 = vld [vmem:[#allocation2 + $0xf1] sm:$0xff] }
  0x2c   : > { %13498 = vmatprep.mubr.msk.f32.mxu0 %vm221_vm0, %v355_v36  ;;  %13537 = vmatprep.mubr.msk.f32.mxu1 %vm221_vm0, %v381_v37  ;;  %v356_v39 = vld [vmem:[#allocation2 + $0x29] sm:$0xff]  ;;  %v382_v40 = vld [vmem:[#allocation2 + $0xf9] sm:$0xff]  ;;  %260 = vst.msk [vmem:[#allocation2 + $0x87] sm:$0xff] %vm221_vm0, %v258_v49  ;;  %264 = vst.msk [vmem:[#allocation2 + $0x91] sm:$0xff] %vm221_vm0, %v262_v50 }
  0x2d   : > { %v357_v41 = vld [vmem:[#allocation2 + $0x31] sm:$0xff]  ;;  %v383_v42 = vld [vmem:[#allocation2 + $0x101] sm:$0xff]  ;;  %13547 = vmatpush3.msra.mxu1 %v16059_v6  ;;  %265 = vst.msk [vmem:[#allocation2 + $0x99] sm:$0xff] %vm221_vm0, %v263_v53  ;;  %269 = vst.msk [vmem:[#allocation2 + $0xa3] sm:$0xff] %vm221_vm0, %v267_v55 }
  0x2e   : > { %13548 = vmatprep.subr.mxu1 %v349_v38  ;;  %v358_v45 = vld [vmem:[#allocation2 + $0x39] sm:$0xff]  ;;  %v384_v46 = vld [vmem:[#allocation2 + $0x109] sm:$0xff]  ;;  %v359_v47 = vld [vmem:[#allocation2 + $0x41] sm:$0xff]  ;;  %270 = vst.msk [vmem:[#allocation2 + $0xab] sm:$0xff] %vm221_vm0, %v268_v56 }
  0x2f   : > { %13499 = vmatmul.mubr.msk.f32.gmra.mxu0 %vm221_vm0, %v356_v39  ;;  %13538 = vmatmul.mubr.msk.f32.gmra.mxu1 %vm221_vm0, %v382_v40  ;;  %v385_v48 = vld [vmem:[#allocation2 + $0x111] sm:$0xff]  ;;  %v360_v51 = vld [vmem:[#allocation2 + $0x49] sm:$0xff]  ;;  %v386_v54 = vld [vmem:[#allocation2 + $0x119] sm:$0x3f]  ;;  %274 = vst.msk [vmem:[#allocation2 + $0xb5] sm:$0xff] %vm221_vm0, %v272_v58 }
  0x30   : > { %13501 = vmatprep.mubr.msk.f32.mxu0 %vm221_vm0, %v357_v41  ;;  %13540 = vmatprep.mubr.msk.f32.mxu1 %vm221_vm0, %v383_v42  ;;  %v361_v57 = vld [vmem:[#allocation2 + $0x51] sm:$0xff]  ;;  %275 = vst.msk [vmem:[#allocation2 + $0xbd] sm:$0xff] %vm221_vm0, %v273_v61  ;;  %279 = vst.msk [vmem:[#allocation2 + $0xc7] sm:$0xff] %vm221_vm0, %v277_v62  ;;  %v362_v0 = vld [vmem:[#allocation2 + $0x59] sm:$0xff] }
  0x31   : > { %13549 = vmatpush3.msra.mxu1 %v349_v38  ;;  %280 = vst.msk [vmem:[#allocation2 + $0xcf] sm:$0xff] %vm221_vm0, %v278_v63  ;;  %v363_v3 = vld [vmem:[#allocation2 + $0x61] sm:$0xff]  ;;  %v313_v4 = vld [vmem:[#allocation2 + $0x10] sm:$0xff]  ;;  %284 = vst.msk [vmem:[#allocation2 + $0xd9] sm:$0xff] %vm221_vm0, %v282_v2 }
  0x32   : > { %13550 = vmatprep.subr.mxu1 %v348_v44  ;;  %v364_v6 = vld [vmem:[#allocation2 + $0x69] sm:$0xff]  ;;  %v314_v7 = vld [vmem:[#allocation2 + $0x18] sm:$0xff]  ;;  %v315_v9 = vld [vmem:[#allocation2 + $0x20] sm:$0xff] }
  0x33   : > { %13502 = vmatmul.mubr.msk.f32.gmra.mxu0 %vm221_vm0, %v358_v45  ;;  %13541 = vmatmul.mubr.msk.f32.gmra.mxu1 %vm221_vm0, %v384_v46  ;;  %v365_v8 = vld [vmem:[#allocation2 + $0x71] sm:$0xff]  ;;  %v366_v11 = vld [vmem:[#allocation2 + $0x79] sm:$0xff]  ;;  %v316_v12 = vld [vmem:[#allocation2 + $0x28] sm:$0xff] }
  0x34   : > { %13504 = vmatprep.mubr.msk.f32.mxu0 %vm221_vm0, %v359_v47  ;;  %13543 = vmatprep.mubr.msk.f32.mxu1 %vm221_vm0, %v385_v48  ;;  %v367_v13 = vld [vmem:[#allocation2 + $0x81] sm:$0xff]  ;;  %v317_v14 = vld [vmem:[#allocation2 + $0x30] sm:$0xff]  ;;  %v318_v17 = vld [vmem:[#allocation2 + $0x38] sm:$0xff] }
  0x35   : > { %13551 = vmatpush3.msra.mxu1 %v348_v44  ;;  %v368_v16 = vld [vmem:[#allocation2 + $0x89] sm:$0xff]  ;;  %v369_v18 = vld [vmem:[#allocation2 + $0x91] sm:$0xff]  ;;  %v319_v19 = vld [vmem:[#allocation2 + $0x40] sm:$0xff] }
  0x36   : > { %13552 = vmatprep.subr.mxu1 %v347_v52  ;;  %v370_v20 = vld [vmem:[#allocation2 + $0x99] sm:$0xff]  ;;  %v320_v21 = vld [vmem:[#allocation2 + $0x48] sm:$0xff]  ;;  %v321_v23 = vld [vmem:[#allocation2 + $0x50] sm:$0xff] }
  0x37   : > { %13505 = vmatmul.mubr.msk.f32.gmra.mxu0 %vm221_vm0, %v360_v51  ;;  %13544 = vmatmul.mubr.msk.f32.gmra.mxu1 %vm221_vm0, %v386_v54  ;;  %v371_v22 = vld [vmem:[#allocation2 + $0xa1] sm:$0xff]  ;;  %v372_v24 = vld [vmem:[#allocation2 + $0xa9] sm:$0xff]  ;;  %v322_v25 = vld [vmem:[#allocation2 + $0x58] sm:$0xff] }
  0x38   : > { %13507 = vmatprep.mubr.msk.f32.mxu0 %vm221_vm0, %v361_v57  ;;  %13553 = vmatpush3.msra.mxu1 %v347_v52  ;;  %v373_v26 = vld [vmem:[#allocation2 + $0xb1] sm:$0xff]  ;;  %v323_v27 = vld [vmem:[#allocation2 + $0x60] sm:$0xff]  ;;  %v324_v30 = vld [vmem:[#allocation2 + $0x68] sm:$0xff] }
  0x39   : > { %13554 = vmatprep.mubr.msk.f32.mxu1 %vm221_vm0, %v311_v60  ;;  %13670 = vmatprep.subr.mxu1 %v11341_v59  ;;  %v16204_v28 = vld [vmem:[%s21584_s1 + $0xb8] sm:$0xff]  ;;  %v375_v31 = vld [vmem:[#allocation2 + $0xc1] sm:$0xff]  ;;  %v325_v32 = vld [vmem:[#allocation2 + $0x70] sm:$0xff] }
  0x3a   : > { %v374_v29 = vld [vmem:[#allocation2 + $0xb9] sm:$0xff]  ;;  %v376_v33 = vld [vmem:[#allocation2 + $0xc9] sm:$0xff]  ;;  %v377_v35 = vld [vmem:[#allocation2 + $0xd1] sm:$0xff] }
  0x3b   : > { %13508 = vmatmul.mubr.msk.f32.gmra.mxu0 %vm221_vm0, %v362_v0  ;;  %13555 = vmatmul.mubr.msk.f32.vlgmr.msra.gmra.mxu1 %vm221_vm0, %v312_v1  ;;  %v326_v34 = vld [vmem:[#allocation2 + $0x78] sm:$0xff]  ;;  %v327_v36 = vld [vmem:[#allocation2 + $0x80] sm:$0xff]  ;;  %v302_v37 = vld [vmem:[%s16054_s9 + $0xf0] sm:$0xff] }
  0x3c   : > { %13510 = vmatprep.mubr.msk.f32.mxu0 %vm221_vm0, %v363_v3  ;;  %13557 = vmatprep.mubr.msk.f32.mxu1 %vm221_vm0, %v313_v4  ;;  %304 = vst.msk [vmem:[#allocation2 + $0x121] sm:$0xff] %vm221_vm0, %v302_v37  ;;  %v303_v38 = vld [vmem:[%s16054_s9 + $0xf8] sm:$0xff]  ;;  %v328_v40 = vld [vmem:[#allocation2 + $0x88] sm:$0xff]  ;;  %v329_v41 = vld [vmem:[#allocation2 + $0x90] sm:$0xff] }
  0x3d   : > { %13671 = vmatpush3.msra.mxu1 %v11341_v59  ;;  %305 = vst.msk [vmem:[#allocation2 + $0x129] sm:$0xff] %vm221_vm0, %v303_v38  ;;  %v378_v39 = vld [vmem:[#allocation2 + $0xd9] sm:$0xff]  ;;  %v1098_v42 = vld [vmem:[#allocation2 + $0x2] sm:$0xff]  ;;  %v1099_v45 = vld [vmem:[#allocation2 + $0xa] sm:$0xff] }
  0x3e   : > { %13672 = vmatprep.subr.mxu1 %v11340_v5  ;;  %v330_v44 = vld [vmem:[#allocation2 + $0x98] sm:$0xff]  ;;  %v331_v46 = vld [vmem:[#allocation2 + $0xa0] sm:$0xff]  ;;  %v11380_v48 = vld [vmem:[%s21584_s1 + $0x90] sm:$0xff] }
  0x3f   : > { %13511 = vmatmul.mubr.msk.f32.gmra.mxu0 %vm221_vm0, %v364_v6  ;;  %13558 = vmatmul.mubr.msk.f32.gmra.mxu1 %vm221_vm0, %v314_v7  ;;  %v16225_v47 = vld [vmem:[#allocation2 + $0x12] sm:$0xff]  ;;  %v332_v49 = vld [vmem:[#allocation2 + $0xa8] sm:$0xff]  ;;  %v16234_v50 = vld [vmem:[#allocation2 + $0x1a] sm:$0xff] }
  0x40   : > { %13513 = vmatprep.mubr.msk.f32.mxu0 %vm221_vm0, %v365_v8  ;;  %13560 = vmatprep.mubr.msk.f32.mxu1 %vm221_vm0, %v315_v9  ;;  %v333_v51 = vld [vmem:[#allocation2 + $0xb0] sm:$0xff]  ;;  %v16238_v52 = vld [vmem:[#allocation2 + $0x22] sm:$0xff]  ;;  %v16262_v59 = vld [vmem:[#allocation2 + $0x3a] sm:$0xff] }
  0x41   : > { %13673 = vmatpush3.msra.mxu1 %v11340_v5  ;;  %v11379_v53 = vld [vmem:[%s21584_s1 + $0x88] sm:$0xff]  ;;  %v335_v55 = vld [vmem:[#allocation2 + $0xc0] sm:$0xff]  ;;  %v16251_v56 = vld [vmem:[#allocation2 + $0x32] sm:$0xff] }
  0x42   : > { %13674 = vmatprep.subr.mxu1 %v11339_v10  ;;  %v16249_v54 = vld [vmem:[#allocation2 + $0x2a] sm:$0xff]  ;;  %v11378_v57 = vld [vmem:[%s21584_s1 + $0x80] sm:$0xff]  ;;  %v16269_v62 = vld [vmem:[%s21584_s1 + $0xd8] sm:$0xff] }
  0x43   : > { %13514 = vmatmul.mubr.msk.f32.gmra.mxu0 %vm221_vm0, %v366_v11  ;;  %13561 = vmatmul.mubr.msk.f32.gmra.mxu1 %vm221_vm0, %v316_v12  ;;  %v336_v58 = vld [vmem:[#allocation2 + $0xc8] sm:$0xff]  ;;  %v337_v60 = vld [vmem:[#allocation2 + $0xd0] sm:$0xff]  ;;  %v338_v63 = vld [vmem:[#allocation2 + $0xd8] sm:$0xff] }
  0x44   : > { %13516 = vmatprep.mubr.msk.f32.mxu0 %vm221_vm0, %v367_v13  ;;  %13563 = vmatprep.mubr.msk.f32.mxu1 %vm221_vm0, %v317_v14  ;;  %v16264_v61 = vld [vmem:[#allocation2 + $0x42] sm:$0xff]  ;;  %v16277_v0 = vld [vmem:[#allocation2 + $0x4a] sm:$0xff]  ;;  %v16279_v2 = vld [vmem:[#allocation2 + $0x52] sm:$0xff] }
  0x45   : > { %13675 = vmatpush3.msra.mxu1 %v11339_v10  ;;  %v339_v1 = vld [vmem:[#allocation2 + $0xe0] sm:$0xff]  ;;  %v340_v3 = vld [vmem:[#allocation2 + $0xe8] sm:$0xff]  ;;  %v341_v5 = vld [vmem:[#allocation2 + $0xf0] sm:$0xff] }
  0x46   : > { %13676 = vmatprep.subr.mxu1 %v11338_v15  ;;  %v16288_v4 = vld [vmem:[#allocation2 + $0x5a] sm:$0xff]  ;;  %v16290_v6 = vld [vmem:[#allocation2 + $0x62] sm:$0xff]  ;;  %v16298_v8 = vld [vmem:[#allocation2 + $0x6a] sm:$0xff] }
  0x47   : > { %13517 = vmatmul.mubr.msk.f32.gmra.mxu0 %vm221_vm0, %v368_v16  ;;  %13564 = vmatmul.mubr.msk.f32.gmra.mxu1 %vm221_vm0, %v318_v17  ;;  %v342_v7 = vld [vmem:[#allocation2 + $0xf8] sm:$0xff]  ;;  %v343_v9 = vld [vmem:[#allocation2 + $0x100] sm:$0xff]  ;;  %v344_v11 = vld [vmem:[#allocation2 + $0x108] sm:$0xff] }
  0x48   : > { %13519 = vmatprep.mubr.msk.f32.mxu0 %vm221_vm0, %v369_v18  ;;  %13566 = vmatprep.mubr.msk.f32.mxu1 %vm221_vm0, %v319_v19  ;;  %v16300_v10 = vld [vmem:[#allocation2 + $0x72] sm:$0xff]  ;;  %v16308_v12 = vld [vmem:[#allocation2 + $0x7a] sm:$0xff]  ;;  %v16310_v14 = vld [vmem:[#allocation2 + $0x82] sm:$0xff] }
  0x49   : > { %13677 = vmatpush3.msra.mxu1 %v11338_v15  ;;  %v345_v13 = vld [vmem:[#allocation2 + $0x110] sm:$0xff]  ;;  %v346_v15 = vld [vmem:[#allocation2 + $0x118] sm:$0x3f]  ;;  %v16331_v19 = vld [vmem:[#allocation2 + $0xa2] sm:$0xff] }
  0x4a   : > { %13794 = vmatprep.subr.mxu1 %v16204_v28  ;;  %v16318_v16 = vld [vmem:[#allocation2 + $0x8a] sm:$0xff]  ;;  %v16320_v17 = vld [vmem:[#allocation2 + $0x92] sm:$0xff]  ;;  %v16329_v18 = vld [vmem:[#allocation2 + $0x9a] sm:$0xff] }
  0x4b   : > { %13520 = vmatmul.mubr.msk.f32.gmra.mxu0 %vm221_vm0, %v370_v20  ;;  %13567 = vmatmul.mubr.msk.f32.gmra.mxu1 %vm221_vm0, %v320_v21  ;;  %v11420_v20 = vld [vmem:[%s21584_s1 + $0xb0] sm:$0xff]  ;;  %v1133_v38 = vld [vmem:[#allocation2 + $0x11a] sm:$0x3f] }
  0x4c   : > { %13522 = vmatprep.mubr.msk.f32.mxu0 %vm221_vm0, %v371_v22  ;;  %13569 = vmatprep.mubr.msk.f32.mxu1 %vm221_vm0, %v321_v23  ;;  %v1119_v21 = vld [vmem:[#allocation2 + $0xaa] sm:$0xff]  ;;  %v16344_v22 = vld [vmem:[#allocation2 + $0xb2] sm:$0xff] }
  0x4d   : > { %v11419_v23 = vld [vmem:[%s21584_s1 + $0xa8] sm:$0xff]  ;;  %v16420_v37 = vld [vmem:[#allocation2 + $0x112] sm:$0xff] }
  0x4f   : > { %13523 = vmatmul.mubr.msk.f32.gmra.mxu0 %vm221_vm0, %v372_v24  ;;  %13570 = vmatmul.mubr.msk.f32.gmra.mxu1 %vm221_vm0, %v322_v25  ;;  %v16357_v24 = vld [vmem:[#allocation2 + $0xba] sm:$0xff]  ;;  %v16359_v25 = vld [vmem:[#allocation2 + $0xc2] sm:$0xff] }
  0x50   : > { %13525 = vmatprep.mubr.msk.f32.mxu0 %vm221_vm0, %v373_v26  ;;  %13572 = vmatprep.mubr.msk.f32.mxu1 %vm221_vm0, %v323_v27  ;;  %v11418_v26 = vld [vmem:[%s21584_s1 + $0xa0] sm:$0xff]  ;;  %v16372_v27 = vld [vmem:[#allocation2 + $0xca] sm:$0xff] }
  0x53   : > { %13526 = vmatmul.mubr.msk.f32.gmra.mxu0 %vm221_vm0, %v374_v29  ;;  %13573 = vmatmul.mubr.msk.f32.gmra.mxu1 %vm221_vm0, %v324_v30  ;;  %v16383_v29 = vld [vmem:[%s21584_s1 + $0xf8] sm:$0xff] }
  0x54   : > { %13528 = vmatprep.mubr.msk.f32.mxu0 %vm221_vm0, %v375_v31  ;;  %13575 = vmatprep.mubr.msk.f32.mxu1 %vm221_vm0, %v325_v32  ;;  %v16389_v30 = vld [vmem:[#allocation2 + $0xda] sm:$0xff]  ;;  %v16391_v31 = vld [vmem:[#allocation2 + $0xe2] sm:$0xff]  ;;  %v1127_v32 = vld [vmem:[#allocation2 + $0xea] sm:$0xff] }
  0x57   : > { %13529 = vmatmul.mubr.msk.f32.gmra.mxu0 %vm221_vm0, %v376_v33  ;;  %13576 = vmatmul.mubr.msk.f32.gmra.mxu1 %vm221_vm0, %v326_v34  ;;  %v16402_v33 = vld [vmem:[#allocation2 + $0xf2] sm:$0xff]  ;;  %v1129_v34 = vld [vmem:[#allocation2 + $0xfa] sm:$0xff] }
  0x58   : > { %13531 = vmatprep.mubr.msk.f32.mxu0 %vm221_vm0, %v377_v35  ;;  %13578 = vmatprep.mubr.msk.f32.mxu1 %vm221_vm0, %v327_v36  ;;  %v16411_v35 = vld [vmem:[#allocation2 + $0x102] sm:$0xff]  ;;  %v1131_v36 = vld [vmem:[#allocation2 + $0x10a] sm:$0xff] }
  0x5b   : > { %13532 = vmatmul.mubr.msk.f32.gmra.mxu0 %vm221_vm0, %v378_v39  ;;  %13579 = vmatmul.mubr.msk.f32.gmra.mxu1 %vm221_vm0, %v328_v40  ;;  %v1958_v39 = vld [vmem:[#allocation2 + $0x13] sm:$0xff]  ;;  %v1959_v40 = vld [vmem:[#allocation2 + $0x1b] sm:$0xff] }
  0x5c   : > { %13581 = vmatprep.mubr.msk.f32.mxu1 %vm221_vm0, %v329_v41  ;;  %13616 = vmatprep.mubr.msk.f32.mxu0 %vm221_vm0, %v1098_v42  ;;  %v1960_v41 = vld [vmem:[#allocation2 + $0x23] sm:$0xff]  ;;  %v11460_v42 = vld [vmem:[%s21584_s1 + $0xd0] sm:$0xff] }
  0x5f   : > { %13582 = vmatmul.mubr.msk.f32.gmra.mxu1 %vm221_vm0, %v330_v44  ;;  %13617 = vmatmul.mubr.msk.f32.vlgmr.msra.gmra.mxu0 %vm221_vm0, %v1099_v45  ;;  %v1961_v44 = vld [vmem:[#allocation2 + $0x2b] sm:$0xff]  ;;  %v1962_v45 = vld [vmem:[#allocation2 + $0x33] sm:$0xff] }
  0x60   : > { %13733 = vmatpush3.msra.mxu0 %v16126_v43  ;;  %13584 = vmatprep.mubr.msk.f32.mxu1 %vm221_vm0, %v331_v46  ;;  %v334_v43 = vld [vmem:[#allocation2 + $0xb8] sm:$0xff]  ;;  %v11459_v46 = vld [vmem:[%s21584_s1 + $0xc8] sm:$0xff] }
  0x61   : > { %13619 = vmatprep.mubr.msk.f32.mxu0 %vm221_vm0, %v16225_v47  ;;  %13734 = vmatprep.subr.mxu0 %v11380_v48 }
  0x62   : > { %13735 = vmatpush3.msra.mxu0 %v11380_v48  ;;  %v1964_v48 = vld [vmem:[#allocation2 + $0x43] sm:$0xff] }
  0x63   : > { %13585 = vmatmul.mubr.msk.f32.gmra.mxu1 %vm221_vm0, %v332_v49  ;;  %13620 = vmatmul.mubr.msk.f32.gmra.mxu0 %vm221_vm0, %v16234_v50  ;;  %v11458_v49 = vld [vmem:[%s21584_s1 + $0xc0] sm:$0xff] }
  0x64   : > { %13587 = vmatprep.mubr.msk.f32.mxu1 %vm221_vm0, %v333_v51  ;;  %13622 = vmatprep.mubr.msk.f32.mxu0 %vm221_vm0, %v16238_v52  ;;  %v1966_v51 = vld [vmem:[#allocation2 + $0x53] sm:$0xff] }
  0x65   : > { %13736 = vmatprep.subr.mxu0 %v11379_v53 }
  0x66   : > { %13737 = vmatpush3.msra.mxu0 %v11379_v53  ;;  %v1967_v53 = vld [vmem:[#allocation2 + $0x5b] sm:$0xff] }
  0x67   : > { %13588 = vmatmul.mubr.msk.f32.gmra.mxu1 %vm221_vm0, %v334_v43  ;;  %13623 = vmatmul.mubr.msk.f32.gmra.mxu0 %vm221_vm0, %v16249_v54  ;;  %v1968_v43 = vld [vmem:[#allocation2 + $0x63] sm:$0xff] }
  0x68   : > { %13590 = vmatprep.mubr.msk.f32.mxu1 %vm221_vm0, %v335_v55  ;;  %13625 = vmatprep.mubr.msk.f32.mxu0 %vm221_vm0, %v16251_v56  ;;  %v1970_v55 = vld [vmem:[#allocation2 + $0x73] sm:$0xff] }
  0x69   : > { %13738 = vmatprep.subr.mxu0 %v11378_v57 }
  0x6a   : > { %13739 = vmatpush3.msra.mxu0 %v11378_v57  ;;  %v1972_v57 = vld [vmem:[#allocation2 + $0x83] sm:$0xff] }
  0x6b   : > { %13591 = vmatmul.mubr.msk.f32.gmra.mxu1 %vm221_vm0, %v336_v58  ;;  %13626 = vmatmul.mubr.msk.f32.gmra.mxu0 %vm221_vm0, %v16262_v59  ;;  %v1561_v58 = vld [vmem:[#allocation2 + $0x11a] sm:$0xff] }
  0x6c   : > { %13593 = vmatprep.mubr.msk.f32.mxu1 %vm221_vm0, %v337_v60  ;;  %13628 = vmatprep.mubr.msk.f32.mxu0 %vm221_vm0, %v16264_v61  ;;  %v1562_v60 = vld [vmem:[#allocation2 + $0x122] sm:$0xff] }
  0x6d   : > { %13856 = vmatprep.subr.mxu0 %v16269_v62 }
  0x6f   : > { %13594 = vmatmul.mubr.msk.f32.gmra.mxu1 %vm221_vm0, %v338_v63  ;;  %13629 = vmatmul.mubr.msk.f32.gmra.mxu0 %vm221_vm0, %v16277_v0  ;;  %v1975_v63 = vld [vmem:[#allocation2 + $0x9b] sm:$0xff] }
  0x70   : > { %13596 = vmatprep.mubr.msk.f32.mxu1 %vm221_vm0, %v339_v1  ;;  %13631 = vmatprep.mubr.msk.f32.mxu0 %vm221_vm0, %v16279_v2  ;;  %v2388_v1 = vld [vmem:[#allocation2 + $0x14] sm:$0xff] }
  0x73   : > { %13597 = vmatmul.mubr.msk.f32.gmra.mxu1 %vm221_vm0, %v340_v3  ;;  %13632 = vmatmul.mubr.msk.f32.gmra.mxu0 %vm221_vm0, %v16288_v4  ;;  %v2389_v3 = vld [vmem:[#allocation2 + $0x1c] sm:$0xff] }
  0x74   : > { %13599 = vmatprep.mubr.msk.f32.mxu1 %vm221_vm0, %v341_v5  ;;  %13634 = vmatprep.mubr.msk.f32.mxu0 %vm221_vm0, %v16290_v6  ;;  %v16497_v5 = vld [vmem:[#allocation2 + $0x24] sm:$0xff] }
  0x77   : > { %13600 = vmatmul.mubr.msk.f32.gmra.mxu1 %vm221_vm0, %v342_v7  ;;  %13635 = vmatmul.mubr.msk.f32.gmra.mxu0 %vm221_vm0, %v16298_v8  ;;  %v1979_v7 = vld [vmem:[#allocation2 + $0xbb] sm:$0xff] }
  0x78   : > { %13602 = vmatprep.mubr.msk.f32.mxu1 %vm221_vm0, %v343_v9  ;;  %13637 = vmatprep.mubr.msk.f32.mxu0 %vm221_vm0, %v16300_v10  ;;  %v1980_v9 = vld [vmem:[#allocation2 + $0xc3] sm:$0xff] }
  0x7b   : > { %13603 = vmatmul.mubr.msk.f32.gmra.mxu1 %vm221_vm0, %v344_v11  ;;  %13638 = vmatmul.mubr.msk.f32.gmra.mxu0 %vm221_vm0, %v16308_v12  ;;  %v11499_v11 = vld [vmem:[%s21584_s1 + $0xe8] sm:$0xff] }
  0x7c   : > { %13605 = vmatprep.mubr.msk.f32.mxu1 %vm221_vm0, %v345_v13  ;;  %13640 = vmatprep.mubr.msk.f32.mxu0 %vm221_vm0, %v16310_v14  ;;  %v16521_v13 = vld [vmem:[#allocation2 + $0x3c] sm:$0xff] }
  0x7f   : > { %13606 = vmatmul.mubr.msk.f32.gmra.mxu1 %vm221_vm0, %v346_v15  ;;  %13641 = vmatmul.mubr.msk.f32.gmra.mxu0 %vm221_vm0, %v16318_v16  ;;  %v16523_v15 = vld [vmem:[#allocation2 + $0x44] sm:$0xff] }
  0x80   : > { %13643 = vmatprep.mubr.msk.f32.mxu0 %vm221_vm0, %v16320_v17  ;;  %13678 = vmatprep.mubr.msk.f32.mxu1 %vm221_vm0, %v16225_v47  ;;  %v1963_v47 = vld [vmem:[#allocation2 + $0x3b] sm:$0xff] }
  0x83   : > { %13644 = vmatmul.mubr.msk.f32.gmra.mxu0 %vm221_vm0, %v16329_v18  ;;  %13679 = vmatmul.mubr.msk.f32.vlgmr.msra.gmra.mxu1 %vm221_vm0, %v16234_v50  ;;  %v1965_v50 = vld [vmem:[#allocation2 + $0x4b] sm:$0xff] }
  0x84   : > { %13646 = vmatprep.mubr.msk.f32.mxu0 %vm221_vm0, %v16331_v19  ;;  %13681 = vmatprep.mubr.msk.f32.mxu1 %vm221_vm0, %v16238_v52  ;;  %v16465_v52 = vld [vmem:[%s21584_s1 + $0x118] sm:$0xff] }
  0x85   : > { %13795 = vmatpush3.msra.mxu1 %v16204_v28  ;;  %v16374_v28 = vld [vmem:[#allocation2 + $0xd2] sm:$0xff] }
  0x86   : > { %13796 = vmatprep.subr.mxu1 %v11420_v20 }
  0x87   : > { %13647 = vmatmul.mubr.msk.f32.gmra.mxu0 %vm221_vm0, %v1119_v21  ;;  %13682 = vmatmul.mubr.msk.f32.gmra.mxu1 %vm221_vm0, %v16249_v54  ;;  %v1969_v54 = vld [vmem:[#allocation2 + $0x6b] sm:$0xff] }
  0x88   : > { %13649 = vmatprep.mubr.msk.f32.mxu0 %vm221_vm0, %v16344_v22  ;;  %13684 = vmatprep.mubr.msk.f32.mxu1 %vm221_vm0, %v16251_v56  ;;  %v1971_v56 = vld [vmem:[#allocation2 + $0x7b] sm:$0xff] }
  0x89   : > { %13797 = vmatpush3.msra.mxu1 %v11420_v20  ;;  %v16536_v20 = vld [vmem:[#allocation2 + $0x54] sm:$0xff] }
  0x8a   : > { %13798 = vmatprep.subr.mxu1 %v11419_v23 }
  0x8b   : > { %13650 = vmatmul.mubr.msk.f32.gmra.mxu0 %vm221_vm0, %v16357_v24  ;;  %13685 = vmatmul.mubr.msk.f32.gmra.mxu1 %vm221_vm0, %v16262_v59  ;;  %v1973_v59 = vld [vmem:[#allocation2 + $0x8b] sm:$0xff] }
  0x8c   : > { %13652 = vmatprep.mubr.msk.f32.mxu0 %vm221_vm0, %v16359_v25  ;;  %13687 = vmatprep.mubr.msk.f32.mxu1 %vm221_vm0, %v16264_v61  ;;  %v1974_v61 = vld [vmem:[#allocation2 + $0x93] sm:$0xff] }
  0x8d   : > { %13799 = vmatpush3.msra.mxu1 %v11419_v23  ;;  %v1986_v23 = vld [vmem:[#allocation2 + $0xf3] sm:$0xff] }
  0x8e   : > { %13800 = vmatprep.subr.mxu1 %v11418_v26 }
  0x8f   : > { %13653 = vmatmul.mubr.msk.f32.gmra.mxu0 %vm221_vm0, %v16372_v27  ;;  %13688 = vmatmul.mubr.msk.f32.gmra.mxu1 %vm221_vm0, %v16277_v0  ;;  %v1976_v0 = vld [vmem:[#allocation2 + $0xa3] sm:$0xff] }
  0x90   : > { %13655 = vmatprep.mubr.msk.f32.mxu0 %vm221_vm0, %v16374_v28  ;;  %13690 = vmatprep.mubr.msk.f32.mxu1 %vm221_vm0, %v16279_v2  ;;  %v1977_v2 = vld [vmem:[#allocation2 + $0xab] sm:$0xff] }
  0x91   : > { %13801 = vmatpush3.msra.mxu1 %v11418_v26  ;;  %v16554_v26 = vld [vmem:[#allocation2 + $0x6c] sm:$0xff] }
  0x92   : > { %13918 = vmatprep.subr.mxu1 %v16383_v29 }
  0x93   : > { %13656 = vmatmul.mubr.msk.f32.gmra.mxu0 %vm221_vm0, %v16389_v30  ;;  %13691 = vmatmul.mubr.msk.f32.gmra.mxu1 %vm221_vm0, %v16288_v4  ;;  %v1978_v4 = vld [vmem:[#allocation2 + $0xb3] sm:$0xff] }
  0x94   : > { %13658 = vmatprep.mubr.msk.f32.mxu0 %vm221_vm0, %v16391_v31  ;;  %13693 = vmatprep.mubr.msk.f32.mxu1 %vm221_vm0, %v16290_v6  ;;  %v11500_v6 = vld [vmem:[%s21584_s1 + $0xf0] sm:$0xff] }
  0x97   : > { %13659 = vmatmul.mubr.msk.f32.gmra.mxu0 %vm221_vm0, %v1127_v32  ;;  %13694 = vmatmul.mubr.msk.f32.gmra.mxu1 %vm221_vm0, %v16298_v8  ;;  %v16507_v8 = vld [vmem:[#allocation2 + $0x2c] sm:$0xff] }
  0x98   : > { %13661 = vmatprep.mubr.msk.f32.mxu0 %vm221_vm0, %v16402_v33  ;;  %13696 = vmatprep.mubr.msk.f32.mxu1 %vm221_vm0, %v16300_v10  ;;  %v16509_v10 = vld [vmem:[#allocation2 + $0x34] sm:$0xff] }
  0x9b   : > { %13662 = vmatmul.mubr.msk.f32.gmra.mxu0 %vm221_vm0, %v1129_v34  ;;  %13697 = vmatmul.mubr.msk.f32.gmra.mxu1 %vm221_vm0, %v16308_v12  ;;  %v1981_v12 = vld [vmem:[#allocation2 + $0xcb] sm:$0xff] }
  0x9c   : > { %13664 = vmatprep.mubr.msk.f32.mxu0 %vm221_vm0, %v16411_v35  ;;  %13699 = vmatprep.mubr.msk.f32.mxu1 %vm221_vm0, %v16310_v14  ;;  %v1982_v14 = vld [vmem:[#allocation2 + $0xd3] sm:$0xff] }
  0x9f   : > { %13665 = vmatmul.mubr.msk.f32.gmra.mxu0 %vm221_vm0, %v1131_v36  ;;  %13700 = vmatmul.mubr.msk.f32.gmra.mxu1 %vm221_vm0, %v16318_v16  ;;  %v11498_v16 = vld [vmem:[%s21584_s1 + $0xe0] sm:$0xff] }
  0xa0   : > { %13667 = vmatprep.mubr.msk.f32.mxu0 %vm221_vm0, %v16420_v37  ;;  %13702 = vmatprep.mubr.msk.f32.mxu1 %vm221_vm0, %v16320_v17  ;;  %v1983_v17 = vld [vmem:[#allocation2 + $0xdb] sm:$0xff] }
  0xa3   : > { %13668 = vmatmul.mubr.msk.f32.gmra.mxu0 %vm221_vm0, %v1133_v38  ;;  %13703 = vmatmul.mubr.msk.f32.gmra.mxu1 %vm221_vm0, %v16329_v18  ;;  %v16534_v18 = vld [vmem:[#allocation2 + $0x4c] sm:$0xff] }
  0xa4   : > { %13705 = vmatprep.mubr.msk.f32.mxu1 %vm221_vm0, %v16331_v19  ;;  %13740 = vmatprep.mubr.msk.f32.mxu0 %vm221_vm0, %v1958_v39  ;;  %v1984_v19 = vld [vmem:[#allocation2 + $0xe3] sm:$0xff]  ;;  %v1993_v38 = vld [vmem:[#allocation2 + $0x12b] sm:$0x3f] }
  0xa5   : > { %v16586_v39 = vld [vmem:[#allocation2 + $0x9c] sm:$0xff] }
  0xa7   : > { %13706 = vmatmul.mubr.msk.f32.gmra.mxu1 %vm221_vm0, %v1119_v21  ;;  %13741 = vmatmul.mubr.msk.f32.vlgmr.msra.gmra.mxu0 %vm221_vm0, %v1959_v40  ;;  %v1985_v21 = vld [vmem:[#allocation2 + $0xeb] sm:$0xff] }
  0xa8   : > { %13857 = vmatpush3.msra.mxu0 %v16269_v62  ;;  %13708 = vmatprep.mubr.msk.f32.mxu1 %vm221_vm0, %v16344_v22  ;;  %v1563_v62 = vld [vmem:[#allocation2 + $0x12a] sm:$0x3f]  ;;  %v16544_v22 = vld [vmem:[#allocation2 + $0x5c] sm:$0xff] }
  0xa9   : > { %13743 = vmatprep.mubr.msk.f32.mxu0 %vm221_vm0, %v1960_v41  ;;  %13858 = vmatprep.subr.mxu0 %v11460_v42  ;;  %v16590_v41 = vld [vmem:[#allocation2 + $0xa4] sm:$0xff] }
  0xaa   : > { %13859 = vmatpush3.msra.mxu0 %v11460_v42 }
  0xab   : > { %13709 = vmatmul.mubr.msk.f32.gmra.mxu1 %vm221_vm0, %v16357_v24  ;;  %13744 = vmatmul.mubr.msk.f32.gmra.mxu0 %vm221_vm0, %v1961_v44  ;;  %v16546_v24 = vld [vmem:[#allocation2 + $0x64] sm:$0xff] }
  0xac   : > { %13711 = vmatprep.mubr.msk.f32.mxu1 %vm221_vm0, %v16359_v25  ;;  %13746 = vmatprep.mubr.msk.f32.mxu0 %vm221_vm0, %v1962_v45  ;;  %v1987_v25 = vld [vmem:[#allocation2 + $0xfb] sm:$0xff]  ;;  %v16603_v45 = vld [vmem:[#allocation2 + $0xac] sm:$0xff] }
  0xad   : > { %13860 = vmatprep.subr.mxu0 %v11459_v46 }
  0xae   : > { %13861 = vmatpush3.msra.mxu0 %v11459_v46 }
  0xaf   : > { %13712 = vmatmul.mubr.msk.f32.gmra.mxu1 %vm221_vm0, %v16372_v27  ;;  %13747 = vmatmul.mubr.msk.f32.gmra.mxu0 %vm221_vm0, %v1963_v47  ;;  %v1988_v27 = vld [vmem:[#allocation2 + $0x103] sm:$0xff] }
  0xb0   : > { %13714 = vmatprep.mubr.msk.f32.mxu1 %vm221_vm0, %v16374_v28  ;;  %13749 = vmatprep.mubr.msk.f32.mxu0 %vm221_vm0, %v1964_v48  ;;  %v16556_v28 = vld [vmem:[#allocation2 + $0x74] sm:$0xff] }
  0xb1   : > { %13862 = vmatprep.subr.mxu0 %v11458_v49  ;;  %v16609_v48 = vld [vmem:[#allocation2 + $0xb4] sm:$0xff] }
  0xb2   : > { %13863 = vmatpush3.msra.mxu0 %v11458_v49  ;;  %v11540_v49 = vld [vmem:[%s21584_s1 + $0x110] sm:$0xff] }
  0xb3   : > { %13715 = vmatmul.mubr.msk.f32.gmra.mxu1 %vm221_vm0, %v16389_v30  ;;  %13750 = vmatmul.mubr.msk.f32.gmra.mxu0 %vm221_vm0, %v1965_v50  ;;  %v16564_v30 = vld [vmem:[#allocation2 + $0x7c] sm:$0xff] }
  0xb4   : > { %13717 = vmatprep.mubr.msk.f32.mxu1 %vm221_vm0, %v16391_v31  ;;  %13752 = vmatprep.mubr.msk.f32.mxu0 %vm221_vm0, %v1966_v51  ;;  %v1990_v31 = vld [vmem:[#allocation2 + $0x113] sm:$0xff] }
  0xb5   : > { %13980 = vmatprep.subr.mxu0 %v16465_v52 }
  0xb7   : > { %13718 = vmatmul.mubr.msk.f32.gmra.mxu1 %vm221_vm0, %v1127_v32  ;;  %13753 = vmatmul.mubr.msk.f32.gmra.mxu0 %vm221_vm0, %v1967_v53  ;;  %v16566_v32 = vld [vmem:[#allocation2 + $0x84] sm:$0xff]  ;;  %v16625_v53 = vld [vmem:[#allocation2 + $0xbc] sm:$0xff] }
  0xb8   : > { %13720 = vmatprep.mubr.msk.f32.mxu1 %vm221_vm0, %v16402_v33  ;;  %13755 = vmatprep.mubr.msk.f32.mxu0 %vm221_vm0, %v1968_v43  ;;  %v1991_v33 = vld [vmem:[#allocation2 + $0x11b] sm:$0xff] }
  0xbb   : > { %13721 = vmatmul.mubr.msk.f32.gmra.mxu1 %vm221_vm0, %v1129_v34  ;;  %13756 = vmatmul.mubr.msk.f32.gmra.mxu0 %vm221_vm0, %v1969_v54  ;;  %v16574_v34 = vld [vmem:[#allocation2 + $0x8c] sm:$0xff] }
  0xbc   : > { %13723 = vmatprep.mubr.msk.f32.mxu1 %vm221_vm0, %v16411_v35  ;;  %13758 = vmatprep.mubr.msk.f32.mxu0 %vm221_vm0, %v1970_v55  ;;  %v16633_v55 = vld [vmem:[#allocation2 + $0xc4] sm:$0xff] }
  0xbf   : > { %13724 = vmatmul.mubr.msk.f32.gmra.mxu1 %vm221_vm0, %v1131_v36  ;;  %13759 = vmatmul.mubr.msk.f32.gmra.mxu0 %vm221_vm0, %v1971_v56  ;;  %v1992_v36 = vld [vmem:[#allocation2 + $0x123] sm:$0xff] }
  0xc0   : > { %13726 = vmatprep.mubr.msk.f32.mxu1 %vm221_vm0, %v16420_v37  ;;  %13761 = vmatprep.mubr.msk.f32.mxu0 %vm221_vm0, %v1972_v57  ;;  %v16578_v37 = vld [vmem:[#allocation2 + $0x94] sm:$0xff] }
  0xc3   : > { %13727 = vmatmul.mubr.msk.f32.gmra.mxu1 %vm221_vm0, %v1561_v58  ;;  %13762 = vmatmul.mubr.msk.f32.gmra.mxu0 %vm221_vm0, %v1973_v59  ;;  %v16646_v58 = vld [vmem:[#allocation3] sm:$0xff] }
  0xc4   : > { %13729 = vmatprep.mubr.msk.f32.mxu1 %vm221_vm0, %v1562_v60  ;;  %13764 = vmatprep.mubr.msk.f32.mxu0 %vm221_vm0, %v1974_v61  ;;  %310 = vst.msk [vmem:[#allocation2 + $0x143] sm:$0x1] %vm309_vm3, %v16646_v58  ;;  %v16653_v59 = vld [vmem:[#allocation2 + $0xcc] sm:$0xff] }
  0xc7   : > { %13730 = vmatmul.mubr.msk.f32.gmra.mxu1 %vm221_vm0, %v1563_v62  ;;  %13765 = vmatmul.mubr.msk.f32.gmra.mxu0 %vm221_vm0, %v1975_v63  ;;  %v16659_v62 = vld [vmem:[#allocation2 + $0xd4] sm:$0xff]  ;;  %v11538_v63 = vld [vmem:[%s21584_s1 + $0x100] sm:$0xff] }
  0xc8   : > { %13767 = vmatprep.mubr.msk.f32.mxu0 %vm221_vm0, %v1976_v0  ;;  %13802 = vmatprep.mubr.msk.f32.mxu1 %vm221_vm0, %v2388_v1 }
  0xcb   : > { %13768 = vmatmul.mubr.msk.f32.gmra.mxu0 %vm221_vm0, %v1977_v2  ;;  %13803 = vmatmul.mubr.msk.f32.vlgmr.msra.gmra.mxu1 %vm221_vm0, %v2389_v3  ;;  %v16676_v2 = vld [vmem:[#allocation2 + $0xdc] sm:$0xff] }
  0xcc   : > { %13770 = vmatprep.mubr.msk.f32.mxu0 %vm221_vm0, %v1978_v4  ;;  %13805 = vmatprep.mubr.msk.f32.mxu1 %vm221_vm0, %v16497_v5 }
  0xcd   : > { %13919 = vmatpush3.msra.mxu1 %v16383_v29  ;;  %v1989_v29 = vld [vmem:[#allocation2 + $0x10b] sm:$0xff] }
  0xce   : > { %13920 = vmatprep.subr.mxu1 %v11500_v6 }
  0xcf   : > { %13771 = vmatmul.mubr.msk.f32.gmra.mxu0 %vm221_vm0, %v1979_v7  ;;  %13806 = vmatmul.mubr.msk.f32.gmra.mxu1 %vm221_vm0, %v16507_v8 }
  0xd0   : > { %13773 = vmatprep.mubr.msk.f32.mxu0 %vm221_vm0, %v1980_v9  ;;  %13808 = vmatprep.mubr.msk.f32.mxu1 %vm221_vm0, %v16509_v10  ;;  %v16697_v9 = vld [vmem:[#allocation2 + $0xec] sm:$0xff] }
  0xd1   : > { %13921 = vmatpush3.msra.mxu1 %v11500_v6 }
  0xd2   : > { %13922 = vmatprep.subr.mxu1 %v11499_v11 }
  0xd3   : > { %13774 = vmatmul.mubr.msk.f32.gmra.mxu0 %vm221_vm0, %v1981_v12  ;;  %13809 = vmatmul.mubr.msk.f32.gmra.mxu1 %vm221_vm0, %v16521_v13  ;;  %v16701_v12 = vld [vmem:[#allocation2 + $0xf4] sm:$0xff] }
  0xd4   : > { %13776 = vmatprep.mubr.msk.f32.mxu0 %vm221_vm0, %v1982_v14  ;;  %13811 = vmatprep.mubr.msk.f32.mxu1 %vm221_vm0, %v16523_v15 }
  0xd5   : > { %13923 = vmatpush3.msra.mxu1 %v11499_v11 }
  0xd6   : > { %13924 = vmatprep.subr.mxu1 %v11498_v16 }
  0xd7   : > { %13777 = vmatmul.mubr.msk.f32.gmra.mxu0 %vm221_vm0, %v1983_v17  ;;  %13812 = vmatmul.mubr.msk.f32.gmra.mxu1 %vm221_vm0, %v16534_v18  ;;  %v16719_v17 = vld [vmem:[#allocation2 + $0xfc] sm:$0xff] }
  0xd8   : > { %13779 = vmatprep.mubr.msk.f32.mxu0 %vm221_vm0, %v1984_v19  ;;  %13814 = vmatprep.mubr.msk.f32.mxu1 %vm221_vm0, %v16536_v20 }
  0xd9   : > { %13925 = vmatpush3.msra.mxu1 %v11498_v16 }
  0xdb   : > { %13780 = vmatmul.mubr.msk.f32.gmra.mxu0 %vm221_vm0, %v1985_v21  ;;  %13815 = vmatmul.mubr.msk.f32.gmra.mxu1 %vm221_vm0, %v16544_v22 }
  0xdc   : > { %13782 = vmatprep.mubr.msk.f32.mxu0 %vm221_vm0, %v1986_v23  ;;  %13817 = vmatprep.mubr.msk.f32.mxu1 %vm221_vm0, %v16546_v24 }
  0xdf   : > { %13783 = vmatmul.mubr.msk.f32.gmra.mxu0 %vm221_vm0, %v1987_v25  ;;  %13818 = vmatmul.mubr.msk.f32.gmra.mxu1 %vm221_vm0, %v16554_v26  ;;  %v16741_v25 = vld [vmem:[#allocation2 + $0x10c] sm:$0xff] }
  0xe0   : > { %13785 = vmatprep.mubr.msk.f32.mxu0 %vm221_vm0, %v1988_v27  ;;  %13820 = vmatprep.mubr.msk.f32.mxu1 %vm221_vm0, %v16556_v28 }
  0xe1   : > { %v16576_v35 = vpop.f32.mrf.mxu0 }
  0xe3   : > { %13786 = vmatmul.mubr.msk.f32.gmra.mxu0 %vm221_vm0, %v1989_v29  ;;  %13821 = vmatmul.mubr.msk.f32.gmra.mxu1 %vm221_vm0, %v16564_v30  ;;  %v16588_v40 = vpop.f32.mrf.mxu0 }
  0xe4   : > { %13788 = vmatprep.mubr.msk.f32.mxu0 %vm221_vm0, %v1990_v31  ;;  %13823 = vmatprep.mubr.msk.f32.mxu1 %vm221_vm0, %v16566_v32 }
  0xe7   : > { %13789 = vmatmul.mubr.msk.f32.gmra.mxu0 %vm221_vm0, %v1991_v33  ;;  %13824 = vmatmul.mubr.msk.f32.gmra.mxu1 %vm221_vm0, %v16574_v34  ;;  %v16763_v33 = vld [vmem:[#allocation2 + $0x11c] sm:$0xff] }
  0xe8   : > { %13791 = vmatprep.mubr.msk.f32.mxu0 %vm221_vm0, %v1992_v36  ;;  %13826 = vmatprep.mubr.msk.f32.mxu1 %vm221_vm0, %v16578_v37 }
  0xeb   : > { %v16592_v42 = vpop.f32.mrf.mxu0  ;;  %v16594_v44 = vpop.f32.mrf.mxu1  ;;  %13792 = vmatmul.mubr.msk.f32.gmra.mxu0 %vm221_vm0, %v1993_v38  ;;  %13827 = vmatmul.mubr.msk.f32.gmra.mxu1 %vm221_vm0, %v16586_v39  ;;  %v16767_v38 = vld [vmem:[#allocation2 + $0x124] sm:$0xff] }
  0xec   : > { %13829 = vmatprep.mubr.msk.f32.mxu1 %vm221_vm0, %v16590_v41  ;;  %13864 = vmatprep.mubr.msk.f32.mxu0 %vm221_vm0, %v16497_v5  ;;  %v16682_v5 = vld [vmem:[#allocation2 + $0xe4] sm:$0xff] }
  0xed   : > { %v16605_v46 = vpop.f32.mrf.mxu0  ;;  %v16607_v47 = vpop.f32.mrf.mxu1 }
  0xef   : > { %v16614_v50 = vpop.f32.mrf.mxu0  ;;  %v16616_v51 = vpop.f32.mrf.mxu1  ;;  %13830 = vmatmul.mubr.msk.f32.gmra.mxu1 %vm221_vm0, %v16603_v45  ;;  %13865 = vmatmul.mubr.msk.f32.vlgmr.msra.gmra.mxu0 %vm221_vm0, %v16507_v8 }
  0xf0   : > { %13981 = vmatpush3.msra.mxu0 %v16465_v52  ;;  %13832 = vmatprep.mubr.msk.f32.mxu1 %vm221_vm0, %v16609_v48  ;;  %v11539_v52 = vld [vmem:[%s21584_s1 + $0x108] sm:$0xff] }
  0xf1   : > { %v16627_v43 = vpop.f32.mrf.mxu0  ;;  %v16629_v54 = vpop.f32.mrf.mxu1  ;;  %13867 = vmatprep.mubr.msk.f32.mxu0 %vm221_vm0, %v16509_v10  ;;  %13982 = vmatprep.subr.mxu0 %v11540_v49 }
  0xf2   : > { %13983 = vmatpush3.msra.mxu0 %v11540_v49 }
  0xf3   : > { %v16638_v56 = vpop.f32.mrf.mxu0  ;;  %v16640_v57 = vpop.f32.mrf.mxu1  ;;  %13833 = vmatmul.mubr.msk.f32.gmra.mxu1 %vm221_vm0, %v16625_v53  ;;  %13868 = vmatmul.mubr.msk.f32.gmra.mxu0 %vm221_vm0, %v16521_v13 }
  0xf4   : > { %13835 = vmatprep.mubr.msk.f32.mxu1 %vm221_vm0, %v16633_v55  ;;  %13870 = vmatprep.mubr.msk.f32.mxu0 %vm221_vm0, %v16523_v15 }
  0xf5   : > { %v16655_v60 = vpop.f32.mrf.mxu0  ;;  %v16657_v61 = vpop.f32.mrf.mxu1  ;;  %13984 = vmatprep.subr.mxu0 %v11539_v52 }
  0xf6   : > { %13985 = vmatpush3.msra.mxu0 %v11539_v52 }
  0xf7   : > { %v16664_v0 = vpop.f32.mrf.mxu0  ;;  %v16666_v1 = vpop.f32.mrf.mxu1  ;;  %13836 = vmatmul.mubr.msk.f32.gmra.mxu1 %vm221_vm0, %v16653_v59  ;;  %13871 = vmatmul.mubr.msk.f32.gmra.mxu0 %vm221_vm0, %v16534_v18 }
  0xf8   : > { %13838 = vmatprep.mubr.msk.f32.mxu1 %vm221_vm0, %v16659_v62  ;;  %13873 = vmatprep.mubr.msk.f32.mxu0 %vm221_vm0, %v16536_v20  ;;  %v16723_v20 = vld [vmem:[#allocation2 + $0x104] sm:$0xff] }
  0xf9   : > { %v16678_v3 = vpop.f32.mrf.mxu0  ;;  %v16680_v4 = vpop.f32.mrf.mxu1  ;;  %13986 = vmatprep.subr.mxu0 %v11538_v63 }
  0xfa   : > { %13987 = vmatpush3.msra.mxu0 %v11538_v63 }
  0xfb   : > { %v16684_v6 = vpop.f32.mrf.mxu0  ;;  %v13556_v7 = vpop.f32.mrf.mxu1  ;;  %13839 = vmatmul.mubr.msk.f32.gmra.mxu1 %vm221_vm0, %v16676_v2  ;;  %13874 = vmatmul.mubr.msk.f32.gmra.mxu0 %vm221_vm0, %v16544_v22 }
  0xfc   : > { %v16691_v8 = vadd.f32 %v13556_v7, %v16576_v35  ;;  %13841 = vmatprep.mubr.msk.f32.mxu1 %vm221_vm0, %v16682_v5  ;;  %13876 = vmatprep.mubr.msk.f32.mxu0 %vm221_vm0, %v16546_v24 }
  0xfd   : > { %v16699_v10 = vpop.f32.mrf.mxu0  ;;  %v919_v11 = vpop.f32.mrf.mxu1 }
  0xfe   : > { %v16704_v13 = vadd.f32 %v919_v11, %v16588_v40 }
  0xff   : > { %v16706_v14 = vpop.f32.mrf.mxu0  ;;  %v13559_v15 = vpop.f32.mrf.mxu1  ;;  %13842 = vmatmul.mubr.msk.f32.gmra.mxu1 %vm221_vm0, %v16697_v9  ;;  %13877 = vmatmul.mubr.msk.f32.gmra.mxu0 %vm221_vm0, %v16554_v26 }
 0x100   : > { %v16713_v16 = vadd.f32 %v13559_v15, %v16592_v42  ;;  %13844 = vmatprep.mubr.msk.f32.mxu1 %vm221_vm0, %v16701_v12  ;;  %13879 = vmatprep.mubr.msk.f32.mxu0 %vm221_vm0, %v16556_v28  ;;  %v16745_v28 = vld [vmem:[#allocation2 + $0x114] sm:$0xff] }
 0x101   : > { %v16721_v18 = vpop.f32.mrf.mxu0  ;;  %v929_v19 = vpop.f32.mrf.mxu1 }
 0x102   : > { %v16726_v21 = vadd.f32 %v929_v19, %v16605_v46  ;;  %v2423_v46 = vld [vmem:[#allocation2 + $0x12c] sm:$0x3f] }
 0x103   : > { %v16728_v22 = vpop.f32.mrf.mxu0  ;;  %v13562_v23 = vpop.f32.mrf.mxu1  ;;  %13845 = vmatmul.mubr.msk.f32.gmra.mxu1 %vm221_vm0, %v16719_v17  ;;  %13880 = vmatmul.mubr.msk.f32.gmra.mxu0 %vm221_vm0, %v16564_v30  ;;  %v3252_v19 = vld [vmem:[#allocation2 + $0x45] sm:$0xff] }
 0x104   : > { %v16735_v24 = vadd.f32 %v13562_v23, %v16614_v50  ;;  %13847 = vmatprep.mubr.msk.f32.mxu1 %vm221_vm0, %v16723_v20  ;;  %13882 = vmatprep.mubr.msk.f32.mxu0 %vm221_vm0, %v16566_v32 }
 0x105   : > { %v16743_v26 = vpop.f32.mrf.mxu0  ;;  %v939_v27 = vpop.f32.mrf.mxu1 }
 0x106   : > { %v16748_v29 = vadd.f32 %v939_v27, %v16627_v43  ;;  %v3248_v43 = vld [vmem:[#allocation2 + $0x25] sm:$0xff] }
 0x107   : > { %v16750_v30 = vpop.f32.mrf.mxu0  ;;  %v13565_v31 = vpop.f32.mrf.mxu1  ;;  %13848 = vmatmul.mubr.msk.f32.gmra.mxu1 %vm221_vm0, %v16741_v25  ;;  %13883 = vmatmul.mubr.msk.f32.gmra.mxu0 %vm221_vm0, %v16574_v34 }
 0x108   : > { %v16757_v32 = vadd.f32 %v13565_v31, %v16638_v56  ;;  %13850 = vmatprep.mubr.msk.f32.mxu1 %vm221_vm0, %v16745_v28  ;;  %13885 = vmatprep.mubr.msk.f32.mxu0 %vm221_vm0, %v16578_v37 }
 0x109   : > { %v16765_v35 = vpop.f32.mrf.mxu0  ;;  %v949_v36 = vpop.f32.mrf.mxu1 }
 0x10a   : > { %v16770_v40 = vadd.f32 %v949_v36, %v16655_v60  ;;  %v3254_v36 = vld [vmem:[#allocation2 + $0x55] sm:$0xff] }
 0x10b   : > { %v16772_v34 = vpop.f32.mrf.mxu0  ;;  %v13568_v42 = vpop.f32.mrf.mxu1  ;;  %13851 = vmatmul.mubr.msk.f32.gmra.mxu1 %vm221_vm0, %v16763_v33  ;;  %13886 = vmatmul.mubr.msk.f32.gmra.mxu0 %vm221_vm0, %v16586_v39 }
 0x10c   : > { %v16779_v37 = vadd.f32 %v13568_v42, %v16664_v0  ;;  %13853 = vmatprep.mubr.msk.f32.mxu1 %vm221_vm0, %v16767_v38  ;;  %13888 = vmatprep.mubr.msk.f32.mxu0 %vm221_vm0, %v16590_v41  ;;  %v3249_v41 = vld [vmem:[#allocation2 + $0x2d] sm:$0xff] }
 0x10d   : > { %v16785_v49 = vpop.f32.mrf.mxu0  ;;  %v959_v50 = vpop.f32.mrf.mxu1 }
 0x10e   : > { %v16788_v52 = vadd.f32 %v959_v50, %v16678_v3  ;;  %v3250_v3 = vld [vmem:[#allocation2 + $0x35] sm:$0xff] }
 0x10f   : > { %v16790_v56 = vpop.f32.mrf.mxu0  ;;  %v13571_v39 = vpop.f32.mrf.mxu1  ;;  %13854 = vmatmul.mubr.msk.f32.gmra.mxu1 %vm221_vm0, %v2423_v46  ;;  %13889 = vmatmul.mubr.msk.f32.gmra.mxu0 %vm221_vm0, %v16603_v45 }
 0x110   : > { %v16796_v60 = vadd.f32 %v13571_v39, %v16684_v6  ;;  %13891 = vmatprep.mubr.msk.f32.mxu0 %vm221_vm0, %v16609_v48  ;;  %13926 = vmatprep.mubr.msk.f32.mxu1 %vm221_vm0, %v3248_v43  ;;  %v3251_v48 = vld [vmem:[#allocation2 + $0x3d] sm:$0xff]  ;;  %v3256_v43 = vld [vmem:[#allocation2 + $0x65] sm:$0xff] }
 0x111   : > { %v16801_v63 = vpop.f32.mrf.mxu0  ;;  %v969_v0 = vpop.f32.mrf.mxu1 }
 0x112   : > { %v16804_v7 = vadd.f32 %v969_v0, %v16699_v10 }
 0x113   : > { %v16806_v11 = vpop.f32.mrf.mxu0  ;;  %v13574_v15 = vpop.f32.mrf.mxu1  ;;  %13892 = vmatmul.mubr.msk.f32.gmra.mxu0 %vm221_vm0, %v16625_v53  ;;  %13927 = vmatmul.mubr.msk.f32.vlgmr.msra.gmra.mxu1 %vm221_vm0, %v3249_v41 }
 0x114   : > { %v16812_v45 = vadd.f32 %v13574_v15, %v16706_v14  ;;  %13894 = vmatprep.mubr.msk.f32.mxu0 %vm221_vm0, %v16633_v55  ;;  %13929 = vmatprep.mubr.msk.f32.mxu1 %vm221_vm0, %v3250_v3  ;;  %v3253_v14 = vld [vmem:[#allocation2 + $0x4d] sm:$0xff]  ;;  %v3258_v15 = vld [vmem:[#allocation2 + $0x75] sm:$0xff] }
 0x115   : > { %v16817_v6 = vpop.f32.mrf.mxu0  ;;  %v979_v10 = vpop.f32.mrf.mxu1 }
 0x116   : > { %v16820_v23 = vadd.f32 %v979_v10, %v16721_v18 }
 0x117   : > { %v16822_v27 = vpop.f32.mrf.mxu0  ;;  %v13577_v53 = vpop.f32.mrf.mxu1  ;;  %13895 = vmatmul.mubr.msk.f32.gmra.mxu0 %vm221_vm0, %v16653_v59  ;;  %13930 = vmatmul.mubr.msk.f32.gmra.mxu1 %vm221_vm0, %v3251_v48 }
 0x118   : > { %v16828_v55 = vadd.f32 %v13577_v53, %v16728_v22  ;;  %13897 = vmatprep.mubr.msk.f32.mxu0 %vm221_vm0, %v16659_v62  ;;  %13932 = vmatprep.mubr.msk.f32.mxu1 %vm221_vm0, %v3252_v19  ;;  %v3255_v22 = vld [vmem:[#allocation2 + $0x5d] sm:$0xff]  ;;  %v3260_v53 = vld [vmem:[#allocation2 + $0x85] sm:$0xff] }
 0x119   : > { %v16833_v31 = vpop.f32.mrf.mxu0  ;;  %v989_v18 = vpop.f32.mrf.mxu1 }
 0x11a   : > { %v16836_v42 = vadd.f32 %v989_v18, %v16743_v26 }
 0x11b   : > { %v16838_v46 = vpop.f32.mrf.mxu0  ;;  %v13580_v59 = vpop.f32.mrf.mxu1  ;;  %13898 = vmatmul.mubr.msk.f32.gmra.mxu0 %vm221_vm0, %v16676_v2  ;;  %13933 = vmatmul.mubr.msk.f32.gmra.mxu1 %vm221_vm0, %v3253_v14 }
 0x11c   : > { %v16844_v62 = vadd.f32 %v13580_v59, %v16750_v30  ;;  %13900 = vmatprep.mubr.msk.f32.mxu0 %vm221_vm0, %v16682_v5  ;;  %13935 = vmatprep.mubr.msk.f32.mxu1 %vm221_vm0, %v3254_v36  ;;  %v3262_v59 = vld [vmem:[#allocation2 + $0x95] sm:$0xff] }
 0x11d   : > { %v16849_v50 = vpop.f32.mrf.mxu0  ;;  %v999_v26 = vpop.f32.mrf.mxu1 }
 0x11e   : > { %v16852_v39 = vadd.f32 %v999_v26, %v16765_v35  ;;  %v3257_v35 = vld [vmem:[#allocation2 + $0x6d] sm:$0xff] }
 0x11f   : > { %v13583_v41 = vpop.f32.mrf.mxu1  ;;  %v13618_v2 = vpop.f32.mrf.mxu0  ;;  %13901 = vmatmul.mubr.msk.f32.gmra.mxu0 %vm221_vm0, %v16697_v9  ;;  %13936 = vmatmul.mubr.msk.f32.gmra.mxu1 %vm221_vm0, %v3255_v22 }
 0x120   : > { %v16858_v30 = vadd.f32 %v13583_v41, %v16772_v34  ;;  %v16861_v5 = vadd.f32 %v13618_v2, %v16691_v8  ;;  %13903 = vmatprep.mubr.msk.f32.mxu0 %vm221_vm0, %v16701_v12  ;;  %13938 = vmatprep.mubr.msk.f32.mxu1 %vm221_vm0, %v3256_v43  ;;  %v2852_v2 = vld [vmem:[#allocation2 + $0x134] sm:$0xff] }
 0x121   : > { %v1009_v0 = vpop.f32.mrf.mxu1  ;;  %v1313_v3 = vpop.f32.mrf.mxu0 }
 0x122   : > { %v16867_v48 = vadd.f32 %v1009_v0, %v16785_v49  ;;  %v16870_v9 = vadd.f32 %v1313_v3, %v16704_v13  ;;  %v3259_v13 = vld [vmem:[#allocation2 + $0x7d] sm:$0xff] }
 0x123   : > { %v13586_v34 = vpop.f32.mrf.mxu1  ;;  %v13621_v10 = vpop.f32.mrf.mxu0  ;;  %13904 = vmatmul.mubr.msk.f32.gmra.mxu0 %vm221_vm0, %v16719_v17  ;;  %13939 = vmatmul.mubr.msk.f32.gmra.mxu1 %vm221_vm0, %v3257_v35  ;;  %v3264_v35 = vld [vmem:[#allocation2 + $0xa5] sm:$0xff] }
 0x124   : > { %v16876_v8 = vadd.f32 %v13586_v34, %v16790_v56  ;;  %v16879_v12 = vadd.f32 %v13621_v10, %v16713_v16  ;;  %13906 = vmatprep.mubr.msk.f32.mxu0 %vm221_vm0, %v16723_v20  ;;  %13941 = vmatprep.mubr.msk.f32.mxu1 %vm221_vm0, %v3258_v15  ;;  %v3265_v15 = vld [vmem:[#allocation2 + $0xad] sm:$0xff]  ;;  %v3266_v10 = vld [vmem:[#allocation2 + $0xb5] sm:$0xff] }
 0x125   : > { %v1019_v49 = vpop.f32.mrf.mxu1  ;;  %v1323_v19 = vpop.f32.mrf.mxu0 }
 0x126   : > { %v16885_v14 = vadd.f32 %v1019_v49, %v16801_v63  ;;  %v16888_v17 = vadd.f32 %v1323_v19, %v16726_v21  ;;  %v3261_v21 = vld [vmem:[#allocation2 + $0x8d] sm:$0xff] }
 0x127   : > { %v13589_v56 = vpop.f32.mrf.mxu1  ;;  %v13624_v18 = vpop.f32.mrf.mxu0  ;;  %13907 = vmatmul.mubr.msk.f32.gmra.mxu0 %vm221_vm0, %v16741_v25  ;;  %13942 = vmatmul.mubr.msk.f32.gmra.mxu1 %vm221_vm0, %v3259_v13  ;;  %v3678_v13 = vld [vmem:[#allocation2 + $0x26] sm:$0xff] }
 0x128   : > { %v16894_v16 = vadd.f32 %v13589_v56, %v16806_v11  ;;  %v16897_v20 = vadd.f32 %v13624_v18, %v16735_v24  ;;  %13909 = vmatprep.mubr.msk.f32.mxu0 %vm221_vm0, %v16745_v28  ;;  %13944 = vmatprep.mubr.msk.f32.mxu1 %vm221_vm0, %v3260_v53  ;;  %v3267_v56 = vld [vmem:[#allocation2 + $0xbd] sm:$0xff] }
 0x129   : > { %v1029_v63 = vpop.f32.mrf.mxu1  ;;  %v1333_v36 = vpop.f32.mrf.mxu0 }
 0x12a   : > { %v16903_v22 = vadd.f32 %v1029_v63, %v16817_v6  ;;  %v16906_v25 = vadd.f32 %v1333_v36, %v16748_v29  ;;  %v2851_v29 = vld [vmem:[#allocation2 + $0x12c] sm:$0xff]  ;;  %v3263_v6 = vld [vmem:[#allocation2 + $0x9d] sm:$0xff] }
 0x12b   : > { %v13592_v11 = vpop.f32.mrf.mxu1  ;;  %v13627_v26 = vpop.f32.mrf.mxu0  ;;  %13910 = vmatmul.mubr.msk.f32.gmra.mxu0 %vm221_vm0, %v16763_v33  ;;  %13945 = vmatmul.mubr.msk.f32.gmra.mxu1 %vm221_vm0, %v3261_v21  ;;  %v3268_v21 = vld [vmem:[#allocation2 + $0xc5] sm:$0xff]  ;;  %v3680_v63 = vld [vmem:[#allocation2 + $0x36] sm:$0xff] }
 0x12c   : > { %v16912_v24 = vadd.f32 %v13592_v11, %v16822_v27  ;;  %v16915_v28 = vadd.f32 %v13627_v26, %v16757_v32  ;;  %13912 = vmatprep.mubr.msk.f32.mxu0 %vm221_vm0, %v16767_v38  ;;  %13947 = vmatprep.mubr.msk.f32.mxu1 %vm221_vm0, %v3262_v59  ;;  %v3269_v26 = vld [vmem:[#allocation2 + $0xcd] sm:$0xff] }
 0x12d   : > { %v1039_v43 = vpop.f32.mrf.mxu1  ;;  %v1343_v41 = vpop.f32.mrf.mxu0 }
 0x12e   : > { %v16921_v33 = vadd.f32 %v1039_v43, %v16833_v31  ;;  %v16924_v27 = vadd.f32 %v1343_v41, %v16770_v40  ;;  %v2853_v31 = vld [vmem:[#allocation2 + $0x13c] sm:$0x3f]  ;;  %v3682_v41 = vld [vmem:[#allocation2 + $0x46] sm:$0xff] }
 0x12f   : > { %v13595_v0 = vpop.f32.mrf.mxu1  ;;  %v13630_v32 = vpop.f32.mrf.mxu0  ;;  %13913 = vmatmul.mubr.msk.f32.gmra.mxu0 %vm221_vm0, %v2851_v29  ;;  %13948 = vmatmul.mubr.msk.f32.gmra.mxu1 %vm221_vm0, %v3263_v6  ;;  %v3681_v29 = vld [vmem:[#allocation2 + $0x3e] sm:$0xff]  ;;  %v3270_v43 = vld [vmem:[#allocation2 + $0xd5] sm:$0xff] }
 0x130   : > { %v16929_v38 = vadd.f32 %v13595_v0, %v16838_v46  ;;  %v16932_v3 = vadd.f32 %v13630_v32, %v16779_v37  ;;  %13915 = vmatprep.mubr.msk.f32.mxu0 %vm221_vm0, %v2852_v2  ;;  %13950 = vmatprep.mubr.msk.f32.mxu1 %vm221_vm0, %v3264_v35  ;;  %v3271_v32 = vld [vmem:[#allocation2 + $0xdd] sm:$0xff] }
 0x131   : > { %v1049_v40 = vpop.f32.mrf.mxu1  ;;  %v1353_v34 = vpop.f32.mrf.mxu0 }
 0x132   : > { %v16937_v49 = vadd.f32 %v1049_v40, %v16849_v50  ;;  %v16940_v19 = vadd.f32 %v1353_v34, %v16788_v52  ;;  %v3679_v50 = vld [vmem:[#allocation2 + $0x2e] sm:$0xff]  ;;  %v3272_v40 = vld [vmem:[#allocation2 + $0xe5] sm:$0xff]  ;;  %v3684_v34 = vld [vmem:[#allocation2 + $0x56] sm:$0xff] }
 0x133   : > { %v16942_v46 = vpop.f32.mrf.mxu1  ;;  %v13633_v37 = vpop.f32.mrf.mxu0  ;;  %13916 = vmatmul.mubr.msk.f32.gmra.mxu0 %vm221_vm0, %v2853_v31  ;;  %13951 = vmatmul.mubr.msk.f32.gmra.mxu1 %vm221_vm0, %v3265_v15  ;;  %v3683_v31 = vld [vmem:[#allocation2 + $0x4e] sm:$0xff] }
 0x134   : > { %v16947_v53 = vadd.f32 %v13633_v37, %v16796_v60  ;;  %13953 = vmatprep.mubr.msk.f32.mxu1 %vm221_vm0, %v3266_v10  ;;  %13988 = vmatprep.mubr.msk.f32.mxu0 %vm221_vm0, %v3678_v13 }
 0x135   : > { %v16951_v18 = vpop.f32.mrf.mxu1  ;;  %v1363_v52 = vpop.f32.mrf.mxu0 }
 0x136   : > { %v16954_v36 = vadd.f32 %v1363_v52, %v16804_v7 }
 0x137   : > { %v16956_v59 = vpop.f32.mrf.mxu1  ;;  %v13636_v11 = vpop.f32.mrf.mxu0  ;;  %13954 = vmatmul.mubr.msk.f32.gmra.mxu1 %vm221_vm0, %v3267_v56  ;;  %13989 = vmatmul.mubr.msk.f32.vlgmr.msra.gmra.mxu0 %vm221_vm0, %v3679_v50  ;;  %v3273_v56 = vld [vmem:[#allocation2 + $0xed] sm:$0xff]  ;;  %v3685_v50 = vld [vmem:[#allocation2 + $0x5e] sm:$0xff] }
 0x138   : > { %v16961_v60 = vadd.f32 %v13636_v11, %v16812_v45  ;;  %13956 = vmatprep.mubr.msk.f32.mxu1 %vm221_vm0, %v3268_v21  ;;  %13991 = vmatprep.mubr.msk.f32.mxu0 %vm221_vm0, %v3680_v63  ;;  %v3274_v21 = vld [vmem:[#allocation2 + $0xf5] sm:$0xff]  ;;  %v3686_v63 = vld [vmem:[#allocation2 + $0x66] sm:$0xff] }
 0x139   : > { %v16965_v6 = vpop.f32.mrf.mxu1  ;;  %v1373_v7 = vpop.f32.mrf.mxu0 }
 0x13a   : > { %v16968_v2 = vadd.f32 %v1373_v7, %v16820_v23 }
 0x13b   : > { %v16970_v35 = vpop.f32.mrf.mxu1  ;;  %v13639_v0 = vpop.f32.mrf.mxu0  ;;  %13957 = vmatmul.mubr.msk.f32.gmra.mxu1 %vm221_vm0, %v3269_v26  ;;  %13992 = vmatmul.mubr.msk.f32.gmra.mxu0 %vm221_vm0, %v3681_v29 }
 0x13c   : > { %v16975_v45 = vadd.f32 %v13639_v0, %v16828_v55  ;;  %13959 = vmatprep.mubr.msk.f32.mxu1 %vm221_vm0, %v3270_v43  ;;  %13994 = vmatprep.mubr.msk.f32.mxu0 %vm221_vm0, %v3682_v41  ;;  %v3275_v43 = vld [vmem:[#allocation2 + $0xfd] sm:$0xff]  ;;  %v3687_v41 = vld [vmem:[#allocation2 + $0x6e] sm:$0xff] }
 0x13d   : > { %v16979_v15 = vpop.f32.mrf.mxu1  ;;  %v1383_v23 = vpop.f32.mrf.mxu0 }
 0x13e   : > { %v16982_v10 = vadd.f32 %v1383_v23, %v16836_v42 }
 0x13f   : > { %v16984_v13 = vpop.f32.mrf.mxu1  ;;  %v13642_v37 = vpop.f32.mrf.mxu0  ;;  %13960 = vmatmul.mubr.msk.f32.gmra.mxu1 %vm221_vm0, %v3271_v32  ;;  %13995 = vmatmul.mubr.msk.f32.gmra.mxu0 %vm221_vm0, %v3683_v31  ;;  %v3276_v32 = vld [vmem:[#allocation2 + $0x105] sm:$0xff]  ;;  %v3688_v31 = vld [vmem:[#allocation2 + $0x76] sm:$0xff] }
 0x140   : > { %v16989_v55 = vadd.f32 %v13642_v37, %v16844_v62  ;;  %13962 = vmatprep.mubr.msk.f32.mxu1 %vm221_vm0, %v3272_v40  ;;  %13997 = vmatprep.mubr.msk.f32.mxu0 %vm221_vm0, %v3684_v34  ;;  %v3277_v37 = vld [vmem:[#allocation2 + $0x10d] sm:$0xff] }
 0x141   : > { %v16993_v52 = vpop.f32.mrf.mxu1  ;;  %v1393_v42 = vpop.f32.mrf.mxu0 }
 0x142   : > { %v16996_v11 = vadd.f32 %v1393_v42, %v16852_v39 }
 0x143   : > { %v13645_v26 = vpop.f32.mrf.mxu0  ;;  %v13680_v29 = vpop.f32.mrf.mxu1  ;;  %13963 = vmatmul.mubr.msk.f32.gmra.mxu1 %vm221_vm0, %v3273_v56  ;;  %13998 = vmatmul.mubr.msk.f32.gmra.mxu0 %vm221_vm0, %v3685_v50  ;;  %v3689_v56 = vld [vmem:[#allocation2 + $0x7e] sm:$0xff] }
 0x144   : > { %v17001_v62 = vadd.f32 %v13645_v26, %v16858_v30  ;;  %v17004_v7 = vadd.f32 %v13680_v29, %v16861_v5  ;;  %13965 = vmatprep.mubr.msk.f32.mxu1 %vm221_vm0, %v3274_v21  ;;  %14000 = vmatprep.mubr.msk.f32.mxu0 %vm221_vm0, %v3686_v63  ;;  %v3278_v21 = vld [vmem:[#allocation2 + $0x115] sm:$0xff]  ;;  %v3690_v63 = vld [vmem:[#allocation2 + $0x86] sm:$0xff] }
 0x145   : > { %v1403_v39 = vpop.f32.mrf.mxu0  ;;  %v17008_v0 = vpop.f32.mrf.mxu1 }
 0x146   : > { %v17011_v23 = vadd.f32 %v1403_v39, %v16867_v48  ;;  %v11594_v48 = vld [vmem:[%s21586_s3 + $0xf8] sm:$0xff] }
 0x147   : > { %v13648_v40 = vpop.f32.mrf.mxu0  ;;  %v13683_v30 = vpop.f32.mrf.mxu1  ;;  %13966 = vmatmul.mubr.msk.f32.gmra.mxu1 %vm221_vm0, %v3275_v43  ;;  %14001 = vmatmul.mubr.msk.f32.gmra.mxu0 %vm221_vm0, %v3687_v41  ;;  %v3279_v41 = vld [vmem:[#allocation2 + $0x11d] sm:$0xff] }
 0x148   : > { %v17016_v5 = vadd.f32 %v13648_v40, %v16876_v8  ;;  %v17019_v34 = vadd.f32 %v13683_v30, %v16879_v12  ;;  %13968 = vmatprep.mubr.msk.f32.mxu1 %vm221_vm0, %v3276_v32  ;;  %14003 = vmatprep.mubr.msk.f32.mxu0 %vm221_vm0, %v3688_v31  ;;  %v3280_v31 = vld [vmem:[#allocation2 + $0x125] sm:$0xff]  ;;  %v3692_v40 = vld [vmem:[#allocation2 + $0x96] sm:$0xff] }
 0x149   : > { %v1413_v50 = vpop.f32.mrf.mxu0  ;;  %v17026_v42 = vpop.f32.mrf.mxu1  ;;  %14042 = vmatprep.subr.mxu1 %v11594_v48 }
 0x14a   : > { %v17029_v8 = vadd.f32 %v1413_v50, %v16885_v14  ;;  %14043 = vmatpush3.msra.mxu1 %v11594_v48  ;;  %v3691_v14 = vld [vmem:[#allocation2 + $0x8e] sm:$0xff]  ;;  %v3693_v50 = vld [vmem:[#allocation2 + $0x9e] sm:$0xff] }
 0x14b   : > { %v13651_v12 = vpop.f32.mrf.mxu0  ;;  %v13686_v26 = vpop.f32.mrf.mxu1  ;;  %13969 = vmatmul.mubr.msk.f32.gmra.mxu1 %vm221_vm0, %v3277_v37  ;;  %14004 = vmatmul.mubr.msk.f32.gmra.mxu0 %vm221_vm0, %v3689_v56 }
 0x14c   : > { %v17034_v29 = vadd.f32 %v13651_v12, %v16894_v16  ;;  %v17037_v43 = vadd.f32 %v13686_v26, %v16897_v20  ;;  %13971 = vmatprep.mubr.msk.f32.mxu1 %vm221_vm0, %v3278_v21  ;;  %14006 = vmatprep.mubr.msk.f32.mxu0 %vm221_vm0, %v3690_v63  ;;  %v11593_v16 = vld [vmem:[%s21586_s3 + $0xf0] sm:$0xff]  ;;  %v3694_v26 = vld [vmem:[#allocation2 + $0xa6] sm:$0xff] }
 0x14d   : > { %v1423_v39 = vpop.f32.mrf.mxu0  ;;  %v17041_v32 = vpop.f32.mrf.mxu1  ;;  %v3282_v12 = vld [vmem:[#allocation2 + $0x135] sm:$0xff]  ;;  %14044 = vmatprep.subr.mxu1 %v11593_v16 }
 0x14e   : > { %v17044_v30 = vadd.f32 %v1423_v39, %v16903_v22  ;;  %v3281_v22 = vld [vmem:[#allocation2 + $0x12d] sm:$0xff]  ;;  %14045 = vmatpush3.msra.mxu1 %v11593_v16 }
 0x14f   : > { %v13654_v20 = vpop.f32.mrf.mxu0  ;;  %v13689_v37 = vpop.f32.mrf.mxu1  ;;  %13972 = vmatmul.mubr.msk.f32.gmra.mxu1 %vm221_vm0, %v3279_v41  ;;  %14007 = vmatmul.mubr.msk.f32.gmra.mxu0 %vm221_vm0, %v3691_v14 }
 0x150   : > { %21597 = vst [vmem:[#allocation5_spill] sm:$0xff] %v17044_v30  ;;  %v17052_v56 = vadd.f32 %v13654_v20, %v16912_v24  ;;  %v17055_v48 = vadd.f32 %v13689_v37, %v16915_v28  ;;  %13974 = vmatprep.mubr.msk.f32.mxu1 %vm221_vm0, %v3280_v31  ;;  %14009 = vmatprep.mubr.msk.f32.mxu0 %vm221_vm0, %v3692_v40  ;;  %v11592_v24 = vld [vmem:[%s21586_s3 + $0xe8] sm:$0xff]  ;;  %v3696_v37 = vld [vmem:[#allocation2 + $0xb6] sm:$0xff] }
 0x151   : > { %v1433_v21 = vpop.f32.mrf.mxu0  ;;  %v17059_v63 = vpop.f32.mrf.mxu1  ;;  %v3695_v40 = vld [vmem:[#allocation2 + $0xae] sm:$0xff]  ;;  %14046 = vmatprep.subr.mxu1 %v11592_v24 }
 0x152   : > { %v17062_v41 = vadd.f32 %v1433_v21, %v16921_v33  ;;  %v3283_v33 = vld [vmem:[#allocation2 + $0x13d] sm:$0x3f]  ;;  %14047 = vmatpush3.msra.mxu1 %v11592_v24 }
 0x153   : > { %v13657_v28 = vpop.f32.mrf.mxu0  ;;  %v13692_v14 = vpop.f32.mrf.mxu1  ;;  %13975 = vmatmul.mubr.msk.f32.gmra.mxu1 %vm221_vm0, %v3281_v22  ;;  %14010 = vmatmul.mubr.msk.f32.gmra.mxu0 %vm221_vm0, %v3693_v50  ;;  %v1065_v22 = vadd.f32 %v16942_v46, %v16594_v44 }
 0x154   : > { %21598 = vst [vmem:[#allocation6_spill] sm:$0xff] %v17062_v41  ;;  %v17070_v39 = vadd.f32 %v13657_v28, %v16929_v38  ;;  %v17073_v31 = vadd.f32 %v13692_v14, %v16932_v3  ;;  %13977 = vmatprep.mubr.msk.f32.mxu1 %vm221_vm0, %v3282_v12  ;;  %14012 = vmatprep.mubr.msk.f32.mxu0 %vm221_vm0, %v3694_v26  ;;  %v11591_v3 = vld [vmem:[%s21586_s3 + $0xe0] sm:$0xff]  ;;  %v3712_v41 = vld [vmem:[#allocation2 + $0x136] sm:$0xff] }
 0x155   : > { %v1443_v16 = vpop.f32.mrf.mxu0  ;;  %v17077_v20 = vpop.f32.mrf.mxu1  ;;  %v1060_v12 = vadd.f32 %v16951_v18, %v16607_v47  ;;  %14048 = vmatprep.subr.mxu1 %v11591_v3  ;;  %v3698_v28 = vld [vmem:[#allocation2 + $0xc6] sm:$0xff]  ;;  %v1075_v14 = vadd.f32 %v16956_v59, %v16616_v51  ;;  %v11590_v47 = vld [vmem:[%s21586_s3 + $0xd8] sm:$0xff]  ;;  %v3699_v51 = vld [vmem:[#allocation2 + $0xce] sm:$0xff] }
 0x156   : > { %v17082_v38 = vadd.f32 %v1443_v16, %v16937_v49  ;;  %v3697_v49 = vld [vmem:[#allocation2 + $0xbe] sm:$0xff]  ;;  %14049 = vmatpush3.msra.mxu1 %v11591_v3  ;;  %v3700_v3 = vld [vmem:[#allocation2 + $0xd6] sm:$0xff] }
 0x157   : > { %v13660_v50 = vpop.f32.mrf.mxu0  ;;  %v13695_v21 = vpop.f32.mrf.mxu1  ;;  %13978 = vmatmul.mubr.msk.f32.gmra.mxu1 %vm221_vm0, %v3283_v33  ;;  %14013 = vmatmul.mubr.msk.f32.gmra.mxu0 %vm221_vm0, %v3695_v40  ;;  %v1070_v40 = vadd.f32 %v16965_v6, %v16629_v54 }
 0x158   : > { %21599 = vst [vmem:[#allocation7_spill] sm:$0xff] %v17082_v38  ;;  %v17091_v26 = vadd.f32 %v13660_v50, %v1065_v22  ;;  %v17094_v44 = vadd.f32 %v13695_v21, %v16947_v53  ;;  %14015 = vmatprep.mubr.msk.f32.mxu0 %vm221_vm0, %v3696_v37  ;;  %14050 = vmatprep.subr.mxu1 %v11590_v47 }
 0x159   : > { %v1453_v46 = vpop.f32.mrf.mxu0  ;;  %v17097_v24 = vpop.f32.mrf.mxu1  ;;  %14051 = vmatpush3.msra.mxu1 %v11590_v47  ;;  %v1085_v50 = vadd.f32 %v16970_v35, %v16640_v57  ;;  %v3702_v35 = vld [vmem:[#allocation2 + $0xe6] sm:$0xff] }
 0x15a   : > { %v17101_v33 = vadd.f32 %v1453_v46, %v1060_v12  ;;  %v11589_v46 = vld [vmem:[%s21586_s3 + $0xd0] sm:$0xff] }
 0x15b   : > { %v13663_v53 = vpop.f32.mrf.mxu0  ;;  %v13698_v18 = vpop.f32.mrf.mxu1  ;;  %14016 = vmatmul.mubr.msk.f32.gmra.mxu0 %vm221_vm0, %v3697_v49  ;;  %v3701_v49 = vld [vmem:[#allocation2 + $0xde] sm:$0xff]  ;;  %14052 = vmatprep.subr.mxu1 %v11589_v46 }
 0x15c   : > { %21600 = vst [vmem:[#allocation8_spill] sm:$0xff] %v17101_v33  ;;  %v17109_v16 = vadd.f32 %v13663_v53, %v1075_v14  ;;  %v17112_v37 = vadd.f32 %v13698_v18, %v16961_v60  ;;  %14018 = vmatprep.mubr.msk.f32.mxu0 %vm221_vm0, %v3698_v28  ;;  %v1095_v14 = vadd.f32 %v16984_v13, %v16666_v1  ;;  %v3704_v13 = vld [vmem:[#allocation2 + $0xf6] sm:$0xff] }
 0x15d   : > { %v1463_v59 = vpop.f32.mrf.mxu0  ;;  %v17115_v22 = vpop.f32.mrf.mxu1  ;;  %14053 = vmatpush3.msra.mxu1 %v11589_v46  ;;  %v3705_v46 = vld [vmem:[#allocation2 + $0xfe] sm:$0xff]  ;;  %v11585_v33 = vld [vmem:[%s21586_s3 + $0xb0] sm:$0xff] }
 0x15e   : > { %v17119_v21 = vadd.f32 %v1463_v59, %v1070_v40  ;;  %v3703_v40 = vld [vmem:[#allocation2 + $0xee] sm:$0xff] }
 0x15f   : > { %v13666_v12 = vpop.f32.mrf.mxu0  ;;  %v13701_v54 = vpop.f32.mrf.mxu1  ;;  %14019 = vmatmul.mubr.msk.f32.gmra.mxu0 %vm221_vm0, %v3699_v51  ;;  %v11588_v51 = vld [vmem:[%s21586_s3 + $0xc8] sm:$0xff] }
 0x160   : > { %21601 = vst [vmem:[#allocation9_spill] sm:$0xff] %v17119_v21  ;;  %v17122_v6 = vadd.f32 %v13666_v12, %v1085_v50  ;;  %v17125_v60 = vadd.f32 %v13701_v54, %v16975_v45  ;;  %14021 = vmatprep.mubr.msk.f32.mxu0 %vm221_vm0, %v3700_v3  ;;  %14054 = vmatprep.subr.mxu1 %v11588_v51  ;;  %v4432_v3 = vld [vmem:[%s21586_s3 + $0x78] sm:$0xff]  ;;  %v4431_v12 = vld [vmem:[%s21586_s3 + $0x70] sm:$0xff] }
 0x161   : > { %v17131_v28 = vpop.f32.mrf.mxu0  ;;  %v17133_v57 = vpop.f32.mrf.mxu1  ;;  %14055 = vmatpush3.msra.mxu1 %v11588_v51  ;;  %14128 = vmatprep.subr.mxu0 %v4432_v3  ;;  %v4429_v51 = vld [vmem:[%s21586_s3 + $0x60] sm:$0xff] }
 0x162   : > { %14129 = vmatpush3.msra.mxu0 %v4432_v3  ;;  %v3709_v21 = vld [vmem:[#allocation2 + $0x11e] sm:$0xff] }
 0x163   : > { %v13669_v47 = vpop.f32.mrf.mxu0  ;;  %v13704_v45 = vpop.f32.mrf.mxu1  ;;  %14022 = vmatmul.mubr.msk.f32.gmra.mxu0 %vm221_vm0, %v3701_v49  ;;  %14130 = vmatprep.subr.mxu0 %v4431_v12 }
 0x164   : > { %v17138_v53 = vadd.f32 %v13669_v47, %v1095_v14  ;;  %v17141_v18 = vadd.f32 %v13704_v45, %v16989_v55  ;;  %14024 = vmatprep.mubr.msk.f32.mxu0 %vm221_vm0, %v3702_v35  ;;  %v11587_v35 = vld [vmem:[%s21586_s3 + $0xc0] sm:$0xff]  ;;  %14131 = vmatpush3.msra.mxu0 %v4431_v12 }
 0x165   : > { %v17147_v59 = vpop.f32.mrf.mxu0  ;;  %v17149_v1 = vpop.f32.mrf.mxu1  ;;  %v3706_v45 = vld [vmem:[#allocation2 + $0x106] sm:$0xff]  ;;  %14056 = vmatprep.subr.mxu1 %v11587_v35 }
 0x166   : > { %14057 = vmatpush3.msra.mxu1 %v11587_v35  ;;  %v3708_v35 = vld [vmem:[#allocation2 + $0x116] sm:$0xff] }
 0x167   : > { %v13707_v55 = vpop.f32.mrf.mxu1  ;;  %v13742_v50 = vpop.f32.mrf.mxu0  ;;  %14025 = vmatmul.mubr.msk.f32.gmra.mxu0 %vm221_vm0, %v3703_v40 }
 0x168   : > { %v17159_v54 = vadd.f32 %v13707_v55, %v17001_v62  ;;  %v17162_v49 = vadd.f32 %v13742_v50, %v17004_v7  ;;  %14027 = vmatprep.mubr.msk.f32.mxu0 %vm221_vm0, %v3704_v13  ;;  %v4430_v62 = vld [vmem:[%s21586_s3 + $0x68] sm:$0xff]  ;;  %v11586_v50 = vld [vmem:[%s21586_s3 + $0xb8] sm:$0xff] }
 0x169   : > { %v17168_v14 = vpop.f32.mrf.mxu1  ;;  %v17170_v47 = vpop.f32.mrf.mxu0  ;;  %14132 = vmatprep.subr.mxu0 %v4430_v62  ;;  %v3707_v55 = vld [vmem:[#allocation2 + $0x10e] sm:$0xff]  ;;  %14058 = vmatprep.subr.mxu1 %v11586_v50 }
 0x16a   : > { %14133 = vmatpush3.msra.mxu0 %v4430_v62  ;;  %14059 = vmatpush3.msra.mxu1 %v11586_v50  ;;  %v4427_v62 = vld [vmem:[%s21586_s3 + $0x50] sm:$0xff] }
 0x16b   : > { %v13710_v7 = vpop.f32.mrf.mxu1  ;;  %v13745_v40 = vpop.f32.mrf.mxu0  ;;  %14028 = vmatmul.mubr.msk.f32.gmra.mxu0 %vm221_vm0, %v3705_v46  ;;  %14134 = vmatprep.subr.mxu0 %v4429_v51 }
 0x16c   : > { %v17180_v13 = vadd.f32 %v13710_v7, %v17016_v5  ;;  %v17183_v3 = vadd.f32 %v13745_v40, %v17019_v34  ;;  %14030 = vmatprep.mubr.msk.f32.mxu0 %vm221_vm0, %v3706_v45  ;;  %v4428_v5 = vld [vmem:[%s21586_s3 + $0x58] sm:$0xff]  ;;  %14135 = vmatpush3.msra.mxu0 %v4429_v51 }
 0x16d   : > { %v17189_v12 = vpop.f32.mrf.mxu1  ;;  %v17191_v46 = vpop.f32.mrf.mxu0  ;;  %14136 = vmatprep.subr.mxu0 %v4428_v5  ;;  %14060 = vmatprep.subr.mxu1 %v11585_v33 }
 0x16e   : > { %14137 = vmatpush3.msra.mxu0 %v4428_v5  ;;  %14061 = vmatpush3.msra.mxu1 %v11585_v33 }
 0x16f   : > { %v13713_v34 = vpop.f32.mrf.mxu1  ;;  %v13748_v45 = vpop.f32.mrf.mxu0  ;;  %14031 = vmatmul.mubr.msk.f32.gmra.mxu0 %vm221_vm0, %v3707_v55  ;;  %v3710_v55 = vld [vmem:[#allocation2 + $0x126] sm:$0xff]  ;;  %14138 = vmatprep.subr.mxu0 %v4427_v62 }
 0x170   : > { %v17201_v7 = vadd.f32 %v13713_v34, %v17034_v29  ;;  %v17204_v40 = vadd.f32 %v13748_v45, %v17037_v43  ;;  %14033 = vmatprep.mubr.msk.f32.mxu0 %vm221_vm0, %v3708_v35  ;;  %14139 = vmatpush3.msra.mxu0 %v4427_v62  ;;  %v4426_v29 = vld [vmem:[%s21586_s3 + $0x48] sm:$0xff] }
 0x171   : > { %v17207_v51 = vpop.f32.mrf.mxu1  ;;  %v17209_v50 = vpop.f32.mrf.mxu0  ;;  %v3711_v45 = vld [vmem:[#allocation2 + $0x12e] sm:$0xff]  ;;  %14140 = vmatprep.subr.mxu0 %v4426_v29 }
 0x172   : > { %21602 = vst [vmem:[#allocation10_spill] sm:$0xff] %v17207_v51  ;;  %14141 = vmatpush3.msra.mxu0 %v4426_v29  ;;  %v4424_v29 = vld [vmem:[%s21586_s3 + $0x38] sm:$0xff] }
 0x173   : > { %v13716_v43 = vpop.f32.mrf.mxu1  ;;  %v13751_v34 = vpop.f32.mrf.mxu0  ;;  %14034 = vmatmul.mubr.msk.f32.gmra.mxu0 %vm221_vm0, %v3709_v21  ;;  %v11584_v21 = vld [vmem:[%s21586_s3 + $0xa8] sm:$0xff] }
 0x174   : > { %v17219_v35 = vadd.f32 %v13716_v43, %v17052_v56  ;;  %v17222_v5 = vadd.f32 %v13751_v34, %v17055_v48  ;;  %14036 = vmatprep.mubr.msk.f32.mxu0 %vm221_vm0, %v3710_v55  ;;  %v4425_v56 = vld [vmem:[%s21586_s3 + $0x40] sm:$0xff]  ;;  %14062 = vmatprep.subr.mxu1 %v11584_v21 }
 0x175   : > { %v17225_v62 = vpop.f32.mrf.mxu1  ;;  %v17227_v38 = vpop.f32.mrf.mxu0  ;;  %v3713_v34 = vld [vmem:[#allocation2 + $0x13e] sm:$0x3f]  ;;  %14063 = vmatpush3.msra.mxu1 %v11584_v21  ;;  %14142 = vmatprep.subr.mxu0 %v4425_v56 }
 0x176   : > { %21603 = vst [vmem:[#allocation11_spill] sm:$0xff] %v17225_v62  ;;  %21604 = vst [vmem:[#allocation12_spill] sm:$0xff] %v17227_v38  ;;  %14143 = vmatpush3.msra.mxu0 %v4425_v56  ;;  %v4422_v56 = vld [vmem:[%s21586_s3 + $0x28] sm:$0xff] }
 0x177   : > { %v13719_v48 = vpop.f32.mrf.mxu1  ;;  %v13754_v43 = vpop.f32.mrf.mxu0  ;;  %14037 = vmatmul.mubr.msk.f32.gmra.mxu0 %vm221_vm0, %v3711_v45  ;;  %14144 = vmatprep.subr.mxu0 %v4424_v29 }
 0x178   : > { %v17237_v33 = vadd.f32 %v13719_v48, %v17070_v39  ;;  %v17240_v55 = vadd.f32 %v13754_v43, %v17073_v31  ;;  %14039 = vmatprep.mubr.msk.f32.mxu0 %vm221_vm0, %v3712_v41  ;;  %v4423_v39 = vld [vmem:[%s21586_s3 + $0x30] sm:$0xff]  ;;  %v11583_v41 = vld [vmem:[%s21586_s3 + $0xa0] sm:$0xff]  ;;  %14145 = vmatpush3.msra.mxu0 %v4424_v29 }
 0x179   : > { %v17246_v62 = vpop.f32.mrf.mxu1  ;;  %v17248_v38 = vpop.f32.mrf.mxu0  ;;  %14064 = vmatprep.subr.mxu1 %v11583_v41  ;;  %14146 = vmatprep.subr.mxu0 %v4423_v39 }
 0x17a   : > { %21605 = vst [vmem:[#allocation13_spill] sm:$0xff] %v17246_v62  ;;  %21606 = vst [vmem:[#allocation14_spill] sm:$0xff] %v17248_v38  ;;  %14065 = vmatpush3.msra.mxu1 %v11583_v41  ;;  %14147 = vmatpush3.msra.mxu0 %v4423_v39  ;;  %v11581_v39 = vld [vmem:[%s21586_s3 + $0x90] sm:$0xff]  ;;  %v17328_v38 = vld [vmem:[#allocation3] sm:$0xff] }
 0x17b   : > { %v13722_v31 = vpop.f32.mrf.mxu1  ;;  %v13757_v45 = vpop.f32.mrf.mxu0  ;;  %14040 = vmatmul.mubr.msk.f32.gmra.mxu0 %vm221_vm0, %v3713_v34  ;;  %14148 = vmatprep.subr.mxu0 %v4422_v56  ;;  %21615 = vst [vmem:[#allocation23_spill] sm:$0xff] %v17328_v38 }
 0x17c   : > { %v17258_v21 = vadd.f32 %v13722_v31, %v17091_v26  ;;  %v17261_v48 = vadd.f32 %v13757_v45, %v17094_v44  ;;  %v11582_v26 = vld [vmem:[%s21586_s3 + $0x98] sm:$0xff]  ;;  %v4421_v44 = vld [vmem:[%s21586_s3 + $0x20] sm:$0xff]  ;;  %14160 = vmatprep.mubr.f32.mxu0 %v16646_v58  ;;  %14149 = vmatpush3.msra.mxu0 %v4422_v56 }
 0x17d   : > { %v17266_v43 = vpop.f32.mrf.mxu1  ;;  %v17268_v34 = vpop.f32.mrf.mxu0  ;;  %14066 = vmatprep.subr.mxu1 %v11582_v26  ;;  %v4420_v58 = vld [vmem:[%s21586_s3 + $0x18] sm:$0xff]  ;;  %14150 = vmatprep.subr.mxu0 %v4421_v44 }
 0x17e   : > { %21607 = vst [vmem:[#allocation15_spill] sm:$0xff] %v17266_v43  ;;  %21608 = vst [vmem:[#allocation16_spill] sm:$0xff] %v17268_v34  ;;  %14067 = vmatpush3.msra.mxu1 %v11582_v26  ;;  %14151 = vmatpush3.msra.mxu0 %v4421_v44  ;;  %v4418_v44 = vld [vmem:[%s21586_s3 + $0x8] sm:$0xff] }
 0x17f   : > { %v13725_v29 = vpop.f32.mrf.mxu1  ;;  %v13760_v31 = vpop.f32.mrf.mxu0  ;;  %14068 = vmatprep.subr.mxu1 %v11581_v39  ;;  %14152 = vmatprep.subr.mxu0 %v4420_v58 }
 0x180   : > { %v17278_v45 = vadd.f32 %v13725_v29, %v17109_v16  ;;  %v17281_v41 = vadd.f32 %v13760_v31, %v17112_v37  ;;  %14069 = vmatpush3.msra.mxu1 %v11581_v39  ;;  %v11580_v16 = vld [vmem:[%s21586_s3 + $0x88] sm:$0xff]  ;;  %v4419_v37 = vld [vmem:[%s21586_s3 + $0x10] sm:$0xff]  ;;  %14153 = vmatpush3.msra.mxu0 %v4420_v58  ;;  %v11579_v39 = vld [vmem:[%s21586_s3 + $0x80] sm:$0xff] }
 0x181   : > { %v17289_v43 = vpop.f32.mrf.mxu1  ;;  %v17291_v34 = vpop.f32.mrf.mxu0  ;;  %14070 = vmatprep.subr.mxu1 %v11580_v16  ;;  %14154 = vmatprep.subr.mxu0 %v4419_v37  ;;  %v4434_v58 = vld [vmem:[#allocation3 + $0x9] sm:$0xff] }
 0x182   : > { %21609 = vst [vmem:[#allocation17_spill] sm:$0xff] %v17289_v43  ;;  %21610 = vst [vmem:[#allocation18_spill] sm:$0xff] %v17291_v34  ;;  %14071 = vmatpush3.msra.mxu1 %v11580_v16  ;;  %14155 = vmatpush3.msra.mxu0 %v4419_v37 }
 0x183   : > { %v13728_v56 = vpop.f32.mrf.mxu1  ;;  %v13763_v26 = vpop.f32.mrf.mxu0  ;;  %14072 = vmatprep.subr.mxu1 %v11579_v39  ;;  %14156 = vmatprep.subr.mxu0 %v4418_v44 }
 0x184   : > { %v17300_v29 = vadd.f32 %v13728_v56, %v17122_v6  ;;  %v17303_v31 = vadd.f32 %v13763_v26, %v17125_v60  ;;  %v4433_v6 = vld [vmem:[#allocation3 + $0x1] sm:$0xff]  ;;  %v4417_v60 = vld [vmem:[%s21586_s3] sm:$0xff]  ;;  %14073 = vmatpush3.msra.mxu1 %v11579_v39  ;;  %14157 = vmatpush3.msra.mxu0 %v4418_v44 }
 0x185   : > { %v17311_v43 = vpop.f32.mrf.mxu1  ;;  %v17313_v34 = vpop.f32.mrf.mxu0  ;;  %14074 = vmatprep.mubr.f32.mxu1 %v4433_v6  ;;  %14158 = vmatprep.subr.mxu0 %v4417_v60 }
 0x186   : > { %21611 = vst [vmem:[#allocation19_spill] sm:$0xff] %v17311_v43  ;;  %21612 = vst [vmem:[#allocation20_spill] sm:$0xff] %v17313_v34  ;;  %14075 = vmatmul.mubr.f32.vlgmr.msra.gmra.mxu1 %v4434_v58  ;;  %14159 = vmatpush3.msra.mxu0 %v4417_v60 }
 0x187   : > { %v13731_v16 = vpop.f32.mrf.mxu1  ;;  %v13766_v56 = vpop.f32.mrf.mxu0  ;;  %14161 = vmatmul.mubr.f32.vlgmr.msra.gmra.mxu0 %v17328_v38 }
 0x188   : > { %v17319_v26 = vadd.f32 %v13731_v16, %v17138_v53  ;;  %v17322_v43 = vadd.f32 %v13766_v56, %v17141_v18 }
 0x189   : > { %v17324_v34 = vpop.f32.mrf.mxu1  ;;  %v17326_v37 = vpop.f32.mrf.mxu0 }
 0x18a   : > { %21613 = vst [vmem:[#allocation21_spill] sm:$0xff] %v17324_v34  ;;  %21614 = vst [vmem:[#allocation22_spill] sm:$0xff] %v17326_v37 }
 0x18b   : > { %v13769_v39 = vpop.f32.mrf.mxu0  ;;  %v13804_v62 = vpop.f32.mrf.mxu1 }
 0x18c   : > { %v17332_v53 = vadd.f32 %v13769_v39, %v17159_v54  ;;  %v17335_v18 = vadd.f32 %v13804_v62, %v17162_v49 }
 0x18d   : > { %v17337_v44 = vpop.f32.mrf.mxu0  ;;  %v17339_v6 = vpop.f32.mrf.mxu1 }
 0x18e   : > { %21616 = vst [vmem:[#allocation24_spill] sm:$0xff] %v17337_v44 }
 0x18f   : > { %v13772_v58 = vpop.f32.mrf.mxu0  ;;  %v13807_v16 = vpop.f32.mrf.mxu1 }
 0x190   : > { %v17342_v60 = vadd.f32 %v13772_v58, %v17180_v13  ;;  %v17345_v56 = vadd.f32 %v13807_v16, %v17183_v3  ;;  %v17361_v13 = vld [vmem:[#allocation3 + $0x2] sm:$0xff]  ;;  %v11610_v16 = vld [vmem:[%s21586_s3 + $0x178] sm:$0xff] }
 0x191   : > { %v17347_v34 = vpop.f32.mrf.mxu0  ;;  %v17349_v37 = vpop.f32.mrf.mxu1  ;;  %21620 = vst [vmem:[#allocation28_spill] sm:$0xff] %v17361_v13  ;;  %7849 = vst [vmem:[#allocation3] sm:$0xff] %v17328_v38  ;;  %14214 = vmatprep.subr.mxu1 %v11610_v16 }
 0x192   : > { %21617 = vst [vmem:[#allocation25_spill] sm:$0xff] %v17347_v34  ;;  %14215 = vmatpush3.msra.mxu1 %v11610_v16 }
 0x193   : > { %v13775_v54 = vpop.f32.mrf.mxu0  ;;  %v13810_v39 = vpop.f32.mrf.mxu1 }
 0x194   : > { %v17352_v49 = vadd.f32 %v13775_v54, %v17201_v7  ;;  %v17355_v62 = vadd.f32 %v13810_v39, %v17204_v40 }
 0x195   : > { %v17357_v44 = vpop.f32.mrf.mxu0  ;;  %v17359_v51 = vpop.f32.mrf.mxu1 }
 0x196   : > { %21618 = vst [vmem:[#allocation26_spill] sm:$0xff] %v17357_v44  ;;  %21619 = vst [vmem:[#allocation27_spill] sm:$0xff] %v17359_v51 }
 0x197   : > { %v13778_v3 = vpop.f32.mrf.mxu0  ;;  %v13813_v58 = vpop.f32.mrf.mxu1 }
 0x198   : > { %v17368_v7 = vadd.f32 %v13778_v3, %v17219_v35  ;;  %v17371_v40 = vadd.f32 %v13813_v58, %v17222_v5  ;;  %v11609_v5 = vld [vmem:[%s21586_s3 + $0x170] sm:$0xff] }
 0x199   : > { %v17373_v54 = vpop.f32.mrf.mxu0  ;;  %v17375_v39 = vpop.f32.mrf.mxu1  ;;  %14216 = vmatprep.subr.mxu1 %v11609_v5 }
 0x19a   : > { %21621 = vst [vmem:[#allocation29_spill] sm:$0xff] %v17373_v54  ;;  %21622 = vst [vmem:[#allocation30_spill] sm:$0xff] %v17375_v39  ;;  %14217 = vmatpush3.msra.mxu1 %v11609_v5 }
 0x19b   : > { %v13781_v13 = vpop.f32.mrf.mxu0  ;;  %v13816_v44 = vpop.f32.mrf.mxu1 }
 0x19c   : > { %v17378_v34 = vadd.f32 %v13781_v13, %v17237_v33  ;;  %v17381_v30 = vadd.f32 %v13816_v44, %v17240_v55  ;;  %v11608_v13 = vld [vmem:[%s21586_s3 + $0x168] sm:$0xff] }
 0x19d   : > { %v17383_v51 = vpop.f32.mrf.mxu0  ;;  %v17385_v35 = vpop.f32.mrf.mxu1  ;;  %14218 = vmatprep.subr.mxu1 %v11608_v13 }
 0x19e   : > { %21623 = vst [vmem:[#allocation31_spill] sm:$0xff] %v17383_v51  ;;  %21624 = vst [vmem:[#allocation32_spill] sm:$0xff] %v17385_v35  ;;  %14219 = vmatpush3.msra.mxu1 %v11608_v13 }
 0x19f   : > { %v13784_v3 = vpop.f32.mrf.mxu0  ;;  %v13819_v58 = vpop.f32.mrf.mxu1 }
 0x1a0   : > { %v17391_v16 = vadd.f32 %v13784_v3, %v17258_v21  ;;  %v17394_v33 = vadd.f32 %v13819_v58, %v17261_v48  ;;  %v11607_v3 = vld [vmem:[%s21586_s3 + $0x160] sm:$0xff] }
 0x1a1   : > { %v17396_v55 = vpop.f32.mrf.mxu0  ;;  %v17398_v44 = vpop.f32.mrf.mxu1  ;;  %14220 = vmatprep.subr.mxu1 %v11607_v3 }
 0x1a2   : > { %21625 = vst [vmem:[#allocation33_spill] sm:$0xff] %v17396_v55  ;;  %21626 = vst [vmem:[#allocation34_spill] sm:$0xff] %v17398_v44  ;;  %14221 = vmatpush3.msra.mxu1 %v11607_v3 }
 0x1a3   : > { %v13787_v51 = vpop.f32.mrf.mxu0  ;;  %v13822_v54 = vpop.f32.mrf.mxu1 }
 0x1a4   : > { %v17404_v35 = vadd.f32 %v13787_v51, %v17278_v45  ;;  %v17407_v21 = vadd.f32 %v13822_v54, %v17281_v41  ;;  %v11606_v54 = vld [vmem:[%s21586_s3 + $0x158] sm:$0xff] }
 0x1a5   : > { %v17409_v48 = vpop.f32.mrf.mxu0  ;;  %v17411_v5 = vpop.f32.mrf.mxu1  ;;  %14222 = vmatprep.subr.mxu1 %v11606_v54 }
 0x1a6   : > { %21627 = vst [vmem:[#allocation35_spill] sm:$0xff] %v17409_v48  ;;  %21628 = vst [vmem:[#allocation36_spill] sm:$0xff] %v17411_v5  ;;  %14223 = vmatpush3.msra.mxu1 %v11606_v54 }
 0x1a7   : > { %v13790_v58 = vpop.f32.mrf.mxu0  ;;  %v13825_v55 = vpop.f32.mrf.mxu1 }
 0x1a8   : > { %v17417_v13 = vadd.f32 %v13790_v58, %v17300_v29  ;;  %v17420_v51 = vadd.f32 %v13825_v55, %v17303_v31 }
 0x1a9   : > { %v17422_v45 = vpop.f32.mrf.mxu0  ;;  %v17424_v41 = vpop.f32.mrf.mxu1 }
 0x1aa   : > { %21629 = vst [vmem:[#allocation37_spill] sm:$0xff] %v17422_v45  ;;  %21630 = vst [vmem:[#allocation38_spill] sm:$0xff] %v17424_v41  ;;  %v11605_v41 = vld [vmem:[%s21586_s3 + $0x150] sm:$0xff] }
 0x1ab   : > { %v13793_v48 = vpop.f32.mrf.mxu0  ;;  %v13828_v5 = vpop.f32.mrf.mxu1  ;;  %14224 = vmatprep.subr.mxu1 %v11605_v41 }
 0x1ac   : > { %v17430_v3 = vadd.f32 %v13793_v48, %v17319_v26  ;;  %v17433_v29 = vadd.f32 %v13828_v5, %v17322_v43  ;;  %14225 = vmatpush3.msra.mxu1 %v11605_v41  ;;  %v11604_v48 = vld [vmem:[%s21586_s3 + $0x148] sm:$0xff] }
 0x1ad   : > { %v17435_v31 = vpop.f32.mrf.mxu0  ;;  %v17437_v55 = vpop.f32.mrf.mxu1  ;;  %14226 = vmatprep.subr.mxu1 %v11604_v48 }
 0x1ae   : > { %21631 = vst [vmem:[#allocation39_spill] sm:$0xff] %v17435_v31  ;;  %21632 = vst [vmem:[#allocation40_spill] sm:$0xff] %v17437_v55  ;;  %14227 = vmatpush3.msra.mxu1 %v11604_v48 }
 0x1af   : > { %v13831_v58 = vpop.f32.mrf.mxu1  ;;  %v13866_v45 = vpop.f32.mrf.mxu0 }
 0x1b0   : > { %v17443_v44 = vadd.f32 %v13831_v58, %v17332_v53  ;;  %v17446_v54 = vadd.f32 %v13866_v45, %v17335_v18 }
 0x1b1   : > { %v17448_v26 = vpop.f32.mrf.mxu1  ;;  %v17450_v43 = vpop.f32.mrf.mxu0 }
 0x1b2   : > { %21633 = vst [vmem:[#allocation41_spill] sm:$0xff] %v17448_v26  ;;  %v11603_v26 = vld [vmem:[%s21586_s3 + $0x140] sm:$0xff] }
 0x1b3   : > { %v13834_v5 = vpop.f32.mrf.mxu1  ;;  %v13869_v31 = vpop.f32.mrf.mxu0  ;;  %14228 = vmatprep.subr.mxu1 %v11603_v26 }
 0x1b4   : > { %v17456_v55 = vadd.f32 %v13834_v5, %v17342_v60  ;;  %v17459_v53 = vadd.f32 %v13869_v31, %v17345_v56  ;;  %14229 = vmatpush3.msra.mxu1 %v11603_v26 }
 0x1b5   : > { %v17461_v18 = vpop.f32.mrf.mxu1  ;;  %v17463_v45 = vpop.f32.mrf.mxu0 }
 0x1b6   : > { %21634 = vst [vmem:[#allocation42_spill] sm:$0xff] %v17461_v18  ;;  %v11602_v18 = vld [vmem:[%s21586_s3 + $0x138] sm:$0xff] }
 0x1b7   : > { %v13837_v58 = vpop.f32.mrf.mxu1  ;;  %v13872_v41 = vpop.f32.mrf.mxu0  ;;  %14230 = vmatprep.subr.mxu1 %v11602_v18 }
 0x1b8   : > { %v17469_v39 = vadd.f32 %v13837_v58, %v17352_v49  ;;  %v17472_v60 = vadd.f32 %v13872_v41, %v17355_v62  ;;  %v11626_v49 = vld [vmem:[%s21586_s3 + $0x1f8] sm:$0xff]  ;;  %14231 = vmatpush3.msra.mxu1 %v11602_v18 }
 0x1b9   : > { %v17474_v56 = vpop.f32.mrf.mxu1  ;;  %v17476_v31 = vpop.f32.mrf.mxu0  ;;  %14300 = vmatprep.subr.mxu0 %v11626_v49 }
 0x1ba   : > { %21635 = vst [vmem:[#allocation43_spill] sm:$0xff] %v17472_v60  ;;  %21636 = vst [vmem:[#allocation44_spill] sm:$0xff] %v17474_v56  ;;  %14301 = vmatpush3.msra.mxu0 %v11626_v49  ;;  %v11625_v56 = vld [vmem:[%s21586_s3 + $0x1f0] sm:$0xff] }
 0x1bb   : > { %21637 = vst [vmem:[#allocation45_spill] sm:$0xff] %v17476_v31  ;;  %v13840_v48 = vpop.f32.mrf.mxu1  ;;  %v13875_v5 = vpop.f32.mrf.mxu0  ;;  %14302 = vmatprep.subr.mxu0 %v11625_v56  ;;  %v11601_v49 = vld [vmem:[%s21586_s3 + $0x130] sm:$0xff] }
 0x1bc   : > { %v17485_v58 = vadd.f32 %v13840_v48, %v17368_v7  ;;  %v17488_v62 = vadd.f32 %v13875_v5, %v17371_v40  ;;  %14303 = vmatpush3.msra.mxu0 %v11625_v56  ;;  %v11624_v7 = vld [vmem:[%s21586_s3 + $0x1e8] sm:$0xff]  ;;  %v11623_v56 = vld [vmem:[%s21586_s3 + $0x1e0] sm:$0xff]  ;;  %14232 = vmatprep.subr.mxu1 %v11601_v49 }
 0x1bd   : > { %v17490_v41 = vpop.f32.mrf.mxu1  ;;  %v17492_v26 = vpop.f32.mrf.mxu0  ;;  %14304 = vmatprep.subr.mxu0 %v11624_v7  ;;  %14233 = vmatpush3.msra.mxu1 %v11601_v49  ;;  %v11621_v49 = vld [vmem:[%s21586_s3 + $0x1d0] sm:$0xff] }
 0x1be   : > { %21638 = vst [vmem:[#allocation46_spill] sm:$0xff] %v17490_v41  ;;  %14305 = vmatpush3.msra.mxu0 %v11624_v7 }
 0x1bf   : > { %v13843_v60 = vpop.f32.mrf.mxu1  ;;  %v13878_v31 = vpop.f32.mrf.mxu0  ;;  %14306 = vmatprep.subr.mxu0 %v11623_v56 }
 0x1c0   : > { %v17501_v40 = vadd.f32 %v13843_v60, %v17378_v34  ;;  %v17504_v48 = vadd.f32 %v13878_v31, %v17381_v30  ;;  %14307 = vmatpush3.msra.mxu0 %v11623_v56  ;;  %v11622_v30 = vld [vmem:[%s21586_s3 + $0x1d8] sm:$0xff]  ;;  %v11600_v56 = vld [vmem:[%s21586_s3 + $0x128] sm:$0xff] }
 0x1c1   : > { %v17506_v18 = vpop.f32.mrf.mxu1  ;;  %v17508_v5 = vpop.f32.mrf.mxu0  ;;  %14308 = vmatprep.subr.mxu0 %v11622_v30  ;;  %14234 = vmatprep.subr.mxu1 %v11600_v56 }
 0x1c2   : > { %21639 = vst [vmem:[#allocation47_spill] sm:$0xff] %v17504_v48  ;;  %21640 = vst [vmem:[#allocation48_spill] sm:$0xff] %v17506_v18  ;;  %14309 = vmatpush3.msra.mxu0 %v11622_v30  ;;  %v11619_v30 = vld [vmem:[%s21586_s3 + $0x1c0] sm:$0xff]  ;;  %14235 = vmatpush3.msra.mxu1 %v11600_v56  ;;  %v11597_v56 = vld [vmem:[%s21586_s3 + $0x110] sm:$0xff] }
 0x1c3   : > { %21641 = vst [vmem:[#allocation49_spill] sm:$0xff] %v17508_v5  ;;  %v13846_v34 = vpop.f32.mrf.mxu1  ;;  %v13881_v60 = vpop.f32.mrf.mxu0  ;;  %14310 = vmatprep.subr.mxu0 %v11621_v49 }
 0x1c4   : > { %v17520_v31 = vadd.f32 %v13846_v34, %v17391_v16  ;;  %v17523_v18 = vadd.f32 %v13881_v60, %v17394_v33  ;;  %v11599_v16 = vld [vmem:[%s21586_s3 + $0x120] sm:$0xff]  ;;  %v11620_v33 = vld [vmem:[%s21586_s3 + $0x1c8] sm:$0xff]  ;;  %14311 = vmatpush3.msra.mxu0 %v11621_v49 }
 0x1c5   : > { %v17525_v7 = vpop.f32.mrf.mxu1  ;;  %v17527_v41 = vpop.f32.mrf.mxu0  ;;  %14312 = vmatprep.subr.mxu0 %v11620_v33  ;;  %14236 = vmatprep.subr.mxu1 %v11599_v16 }
 0x1c6   : > { %21642 = vst [vmem:[#allocation50_spill] sm:$0xff] %v17523_v18  ;;  %21643 = vst [vmem:[#allocation51_spill] sm:$0xff] %v17525_v7  ;;  %14313 = vmatpush3.msra.mxu0 %v11620_v33  ;;  %14237 = vmatpush3.msra.mxu1 %v11599_v16 }
 0x1c7   : > { %21644 = vst [vmem:[#allocation52_spill] sm:$0xff] %v17527_v41  ;;  %v13849_v34 = vpop.f32.mrf.mxu1  ;;  %v13884_v60 = vpop.f32.mrf.mxu0  ;;  %v11598_v41 = vld [vmem:[%s21586_s3 + $0x118] sm:$0xff]  ;;  %14314 = vmatprep.subr.mxu0 %v11619_v30 }
 0x1c8   : > { %v17545_v7 = vadd.f32 %v13849_v34, %v17404_v35  ;;  %v17548_v18 = vadd.f32 %v13884_v60, %v17407_v21  ;;  %v11618_v35 = vld [vmem:[%s21586_s3 + $0x1b8] sm:$0xff]  ;;  %14238 = vmatprep.subr.mxu1 %v11598_v41  ;;  %14315 = vmatpush3.msra.mxu0 %v11619_v30  ;;  %v11617_v34 = vld [vmem:[%s21586_s3 + $0x1b0] sm:$0xff]  ;;  %v11616_v30 = vld [vmem:[%s21586_s3 + $0x1a8] sm:$0xff] }
 0x1c9   : > { %v17553_v48 = vpop.f32.mrf.mxu1  ;;  %v17555_v5 = vpop.f32.mrf.mxu0  ;;  %14239 = vmatpush3.msra.mxu1 %v11598_v41  ;;  %14316 = vmatprep.subr.mxu0 %v11618_v35  ;;  %v11615_v41 = vld [vmem:[%s21586_s3 + $0x1a0] sm:$0xff] }
 0x1ca   : > { %21645 = vst [vmem:[#allocation53_spill] sm:$0xff] %v17548_v18  ;;  %21646 = vst [vmem:[#allocation54_spill] sm:$0xff] %v17553_v48  ;;  %14317 = vmatpush3.msra.mxu0 %v11618_v35  ;;  %14240 = vmatprep.subr.mxu1 %v11597_v56 }
 0x1cb   : > { %21647 = vst [vmem:[#allocation55_spill] sm:$0xff] %v17555_v5  ;;  %v13852_v21 = vpop.f32.mrf.mxu1  ;;  %v13887_v49 = vpop.f32.mrf.mxu0  ;;  %14318 = vmatprep.subr.mxu0 %v11617_v34  ;;  %14241 = vmatpush3.msra.mxu1 %v11597_v56 }
 0x1cc   : > { %v17567_v33 = vadd.f32 %v13852_v21, %v17417_v13  ;;  %v17570_v16 = vadd.f32 %v13887_v49, %v17420_v51  ;;  %14319 = vmatpush3.msra.mxu0 %v11617_v34  ;;  %v11596_v51 = vld [vmem:[%s21586_s3 + $0x108] sm:$0xff]  ;;  %v11614_v34 = vld [vmem:[%s21586_s3 + $0x198] sm:$0xff] }
 0x1cd   : > { %v17572_v60 = vpop.f32.mrf.mxu1  ;;  %v17574_v48 = vpop.f32.mrf.mxu0  ;;  %14320 = vmatprep.subr.mxu0 %v11616_v30  ;;  %14242 = vmatprep.subr.mxu1 %v11596_v51 }
 0x1ce   : > { %21648 = vst [vmem:[#allocation56_spill] sm:$0xff] %v17570_v16  ;;  %21649 = vst [vmem:[#allocation57_spill] sm:$0xff] %v17572_v60  ;;  %14321 = vmatpush3.msra.mxu0 %v11616_v30  ;;  %14243 = vmatpush3.msra.mxu1 %v11596_v51  ;;  %v11612_v51 = vld [vmem:[%s21586_s3 + $0x188] sm:$0xff] }
 0x1cf   : > { %21650 = vst [vmem:[#allocation58_spill] sm:$0xff] %v17574_v48  ;;  %v13855_v18 = vpop.f32.mrf.mxu1  ;;  %v13890_v13 = vpop.f32.mrf.mxu0  ;;  %14322 = vmatprep.subr.mxu0 %v11615_v41 }
 0x1d0   : > { %v17586_v35 = vadd.f32 %v13855_v18, %v17430_v3  ;;  %v17589_v21 = vadd.f32 %v13890_v13, %v17433_v29  ;;  %14323 = vmatpush3.msra.mxu0 %v11615_v41  ;;  %v11613_v3 = vld [vmem:[%s21586_s3 + $0x190] sm:$0xff]  ;;  %v11595_v29 = vld [vmem:[%s21586_s3 + $0x100] sm:$0xff] }
 0x1d1   : > { %v17591_v49 = vpop.f32.mrf.mxu1  ;;  %v17593_v56 = vpop.f32.mrf.mxu0  ;;  %14324 = vmatprep.subr.mxu0 %v11614_v34  ;;  %14244 = vmatprep.subr.mxu1 %v11595_v29 }
 0x1d2   : > { %21651 = vst [vmem:[#allocation59_spill] sm:$0xff] %v17589_v21  ;;  %21652 = vst [vmem:[#allocation60_spill] sm:$0xff] %v17591_v49  ;;  %14325 = vmatpush3.msra.mxu0 %v11614_v34  ;;  %14245 = vmatpush3.msra.mxu1 %v11595_v29 }
 0x1d3   : > { %21653 = vst [vmem:[#allocation61_spill] sm:$0xff] %v17593_v56  ;;  %v13893_v60 = vpop.f32.mrf.mxu0  ;;  %v17598_v16 = vpop.f32.mrf.mxu1  ;;  %14326 = vmatprep.subr.mxu0 %v11613_v3 }
 0x1d4   : > { %v17607_v18 = vadd.f32 %v13893_v60, %v17443_v44  ;;  %14327 = vmatpush3.msra.mxu0 %v11613_v3  ;;  %v11611_v44 = vld [vmem:[%s21586_s3 + $0x180] sm:$0xff]  ;;  %v11642_v60 = vld [vmem:[%s21586_s3 + $0x278] sm:$0xff] }
 0x1d5   : > { %v17609_v30 = vpop.f32.mrf.mxu0  ;;  %v17611_v13 = vpop.f32.mrf.mxu1  ;;  %14328 = vmatprep.subr.mxu0 %v11612_v51  ;;  %14386 = vmatprep.subr.mxu1 %v11642_v60 }
 0x1d6   : > { %21654 = vst [vmem:[#allocation62_spill] sm:$0xff] %v17607_v18  ;;  %21655 = vst [vmem:[#allocation63_spill] sm:$0xff] %v17609_v30  ;;  %v17624_v30 = vld [vmem:[#allocation3 + $0xa] sm:$0xff]  ;;  %14329 = vmatpush3.msra.mxu0 %v11612_v51 }
 0x1d7   : > { %v13896_v41 = vpop.f32.mrf.mxu0  ;;  %v17616_v49 = vpop.f32.mrf.mxu1  ;;  %21656 = vst [vmem:[#allocation64_spill] sm:$0xff] %v17624_v30  ;;  %7850 = vst [vmem:[#allocation3 + $0x8] sm:$0x7] %v17328_v38  ;;  %14330 = vmatprep.subr.mxu0 %v11611_v44 }
 0x1d8   : > { %v17627_v34 = vadd.f32 %v13896_v41, %v17456_v55  ;;  %14331 = vmatpush3.msra.mxu0 %v11611_v44 }
 0x1d9   : > { %v17630_v29 = vpop.f32.mrf.mxu0  ;;  %v17632_v3 = vpop.f32.mrf.mxu1 }
 0x1da   : > { %21657 = vst [vmem:[#allocation65_spill] sm:$0xff] %v17627_v34  ;;  %21658 = vst [vmem:[#allocation66_spill] sm:$0xff] %v17630_v29 }
 0x1db   : > { %v13899_v18 = vpop.f32.mrf.mxu0  ;;  %v17634_v21 = vpop.f32.mrf.mxu1 }
 0x1dc   : > { %v17637_v56 = vadd.f32 %v13899_v18, %v17469_v39 }
 0x1dd   : > { %v17639_v30 = vpop.f32.mrf.mxu0  ;;  %v17641_v55 = vpop.f32.mrf.mxu1 }
 0x1de   : > { %21659 = vst [vmem:[#allocation67_spill] sm:$0xff] %v17637_v56  ;;  %21660 = vst [vmem:[#allocation68_spill] sm:$0xff] %v17639_v30 }
 0x1df   : > { %v13902_v41 = vpop.f32.mrf.mxu0  ;;  %v17643_v60 = vpop.f32.mrf.mxu1 }
 0x1e0   : > { %v17646_v34 = vadd.f32 %v13902_v41, %v17485_v58 }
 0x1e1   : > { %v17648_v29 = vpop.f32.mrf.mxu0  ;;  %v17650_v51 = vpop.f32.mrf.mxu1 }
 0x1e2   : > { %21661 = vst [vmem:[#allocation69_spill] sm:$0xff] %v17646_v34  ;;  %21662 = vst [vmem:[#allocation70_spill] sm:$0xff] %v17648_v29 }
 0x1e3   : > { %v13905_v48 = vpop.f32.mrf.mxu0  ;;  %v17652_v5 = vpop.f32.mrf.mxu1 }
 0x1e4   : > { %v17655_v39 = vadd.f32 %v13905_v48, %v17501_v40 }
 0x1e5   : > { %v17657_v18 = vpop.f32.mrf.mxu0  ;;  %v17659_v44 = vpop.f32.mrf.mxu1 }
 0x1e6   : > { %21663 = vst [vmem:[#allocation71_spill] sm:$0xff] %v17655_v39  ;;  %21664 = vst [vmem:[#allocation72_spill] sm:$0xff] %v17657_v18 }
 0x1e7   : > { %21665 = vst [vmem:[#allocation73_spill] sm:$0xff] %v17659_v44  ;;  %v13908_v30 = vpop.f32.mrf.mxu0  ;;  %v17661_v56 = vpop.f32.mrf.mxu1 }
 0x1e8   : > { %v17664_v58 = vadd.f32 %v13908_v30, %v17520_v31  ;;  %v1922_v31 = vadd.f32 %v17008_v0, %v16870_v9  ;;  %v1080_v9 = vadd.f32 %v16979_v15, %v16657_v61  ;;  %v1924_v0 = vadd.f32 %v17026_v42, %v16888_v17  ;;  %v17726_v42 = vld [vmem:[%s21585_s2] ss:$0 sm:$0xff] }
 0x1e9   : > { %v17666_v41 = vpop.f32.mrf.mxu0  ;;  %v17668_v34 = vpop.f32.mrf.mxu1  ;;  %v1928_v61 = vadd.f32 %v17059_v63, %v16924_v27  ;;  %v1930_v17 = vadd.f32 %v17077_v20, %v16940_v19  ;;  %v17718_v15 = vadd.f32 %v17097_v24, %v16954_v36  ;;  %v17730_v27 = vadd.f32 %v17115_v22, %v16968_v2 }
 0x1ea   : > { %21666 = vst [vmem:[#allocation74_spill] sm:$0xff] %v17664_v58  ;;  %21667 = vst [vmem:[#allocation75_spill] sm:$0xff] %v17666_v41  ;;  %v17733_v19 = vadd.f32 %v17131_v28, %v1080_v9  ;;  %v17738_v63 = vadd.f32 %v17133_v57, %v16982_v10  ;;  %v17747_v2 = vadd.f32 %v17149_v1, %v16996_v11 }
 0x1eb   : > { %v13911_v29 = vpop.f32.mrf.mxu0  ;;  %v17670_v38 = vpop.f32.mrf.mxu1  ;;  %v17751_v22 = vadd.f32 %v17168_v14, %v17011_v23  ;;  %v3645_v11 = vadd.f32 %v17616_v49, %v17459_v53  ;;  %v21673_v23 = vld [vmem:[#allocation10_spill] sm:$0xff] }
 0x1ec   : > { %v17673_v40 = vadd.f32 %v13911_v29, %v17545_v7  ;;  %v2352_v7 = vadd.f32 %v17170_v47, %v1922_v31  ;;  %v1090_v47 = vadd.f32 %v16993_v52, %v16680_v4  ;;  %v1926_v31 = vadd.f32 %v17041_v32, %v16906_v25 }
 0x1ed   : > { %v17675_v48 = vpop.f32.mrf.mxu0  ;;  %v17677_v18 = vpop.f32.mrf.mxu1  ;;  %v2354_v4 = vadd.f32 %v17191_v46, %v1924_v0 }
 0x1ee   : > { %21668 = vst [vmem:[#allocation76_spill] sm:$0xff] %v17673_v40  ;;  %21669 = vst [vmem:[#allocation77_spill] sm:$0xff] %v17675_v48  ;;  %v2782_v48 = vadd.f32 %v17339_v6, %v2352_v7  ;;  %v17741_v20 = vadd.f32 %v17147_v59, %v1090_v47  ;;  %v2356_v24 = vadd.f32 %v17209_v50, %v1926_v31  ;;  %v21671_v50 = vld [vmem:[#allocation27_spill] sm:$0xff]  ;;  %v21674_v7 = vld [vmem:[#allocation12_spill] sm:$0xff] }
 0x1ef   : > { %21670 = vst [vmem:[#allocation78_spill] sm:$0xff] %v17677_v18  ;;  %v13914_v39 = vpop.f32.mrf.mxu0  ;;  %v17679_v44 = vpop.f32.mrf.mxu1  ;;  %v2784_v46 = vadd.f32 %v17349_v37, %v2354_v4  ;;  %v17758_v59 = vadd.f32 %v17189_v12, %v17029_v8  ;;  %v21675_v8 = vld [vmem:[#allocation45_spill] sm:$0xff]  ;;  %v21676_v47 = vld [vmem:[#allocation43_spill] sm:$0xff] }
 0x1f0   : > { %v17684_v30 = vadd.f32 %v13914_v39, %v17567_v33  ;;  %v3212_v6 = vadd.f32 %v17450_v43, %v2782_v48  ;;  %v2786_v37 = vadd.f32 %v21671_v50, %v2356_v24  ;;  %v3647_v53 = vadd.f32 %v17634_v21, %v21676_v47  ;;  %v21678_v4 = vld [vmem:[#allocation11_spill] sm:$0xff] }
 0x1f1   : > { %v17686_v58 = vpop.f32.mrf.mxu0  ;;  %v17688_v41 = vpop.f32.mrf.mxu1  ;;  %v3214_v43 = vadd.f32 %v17463_v45, %v2784_v46  ;;  %v21680_v46 = vld [vmem:[#allocation30_spill] sm:$0xff]  ;;  %v21681_v50 = vld [vmem:[#allocation7_spill] sm:$0xff] }
 0x1f2   : > { %v3642_v36 = vadd.f32 %v17611_v13, %v3212_v6  ;;  %v3216_v12 = vadd.f32 %v21675_v8, %v2786_v37  ;;  %v21682_v37 = vld [vmem:[#allocation13_spill] sm:$0xff]  ;;  %v3649_v8 = vadd.f32 %v17643_v60, %v17488_v62  ;;  %v21686_v60 = vld [vmem:[#allocation47_spill] sm:$0xff] }
 0x1f3   : > { %v13917_v29 = vpop.f32.mrf.mxu0  ;;  %v17691_v40 = vpop.f32.mrf.mxu1  ;;  %v3644_v9 = vadd.f32 %v17632_v3, %v3214_v43  ;;  %v17786_v43 = vadd.f32 %v21682_v37, %v21681_v50 }
 0x1f4   : > { %v17695_v18 = vadd.f32 %v13917_v29, %v17586_v35  ;;  %v3643_v35 = vadd.f32 %v17598_v16, %v17446_v54  ;;  %v21672_v16 = vld [vmem:[#allocation5_spill] sm:$0xff]  ;;  %v2358_v29 = vadd.f32 %v21674_v7, %v1928_v61  ;;  %v3646_v21 = vadd.f32 %v17641_v55, %v3216_v12 }
 0x1f5   : > { %v17701_v33 = vpop.f32.mrf.mxu0  ;;  %v17703_v39 = vpop.f32.mrf.mxu1  ;;  %v17766_v14 = vadd.f32 %v21673_v23, %v21672_v16  ;;  %v21683_v16 = vld [vmem:[#allocation32_spill] sm:$0xff] }
 0x1f7   : > { %v17721_v52 = vpop.f32.mrf.mxu1  ;;  %v13990_v25 = vpop.f32.mrf.mxu0 }
 0x1f8   : > { %v4073_v32 = vadd.f32 %v13990_v25, %v3643_v35  ;;  %v21677_v35 = vld [vmem:[#allocation6_spill] sm:$0xff] }
 0x1f9   : > { %v3893_v54 = vpop.f32.mrf.mxu0  ;;  %v17754_v10 = vpop.f32.mrf.mxu1  ;;  %v17778_v25 = vadd.f32 %v21678_v4, %v21677_v35 }
 0x1fa   : > { %v4116_v28 = vadd.f32 %v17726_v42, %v4073_v32  ;;  %v4072_v57 = vadd.f32 %v3893_v54, %v3642_v36  ;;  %v21679_v36 = vld [vmem:[#allocation14_spill] sm:$0xff]  ;;  %v2788_v54 = vadd.f32 %v21680_v46, %v2358_v29  ;;  %v21688_v46 = vld [vmem:[#allocation15_spill] sm:$0xff] }
 0x1fb   : > { %v13993_v1 = vpop.f32.mrf.mxu0  ;;  %v17774_v6 = vpop.f32.mrf.mxu1  ;;  %v2360_v61 = vadd.f32 %v21679_v36, %v1930_v17  ;;  %v11658_v29 = vld [vmem:[%s21586_s3 + $0x2f8] sm:$0xff] }
 0x1fc   : > { %vm4152_vm4 = vcmp.ge.f32.partialorder %v4116_v28, 0.0  ;;  %v4188_v13 = vmul.f32 0.01, %v4116_v28  ;;  %v4115_v48 = vadd.f32 %v17726_v42, %v4072_v57  ;;  %v4075_v0 = vadd.f32 %v13993_v1, %v3645_v11  ;;  %14472 = vmatprep.subr.mxu0 %v11658_v29  ;;  %v21692_v29 = vld [vmem:[#allocation36_spill] sm:$0xff] }
 0x1fd   : > { %v3903_v45 = vpop.f32.mrf.mxu0  ;;  %v2790_v23 = vadd.f32 %v21683_v16, %v2360_v61  ;;  %v17791_v7 = vpop.f32.mrf.mxu1  ;;  %v3651_v61 = vadd.f32 %v17652_v5, %v21686_v60  ;;  %v21690_v5 = vld [vmem:[#allocation34_spill] sm:$0xff]  ;;  %v21694_v60 = vld [vmem:[#allocation23_spill] sm:$0xff] }
 0x1fe   : > { %v4224_v49 = vsel %vm4152_vm4, %v4116_v28, %v4188_v13  ;;  %vm4151_vm5 = vcmp.ge.f32.partialorder %v4115_v48, 0.0  ;;  %v4187_v31 = vmul.f32 0.01, %v4115_v48  ;;  %v4118_v32 = vadd.f32 %v17726_v42, %v4075_v0 }
 0x1ff   : > { %4301 = vst [vmem:[#allocation3 + $0x1b] sm:$0xff] %v4224_v49  ;;  %v4074_v3 = vadd.f32 %v3903_v45, %v3644_v9  ;;  %v13996_v24 = vpop.f32.mrf.mxu0  ;;  %v3218_v13 = vadd.f32 %v17492_v26, %v2788_v54  ;;  %v21684_v45 = vld [vmem:[#allocation16_spill] sm:$0xff]  ;;  %v21685_v49 = vld [vmem:[#allocation49_spill] sm:$0xff] }
 0x200   : > { %v4223_v28 = vsel %vm4151_vm5, %v4115_v48, %v4187_v31  ;;  %v4077_v57 = vadd.f32 %v13996_v24, %v3647_v53  ;;  %vm4154_vm6 = vcmp.ge.f32.partialorder %v4118_v32, 0.0  ;;  %v4190_v11 = vmul.f32 0.01, %v4118_v32  ;;  %v21687_v24 = vld [vmem:[#allocation8_spill] sm:$0xff] }
 0x201   : > { %4300 = vst [vmem:[#allocation3 + $0x13] sm:$0xff] %v4223_v28  ;;  %v4117_v17 = vadd.f32 %v17726_v42, %v4074_v3  ;;  %v3913_v1 = vpop.f32.mrf.mxu0  ;;  %v2362_v26 = vadd.f32 %v21684_v45, %v17718_v15  ;;  %v3220_v31 = vadd.f32 %v21685_v49, %v2790_v23  ;;  %v3648_v35 = vadd.f32 %v17650_v51, %v3218_v13 }
 0x202   : > { %v4120_v55 = vadd.f32 %v17726_v42, %v4077_v57  ;;  %v4076_v48 = vadd.f32 %v3913_v1, %v3646_v21  ;;  %v4226_v12 = vsel %vm4154_vm6, %v4118_v32, %v4190_v11  ;;  %v17806_v32 = vpop.f32.mrf.mxu1  ;;  %v17810_v54 = vadd.f32 %v21688_v46, %v21687_v24  ;;  %v21689_v21 = vld [vmem:[#allocation18_spill] sm:$0xff] }
 0x203   : > { %vm4153_vm7 = vcmp.ge.f32.partialorder %v4117_v17, 0.0  ;;  %v4189_v9 = vmul.f32 0.01, %v4117_v17  ;;  %v13999_v0 = vpop.f32.mrf.mxu0  ;;  %4262 = vst [vmem:[#allocation4 + $0x18] sm:$0xff] %v4226_v12  ;;  %v2364_v28 = vadd.f32 %v21689_v21, %v17730_v27  ;;  %v2792_v11 = vadd.f32 %v21690_v5, %v2362_v26  ;;  %v21696_v21 = vld [vmem:[#allocation20_spill] sm:$0xff]  ;;  %v21697_v5 = vld [vmem:[#allocation55_spill] sm:$0xff] }
 0x204   : > { %vm4156_vm8 = vcmp.ge.f32.partialorder %v4120_v55, 0.0  ;;  %v4192_v47 = vmul.f32 0.01, %v4120_v55  ;;  %v4119_v53 = vadd.f32 %v17726_v42, %v4076_v48  ;;  %v4079_v36 = vadd.f32 %v13999_v0, %v3649_v8  ;;  %v17826_v49 = vpop.f32.mrf.mxu1 }
 0x205   : > { %v4225_v4 = vsel %vm4153_vm7, %v4117_v17, %v4189_v9  ;;  %v3923_v62 = vpop.f32.mrf.mxu0  ;;  %v21691_v17 = vld [vmem:[#allocation73_spill] sm:$0xff]  ;;  %v2794_v8 = vadd.f32 %v21692_v29, %v2364_v28  ;;  %v2366_v28 = vadd.f32 %v21696_v21, %v17738_v63 }
 0x206   : > { %4261 = vst [vmem:[#allocation4 + $0x10] sm:$0xff] %v4225_v4  ;;  %v4228_v3 = vsel %vm4156_vm8, %v4120_v55, %v4192_v47  ;;  %vm4155_vm9 = vcmp.ge.f32.partialorder %v4119_v53, 0.0  ;;  %v4191_v15 = vmul.f32 0.01, %v4119_v53  ;;  %v4122_v51 = vadd.f32 %v17726_v42, %v4079_v36  ;;  %v17815_v37 = vld [vmem:[#allocation3 + $0x1b] sm:$0xff]  ;;  %v21699_v29 = vld [vmem:[#allocation9_spill] sm:$0xff] }
 0x207   : > { %4264 = vst [vmem:[#allocation4 + $0x28] sm:$0xff] %v4228_v3  ;;  %v4078_v57 = vadd.f32 %v3923_v62, %v3648_v35  ;;  %v14002_v50 = vpop.f32.mrf.mxu0  ;;  %v3650_v1 = vadd.f32 %v21691_v17, %v3220_v31  ;;  %v17823_v26 = vld [vmem:[#allocation3 + $0x1c] sm:$0xff] }
 0x208   : > { %v4227_v16 = vsel %vm4155_vm9, %v4119_v53, %v4191_v15  ;;  %v4081_v23 = vadd.f32 %v14002_v50, %v3651_v61  ;;  %v4435_v13 = vld [vmem:[#allocation3 + $0x11] sm:$0xff]  ;;  %v4436_v48 = vld [vmem:[#allocation3 + $0x19] sm:$0xff]  ;;  %vm4158_vm10 = vcmp.ge.f32.partialorder %v4122_v51, 0.0  ;;  %v4194_v27 = vmul.f32 0.01, %v4122_v51 }
 0x209   : > { %v4383_v55 = vld [vmem:[#allocation3 + $0x10] sm:$0xff]  ;;  %4263 = vst [vmem:[#allocation4 + $0x20] sm:$0xff] %v4227_v16  ;;  %v4121_v12 = vadd.f32 %v17726_v42, %v4078_v57  ;;  %v3933_v9 = vpop.f32.mrf.mxu0  ;;  %14077 = vmatprep.mubr.f32.mxu1 %v4435_v13  ;;  %v4384_v0 = vld [vmem:[#allocation3 + $0x18] sm:$0xff]  ;;  %v21693_v47 = vld [vmem:[#allocation52_spill] sm:$0xff] }
 0x20a   : > { %14163 = vmatprep.mubr.f32.mxu0 %v4383_v55  ;;  %v17821_v45 = vld [vmem:[#allocation3 + $0x1a] sm:$0xff]  ;;  %v3222_v53 = vadd.f32 %v21693_v47, %v2792_v11  ;;  %v4124_v31 = vadd.f32 %v17726_v42, %v4081_v23  ;;  %v4080_v35 = vadd.f32 %v3933_v9, %v3650_v1  ;;  %14078 = vmatmul.mubr.f32.gmra.mxu1 %v4436_v48  ;;  %v17829_v4 = vld [vmem:[#allocation3 + $0x12] sm:$0xff]  ;;  %v21698_v23 = vld [vmem:[#allocation53_spill] sm:$0xff]  ;;  %v17847_v55 = vpop.f32.mrf.mxu1 }
 0x20b   : > { %14164 = vmatmul.mubr.f32.gmra.mxu0 %v4384_v0  ;;  %v17831_v36 = vld [vmem:[#allocation3 + $0x13] sm:$0xff]  ;;  %7857 = vst [vmem:[#allocation3 + $0x1d] sm:$0x3] %v21694_v60  ;;  %v4230_v15 = vsel %vm4158_vm10, %v4122_v51, %v4194_v27  ;;  %vm4157_vm11 = vcmp.ge.f32.partialorder %v4121_v12, 0.0  ;;  %v4193_v24 = vmul.f32 0.01, %v4121_v12  ;;  %v14005_v46 = vpop.f32.mrf.mxu0  ;;  %v3224_v11 = vadd.f32 %v21697_v5, %v2794_v8 }
 0x20c   : > { %v17833_v62 = vld [vmem:[#allocation3 + $0x14] sm:$0xff]  ;;  %4266 = vst [vmem:[#allocation4 + $0x38] sm:$0xff] %v4230_v15  ;;  %vm4160_vm12 = vcmp.ge.f32.partialorder %v4124_v31, 0.0  ;;  %v4196_v57 = vmul.f32 0.01, %v4124_v31  ;;  %v4123_v50 = vadd.f32 %v17726_v42, %v4080_v35  ;;  %v3652_v17 = vadd.f32 %v17668_v34, %v3222_v53  ;;  %v21700_v27 = vld [vmem:[#allocation17_spill] sm:$0xff] }
 0x20d   : > { %v21695_v61 = vld [vmem:[#allocation50_spill] sm:$0xff]  ;;  %7853 = vst [vmem:[#allocation3 + $0x13] sm:$0x3] %v21694_v60  ;;  %v4229_v1 = vsel %vm4157_vm11, %v4121_v12, %v4193_v24  ;;  %v3943_v16 = vpop.f32.mrf.mxu0  ;;  %v3655_v13 = vadd.f32 %v17670_v38, %v21698_v23  ;;  %v17851_v9 = vadd.f32 %v21700_v27, %v21699_v29  ;;  %v21704_v24 = vld [vmem:[#allocation19_spill] sm:$0xff]  ;;  %v21705_v5 = vld [vmem:[#allocation40_spill] sm:$0xff] }
 0x20e   : > { %v3653_v3 = vadd.f32 %v17661_v56, %v21695_v61  ;;  %v4303_v56 = vld [vmem:[#allocation4 + $0x12] sm:$0xff]  ;;  %4265 = vst [vmem:[#allocation4 + $0x30] sm:$0xff] %v4229_v1  ;;  %v4232_v63 = vsel %vm4160_vm12, %v4124_v31, %v4196_v57  ;;  %vm4159_vm13 = vcmp.ge.f32.partialorder %v4123_v50, 0.0  ;;  %v4195_v48 = vmul.f32 0.01, %v4123_v50  ;;  %v21701_v34 = vld [vmem:[#allocation22_spill] sm:$0xff] }
 0x20f   : > { %4305 = vst [vmem:[#allocation3 + $0x25] sm:$0xff] %v4303_v56  ;;  %v2368_v8 = vadd.f32 %v21701_v34, %v17747_v2  ;;  %v4082_v0 = vadd.f32 %v3943_v16, %v3652_v17  ;;  %v14008_v47 = vpop.f32.mrf.mxu0  ;;  %4320 = vst [vmem:[#allocation3 + $0x5b] sm:$0xff] %v4232_v63  ;;  %v21702_v38 = vld [vmem:[#allocation38_spill] sm:$0xff]  ;;  %v17865_v56 = vpop.f32.mrf.mxu1  ;;  %v21708_v63 = vld [vmem:[#allocation24_spill] sm:$0xff] }
 0x210   : > { %v4083_v51 = vadd.f32 %v14005_v46, %v3653_v3  ;;  %v2796_v53 = vadd.f32 %v21702_v38, %v2366_v28  ;;  %v21703_v35 = vld [vmem:[#allocation78_spill] sm:$0xff]  ;;  %v4304_v61 = vld [vmem:[#allocation4 + $0x1a] sm:$0xff]  ;;  %v4231_v31 = vsel %vm4159_vm13, %v4123_v50, %v4195_v48  ;;  %v4085_v3 = vadd.f32 %v14008_v47, %v3655_v13 }
 0x211   : > { %v3654_v60 = vadd.f32 %v21703_v35, %v3224_v11  ;;  %v4308_v15 = vld [vmem:[#allocation4 + $0x24] sm:$0xff]  ;;  %v17860_v46 = vadd.f32 %v21704_v24, %v17733_v19  ;;  %4306 = vst [vmem:[#allocation3 + $0x2d] sm:$0xff] %v4304_v61  ;;  %4267 = vst [vmem:[#allocation4 + $0x40] sm:$0xff] %v4231_v31  ;;  %v4125_v21 = vadd.f32 %v17726_v42, %v4082_v0  ;;  %v3953_v57 = vpop.f32.mrf.mxu0 }
 0x212   : > { %v4126_v12 = vadd.f32 %v17726_v42, %v4083_v51  ;;  %4310 = vst [vmem:[#allocation3 + $0x37] sm:$0xff] %v4308_v15  ;;  %v2798_v28 = vadd.f32 %v21705_v5, %v2368_v8  ;;  %v21706_v17 = vld [vmem:[#allocation58_spill] sm:$0xff]  ;;  %v4128_v50 = vadd.f32 %v17726_v42, %v4085_v3  ;;  %v21707_v51 = vld [vmem:[#allocation56_spill] sm:$0xff]  ;;  %v2370_v48 = vadd.f32 %v21708_v63, %v17751_v22  ;;  %v21709_v34 = vld [vmem:[#allocation61_spill] sm:$0xff]  ;;  %v17880_v22 = vpop.f32.mrf.mxu1 }
 0x213   : > { %v3226_v11 = vadd.f32 %v21706_v17, %v2796_v53  ;;  %v4084_v1 = vadd.f32 %v3953_v57, %v3654_v60  ;;  %v3657_v19 = vadd.f32 %v17679_v44, %v21707_v51  ;;  %vm4161_vm15 = vcmp.ge.f32.partialorder %v4125_v21, 0.0  ;;  %v14011_v13 = vpop.f32.mrf.mxu0  ;;  %v21710_v60 = vld [vmem:[#allocation59_spill] sm:$0xff]  ;;  %v21711_v15 = vld [vmem:[#allocation21_spill] sm:$0xff] }
 0x214   : > { %vm4162_vm14 = vcmp.ge.f32.partialorder %v4126_v12, 0.0  ;;  %v4198_v2 = vmul.f32 0.01, %v4126_v12  ;;  %v4197_v23 = vmul.f32 0.01, %v4125_v21  ;;  %vm4164_vm0 = vcmp.ge.f32.partialorder %v4128_v50, 0.0 }
 0x215   : > { %v4200_v29 = vmul.f32 0.01, %v4128_v50  ;;  %v4127_v27 = vadd.f32 %v17726_v42, %v4084_v1  ;;  %v3228_v8 = vadd.f32 %v21709_v34, %v2798_v28  ;;  %v3656_v0 = vadd.f32 %v17688_v41, %v3226_v11  ;;  %v4309_v47 = vld [vmem:[#allocation4 + $0x2c] sm:$0xff]  ;;  %v17875_v38 = vld [vmem:[#allocation4 + $0x36] sm:$0xff]  ;;  %v3963_v53 = vpop.f32.mrf.mxu0  ;;  %v21713_v28 = vld [vmem:[#allocation41_spill] sm:$0xff] }
 0x216   : > { %v4234_v16 = vsel %vm4162_vm14, %v4126_v12, %v4198_v2  ;;  %v4233_v44 = vsel %vm4161_vm15, %v4125_v21, %v4197_v23  ;;  %v4087_v12 = vadd.f32 %v14011_v13, %v3657_v19  ;;  %v4437_v35 = vld [vmem:[#allocation3 + $0x21] sm:$0xff]  ;;  %v3659_v61 = vadd.f32 %v17691_v40, %v21710_v60  ;;  %4311 = vst [vmem:[#allocation3 + $0x3f] sm:$0xff] %v4309_v47  ;;  %v21716_v47 = vld [vmem:[#allocation63_spill] sm:$0xff] }
 0x217   : > { %4270 = vst [vmem:[#allocation4 + $0x58] sm:$0xff] %v4234_v16  ;;  %4315 = vst [vmem:[#allocation3 + $0x49] sm:$0xff] %v17875_v38  ;;  %v4236_v31 = vsel %vm4164_vm0, %v4128_v50, %v4200_v29  ;;  %vm4163_vm1 = vcmp.ge.f32.partialorder %v4127_v27, 0.0  ;;  %v4199_v3 = vmul.f32 0.01, %v4127_v27  ;;  %14080 = vmatprep.mubr.f32.mxu1 %v4437_v35  ;;  %v4385_v41 = vld [vmem:[#allocation3 + $0x20] sm:$0xff]  ;;  %v17884_v24 = vadd.f32 %v21711_v15, %v17741_v20  ;;  %v14014_v5 = vpop.f32.mrf.mxu0 }
 0x218   : > { %4321 = vst [vmem:[#allocation3 + $0x63] sm:$0xff] %v4233_v44  ;;  %v21712_v2 = vld [vmem:[#allocation25_spill] sm:$0xff]  ;;  %4272 = vst [vmem:[#allocation4 + $0x68] sm:$0xff] %v4236_v31  ;;  %v4130_v40 = vadd.f32 %v17726_v42, %v4087_v12  ;;  %v4086_v57 = vadd.f32 %v3963_v53, %v3656_v0  ;;  %14166 = vmatprep.mubr.f32.mxu0 %v4385_v41  ;;  %v2800_v17 = vadd.f32 %v21713_v28, %v2370_v48  ;;  %v21714_v20 = vld [vmem:[#allocation42_spill] sm:$0xff] }
 0x219   : > { %v2372_v21 = vadd.f32 %v21712_v2, %v17758_v59  ;;  %v3658_v11 = vadd.f32 %v17703_v39, %v3228_v8  ;;  %v4235_v50 = vsel %vm4163_vm1, %v4127_v27, %v4199_v3  ;;  %v4089_v1 = vadd.f32 %v14014_v5, %v3659_v61  ;;  %v4438_v51 = vld [vmem:[#allocation3 + $0x29] sm:$0xff]  ;;  %v4439_v16 = vld [vmem:[#allocation3 + $0x31] sm:$0xff]  ;;  %v3973_v63 = vpop.f32.mrf.mxu0  ;;  %v17897_v27 = vpop.f32.mrf.mxu1 }
 0x21a   : > { %v4386_v19 = vld [vmem:[#allocation3 + $0x28] sm:$0xff]  ;;  %4271 = vst [vmem:[#allocation4 + $0x60] sm:$0xff] %v4235_v50  ;;  %vm4166_vm2 = vcmp.ge.f32.partialorder %v4130_v40, 0.0  ;;  %v4202_v59 = vmul.f32 0.01, %v4130_v40  ;;  %v4129_v13 = vadd.f32 %v17726_v42, %v4086_v57  ;;  %14081 = vmatmul.mubr.f32.gmra.mxu1 %v4438_v51  ;;  %v4387_v29 = vld [vmem:[#allocation3 + $0x30] sm:$0xff]  ;;  %v3230_v44 = vadd.f32 %v21716_v47, %v2800_v17 }
 0x21b   : > { %v2802_v23 = vadd.f32 %v21714_v20, %v2372_v21  ;;  %14167 = vmatmul.mubr.f32.gmra.mxu0 %v4386_v19  ;;  %v17893_v34 = vld [vmem:[#allocation4 + $0x3e] sm:$0xff]  ;;  %v21715_v48 = vld [vmem:[#allocation62_spill] sm:$0xff]  ;;  %v4132_v8 = vadd.f32 %v17726_v42, %v4089_v1  ;;  %v4088_v0 = vadd.f32 %v3973_v63, %v3658_v11  ;;  %14083 = vmatprep.mubr.f32.mxu1 %v4439_v16  ;;  %v14017_v35 = vpop.f32.mrf.mxu0  ;;  %v17908_v17 = vpop.f32.mrf.mxu1  ;;  %v21722_v47 = vld [vmem:[#allocation67_spill] sm:$0xff] }
 0x21c   : > { %v3661_v39 = vadd.f32 %v17721_v52, %v21715_v48  ;;  %14169 = vmatprep.mubr.f32.mxu0 %v4387_v29  ;;  %4316 = vst [vmem:[#allocation3 + $0x51] sm:$0xff] %v17893_v34  ;;  %v4238_v12 = vsel %vm4166_vm2, %v4130_v40, %v4202_v59  ;;  %vm4165_vm3 = vcmp.ge.f32.partialorder %v4129_v13, 0.0  ;;  %v4201_v53 = vmul.f32 0.01, %v4129_v13  ;;  %v21717_v31 = vld [vmem:[#allocation66_spill] sm:$0xff]  ;;  %v21718_v15 = vld [vmem:[#allocation65_spill] sm:$0xff] }
 0x21d   : > { %4274 = vst [vmem:[#allocation4 + $0x78] sm:$0xff] %v4238_v12  ;;  %vm4168_vm4 = vcmp.ge.f32.partialorder %v4132_v8, 0.0  ;;  %v4204_v60 = vmul.f32 0.01, %v4132_v8  ;;  %v4131_v52 = vadd.f32 %v17726_v42, %v4088_v0  ;;  %v3232_v3 = vadd.f32 %v21717_v31, %v2802_v23  ;;  %v3983_v57 = vpop.f32.mrf.mxu0  ;;  %v4440_v5 = vld [vmem:[#allocation3 + $0x39] sm:$0xff]  ;;  %v4441_v28 = vld [vmem:[#allocation3 + $0x41] sm:$0xff] }
 0x21e   : > { %v4091_v61 = vadd.f32 %v14017_v35, %v3661_v39  ;;  %v3660_v41 = vadd.f32 %v17754_v10, %v3230_v44  ;;  %v3663_v2 = vadd.f32 %v17774_v6, %v21718_v15  ;;  %v4237_v21 = vsel %vm4165_vm3, %v4129_v13, %v4201_v53  ;;  %v4388_v40 = vld [vmem:[#allocation3 + $0x38] sm:$0xff]  ;;  %14084 = vmatmul.mubr.f32.gmra.mxu1 %v4440_v5  ;;  %v4389_v51 = vld [vmem:[#allocation3 + $0x40] sm:$0xff]  ;;  %v21719_v10 = vld [vmem:[#allocation26_spill] sm:$0xff]  ;;  %v17920_v35 = vpop.f32.mrf.mxu1 }
 0x21f   : > { %4273 = vst [vmem:[#allocation4 + $0x70] sm:$0xff] %v4237_v21  ;;  %v4240_v11 = vsel %vm4168_vm4, %v4132_v8, %v4204_v60  ;;  %vm4167_vm5 = vcmp.ge.f32.partialorder %v4131_v52, 0.0  ;;  %v4203_v50 = vmul.f32 0.01, %v4131_v52  ;;  %14170 = vmatmul.mubr.f32.gmra.mxu0 %v4388_v40  ;;  %v2374_v19 = vadd.f32 %v21719_v10, %v17766_v14  ;;  %14086 = vmatprep.mubr.f32.mxu1 %v4441_v28  ;;  %v14020_v20 = vpop.f32.mrf.mxu0  ;;  %v21720_v48 = vld [vmem:[#allocation29_spill] sm:$0xff]  ;;  %v21721_v8 = vld [vmem:[#allocation44_spill] sm:$0xff] }
 0x220   : > { %v4134_v1 = vadd.f32 %v17726_v42, %v4091_v61  ;;  %v3662_v6 = vadd.f32 %v17791_v7, %v3232_v3  ;;  %4276 = vst [vmem:[#allocation4 + $0x88] sm:$0xff] %v4240_v11  ;;  %v4090_v16 = vadd.f32 %v3983_v57, %v3660_v41  ;;  %14172 = vmatprep.mubr.f32.mxu0 %v4389_v51  ;;  %v4390_v12 = vld [vmem:[#allocation3 + $0x48] sm:$0xff]  ;;  %v21723_v61 = vld [vmem:[#allocation46_spill] sm:$0xff]  ;;  %v21724_v31 = vld [vmem:[#allocation68_spill] sm:$0xff] }
 0x221   : > { %v4239_v23 = vsel %vm4167_vm5, %v4131_v52, %v4203_v50  ;;  %v4093_v13 = vadd.f32 %v14020_v20, %v3663_v2  ;;  %v4323_v63 = vld [vmem:[#allocation4 + $0x5a] sm:$0xff]  ;;  %v4324_v29 = vld [vmem:[#allocation4 + $0x62] sm:$0xff]  ;;  %v2376_v39 = vadd.f32 %v21720_v48, %v17778_v25  ;;  %v2804_v0 = vadd.f32 %v21721_v8, %v2374_v19  ;;  %v3993_v44 = vpop.f32.mrf.mxu0  ;;  %v4444_v5 = vld [vmem:[#allocation3 + $0x59] sm:$0xff] }
 0x222   : > { %vm4170_vm6 = vcmp.ge.f32.partialorder %v4134_v1, 0.0  ;;  %v4206_v59 = vmul.f32 0.01, %v4134_v1  ;;  %v3665_v14 = vadd.f32 %v17806_v32, %v21722_v47  ;;  %4275 = vst [vmem:[#allocation4 + $0x80] sm:$0xff] %v4239_v23  ;;  %v4133_v7 = vadd.f32 %v17726_v42, %v4090_v16  ;;  %4325 = vst [vmem:[#allocation3 + $0x6d] sm:$0xff] %v4323_v63  ;;  %14087 = vmatmul.mubr.f32.gmra.mxu1 %v17875_v38  ;;  %v21725_v40 = vld [vmem:[#allocation70_spill] sm:$0xff] }
 0x223   : > { %v4391_v53 = vld [vmem:[#allocation3 + $0x50] sm:$0xff]  ;;  %4326 = vst [vmem:[#allocation3 + $0x75] sm:$0xff] %v4324_v29  ;;  %v4136_v52 = vadd.f32 %v17726_v42, %v4093_v13  ;;  %v4092_v25 = vadd.f32 %v3993_v44, %v3662_v6  ;;  %14173 = vmatmul.mubr.f32.gmra.mxu0 %v4390_v12  ;;  %v2806_v32 = vadd.f32 %v21723_v61, %v2376_v39  ;;  %v14023_v15 = vpop.f32.mrf.mxu0  ;;  %v21726_v11 = vld [vmem:[#allocation69_spill] sm:$0xff]  ;;  %v4392_v10 = vld [vmem:[#allocation3 + $0x58] sm:$0xff]  ;;  %v17933_v6 = vpop.f32.mrf.mxu1 }
 0x224   : > { %v4242_v60 = vsel %vm4170_vm6, %v4134_v1, %v4206_v59  ;;  %v3234_v3 = vadd.f32 %v21724_v31, %v2804_v0  ;;  %vm4169_vm7 = vcmp.ge.f32.partialorder %v4133_v7, 0.0  ;;  %v4205_v41 = vmul.f32 0.01, %v4133_v7  ;;  %14089 = vmatprep.mubr.f32.mxu1 %v17893_v34  ;;  %14175 = vmatprep.mubr.f32.mxu0 %v4391_v53  ;;  %v4445_v59 = vld [vmem:[#allocation3 + $0x61] sm:$0xff] }
 0x225   : > { %4341 = vst [vmem:[#allocation3 + $0xab] sm:$0xff] %v4242_v60  ;;  %vm4172_vm8 = vcmp.ge.f32.partialorder %v4136_v52, 0.0  ;;  %v4208_v2 = vmul.f32 0.01, %v4136_v52  ;;  %v4135_v21 = vadd.f32 %v17726_v42, %v4092_v25  ;;  %v4095_v57 = vadd.f32 %v14023_v15, %v3665_v14  ;;  %v4003_v51 = vpop.f32.mrf.mxu0  ;;  %v4393_v13 = vld [vmem:[#allocation3 + $0x60] sm:$0xff]  ;;  %v21728_v44 = vld [vmem:[#allocation33_spill] sm:$0xff] }
 0x226   : > { %v3236_v38 = vadd.f32 %v21725_v40, %v2806_v32  ;;  %v3664_v28 = vadd.f32 %v17826_v49, %v3234_v3  ;;  %v3667_v50 = vadd.f32 %v17847_v55, %v21726_v11  ;;  %v4241_v1 = vsel %vm4169_vm7, %v4133_v7, %v4205_v41  ;;  %v4328_v34 = vld [vmem:[#allocation4 + $0x6c] sm:$0xff]  ;;  %v4329_v19 = vld [vmem:[#allocation4 + $0x74] sm:$0xff]  ;;  %14090 = vmatmul.mubr.f32.gmra.mxu1 %v4444_v5  ;;  %v17950_v3 = vpop.f32.mrf.mxu1 }
 0x227   : > { %v4244_v16 = vsel %vm4172_vm8, %v4136_v52, %v4208_v2  ;;  %vm4171_vm9 = vcmp.ge.f32.partialorder %v4135_v21, 0.0  ;;  %v4207_v20 = vmul.f32 0.01, %v4135_v21  ;;  %v4138_v23 = vadd.f32 %v17726_v42, %v4095_v57  ;;  %14176 = vmatmul.mubr.f32.gmra.mxu0 %v4392_v10  ;;  %4330 = vst [vmem:[#allocation3 + $0x7f] sm:$0xff] %v4328_v34  ;;  %4331 = vst [vmem:[#allocation3 + $0x87] sm:$0xff] %v4329_v19  ;;  %v21727_v49 = vld [vmem:[#allocation31_spill] sm:$0xff]  ;;  %v14026_v48 = vpop.f32.mrf.mxu0 }
 0x228   : > { %4340 = vst [vmem:[#allocation3 + $0xa3] sm:$0xff] %v4241_v1  ;;  %v2378_v55 = vadd.f32 %v21727_v49, %v17786_v43  ;;  %v3666_v63 = vadd.f32 %v17865_v56, %v3236_v38  ;;  %4280 = vst [vmem:[#allocation4 + $0xa8] sm:$0xff] %v4244_v16  ;;  %v4094_v29 = vadd.f32 %v4003_v51, %v3664_v28  ;;  %14092 = vmatprep.mubr.f32.mxu1 %v4445_v59  ;;  %v21729_v53 = vld [vmem:[#allocation48_spill] sm:$0xff]  ;;  %v21730_v60 = vld [vmem:[#allocation71_spill] sm:$0xff]  ;;  %vm7501_vm8 = vcmask 1046528  }
 0x229   : > { %14178 = vmatprep.mubr.f32.mxu0 %v4393_v13  ;;  %v4243_v39 = vsel %vm4171_vm9, %v4135_v21, %v4207_v20  ;;  %vm4174_vm10 = vcmp.ge.f32.partialorder %v4138_v23, 0.0  ;;  %v4210_v8 = vmul.f32 0.01, %v4138_v23  ;;  %v4097_v0 = vadd.f32 %v14026_v48, %v3667_v50  ;;  %v4446_v47 = vld [vmem:[#allocation3 + $0x69] sm:$0xff]  ;;  %v4013_v25 = vpop.f32.mrf.mxu0  ;;  %v21732_v21 = vld [vmem:[#allocation72_spill] sm:$0xff]  ;;  %v21733_v50 = vld [vmem:[#allocation75_spill] sm:$0xff]  ;;  %v13976_v13 = vpop.f32.mrf.mxu1 }
 0x22a   : > { %v4394_v14 = vld [vmem:[#allocation3 + $0x68] sm:$0xff]  ;;  %v4447_v7 = vld [vmem:[#allocation3 + $0x71] sm:$0xff]  ;;  %v2380_v12 = vadd.f32 %v21728_v44, %v17810_v54  ;;  %v2808_v43 = vadd.f32 %v21729_v53, %v2378_v55  ;;  %v3669_v56 = vadd.f32 %v17880_v22, %v21730_v60  ;;  %4279 = vst [vmem:[#allocation4 + $0xa0] sm:$0xff] %v4243_v39  ;;  %v4137_v52 = vadd.f32 %v17726_v42, %v4094_v29  ;;  %v21738_v60 = vld [vmem:[#allocation76_spill] sm:$0xff] }
 0x22b   : > { %v4395_v61 = vld [vmem:[#allocation3 + $0x70] sm:$0xff]  ;;  %v17946_v32 = vld [vmem:[#allocation4 + $0x7e] sm:$0xff]  ;;  %v4246_v41 = vsel %vm4174_vm10, %v4138_v23, %v4210_v8  ;;  %v4140_v54 = vadd.f32 %v17726_v42, %v4097_v0  ;;  %v4096_v15 = vadd.f32 %v4013_v25, %v3666_v63  ;;  %14093 = vmatmul.mubr.f32.gmra.mxu1 %v4446_v47  ;;  %14179 = vmatmul.mubr.f32.gmra.mxu0 %v4394_v14  ;;  %v21731_v22 = vld [vmem:[#allocation51_spill] sm:$0xff]  ;;  %v14029_v40 = vpop.f32.mrf.mxu0 }
 0x22c   : > { %v17948_v31 = vld [vmem:[#allocation4 + $0x86] sm:$0xff]  ;;  %4335 = vst [vmem:[#allocation3 + $0x91] sm:$0xff] %v17946_v32  ;;  %v2810_v2 = vadd.f32 %v21731_v22, %v2380_v12  ;;  %v3238_v57 = vadd.f32 %v21732_v21, %v2808_v43  ;;  %4282 = vst [vmem:[#allocation4 + $0xb8] sm:$0xff] %v4246_v41  ;;  %vm4173_vm11 = vcmp.ge.f32.partialorder %v4137_v52, 0.0  ;;  %v4209_v5 = vmul.f32 0.01, %v4137_v52  ;;  %14095 = vmatprep.mubr.f32.mxu1 %v4447_v7  ;;  %v3623_v41 = vpop.f32.mrf.mxu1 }
 0x22d   : > { %4336 = vst [vmem:[#allocation3 + $0x99] sm:$0xff] %v17948_v31  ;;  %14181 = vmatprep.mubr.f32.mxu0 %v4395_v61  ;;  %vm4176_vm12 = vcmp.ge.f32.partialorder %v4140_v54, 0.0  ;;  %v4212_v38 = vmul.f32 0.01, %v4140_v54  ;;  %v4139_v28 = vadd.f32 %v17726_v42, %v4096_v15  ;;  %v4099_v11 = vadd.f32 %v14029_v40, %v3669_v56  ;;  %v21734_v10 = vld [vmem:[#allocation74_spill] sm:$0xff]  ;;  %v4023_v16 = vpop.f32.mrf.mxu0  ;;  %v21736_v44 = vld [vmem:[#allocation37_spill] sm:$0xff] }
 0x22e   : > { %v3240_v1 = vadd.f32 %v21733_v50, %v2810_v2  ;;  %v3668_v51 = vadd.f32 %v17897_v27, %v3238_v57  ;;  %v3671_v34 = vadd.f32 %v17908_v17, %v21734_v10  ;;  %v4245_v19 = vsel %vm4173_vm11, %v4137_v52, %v4209_v5  ;;  %v4448_v20 = vld [vmem:[#allocation3 + $0x79] sm:$0xff]  ;;  %v4449_v59 = vld [vmem:[#allocation3 + $0x81] sm:$0xff]  ;;  %v21737_v53 = vld [vmem:[#allocation54_spill] sm:$0xff] }
 0x22f   : > { %v4396_v23 = vld [vmem:[#allocation3 + $0x78] sm:$0xff]  ;;  %4281 = vst [vmem:[#allocation4 + $0xb0] sm:$0xff] %v4245_v19  ;;  %v4248_v49 = vsel %vm4176_vm12, %v4140_v54, %v4212_v38  ;;  %vm4175_vm13 = vcmp.ge.f32.partialorder %v4139_v28, 0.0  ;;  %v4211_v55 = vmul.f32 0.01, %v4139_v28  ;;  %v4142_v63 = vadd.f32 %v17726_v42, %v4099_v11  ;;  %14096 = vmatmul.mubr.f32.gmra.mxu1 %v4448_v20  ;;  %v4397_v29 = vld [vmem:[#allocation3 + $0x80] sm:$0xff]  ;;  %v14032_v8 = vpop.f32.mrf.mxu0 }
 0x230   : > { %14182 = vmatmul.mubr.f32.gmra.mxu0 %v4396_v23  ;;  %v21735_v27 = vld [vmem:[#allocation35_spill] sm:$0xff]  ;;  %v3670_v17 = vadd.f32 %v17920_v35, %v3240_v1  ;;  %4284 = vst [vmem:[#allocation4 + $0xc8] sm:$0xff] %v4248_v49  ;;  %v4098_v39 = vadd.f32 %v4023_v16, %v3668_v51  ;;  %14098 = vmatprep.mubr.f32.mxu1 %v4449_v59  ;;  %v4450_v52 = vld [vmem:[#allocation3 + $0x89] sm:$0xff] }
 0x231   : > { %v2382_v48 = vadd.f32 %v21735_v27, %v17851_v9  ;;  %14184 = vmatprep.mubr.f32.mxu0 %v4397_v29  ;;  %v4247_v0 = vsel %vm4175_vm13, %v4139_v28, %v4211_v55  ;;  %vm4178_vm14 = vcmp.ge.f32.partialorder %v4142_v63, 0.0  ;;  %v4214_v47 = vmul.f32 0.01, %v4142_v63  ;;  %v4343_v7 = vld [vmem:[#allocation4 + $0xa2] sm:$0xff]  ;;  %v4033_v56 = vpop.f32.mrf.mxu0 }
 0x232   : > { %v4101_v14 = vadd.f32 %v14032_v8, %v3671_v34  ;;  %v2384_v12 = vadd.f32 %v21736_v44, %v17860_v46  ;;  %v3673_v9 = vadd.f32 %v17933_v6, %v21738_v60  ;;  %4283 = vst [vmem:[#allocation4 + $0xc0] sm:$0xff] %v4247_v0  ;;  %v4141_v35 = vadd.f32 %v17726_v42, %v4098_v39  ;;  %v4398_v25 = vld [vmem:[#allocation3 + $0x88] sm:$0xff]  ;;  %v21742_v8 = vld [vmem:[#allocation60_spill] sm:$0xff] }
 0x233   : > { %v2812_v43 = vadd.f32 %v21737_v53, %v2382_v48  ;;  %v4399_v61 = vld [vmem:[#allocation3 + $0x90] sm:$0xff]  ;;  %4345 = vst [vmem:[#allocation3 + $0xb5] sm:$0xff] %v4343_v7  ;;  %v4250_v54 = vsel %vm4178_vm14, %v4142_v63, %v4214_v47  ;;  %v4100_v22 = vadd.f32 %v4033_v56, %v3670_v17  ;;  %14099 = vmatmul.mubr.f32.gmra.mxu1 %v4450_v52  ;;  %v21739_v46 = vld [vmem:[#allocation57_spill] sm:$0xff]  ;;  %v14035_v5 = vpop.f32.mrf.mxu0  ;;  %vm7679_vm14 = vcmask 1045504  }
 0x234   : > { %v4144_v15 = vadd.f32 %v17726_v42, %v4101_v14  ;;  %14185 = vmatmul.mubr.f32.gmra.mxu0 %v4398_v25  ;;  %v2814_v2 = vadd.f32 %v21739_v46, %v2384_v12  ;;  %v21740_v21 = vld [vmem:[#allocation77_spill] sm:$0xff]  ;;  %vm4177_vm15 = vcmp.ge.f32.partialorder %v4141_v35, 0.0  ;;  %v4213_v6 = vmul.f32 0.01, %v4141_v35  ;;  %14101 = vmatprep.mubr.f32.mxu1 %v17946_v32  ;;  %4360 = vst [vmem:[#allocation3 + $0xeb] sm:$0xff] %v4250_v54  ;;  %v4400_v34 = vld [vmem:[#allocation3 + $0x98] sm:$0xff]  ;;  %v13979_v32 = vpop.f32.mrf.mxu1 }
 0x235   : > { %v3242_v57 = vadd.f32 %v21740_v21, %v2812_v43  ;;  %14187 = vmatprep.mubr.f32.mxu0 %v4399_v61  ;;  %v4143_v38 = vadd.f32 %v17726_v42, %v4100_v22  ;;  %v4103_v28 = vadd.f32 %v14035_v5, %v3673_v9  ;;  %v3675_v1 = vadd.f32 %v13976_v13, %v17684_v30  ;;  %v4043_v10 = vpop.f32.mrf.mxu0  ;;  %v4401_v49 = vld [vmem:[#allocation3 + $0xa0] sm:$0xff]  ;;  %v21741_v30 = vld [vmem:[#allocation39_spill] sm:$0xff]  ;;  %v4454_v7 = vld [vmem:[#allocation3 + $0xa9] sm:$0xff] }
 0x236   : > { %vm4180_vm0 = vcmp.ge.f32.partialorder %v4144_v15, 0.0  ;;  %v4216_v40 = vmul.f32 0.01, %v4144_v15  ;;  %v3244_v11 = vadd.f32 %v17686_v58, %v2814_v2  ;;  %v4249_v51 = vsel %vm4177_vm15, %v4141_v35, %v4213_v6  ;;  %v4344_v19 = vld [vmem:[#allocation4 + $0xaa] sm:$0xff]  ;;  %v4348_v16 = vld [vmem:[#allocation4 + $0xb4] sm:$0xff]  ;;  %v4402_v44 = vld [vmem:[#allocation3 + $0xa8] sm:$0xff]  ;;  %v3633_v53 = vpop.f32.mrf.mxu1 }
 0x237   : > { %v3672_v50 = vadd.f32 %v17950_v3, %v3242_v57  ;;  %4285 = vst [vmem:[#allocation4 + $0xd0] sm:$0xff] %v4249_v51  ;;  %vm4179_vm1 = vcmp.ge.f32.partialorder %v4143_v38, 0.0  ;;  %v4215_v23 = vmul.f32 0.01, %v4143_v38  ;;  %v4146_v59 = vadd.f32 %v17726_v42, %v4103_v28  ;;  %14102 = vmatmul.mubr.f32.gmra.mxu1 %v17948_v31  ;;  %v4453_v58 = vld [vmem:[#allocation3 + $0xa1] sm:$0xff]  ;;  %4346 = vst [vmem:[#allocation3 + $0xbd] sm:$0xff] %v4344_v19  ;;  %v14038_v63 = vpop.f32.mrf.mxu0 }
 0x238   : > { %v4252_v20 = vsel %vm4180_vm0, %v4144_v15, %v4216_v40  ;;  %14188 = vmatmul.mubr.f32.gmra.mxu0 %v4400_v34  ;;  %4350 = vst [vmem:[#allocation3 + $0xc7] sm:$0xff] %v4348_v16  ;;  %v2386_v3 = vadd.f32 %v21741_v30, %v17884_v24  ;;  %v3674_v13 = vadd.f32 %v3623_v41, %v3244_v11 }
 0x239   : > { %4288 = vst [vmem:[#allocation4 + $0xe8] sm:$0xff] %v4252_v20  ;;  %v4102_v55 = vadd.f32 %v4043_v10, %v3672_v50  ;;  %14104 = vmatprep.mubr.f32.mxu1 %v4453_v58  ;;  %14190 = vmatprep.mubr.f32.mxu0 %v4401_v49  ;;  %v4251_v29 = vsel %vm4179_vm1, %v4143_v38, %v4215_v23  ;;  %vm4182_vm2 = vcmp.ge.f32.partialorder %v4146_v59, 0.0  ;;  %v4218_v27 = vmul.f32 0.01, %v4146_v59  ;;  %v4349_v39 = vld [vmem:[#allocation4 + $0xbc] sm:$0xff]  ;;  %v4053_v14 = vpop.f32.mrf.mxu0  ;;  %v4353_v12 = vld [vmem:[#allocation4 + $0xc6] sm:$0xff] }
 0x23a   : > { %v4105_v48 = vadd.f32 %v14038_v63, %v3675_v1  ;;  %v4455_v31 = vld [vmem:[#allocation3 + $0xb1] sm:$0xff]  ;;  %v2816_v0 = vadd.f32 %v21742_v8, %v2386_v3  ;;  %v3677_v47 = vadd.f32 %v13979_v32, %v17695_v18  ;;  %4351 = vst [vmem:[#allocation3 + $0xcf] sm:$0xff] %v4349_v39  ;;  %4361 = vst [vmem:[#allocation3 + $0xf3] sm:$0xff] %v4251_v29 }
 0x23b   : > { %v4403_v17 = vld [vmem:[#allocation3 + $0xb0] sm:$0xff]  ;;  %v4145_v24 = vadd.f32 %v17726_v42, %v4102_v55  ;;  %v4254_v43 = vsel %vm4182_vm2, %v4146_v59, %v4218_v27  ;;  %v4104_v9 = vadd.f32 %v4053_v14, %v3674_v13  ;;  %14105 = vmatmul.mubr.f32.gmra.mxu1 %v4454_v7  ;;  %4355 = vst [vmem:[#allocation3 + $0xd9] sm:$0xff] %v4353_v12  ;;  %v14041_v56 = vpop.f32.mrf.mxu0 }
 0x23c   : > { %v4148_v60 = vadd.f32 %v17726_v42, %v4105_v48  ;;  %14191 = vmatmul.mubr.f32.gmra.mxu0 %v4402_v44  ;;  %v3246_v35 = vadd.f32 %v17701_v33, %v2816_v0  ;;  %4290 = vst [vmem:[#allocation4 + $0xf8] sm:$0xff] %v4254_v43  ;;  %14107 = vmatprep.mubr.f32.mxu1 %v4455_v31  ;;  %v4462_v49 = vld [vmem:[#allocation3 + $0xe9] sm:$0xff]  ;;  %v21744_v43 = vld [vmem:[#allocation64_spill] sm:$0xff] }
 0x23d   : > { %vm4181_vm3 = vcmp.ge.f32.partialorder %v4145_v24, 0.0  ;;  %v4217_v18 = vmul.f32 0.01, %v4145_v24  ;;  %14193 = vmatprep.mubr.f32.mxu0 %v4403_v17  ;;  %v4147_v25 = vadd.f32 %v17726_v42, %v4104_v9  ;;  %v4107_v61 = vadd.f32 %v14041_v56, %v3677_v47  ;;  %v4063_v15 = vpop.f32.mrf.mxu0  ;;  %v5312_v9 = vld [vmem:[#allocation3 + $0x22] sm:$0xff]  ;;  %v15944_v56 = vld [vmem:[%s21586_s3 + $0x2f8] sm:$0xff] }
 0x23e   : > { %vm4184_vm4 = vcmp.ge.f32.partialorder %v4148_v60, 0.0  ;;  %v4220_v52 = vmul.f32 0.01, %v4148_v60  ;;  %v3676_v41 = vadd.f32 %v3633_v53, %v3246_v35  ;;  %v4456_v22 = vld [vmem:[#allocation3 + $0xb9] sm:$0xff]  ;;  %v11641_v53 = vld [vmem:[%s21586_s3 + $0x270] sm:$0xff] }
 0x23f   : > { %v4253_v54 = vsel %vm4181_vm3, %v4145_v24, %v4217_v18  ;;  %v4404_v46 = vld [vmem:[#allocation3 + $0xb8] sm:$0xff]  ;;  %v4457_v2 = vld [vmem:[#allocation3 + $0xc1] sm:$0xff]  ;;  %vm4183_vm5 = vcmp.ge.f32.partialorder %v4147_v25, 0.0  ;;  %v4219_v33 = vmul.f32 0.01, %v4147_v25  ;;  %v4150_v57 = vadd.f32 %v17726_v42, %v4107_v61  ;;  %14108 = vmatmul.mubr.f32.gmra.mxu1 %v4456_v22  ;;  %v5313_v35 = vld [vmem:[#allocation3 + $0x2a] sm:$0xff] }
 0x240   : > { %4289 = vst [vmem:[#allocation4 + $0xf0] sm:$0xff] %v4253_v54  ;;  %v4256_v21 = vsel %vm4184_vm4, %v4148_v60, %v4220_v52  ;;  %14194 = vmatmul.mubr.f32.gmra.mxu0 %v4404_v46  ;;  %v4405_v6 = vld [vmem:[#allocation3 + $0xc0] sm:$0xff]  ;;  %v4354_v5 = vld [vmem:[#allocation4 + $0xce] sm:$0xff]  ;;  %v4106_v40 = vadd.f32 %v4063_v15, %v3676_v41  ;;  %14110 = vmatprep.mubr.f32.mxu1 %v4457_v2  ;;  %v11657_v52 = vld [vmem:[%s21586_s3 + $0x2f0] sm:$0xff] }
 0x241   : > { %4292 = vst [vmem:[#allocation4 + $0x108] sm:$0xff] %v4256_v21  ;;  %14196 = vmatprep.mubr.f32.mxu0 %v4405_v6  ;;  %4356 = vst [vmem:[#allocation3 + $0xe1] sm:$0xff] %v4354_v5  ;;  %v4255_v38 = vsel %vm4183_vm5, %v4147_v25, %v4219_v33  ;;  %vm4186_vm6 = vcmp.ge.f32.partialorder %v4150_v57, 0.0  ;;  %v4222_v28 = vmul.f32 0.01, %v4150_v57  ;;  %v4458_v11 = vld [vmem:[#allocation3 + $0xc9] sm:$0xff] }
 0x242   : > { %v4406_v50 = vld [vmem:[#allocation3 + $0xc8] sm:$0xff]  ;;  %v4459_v1 = vld [vmem:[#allocation3 + $0xd1] sm:$0xff]  ;;  %4291 = vst [vmem:[#allocation4 + $0x100] sm:$0xff] %v4255_v38  ;;  %v4149_v51 = vadd.f32 %v17726_v42, %v4106_v40  ;;  %v11640_v18 = vld [vmem:[%s21586_s3 + $0x268] sm:$0xff] }
 0x243   : > { %v4407_v10 = vld [vmem:[#allocation3 + $0xd0] sm:$0xff]  ;;  %v4258_v34 = vsel %vm4186_vm6, %v4150_v57, %v4222_v28  ;;  %14111 = vmatmul.mubr.f32.gmra.mxu1 %v4458_v11  ;;  %v4408_v32 = vld [vmem:[#allocation3 + $0xd8] sm:$0xff]  ;;  %v11656_v41 = vld [vmem:[%s21586_s3 + $0x2e8] sm:$0xff] }
 0x244   : > { %14197 = vmatmul.mubr.f32.gmra.mxu0 %v4406_v50  ;;  %4294 = vst [vmem:[#allocation4 + $0x118] sm:$0x3f] %v4258_v34  ;;  %vm4185_vm7 = vcmp.ge.f32.partialorder %v4149_v51, 0.0  ;;  %v4221_v19 = vmul.f32 0.01, %v4149_v51  ;;  %14113 = vmatprep.mubr.f32.mxu1 %v4459_v1  ;;  %v4463_v3 = vld [vmem:[#allocation3 + $0xf1] sm:$0xff] }
 0x245   : > { %14199 = vmatprep.mubr.f32.mxu0 %v4407_v10  ;;  %v4411_v13 = vld [vmem:[#allocation3 + $0xf0] sm:$0xff]  ;;  %v5315_v25 = vld [vmem:[#allocation3 + $0x3a] sm:$0xff]  ;;  %v11637_v21 = vld [vmem:[%s21586_s3 + $0x250] sm:$0xff] }
 0x246   : > { %v4257_v16 = vsel %vm4185_vm7, %v4149_v51, %v4221_v19  ;;  %v14076_v48 = vpop.f32.mrf.mxu1  ;;  %v15943_v60 = vld [vmem:[%s21586_s3 + $0x278] sm:$0xff]  ;;  %v11639_v61 = vld [vmem:[%s21586_s3 + $0x260] sm:$0xff]  ;;  %v5320_v57 = vld [vmem:[#allocation3 + $0x62] sm:$0xff] }
 0x247   : > { %v4363_v20 = vld [vmem:[#allocation4 + $0xea] sm:$0xff]  ;;  %v4364_v23 = vld [vmem:[#allocation4 + $0xf2] sm:$0xff]  ;;  %4293 = vst [vmem:[#allocation4 + $0x110] sm:$0xff] %v4257_v16  ;;  %14114 = vmatmul.mubr.f32.gmra.mxu1 %v4353_v12  ;;  %v14162_v31 = vpop.f32.mrf.mxu0  ;;  %v5317_v54 = vld [vmem:[#allocation3 + $0x4a] sm:$0xff] }
 0x248   : > { %14200 = vmatmul.mubr.f32.gmra.mxu0 %v4408_v32  ;;  %v4409_v59 = vld [vmem:[#allocation3 + $0xe0] sm:$0xff]  ;;  %4365 = vst [vmem:[#allocation3 + $0xfd] sm:$0xff] %v4363_v20  ;;  %4366 = vst [vmem:[#allocation3 + $0x105] sm:$0xff] %v4364_v23  ;;  %14116 = vmatprep.mubr.f32.mxu1 %v4354_v5  ;;  %v4410_v30 = vld [vmem:[#allocation3 + $0xe8] sm:$0xff]  ;;  %v17995_v8 = vadd.f32 %v14162_v31, %v14076_v48 }
 0x249   : > { %14202 = vmatprep.mubr.f32.mxu0 %v4409_v59  ;;  %v4368_v42 = vld [vmem:[#allocation4 + $0xfc] sm:$0xff]  ;;  %v4369_v58 = vld [vmem:[#allocation4 + $0x104] sm:$0xff]  ;;  %v11655_v22 = vld [vmem:[%s21586_s3 + $0x2e0] sm:$0xff] }
 0x24a   : > { %4370 = vst [vmem:[#allocation3 + $0x10f] sm:$0xff] %v4368_v42  ;;  %4371 = vst [vmem:[#allocation3 + $0x117] sm:$0xff] %v4369_v58  ;;  %v21743_v12 = vld [vmem:[#allocation28_spill] sm:$0xff]  ;;  %v11638_v15 = vld [vmem:[%s21586_s3 + $0x258] sm:$0xff] }
 0x24b   : > { %14117 = vmatmul.mubr.f32.gmra.mxu1 %v4462_v49  ;;  %v5318_v46 = vld [vmem:[#allocation3 + $0x52] sm:$0xff]  ;;  %v5319_v2 = vld [vmem:[#allocation3 + $0x5a] sm:$0xff]  ;;  %v18036_v6 = vld [vmem:[#allocation3 + $0x23] sm:$0xff] }
 0x24c   : > { %14203 = vmatmul.mubr.f32.gmra.mxu0 %v4410_v30  ;;  %14119 = vmatprep.mubr.f32.mxu1 %v4463_v3  ;;  %v11654_v33 = vld [vmem:[%s21586_s3 + $0x2d8] sm:$0xff]  ;;  %v18038_v5 = vld [vmem:[#allocation3 + $0x24] sm:$0xff]  ;;  %v18048_v50 = vld [vmem:[#allocation3 + $0x3b] sm:$0xff] }
 0x24d   : > { %14205 = vmatprep.mubr.f32.mxu0 %v4411_v13  ;;  %v18040_v40 = vld [vmem:[#allocation3 + $0x2b] sm:$0xff]  ;;  %v18046_v11 = vld [vmem:[#allocation3 + $0x34] sm:$0xff]  ;;  %v18050_v1 = vld [vmem:[#allocation3 + $0x3c] sm:$0xff] }
 0x24e   : > { %v4373_v17 = vld [vmem:[#allocation4 + $0x10e] sm:$0xff]  ;;  %v4374_v39 = vld [vmem:[#allocation4 + $0x116] sm:$0xff]  ;;  %v18042_v38 = vld [vmem:[#allocation3 + $0x2c] sm:$0xff] }
 0x24f   : > { %v4464_v55 = vld [vmem:[#allocation3 + $0xf9] sm:$0xff]  ;;  %v4465_v29 = vld [vmem:[#allocation3 + $0x101] sm:$0xff]  ;;  %4375 = vst [vmem:[#allocation3 + $0x121] sm:$0xff] %v4373_v17  ;;  %4376 = vst [vmem:[#allocation3 + $0x129] sm:$0xff] %v4374_v39 }
 0x250   : > { %v4412_v63 = vld [vmem:[#allocation3 + $0xf8] sm:$0xff]  ;;  %14120 = vmatmul.mubr.f32.gmra.mxu1 %v4464_v55  ;;  %v4413_v27 = vld [vmem:[#allocation3 + $0x100] sm:$0xff]  ;;  %v18056_v34 = vld [vmem:[#allocation3 + $0x2d] sm:$0xff] }
 0x251   : > { %14206 = vmatmul.mubr.f32.gmra.mxu0 %v4412_v63  ;;  %14122 = vmatprep.mubr.f32.mxu1 %v4465_v29  ;;  %v4466_v0 = vld [vmem:[#allocation3 + $0x109] sm:$0xff]  ;;  %v4467_v24 = vld [vmem:[#allocation3 + $0x111] sm:$0xff]  ;;  %v4468_v7 = vld [vmem:[#allocation3 + $0x119] sm:$0x3f] }
 0x252   : > { %14208 = vmatprep.mubr.f32.mxu0 %v4413_v27  ;;  %v4414_v47 = vld [vmem:[#allocation3 + $0x108] sm:$0xff]  ;;  %v4415_v14 = vld [vmem:[#allocation3 + $0x110] sm:$0xff]  ;;  %v4416_v44 = vld [vmem:[#allocation3 + $0x118] sm:$0x3f] }
 0x253   : > { %v18044_v28 = vld [vmem:[#allocation3 + $0x25] sm:$0xff]  ;;  %v18058_v19 = vld [vmem:[#allocation3 + $0x35] sm:$0xff]  ;;  %v18076_v30 = vld [vmem:[#allocation3 + $0x4d] sm:$0xff] }
 0x254   : > { %14123 = vmatmul.mubr.f32.gmra.mxu1 %v4466_v0  ;;  %v18052_v51 = vld [vmem:[#allocation3 + $0x43] sm:$0xff]  ;;  %v18062_v32 = vld [vmem:[#allocation3 + $0x4b] sm:$0xff]  ;;  %v18066_v23 = vld [vmem:[#allocation3 + $0x53] sm:$0xff] }
 0x255   : > { %14209 = vmatmul.mubr.f32.gmra.mxu0 %v4414_v47  ;;  %14125 = vmatprep.mubr.f32.mxu1 %v4467_v24  ;;  %v18054_v10 = vld [vmem:[#allocation3 + $0x44] sm:$0xff]  ;;  %v18064_v20 = vld [vmem:[#allocation3 + $0x4c] sm:$0xff]  ;;  %v18068_v59 = vld [vmem:[#allocation3 + $0x54] sm:$0xff] }
 0x256   : > { %14211 = vmatprep.mubr.f32.mxu0 %v4415_v14  ;;  %v18060_v16 = vld [vmem:[#allocation3 + $0x45] sm:$0xff]  ;;  %v18070_v42 = vld [vmem:[#allocation3 + $0x5b] sm:$0xff]  ;;  %v18084_v63 = vld [vmem:[#allocation3 + $0x2e] sm:$0xff] }
 0x257   : > { %v18072_v58 = vld [vmem:[#allocation3 + $0x5c] sm:$0xff]  ;;  %v18082_v55 = vld [vmem:[#allocation3 + $0x26] sm:$0xff]  ;;  %v15945_v29 = vld [vmem:[#allocation3 + $0x133] sm:$0xff] }
 0x258   : > { %14126 = vmatmul.mubr.f32.gmra.mxu1 %v4468_v7  ;;  %v18074_v49 = vld [vmem:[#allocation3 + $0x63] sm:$0xff]  ;;  %v18078_v3 = vld [vmem:[#allocation3 + $0x55] sm:$0xff]  ;;  %7861 = vst [vmem:[#allocation3 + $0x27] sm:$0x3] %v15945_v29 }
 0x259   : > { %14212 = vmatmul.mubr.f32.gmra.mxu0 %v4416_v44  ;;  %14246 = vmatprep.mubr.f32.mxu1 %v21743_v12  ;;  %v18080_v13 = vld [vmem:[#allocation3 + $0x5d] sm:$0xff]  ;;  %v18090_v31 = vld [vmem:[#allocation3 + $0x46] sm:$0xff]  ;;  %v18092_v17 = vld [vmem:[#allocation3 + $0x4e] sm:$0xff] }
 0x25a   : > { %14332 = vmatprep.mubr.f32.mxu0 %v17829_v4  ;;  %v18086_v27 = vld [vmem:[#allocation3 + $0x36] sm:$0xff]  ;;  %v18088_v48 = vld [vmem:[#allocation3 + $0x3e] sm:$0xff]  ;;  %21746 = vst [vmem:[#allocation5_spill] sm:$0xff] %v18090_v31  ;;  %21747 = vst [vmem:[#allocation10_spill] sm:$0xff] %v18092_v17 }
 0x25b   : > { %21745 = vst [vmem:[#allocation27_spill] sm:$0xff] %v18088_v48  ;;  %7869 = vst [vmem:[#allocation3 + $0x3b] sm:$0x3] %v15945_v29  ;;  %v18094_v39 = vld [vmem:[#allocation3 + $0x56] sm:$0xff]  ;;  %v18096_v0 = vld [vmem:[#allocation3 + $0x5e] sm:$0xff] }
 0x25c   : > { %14247 = vmatmul.mubr.f32.vlgmr.msra.gmra.mxu1 %v21744_v43  ;;  %21748 = vst [vmem:[#allocation12_spill] sm:$0xff] %v18094_v39  ;;  %21749 = vst [vmem:[#allocation45_spill] sm:$0xff] %v18096_v0  ;;  %v5321_v47 = vld [vmem:[#allocation3 + $0x6a] sm:$0xff]  ;;  %v11636_v24 = vld [vmem:[%s21586_s3 + $0x248] sm:$0xff] }
 0x25d   : > { %14333 = vmatmul.mubr.f32.vlgmr.msra.gmra.mxu0 %v17821_v45  ;;  %14387 = vmatpush3.msra.mxu1 %v15943_v60  ;;  %v11653_v14 = vld [vmem:[%s21586_s3 + $0x2d0] sm:$0xff]  ;;  %7877 = vst [vmem:[#allocation3 + $0x4f] sm:$0x3] %v15945_v29  ;;  %7881 = vst [vmem:[#allocation3 + $0x59] sm:$0x3] %v15945_v29  ;;  %v5322_v7 = vld [vmem:[#allocation3 + $0x72] sm:$0xff] }
 0x25e   : > { %14249 = vmatprep.mubr.f32.mxu1 %v17829_v4  ;;  %14335 = vmatprep.mubr.f32.mxu0 %v5312_v9  ;;  %v5314_v4 = vld [vmem:[#allocation3 + $0x32] sm:$0xff]  ;;  %7883 = vst [vmem:[#allocation3 + $0x63] sm:$0x1] %v15945_v29  ;;  %7882 = vst [vmem:[#allocation3 + $0x5b] sm:$0xff] %v15945_v29  ;;  %v5323_v44 = vld [vmem:[#allocation3 + $0x7a] sm:$0xff] }
 0x25f   : > { %14388 = vmatprep.subr.mxu1 %v11641_v53  ;;  %14473 = vmatpush3.msra.mxu0 %v15944_v56  ;;  %7865 = vst [vmem:[#allocation3 + $0x31] sm:$0x3] %v15945_v29  ;;  %v11635_v12 = vld [vmem:[%s21586_s3 + $0x240] sm:$0xff]  ;;  %v5324_v43 = vld [vmem:[#allocation3 + $0x82] sm:$0xff]  ;;  %v5325_v60 = vld [vmem:[#allocation3 + $0x8a] sm:$0xff] }
 0x260   : > { %14389 = vmatpush3.msra.mxu1 %v11641_v53  ;;  %14474 = vmatprep.subr.mxu0 %v11657_v52  ;;  %v11652_v53 = vld [vmem:[%s21586_s3 + $0x2c8] sm:$0xff]  ;;  %v5679_v39 = vld [vmem:[#allocation3 + $0x12b] sm:$0x3f] }
 0x261   : > { %14250 = vmatmul.mubr.f32.gmra.mxu1 %v17821_v45  ;;  %14336 = vmatmul.mubr.f32.gmra.mxu0 %v5313_v35  ;;  %v5316_v45 = vld [vmem:[#allocation3 + $0x42] sm:$0xff]  ;;  %v5327_v56 = vld [vmem:[#allocation3 + $0x9a] sm:$0xff]  ;;  %v6013_v17 = vld [vmem:[#allocation3 + $0x12c] sm:$0x3f] }
 0x262   : > { %14252 = vmatprep.mubr.f32.mxu1 %v5312_v9  ;;  %14338 = vmatprep.mubr.f32.mxu0 %v5314_v4  ;;  %7873 = vst [vmem:[#allocation3 + $0x45] sm:$0x3] %v15945_v29  ;;  %v11634_v9 = vld [vmem:[%s21586_s3 + $0x238] sm:$0xff] }
 0x263   : > { %14390 = vmatprep.subr.mxu1 %v11640_v18  ;;  %14475 = vmatpush3.msra.mxu0 %v11657_v52  ;;  %v11633_v52 = vld [vmem:[%s21586_s3 + $0x230] sm:$0xff]  ;;  %v5334_v29 = vld [vmem:[#allocation3 + $0xd2] sm:$0xff] }
 0x264   : > { %14391 = vmatpush3.msra.mxu1 %v11640_v18  ;;  %14476 = vmatprep.subr.mxu0 %v11656_v41  ;;  %v5326_v18 = vld [vmem:[#allocation3 + $0x92] sm:$0xff] }
 0x265   : > { %14253 = vmatmul.mubr.f32.gmra.mxu1 %v5313_v35  ;;  %14339 = vmatmul.mubr.f32.gmra.mxu0 %v5315_v25  ;;  %v11651_v35 = vld [vmem:[%s21586_s3 + $0x2c0] sm:$0xff] }
 0x266   : > { %14255 = vmatprep.mubr.f32.mxu1 %v5314_v4  ;;  %14341 = vmatprep.mubr.f32.mxu0 %v5316_v45  ;;  %v11650_v4 = vld [vmem:[%s21586_s3 + $0x2b8] sm:$0xff] }
 0x267   : > { %14392 = vmatprep.subr.mxu1 %v11639_v61  ;;  %14477 = vmatpush3.msra.mxu0 %v11656_v41  ;;  %v11632_v41 = vld [vmem:[%s21586_s3 + $0x228] sm:$0xff] }
 0x268   : > { %14393 = vmatpush3.msra.mxu1 %v11639_v61  ;;  %14478 = vmatprep.subr.mxu0 %v11655_v22  ;;  %v5329_v61 = vld [vmem:[#allocation3 + $0xaa] sm:$0xff] }
 0x269   : > { %14256 = vmatmul.mubr.f32.gmra.mxu1 %v5315_v25  ;;  %14342 = vmatmul.mubr.f32.gmra.mxu0 %v5317_v54  ;;  %v5328_v25 = vld [vmem:[#allocation3 + $0xa2] sm:$0xff] }
 0x26a   : > { %14258 = vmatprep.mubr.f32.mxu1 %v5316_v45  ;;  %14344 = vmatprep.mubr.f32.mxu0 %v5318_v46  ;;  %v11649_v45 = vld [vmem:[%s21586_s3 + $0x2b0] sm:$0xff] }
 0x26b   : > { %14394 = vmatprep.subr.mxu1 %v11638_v15  ;;  %14479 = vmatpush3.msra.mxu0 %v11655_v22  ;;  %v11631_v22 = vld [vmem:[%s21586_s3 + $0x220] sm:$0xff] }
 0x26c   : > { %14395 = vmatpush3.msra.mxu1 %v11638_v15  ;;  %14480 = vmatprep.subr.mxu0 %v11654_v33  ;;  %v5331_v15 = vld [vmem:[#allocation3 + $0xba] sm:$0xff] }
 0x26d   : > { %14259 = vmatmul.mubr.f32.gmra.mxu1 %v5317_v54  ;;  %14345 = vmatmul.mubr.f32.gmra.mxu0 %v5319_v2  ;;  %v5330_v54 = vld [vmem:[#allocation3 + $0xb2] sm:$0xff] }
 0x26e   : > { %14261 = vmatprep.mubr.f32.mxu1 %v5318_v46  ;;  %14347 = vmatprep.mubr.f32.mxu0 %v5320_v57  ;;  %v11648_v46 = vld [vmem:[%s21586_s3 + $0x2a8] sm:$0xff] }
 0x26f   : > { %14396 = vmatprep.subr.mxu1 %v11637_v21  ;;  %14481 = vmatpush3.msra.mxu0 %v11654_v33  ;;  %v11630_v33 = vld [vmem:[%s21586_s3 + $0x218] sm:$0xff] }
 0x270   : > { %14397 = vmatpush3.msra.mxu1 %v11637_v21  ;;  %14482 = vmatprep.subr.mxu0 %v11653_v14  ;;  %v5333_v21 = vld [vmem:[#allocation3 + $0xca] sm:$0xff] }
 0x271   : > { %14262 = vmatmul.mubr.f32.gmra.mxu1 %v5319_v2  ;;  %14348 = vmatmul.mubr.f32.gmra.mxu0 %v5321_v47  ;;  %v5332_v2 = vld [vmem:[#allocation3 + $0xc2] sm:$0xff] }
 0x272   : > { %14264 = vmatprep.mubr.f32.mxu1 %v5320_v57  ;;  %14350 = vmatprep.mubr.f32.mxu0 %v5322_v7  ;;  %v11647_v57 = vld [vmem:[%s21586_s3 + $0x2a0] sm:$0xff] }
 0x273   : > { %14398 = vmatprep.subr.mxu1 %v11636_v24  ;;  %14483 = vmatpush3.msra.mxu0 %v11653_v14  ;;  %v11646_v14 = vld [vmem:[%s21586_s3 + $0x298] sm:$0xff] }
 0x274   : > { %14399 = vmatpush3.msra.mxu1 %v11636_v24  ;;  %14484 = vmatprep.subr.mxu0 %v11652_v53  ;;  %v11629_v24 = vld [vmem:[%s21586_s3 + $0x210] sm:$0xff] }
 0x275   : > { %14265 = vmatmul.mubr.f32.gmra.mxu1 %v5321_v47  ;;  %14351 = vmatmul.mubr.f32.gmra.mxu0 %v5323_v44  ;;  %v5335_v47 = vld [vmem:[#allocation3 + $0xda] sm:$0xff] }
 0x276   : > { %14267 = vmatprep.mubr.f32.mxu1 %v5322_v7  ;;  %14353 = vmatprep.mubr.f32.mxu0 %v5324_v43  ;;  %v5336_v7 = vld [vmem:[#allocation3 + $0xe2] sm:$0xff] }
 0x277   : > { %14400 = vmatprep.subr.mxu1 %v11635_v12  ;;  %14485 = vmatpush3.msra.mxu0 %v11652_v53  ;;  %v11645_v53 = vld [vmem:[%s21586_s3 + $0x290] sm:$0xff] }
 0x278   : > { %14401 = vmatpush3.msra.mxu1 %v11635_v12  ;;  %14486 = vmatprep.subr.mxu0 %v11651_v35  ;;  %v11628_v12 = vld [vmem:[%s21586_s3 + $0x208] sm:$0xff] }
 0x279   : > { %14268 = vmatmul.mubr.f32.gmra.mxu1 %v5323_v44  ;;  %14354 = vmatmul.mubr.f32.gmra.mxu0 %v5325_v60  ;;  %v5337_v44 = vld [vmem:[#allocation3 + $0xea] sm:$0xff] }
 0x27a   : > { %14270 = vmatprep.mubr.f32.mxu1 %v5324_v43  ;;  %14356 = vmatprep.mubr.f32.mxu0 %v5326_v18  ;;  %v5338_v43 = vld [vmem:[#allocation3 + $0xf2] sm:$0xff] }
 0x27b   : > { %14402 = vmatprep.subr.mxu1 %v11634_v9  ;;  %14487 = vmatpush3.msra.mxu0 %v11651_v35  ;;  %v11644_v35 = vld [vmem:[%s21586_s3 + $0x288] sm:$0xff] }
 0x27c   : > { %14403 = vmatpush3.msra.mxu1 %v11634_v9  ;;  %14488 = vmatprep.subr.mxu0 %v11650_v4  ;;  %v11627_v9 = vld [vmem:[%s21586_s3 + $0x200] sm:$0xff] }
 0x27d   : > { %14271 = vmatmul.mubr.f32.gmra.mxu1 %v5325_v60  ;;  %14357 = vmatmul.mubr.f32.gmra.mxu0 %v5327_v56  ;;  %v5339_v60 = vld [vmem:[#allocation3 + $0xfa] sm:$0xff] }
 0x27e   : > { %14273 = vmatprep.mubr.f32.mxu1 %v5326_v18  ;;  %14359 = vmatprep.mubr.f32.mxu0 %v5328_v25  ;;  %v5340_v18 = vld [vmem:[#allocation3 + $0x102] sm:$0xff] }
 0x27f   : > { %14404 = vmatprep.subr.mxu1 %v11633_v52  ;;  %14489 = vmatpush3.msra.mxu0 %v11650_v4  ;;  %v11674_v4 = vld [vmem:[%s21586_s3 + $0x378] sm:$0xff] }
 0x280   : > { %14405 = vmatpush3.msra.mxu1 %v11633_v52  ;;  %14490 = vmatprep.subr.mxu0 %v11649_v45  ;;  %v11643_v52 = vld [vmem:[%s21586_s3 + $0x280] sm:$0xff] }
 0x281   : > { %14274 = vmatmul.mubr.f32.gmra.mxu1 %v5327_v56  ;;  %14360 = vmatmul.mubr.f32.gmra.mxu0 %v5329_v61  ;;  %v5341_v56 = vld [vmem:[#allocation3 + $0x10a] sm:$0xff] }
 0x282   : > { %14276 = vmatprep.mubr.f32.mxu1 %v5328_v25  ;;  %14362 = vmatprep.mubr.f32.mxu0 %v5330_v54  ;;  %v5342_v25 = vld [vmem:[#allocation3 + $0x112] sm:$0xff] }
 0x283   : > { %14406 = vmatprep.subr.mxu1 %v11632_v41  ;;  %14491 = vmatpush3.msra.mxu0 %v11649_v45  ;;  %v5344_v45 = vld [vmem:[#allocation3 + $0x122] sm:$0xff] }
 0x284   : > { %14407 = vmatpush3.msra.mxu1 %v11632_v41  ;;  %14492 = vmatprep.subr.mxu0 %v11648_v46  ;;  %v11690_v41 = vld [vmem:[%s21586_s3 + $0x3f8] sm:$0xff] }
 0x285   : > { %14277 = vmatmul.mubr.f32.gmra.mxu1 %v5329_v61  ;;  %14363 = vmatmul.mubr.f32.gmra.mxu0 %v5331_v15  ;;  %v5343_v61 = vld [vmem:[#allocation3 + $0x11a] sm:$0xff] }
 0x286   : > { %14279 = vmatprep.mubr.f32.mxu1 %v5330_v54  ;;  %14365 = vmatprep.mubr.f32.mxu0 %v5332_v2  ;;  %v5011_v54 = vld [vmem:[#allocation3 + $0x11a] sm:$0x3f] }
 0x287   : > { %14408 = vmatprep.subr.mxu1 %v11631_v22  ;;  %14493 = vmatpush3.msra.mxu0 %v11648_v46  ;;  %v11687_v46 = vld [vmem:[%s21586_s3 + $0x3e0] sm:$0xff] }
 0x288   : > { %14409 = vmatpush3.msra.mxu1 %v11631_v22  ;;  %14494 = vmatprep.subr.mxu0 %v11647_v57  ;;  %v11673_v22 = vld [vmem:[%s21586_s3 + $0x370] sm:$0xff] }
 0x289   : > { %14280 = vmatmul.mubr.f32.gmra.mxu1 %v5331_v15  ;;  %14366 = vmatmul.mubr.f32.gmra.mxu0 %v5333_v21  ;;  %v5345_v15 = vld [vmem:[#allocation3 + $0x12a] sm:$0x3f] }
 0x28a   : > { %14282 = vmatprep.mubr.f32.mxu1 %v5332_v2  ;;  %14368 = vmatprep.mubr.f32.mxu0 %v5334_v29  ;;  %v18217_v2 = vld [vmem:[#allocation3 + $0x6c] sm:$0xff] }
 0x28b   : > { %14410 = vmatprep.subr.mxu1 %v11630_v33  ;;  %14495 = vmatpush3.msra.mxu0 %v11647_v57  ;;  %v5657_v57 = vld [vmem:[#allocation3 + $0x7b] sm:$0xff] }
 0x28c   : > { %14411 = vmatpush3.msra.mxu1 %v11630_v33  ;;  %14496 = vmatprep.subr.mxu0 %v11646_v14  ;;  %v18226_v33 = vld [vmem:[#allocation3 + $0x74] sm:$0xff] }
 0x28d   : > { %14283 = vmatmul.mubr.f32.gmra.mxu1 %v5333_v21  ;;  %14369 = vmatmul.mubr.f32.gmra.mxu0 %v5335_v47  ;;  %v11668_v21 = vld [vmem:[%s21586_s3 + $0x348] sm:$0xff] }
 0x28e   : > { %14285 = vmatprep.mubr.f32.mxu1 %v5334_v29  ;;  %14371 = vmatprep.mubr.f32.mxu0 %v5336_v7  ;;  %v18229_v29 = vld [vmem:[#allocation3 + $0x7c] sm:$0xff] }
 0x28f   : > { %14412 = vmatprep.subr.mxu1 %v11629_v24  ;;  %14497 = vmatpush3.msra.mxu0 %v11646_v14  ;;  %v5658_v14 = vld [vmem:[#allocation3 + $0x83] sm:$0xff] }
 0x290   : > { %14413 = vmatpush3.msra.mxu1 %v11629_v24  ;;  %14498 = vmatprep.subr.mxu0 %v11645_v53  ;;  %v11684_v24 = vld [vmem:[%s21586_s3 + $0x3c8] sm:$0xff] }
 0x291   : > { %14286 = vmatmul.mubr.f32.gmra.mxu1 %v5335_v47  ;;  %14372 = vmatmul.mubr.f32.gmra.mxu0 %v5337_v44  ;;  %v11667_v47 = vld [vmem:[%s21586_s3 + $0x340] sm:$0xff] }
 0x292   : > { %14288 = vmatprep.mubr.f32.mxu1 %v5336_v7  ;;  %14374 = vmatprep.mubr.f32.mxu0 %v5338_v43  ;;  %v18238_v7 = vld [vmem:[#allocation3 + $0x84] sm:$0xff] }
 0x293   : > { %14414 = vmatprep.subr.mxu1 %v11628_v12  ;;  %14499 = vmatpush3.msra.mxu0 %v11645_v53  ;;  %v11666_v53 = vld [vmem:[%s21586_s3 + $0x338] sm:$0xff] }
 0x294   : > { %14415 = vmatpush3.msra.mxu1 %v11628_v12  ;;  %14500 = vmatprep.subr.mxu0 %v11644_v35  ;;  %v18241_v12 = vld [vmem:[#allocation3 + $0x8c] sm:$0xff] }
 0x295   : > { %14289 = vmatmul.mubr.f32.gmra.mxu1 %v5337_v44  ;;  %14375 = vmatmul.mubr.f32.gmra.mxu0 %v5339_v60  ;;  %v5659_v44 = vld [vmem:[#allocation3 + $0x8b] sm:$0xff] }
 0x296   : > { %14291 = vmatprep.mubr.f32.mxu1 %v5338_v43  ;;  %14377 = vmatprep.mubr.f32.mxu0 %v5340_v18  ;;  %v11683_v43 = vld [vmem:[%s21586_s3 + $0x3c0] sm:$0xff] }
 0x297   : > { %14416 = vmatprep.subr.mxu1 %v11627_v9  ;;  %14501 = vmatpush3.msra.mxu0 %v11644_v35  ;;  %v5661_v35 = vld [vmem:[#allocation3 + $0x9b] sm:$0xff] }
 0x298   : > { %14417 = vmatpush3.msra.mxu1 %v11627_v9  ;;  %14502 = vmatprep.subr.mxu0 %v11643_v52  ;;  %v18250_v9 = vld [vmem:[#allocation3 + $0x94] sm:$0xff] }
 0x299   : > { %14292 = vmatmul.mubr.f32.gmra.mxu1 %v5339_v60  ;;  %14378 = vmatmul.mubr.f32.gmra.mxu0 %v5341_v56  ;;  %v5660_v60 = vld [vmem:[#allocation3 + $0x93] sm:$0xff] }
 0x29a   : > { %14294 = vmatprep.mubr.f32.mxu1 %v5340_v18  ;;  %14380 = vmatprep.mubr.f32.mxu0 %v5342_v25  ;;  %v18253_v18 = vld [vmem:[#allocation3 + $0x9c] sm:$0xff] }
 0x29b   : > { %14558 = vmatprep.subr.mxu1 %v11674_v4  ;;  %14503 = vmatpush3.msra.mxu0 %v11643_v52  ;;  %v11682_v52 = vld [vmem:[%s21586_s3 + $0x3b8] sm:$0xff] }
 0x29c   : > { %14644 = vmatprep.subr.mxu0 %v11690_v41 }
 0x29d   : > { %14295 = vmatmul.mubr.f32.gmra.mxu1 %v5341_v56  ;;  %14381 = vmatmul.mubr.f32.gmra.mxu0 %v5343_v61  ;;  %v11665_v56 = vld [vmem:[%s21586_s3 + $0x330] sm:$0xff] }
 0x29e   : > { %14297 = vmatprep.mubr.f32.mxu1 %v5342_v25  ;;  %14383 = vmatprep.mubr.f32.mxu0 %v5344_v45  ;;  %v18262_v25 = vld [vmem:[#allocation3 + $0xa4] sm:$0xff] }
 0x29f   : > { %v5663_v61 = vld [vmem:[#allocation3 + $0xab] sm:$0xff]  ;;  %v11664_v45 = vld [vmem:[%s21586_s3 + $0x328] sm:$0xff] }
 0x2a1   : > { %14298 = vmatmul.mubr.f32.gmra.mxu1 %v5011_v54  ;;  %14384 = vmatmul.mubr.f32.gmra.mxu0 %v5345_v15  ;;  %v11681_v54 = vld [vmem:[%s21586_s3 + $0x3b0] sm:$0xff]  ;;  %v5664_v15 = vld [vmem:[#allocation3 + $0xb3] sm:$0xff] }
 0x2a2   : > { %14418 = vmatprep.mubr.f32.mxu1 %v17831_v36  ;;  %14504 = vmatprep.mubr.f32.mxu0 %v17833_v62  ;;  %v11672_v36 = vld [vmem:[%s21586_s3 + $0x368] sm:$0xff]  ;;  %v11689_v62 = vld [vmem:[%s21586_s3 + $0x3f0] sm:$0xff] }
 0x2a5   : > { %14419 = vmatmul.mubr.f32.vlgmr.msra.gmra.mxu1 %v17815_v37  ;;  %14505 = vmatmul.mubr.f32.vlgmr.msra.gmra.mxu0 %v17823_v26  ;;  %v5648_v37 = vld [vmem:[#allocation3 + $0x33] sm:$0xff] }
 0x2a6   : > { %14559 = vmatpush3.msra.mxu1 %v11674_v4  ;;  %14421 = vmatprep.mubr.f32.mxu1 %v18036_v6  ;;  %v11671_v26 = vld [vmem:[%s21586_s3 + $0x360] sm:$0xff]  ;;  %v11688_v6 = vld [vmem:[%s21586_s3 + $0x3e8] sm:$0xff] }
 0x2a7   : > { %14507 = vmatprep.mubr.f32.mxu0 %v18038_v5  ;;  %14560 = vmatprep.subr.mxu1 %v11673_v22  ;;  %v5662_v4 = vld [vmem:[#allocation3 + $0xa3] sm:$0xff] }
 0x2a8   : > { %14561 = vmatpush3.msra.mxu1 %v11673_v22  ;;  %14645 = vmatpush3.msra.mxu0 %v11690_v41  ;;  %v18265_v41 = vld [vmem:[#allocation3 + $0xac] sm:$0xff]  ;;  %v18274_v22 = vld [vmem:[#allocation3 + $0xb4] sm:$0xff] }
 0x2a9   : > { %14422 = vmatmul.mubr.f32.gmra.mxu1 %v18040_v40  ;;  %14508 = vmatmul.mubr.f32.gmra.mxu0 %v18042_v38  ;;  %v11670_v40 = vld [vmem:[%s21586_s3 + $0x358] sm:$0xff] }
 0x2aa   : > { %14424 = vmatprep.mubr.f32.mxu1 %v5648_v37  ;;  %14510 = vmatprep.mubr.f32.mxu0 %v18046_v11  ;;  %v5665_v37 = vld [vmem:[#allocation3 + $0xbb] sm:$0xff] }
 0x2ab   : > { %14562 = vmatprep.subr.mxu1 %v11672_v36  ;;  %14646 = vmatprep.subr.mxu0 %v11689_v62 }
 0x2ac   : > { %14563 = vmatpush3.msra.mxu1 %v11672_v36  ;;  %14647 = vmatpush3.msra.mxu0 %v11689_v62  ;;  %v18276_v36 = vpop.f32.mrf.mxu1  ;;  %v18278_v62 = vpop.f32.mrf.mxu0 }
 0x2ad   : > { %14425 = vmatmul.mubr.f32.gmra.mxu1 %v18048_v50  ;;  %14511 = vmatmul.mubr.f32.gmra.mxu0 %v18050_v1  ;;  %v11669_v50 = vld [vmem:[%s21586_s3 + $0x350] sm:$0xff]  ;;  %21750 = vst [vmem:[#allocation43_spill] sm:$0xff] %v18276_v36  ;;  %21751 = vst [vmem:[#allocation6_spill] sm:$0xff] %v18278_v62  ;;  %v18365_v62 = vld [vmem:[#allocation3 + $0x11c] sm:$0xff] }
 0x2ae   : > { %14427 = vmatprep.mubr.f32.mxu1 %v18052_v51  ;;  %14513 = vmatprep.mubr.f32.mxu0 %v18054_v10  ;;  %v11686_v51 = vld [vmem:[%s21586_s3 + $0x3d8] sm:$0xff] }
 0x2af   : > { %14564 = vmatprep.subr.mxu1 %v11671_v26  ;;  %14648 = vmatprep.subr.mxu0 %v11688_v6 }
 0x2b0   : > { %14565 = vmatpush3.msra.mxu1 %v11671_v26  ;;  %14649 = vmatpush3.msra.mxu0 %v11688_v6  ;;  %v18281_v26 = vld [vmem:[#allocation3 + $0xbc] sm:$0xff] }
 0x2b1   : > { %14428 = vmatmul.mubr.f32.gmra.mxu1 %v18062_v32  ;;  %14514 = vmatmul.mubr.f32.gmra.mxu0 %v18064_v20  ;;  %v18213_v32 = vld [vmem:[#allocation3 + $0x64] sm:$0xff]  ;;  %v11663_v6 = vld [vmem:[%s21586_s3 + $0x320] sm:$0xff] }
 0x2b2   : > { %14430 = vmatprep.mubr.f32.mxu1 %v18066_v23  ;;  %14516 = vmatprep.mubr.f32.mxu0 %v18068_v59  ;;  %v5655_v23 = vld [vmem:[#allocation3 + $0x6b] sm:$0xff] }
 0x2b3   : > { %14566 = vmatprep.subr.mxu1 %v11670_v40  ;;  %14650 = vmatprep.subr.mxu0 %v11687_v46 }
 0x2b4   : > { %14567 = vmatpush3.msra.mxu1 %v11670_v40  ;;  %14651 = vmatpush3.msra.mxu0 %v11687_v46  ;;  %v11680_v40 = vld [vmem:[%s21586_s3 + $0x3a8] sm:$0xff] }
 0x2b5   : > { %14431 = vmatmul.mubr.f32.gmra.mxu1 %v18070_v42  ;;  %14517 = vmatmul.mubr.f32.gmra.mxu0 %v18072_v58  ;;  %v11685_v42 = vld [vmem:[%s21586_s3 + $0x3d0] sm:$0xff] }
 0x2b6   : > { %14433 = vmatprep.mubr.f32.mxu1 %v18074_v49  ;;  %14519 = vmatprep.mubr.f32.mxu0 %v18213_v32  ;;  %v5656_v49 = vld [vmem:[#allocation3 + $0x73] sm:$0xff]  ;;  %v5666_v46 = vld [vmem:[#allocation3 + $0xc3] sm:$0xff] }
 0x2b7   : > { %14568 = vmatprep.subr.mxu1 %v11669_v50  ;;  %14652 = vmatprep.subr.mxu0 %v11686_v51 }
 0x2b8   : > { %14569 = vmatpush3.msra.mxu1 %v11669_v50  ;;  %14653 = vmatpush3.msra.mxu0 %v11686_v51  ;;  %v18290_v50 = vld [vmem:[#allocation3 + $0xc4] sm:$0xff] }
 0x2b9   : > { %14434 = vmatmul.mubr.f32.gmra.mxu1 %v5655_v23  ;;  %14520 = vmatmul.mubr.f32.gmra.mxu0 %v18217_v2 }
 0x2ba   : > { %14436 = vmatprep.mubr.f32.mxu1 %v5656_v49  ;;  %14522 = vmatprep.mubr.f32.mxu0 %v18226_v33 }
 0x2bb   : > { %14570 = vmatprep.subr.mxu1 %v11668_v21  ;;  %14654 = vmatprep.subr.mxu0 %v11685_v42 }
 0x2bc   : > { %14571 = vmatpush3.msra.mxu1 %v11668_v21  ;;  %14655 = vmatpush3.msra.mxu0 %v11685_v42  ;;  %v5667_v42 = vld [vmem:[#allocation3 + $0xcb] sm:$0xff] }
 0x2bd   : > { %14437 = vmatmul.mubr.f32.gmra.mxu1 %v5657_v57  ;;  %14523 = vmatmul.mubr.f32.gmra.mxu0 %v18229_v29 }
 0x2be   : > { %14439 = vmatprep.mubr.f32.mxu1 %v5658_v14  ;;  %14525 = vmatprep.mubr.f32.mxu0 %v18238_v7  ;;  %v11662_v14 = vld [vmem:[%s21586_s3 + $0x318] sm:$0xff] }
 0x2bf   : > { %14572 = vmatprep.subr.mxu1 %v11667_v47  ;;  %14656 = vmatprep.subr.mxu0 %v11684_v24 }
 0x2c0   : > { %14573 = vmatpush3.msra.mxu1 %v11667_v47  ;;  %14657 = vmatpush3.msra.mxu0 %v11684_v24  ;;  %v18295_v47 = vld [vmem:[#allocation3 + $0xcc] sm:$0xff] }
 0x2c1   : > { %14440 = vmatmul.mubr.f32.gmra.mxu1 %v5659_v44  ;;  %14526 = vmatmul.mubr.f32.gmra.mxu0 %v18241_v12  ;;  %v11679_v44 = vld [vmem:[%s21586_s3 + $0x3a0] sm:$0xff] }
 0x2c2   : > { %14442 = vmatprep.mubr.f32.mxu1 %v5660_v60  ;;  %14528 = vmatprep.mubr.f32.mxu0 %v18250_v9  ;;  %v5669_v60 = vld [vmem:[#allocation3 + $0xdb] sm:$0xff] }
 0x2c3   : > { %14574 = vmatprep.subr.mxu1 %v11666_v53  ;;  %14658 = vmatprep.subr.mxu0 %v11683_v43 }
 0x2c4   : > { %14575 = vmatpush3.msra.mxu1 %v11666_v53  ;;  %14659 = vmatpush3.msra.mxu0 %v11683_v43  ;;  %v5668_v53 = vld [vmem:[#allocation3 + $0xd3] sm:$0xff] }
 0x2c5   : > { %14443 = vmatmul.mubr.f32.gmra.mxu1 %v5661_v35  ;;  %14529 = vmatmul.mubr.f32.gmra.mxu0 %v18253_v18  ;;  %v18306_v43 = vld [vmem:[#allocation3 + $0xd4] sm:$0xff]  ;;  %v18309_v35 = vld [vmem:[#allocation3 + $0xdc] sm:$0xff] }
 0x2c6   : > { %14445 = vmatprep.mubr.f32.mxu1 %v5662_v4  ;;  %14531 = vmatprep.mubr.f32.mxu0 %v18262_v25  ;;  %v5670_v4 = vld [vmem:[#allocation3 + $0xe3] sm:$0xff] }
 0x2c7   : > { %14576 = vmatprep.subr.mxu1 %v11665_v56  ;;  %14660 = vmatprep.subr.mxu0 %v11682_v52 }
 0x2c8   : > { %14577 = vmatpush3.msra.mxu1 %v11665_v56  ;;  %14661 = vmatpush3.msra.mxu0 %v11682_v52  ;;  %v11661_v56 = vld [vmem:[%s21586_s3 + $0x310] sm:$0xff]  ;;  %v11678_v52 = vld [vmem:[%s21586_s3 + $0x398] sm:$0xff] }
 0x2c9   : > { %14446 = vmatmul.mubr.f32.gmra.mxu1 %v5663_v61  ;;  %14532 = vmatmul.mubr.f32.gmra.mxu0 %v18265_v41  ;;  %v18318_v61 = vld [vmem:[#allocation3 + $0xe4] sm:$0xff] }
 0x2ca   : > { %14448 = vmatprep.mubr.f32.mxu1 %v5664_v15  ;;  %14534 = vmatprep.mubr.f32.mxu0 %v18274_v22  ;;  %v14079_v51 = vpop.f32.mrf.mxu1  ;;  %v11677_v15 = vld [vmem:[%s21586_s3 + $0x390] sm:$0xff] }
 0x2cb   : > { %14578 = vmatprep.subr.mxu1 %v11664_v45  ;;  %14662 = vmatprep.subr.mxu0 %v11681_v54  ;;  %v14165_v23 = vpop.f32.mrf.mxu0 }
 0x2cc   : > { %14579 = vmatpush3.msra.mxu1 %v11664_v45  ;;  %14663 = vmatpush3.msra.mxu0 %v11681_v54  ;;  %v18293_v21 = vadd.f32 %v14165_v23, %v14079_v51  ;;  %v4562_v49 = vpop.f32.mrf.mxu1  ;;  %v18321_v45 = vld [vmem:[#allocation3 + $0xec] sm:$0xff]  ;;  %v11660_v54 = vld [vmem:[%s21586_s3 + $0x308] sm:$0xff] }
 0x2cd   : > { %14449 = vmatmul.mubr.f32.gmra.mxu1 %v5665_v37  ;;  %14535 = vmatmul.mubr.f32.gmra.mxu0 %v18281_v26  ;;  %v4807_v57 = vpop.f32.mrf.mxu0  ;;  %v15946_v37 = vld [vmem:[#allocation3 + $0xeb] sm:$0xff] }
 0x2ce   : > { %14451 = vmatprep.mubr.f32.mxu1 %v5666_v46  ;;  %14537 = vmatprep.mubr.f32.mxu0 %v18290_v50  ;;  %v18297_v24 = vadd.f32 %v4807_v57, %v4562_v49  ;;  %v5673_v46 = vld [vmem:[#allocation3 + $0xfb] sm:$0xff] }
 0x2cf   : > { %14580 = vmatprep.subr.mxu1 %v11663_v6  ;;  %14664 = vmatprep.subr.mxu0 %v11680_v40  ;;  %v11659_v49 = vld [vmem:[%s21586_s3 + $0x300] sm:$0xff]  ;;  %v11676_v57 = vld [vmem:[%s21586_s3 + $0x388] sm:$0xff] }
 0x2d0   : > { %14581 = vmatpush3.msra.mxu1 %v11663_v6  ;;  %14665 = vmatpush3.msra.mxu0 %v11680_v40  ;;  %v18330_v6 = vld [vmem:[#allocation3 + $0xf4] sm:$0xff] }
 0x2d1   : > { %14452 = vmatmul.mubr.f32.gmra.mxu1 %v5667_v42  ;;  %14538 = vmatmul.mubr.f32.gmra.mxu0 %v18295_v47  ;;  %v15947_v40 = vld [vmem:[#allocation3 + $0xf3] sm:$0xff]  ;;  %v18333_v42 = vld [vmem:[#allocation3 + $0xfc] sm:$0xff] }
 0x2d2   : > { %14454 = vmatprep.mubr.f32.mxu1 %v5668_v53  ;;  %14540 = vmatprep.mubr.f32.mxu0 %v18306_v43  ;;  %v18344_v53 = vld [vmem:[#allocation3 + $0x104] sm:$0xff] }
 0x2d3   : > { %14582 = vmatprep.subr.mxu1 %v11662_v14  ;;  %14666 = vmatprep.subr.mxu0 %v11679_v44 }
 0x2d4   : > { %14583 = vmatpush3.msra.mxu1 %v11662_v14  ;;  %14667 = vmatpush3.msra.mxu0 %v11679_v44  ;;  %v5674_v44 = vld [vmem:[#allocation3 + $0x103] sm:$0xff] }
 0x2d5   : > { %14455 = vmatmul.mubr.f32.gmra.mxu1 %v5669_v60  ;;  %14541 = vmatmul.mubr.f32.gmra.mxu0 %v18309_v35 }
 0x2d6   : > { %14457 = vmatprep.mubr.f32.mxu1 %v5670_v4  ;;  %14543 = vmatprep.mubr.f32.mxu0 %v18318_v61  ;;  %v5675_v4 = vld [vmem:[#allocation3 + $0x10b] sm:$0xff] }
 0x2d7   : > { %14584 = vmatprep.subr.mxu1 %v11661_v56  ;;  %14668 = vmatprep.subr.mxu0 %v11678_v52 }
 0x2d8   : > { %14585 = vmatpush3.msra.mxu1 %v11661_v56  ;;  %14669 = vmatpush3.msra.mxu0 %v11678_v52 }
 0x2d9   : > { %14458 = vmatmul.mubr.f32.gmra.mxu1 %v15946_v37  ;;  %14544 = vmatmul.mubr.f32.gmra.mxu0 %v18321_v45  ;;  %v11706_v37 = vld [vmem:[%s21586_s3 + $0x478] sm:$0xff] }
 0x2da   : > { %14460 = vmatprep.mubr.f32.mxu1 %v15947_v40  ;;  %14546 = vmatprep.mubr.f32.mxu0 %v18330_v6  ;;  %v14082_v51 = vpop.f32.mrf.mxu1 }
 0x2db   : > { %14586 = vmatprep.subr.mxu1 %v11660_v54  ;;  %14670 = vmatprep.subr.mxu0 %v11677_v15  ;;  %v14168_v23 = vpop.f32.mrf.mxu0 }
 0x2dc   : > { %14587 = vmatpush3.msra.mxu1 %v11660_v54  ;;  %14671 = vmatpush3.msra.mxu0 %v11677_v15  ;;  %v18341_v14 = vadd.f32 %v14168_v23, %v14082_v51  ;;  %v4572_v60 = vpop.f32.mrf.mxu1  ;;  %v18349_v54 = vld [vmem:[#allocation3 + $0x10c] sm:$0xff]  ;;  %v11675_v15 = vld [vmem:[%s21586_s3 + $0x380] sm:$0xff] }
 0x2dd   : > { %14461 = vmatmul.mubr.f32.gmra.mxu1 %v5673_v46  ;;  %14547 = vmatmul.mubr.f32.gmra.mxu0 %v18333_v42  ;;  %v4817_v56 = vpop.f32.mrf.mxu0  ;;  %v5676_v51 = vld [vmem:[#allocation3 + $0x113] sm:$0xff] }
 0x2de   : > { %14463 = vmatprep.mubr.f32.mxu1 %v5674_v44  ;;  %14549 = vmatprep.mubr.f32.mxu0 %v18344_v53  ;;  %v18347_v52 = vadd.f32 %v4817_v56, %v4572_v60  ;;  %v14085_v40 = vpop.f32.mrf.mxu1  ;;  %v18358_v23 = vld [vmem:[#allocation3 + $0x114] sm:$0xff] }
 0x2df   : > { %14588 = vmatprep.subr.mxu1 %v11659_v49  ;;  %14672 = vmatprep.subr.mxu0 %v11676_v57  ;;  %v14171_v46 = vpop.f32.mrf.mxu0  ;;  %v5677_v56 = vld [vmem:[#allocation3 + $0x11b] sm:$0xff] }
 0x2e0   : > { %14589 = vmatpush3.msra.mxu1 %v11659_v49  ;;  %14673 = vmatpush3.msra.mxu0 %v11676_v57  ;;  %v18360_v44 = vadd.f32 %v14171_v46, %v14085_v40  ;;  %v4582_v49 = vpop.f32.mrf.mxu1  ;;  %v5678_v40 = vld [vmem:[#allocation3 + $0x123] sm:$0xff] }
 0x2e1   : > { %14464 = vmatmul.mubr.f32.gmra.mxu1 %v5675_v4  ;;  %14550 = vmatmul.mubr.f32.gmra.mxu0 %v18349_v54  ;;  %v4827_v57 = vpop.f32.mrf.mxu0  ;;  %v18368_v46 = vld [vmem:[#allocation3 + $0x124] sm:$0xff] }
 0x2e2   : > { %14466 = vmatprep.mubr.f32.mxu1 %v5676_v51  ;;  %14552 = vmatprep.mubr.f32.mxu0 %v18358_v23  ;;  %v18363_v60 = vadd.f32 %v4827_v57, %v4582_v49  ;;  %v14088_v4 = vpop.f32.mrf.mxu1 }
 0x2e3   : > { %14674 = vmatprep.subr.mxu0 %v11675_v15  ;;  %14730 = vmatprep.subr.mxu1 %v11706_v37  ;;  %v14174_v36 = vpop.f32.mrf.mxu0 }
 0x2e4   : > { %14675 = vmatpush3.msra.mxu0 %v11675_v15  ;;  %v18370_v51 = vadd.f32 %v14174_v36, %v14088_v4  ;;  %v4592_v0 = vpop.f32.mrf.mxu1 }
 0x2e5   : > { %14467 = vmatmul.mubr.f32.gmra.mxu1 %v5677_v56  ;;  %14553 = vmatmul.mubr.f32.gmra.mxu0 %v18365_v62  ;;  %v4837_v49 = vpop.f32.mrf.mxu0 }
 0x2e6   : > { %14469 = vmatprep.mubr.f32.mxu1 %v5678_v40  ;;  %14555 = vmatprep.mubr.f32.mxu0 %v18368_v46  ;;  %v18373_v57 = vadd.f32 %v4837_v49, %v4592_v0  ;;  %v14091_v15 = vpop.f32.mrf.mxu1  ;;  %v11705_v0 = vld [vmem:[%s21586_s3 + $0x470] sm:$0xff] }
 0x2e7   : > { %v14177_v31 = vpop.f32.mrf.mxu0 }
 0x2e8   : > { %v18375_v56 = vadd.f32 %v14177_v31, %v14091_v15  ;;  %v4602_v36 = vpop.f32.mrf.mxu1 }
 0x2e9   : > { %14470 = vmatmul.mubr.f32.gmra.mxu1 %v5679_v39  ;;  %14556 = vmatmul.mubr.f32.gmra.mxu0 %v6013_v17  ;;  %v4847_v4 = vpop.f32.mrf.mxu0  ;;  %v6649_v39 = vld [vmem:[#allocation3 + $0x3d] sm:$0xff] }
 0x2ea   : > { %14590 = vmatprep.mubr.f32.mxu1 %v18038_v5  ;;  %14676 = vmatprep.mubr.f32.mxu0 %v18044_v28  ;;  %v18379_v40 = vadd.f32 %v4847_v4, %v4602_v36  ;;  %v11703_v36 = vld [vmem:[%s21586_s3 + $0x460] sm:$0xff] }
 0x2eb   : > { %v14094_v49 = vpop.f32.mrf.mxu1  ;;  %v14180_v48 = vpop.f32.mrf.mxu0 }
 0x2ec   : > { %v18386_v31 = vadd.f32 %v14180_v48, %v14094_v49 }
 0x2ed   : > { %14591 = vmatmul.mubr.f32.vlgmr.msra.gmra.mxu1 %v18042_v38  ;;  %14677 = vmatmul.mubr.f32.vlgmr.msra.gmra.mxu0 %v18056_v34  ;;  %v4612_v5 = vpop.f32.mrf.mxu1  ;;  %v4857_v28 = vpop.f32.mrf.mxu0  ;;  %v11704_v38 = vld [vmem:[%s21586_s3 + $0x468] sm:$0xff] }
 0x2ee   : > { %14731 = vmatpush3.msra.mxu1 %v11706_v37  ;;  %14593 = vmatprep.mubr.f32.mxu1 %v18046_v11  ;;  %v18390_v17 = vadd.f32 %v4857_v28, %v4612_v5  ;;  %v11702_v5 = vld [vmem:[%s21586_s3 + $0x458] sm:$0xff] }
 0x2ef   : > { %14679 = vmatprep.mubr.f32.mxu0 %v18058_v19  ;;  %14732 = vmatprep.subr.mxu1 %v11705_v0  ;;  %v14097_v15 = vpop.f32.mrf.mxu1 }
 0x2f0   : > { %14733 = vmatpush3.msra.mxu1 %v11705_v0  ;;  %v14183_v34 = vpop.f32.mrf.mxu0 }
 0x2f1   : > { %14594 = vmatmul.mubr.f32.gmra.mxu1 %v18050_v1  ;;  %14680 = vmatmul.mubr.f32.gmra.mxu0 %v6649_v39  ;;  %v18396_v48 = vadd.f32 %v14183_v34, %v14097_v15  ;;  %v4622_v11 = vpop.f32.mrf.mxu1  ;;  %v6655_v15 = vld [vmem:[#allocation3 + $0x6d] sm:$0xff] }
 0x2f2   : > { %14596 = vmatprep.mubr.f32.mxu1 %v18054_v10  ;;  %14682 = vmatprep.mubr.f32.mxu0 %v18060_v16  ;;  %v4867_v19 = vpop.f32.mrf.mxu0  ;;  %v11701_v34 = vld [vmem:[%s21586_s3 + $0x450] sm:$0xff] }
 0x2f3   : > { %14734 = vmatprep.subr.mxu1 %v11704_v38  ;;  %v18400_v37 = vadd.f32 %v4867_v19, %v4622_v11  ;;  %v14100_v4 = vpop.f32.mrf.mxu1 }
 0x2f4   : > { %14735 = vmatpush3.msra.mxu1 %v11704_v38  ;;  %v14186_v0 = vpop.f32.mrf.mxu0 }
 0x2f5   : > { %14597 = vmatmul.mubr.f32.gmra.mxu1 %v18064_v20  ;;  %14683 = vmatmul.mubr.f32.gmra.mxu0 %v18076_v30  ;;  %v18407_v1 = vadd.f32 %v14186_v0, %v14100_v4  ;;  %v4632_v10 = vpop.f32.mrf.mxu1  ;;  %v6654_v30 = vld [vmem:[#allocation3 + $0x65] sm:$0xff]  ;;  %v6657_v0 = vld [vmem:[#allocation3 + $0x7d] sm:$0xff] }
 0x2f6   : > { %14599 = vmatprep.mubr.f32.mxu1 %v18068_v59  ;;  %14685 = vmatprep.mubr.f32.mxu0 %v18078_v3  ;;  %v4877_v16 = vpop.f32.mrf.mxu0 }
 0x2f7   : > { %14736 = vmatprep.subr.mxu1 %v11703_v36  ;;  %v18411_v49 = vadd.f32 %v4877_v16, %v4632_v10  ;;  %v14103_v28 = vpop.f32.mrf.mxu1  ;;  %v11700_v10 = vld [vmem:[%s21586_s3 + $0x448] sm:$0xff] }
 0x2f8   : > { %14737 = vmatpush3.msra.mxu1 %v11703_v36  ;;  %v14189_v20 = vpop.f32.mrf.mxu0 }
 0x2f9   : > { %14600 = vmatmul.mubr.f32.gmra.mxu1 %v18072_v58  ;;  %14686 = vmatmul.mubr.f32.gmra.mxu0 %v18080_v13  ;;  %v18418_v59 = vadd.f32 %v14189_v20, %v14103_v28  ;;  %v4642_v3 = vpop.f32.mrf.mxu1  ;;  %v6656_v13 = vld [vmem:[#allocation3 + $0x75] sm:$0xff] }
 0x2fa   : > { %14602 = vmatprep.mubr.f32.mxu1 %v18213_v32  ;;  %14688 = vmatprep.mubr.f32.mxu0 %v6654_v30  ;;  %v4887_v39 = vpop.f32.mrf.mxu0 }
 0x2fb   : > { %14738 = vmatprep.subr.mxu1 %v11702_v5  ;;  %v18421_v38 = vadd.f32 %v4887_v39, %v4642_v3  ;;  %v14106_v58 = vpop.f32.mrf.mxu1  ;;  %v6659_v3 = vld [vmem:[#allocation3 + $0x8d] sm:$0xff]  ;;  %v11699_v39 = vld [vmem:[%s21586_s3 + $0x440] sm:$0xff] }
 0x2fc   : > { %14739 = vmatpush3.msra.mxu1 %v11702_v5  ;;  %v14192_v11 = vpop.f32.mrf.mxu0  ;;  %v6658_v5 = vld [vmem:[#allocation3 + $0x85] sm:$0xff] }
 0x2fd   : > { %14603 = vmatmul.mubr.f32.gmra.mxu1 %v18217_v2  ;;  %14689 = vmatmul.mubr.f32.gmra.mxu0 %v6655_v15  ;;  %v18427_v19 = vadd.f32 %v14192_v11, %v14106_v58  ;;  %v4652_v32 = vpop.f32.mrf.mxu1 }
 0x2fe   : > { %14605 = vmatprep.mubr.f32.mxu1 %v18226_v33  ;;  %14691 = vmatprep.mubr.f32.mxu0 %v6656_v13  ;;  %v4897_v36 = vpop.f32.mrf.mxu0 }
 0x2ff   : > { %14740 = vmatprep.subr.mxu1 %v11701_v34  ;;  %v18430_v4 = vadd.f32 %v4897_v36, %v4652_v32  ;;  %v14109_v16 = vpop.f32.mrf.mxu1  ;;  %v6661_v32 = vld [vmem:[#allocation3 + $0x9d] sm:$0xff]  ;;  %v11698_v36 = vld [vmem:[%s21586_s3 + $0x438] sm:$0xff] }
 0x300   : > { %14741 = vmatpush3.msra.mxu1 %v11701_v34  ;;  %v14195_v2 = vpop.f32.mrf.mxu0  ;;  %v6660_v34 = vld [vmem:[#allocation3 + $0x95] sm:$0xff] }
 0x301   : > { %14606 = vmatmul.mubr.f32.gmra.mxu1 %v18229_v29  ;;  %14692 = vmatmul.mubr.f32.gmra.mxu0 %v6657_v0  ;;  %v18436_v28 = vadd.f32 %v14195_v2, %v14109_v16  ;;  %v4662_v33 = vpop.f32.mrf.mxu1 }
 0x302   : > { %14608 = vmatprep.mubr.f32.mxu1 %v18238_v7  ;;  %14694 = vmatprep.mubr.f32.mxu0 %v6658_v5  ;;  %v4907_v20 = vpop.f32.mrf.mxu0 }
 0x303   : > { %14742 = vmatprep.subr.mxu1 %v11700_v10  ;;  %v18439_v30 = vadd.f32 %v4907_v20, %v4662_v33  ;;  %v14112_v15 = vpop.f32.mrf.mxu1  ;;  %v6663_v33 = vld [vmem:[#allocation3 + $0xad] sm:$0xff] }
 0x304   : > { %14743 = vmatpush3.msra.mxu1 %v11700_v10  ;;  %v14198_v29 = vpop.f32.mrf.mxu0  ;;  %v6662_v10 = vld [vmem:[#allocation3 + $0xa5] sm:$0xff] }
 0x305   : > { %14609 = vmatmul.mubr.f32.gmra.mxu1 %v18241_v12  ;;  %14695 = vmatmul.mubr.f32.gmra.mxu0 %v6659_v3  ;;  %v18445_v58 = vadd.f32 %v14198_v29, %v14112_v15  ;;  %v4672_v7 = vpop.f32.mrf.mxu1  ;;  %v11697_v20 = vld [vmem:[%s21586_s3 + $0x430] sm:$0xff] }
 0x306   : > { %14611 = vmatprep.mubr.f32.mxu1 %v18250_v9  ;;  %14697 = vmatprep.mubr.f32.mxu0 %v6660_v34  ;;  %v4917_v11 = vpop.f32.mrf.mxu0 }
 0x307   : > { %14744 = vmatprep.subr.mxu1 %v11699_v39  ;;  %v18448_v13 = vadd.f32 %v4917_v11, %v4672_v7  ;;  %v14115_v0 = vpop.f32.mrf.mxu1  ;;  %v6665_v7 = vld [vmem:[#allocation3 + $0xbd] sm:$0xff] }
 0x308   : > { %14745 = vmatpush3.msra.mxu1 %v11699_v39  ;;  %v14201_v12 = vpop.f32.mrf.mxu0  ;;  %v6664_v39 = vld [vmem:[#allocation3 + $0xb5] sm:$0xff]  ;;  %v11696_v11 = vld [vmem:[%s21586_s3 + $0x428] sm:$0xff] }
 0x309   : > { %14612 = vmatmul.mubr.f32.gmra.mxu1 %v18253_v18  ;;  %14698 = vmatmul.mubr.f32.gmra.mxu0 %v6661_v32  ;;  %v18454_v16 = vadd.f32 %v14201_v12, %v14115_v0  ;;  %v4682_v9 = vpop.f32.mrf.mxu1 }
 0x30a   : > { %14614 = vmatprep.mubr.f32.mxu1 %v18262_v25  ;;  %14700 = vmatprep.mubr.f32.mxu0 %v6662_v10  ;;  %v4927_v2 = vpop.f32.mrf.mxu0 }
 0x30b   : > { %14746 = vmatprep.subr.mxu1 %v11698_v36  ;;  %v18457_v5 = vadd.f32 %v4927_v2, %v4682_v9  ;;  %v14118_v3 = vpop.f32.mrf.mxu1  ;;  %v6667_v9 = vld [vmem:[#allocation3 + $0xcd] sm:$0xff]  ;;  %v11695_v2 = vld [vmem:[%s21586_s3 + $0x420] sm:$0xff] }
 0x30c   : > { %14747 = vmatpush3.msra.mxu1 %v11698_v36  ;;  %v14204_v18 = vpop.f32.mrf.mxu0  ;;  %v6666_v36 = vld [vmem:[#allocation3 + $0xc5] sm:$0xff] }
 0x30d   : > { %14615 = vmatmul.mubr.f32.gmra.mxu1 %v18265_v41  ;;  %14701 = vmatmul.mubr.f32.gmra.mxu0 %v6663_v33  ;;  %v18463_v15 = vadd.f32 %v14204_v18, %v14118_v3  ;;  %v4692_v25 = vpop.f32.mrf.mxu1 }
 0x30e   : > { %14617 = vmatprep.mubr.f32.mxu1 %v18274_v22  ;;  %14703 = vmatprep.mubr.f32.mxu0 %v6664_v39  ;;  %v4937_v29 = vpop.f32.mrf.mxu0  ;;  %v6669_v39 = vld [vmem:[#allocation3 + $0xdd] sm:$0xff] }
 0x30f   : > { %14748 = vmatprep.subr.mxu1 %v11697_v20  ;;  %v18466_v34 = vadd.f32 %v4937_v29, %v4692_v25  ;;  %v11694_v25 = vld [vmem:[%s21586_s3 + $0x418] sm:$0xff] }
 0x310   : > { %14749 = vmatpush3.msra.mxu1 %v11697_v20  ;;  %v14121_v32 = vpop.f32.mrf.mxu1  ;;  %v6668_v20 = vld [vmem:[#allocation3 + $0xd5] sm:$0xff] }
 0x311   : > { %v14207_v41 = vpop.f32.mrf.mxu0  ;;  %14618 = vmatmul.mubr.f32.gmra.mxu1 %v18281_v26  ;;  %14704 = vmatmul.mubr.f32.gmra.mxu0 %v6665_v7  ;;  %v6670_v7 = vld [vmem:[#allocation3 + $0xe5] sm:$0xff] }
 0x312   : > { %v18472_v0 = vadd.f32 %v14207_v41, %v14121_v32  ;;  %14620 = vmatprep.mubr.f32.mxu1 %v18290_v50  ;;  %14706 = vmatprep.mubr.f32.mxu0 %v6666_v36  ;;  %v4702_v22 = vpop.f32.mrf.mxu1  ;;  %v6671_v41 = vld [vmem:[#allocation3 + $0xed] sm:$0xff] }
 0x313   : > { %v4947_v12 = vpop.f32.mrf.mxu0  ;;  %14750 = vmatprep.subr.mxu1 %v11696_v11  ;;  %v11693_v36 = vld [vmem:[%s21586_s3 + $0x410] sm:$0xff] }
 0x314   : > { %v18475_v10 = vadd.f32 %v4947_v12, %v4702_v22  ;;  %14751 = vmatpush3.msra.mxu1 %v11696_v11  ;;  %v14124_v33 = vpop.f32.mrf.mxu1  ;;  %v6672_v12 = vld [vmem:[#allocation3 + $0xf5] sm:$0xff] }
 0x315   : > { %v14210_v26 = vpop.f32.mrf.mxu0  ;;  %14621 = vmatmul.mubr.f32.gmra.mxu1 %v18295_v47  ;;  %14707 = vmatmul.mubr.f32.gmra.mxu0 %v6667_v9 }
 0x316   : > { %v18481_v3 = vadd.f32 %v14210_v26, %v14124_v33  ;;  %14623 = vmatprep.mubr.f32.mxu1 %v18306_v43  ;;  %14709 = vmatprep.mubr.f32.mxu0 %v6668_v20  ;;  %v18484_v50 = vpop.f32.mrf.mxu1  ;;  %v6673_v26 = vld [vmem:[#allocation3 + $0xfd] sm:$0xff] }
 0x317   : > { %v18486_v18 = vpop.f32.mrf.mxu0  ;;  %14752 = vmatprep.subr.mxu1 %v11695_v2 }
 0x318   : > { %14753 = vmatpush3.msra.mxu1 %v11695_v2  ;;  %v14127_v29 = vpop.f32.mrf.mxu1 }
 0x319   : > { %v14213_v47 = vpop.f32.mrf.mxu0  ;;  %14624 = vmatmul.mubr.f32.gmra.mxu1 %v18309_v35  ;;  %14710 = vmatmul.mubr.f32.gmra.mxu0 %v6669_v39 }
 0x31a   : > { %v18492_v11 = vadd.f32 %v14213_v47, %v14127_v29  ;;  %14626 = vmatprep.mubr.f32.mxu1 %v18318_v61  ;;  %14712 = vmatprep.mubr.f32.mxu0 %v6670_v7  ;;  %v18495_v43 = vpop.f32.mrf.mxu1 }
 0x31b   : > { %v18497_v32 = vpop.f32.mrf.mxu0  ;;  %14754 = vmatprep.subr.mxu1 %v11694_v25 }
 0x31c   : > { %14755 = vmatpush3.msra.mxu1 %v11694_v25  ;;  %v14248_v22 = vpop.f32.mrf.mxu1 }
 0x31d   : > { %v14334_v35 = vpop.f32.mrf.mxu0  ;;  %14627 = vmatmul.mubr.f32.gmra.mxu1 %v18321_v45  ;;  %14713 = vmatmul.mubr.f32.gmra.mxu0 %v6671_v41  ;;  %v5275_v61 = vadd.f32 %v14248_v22, %v17995_v8  ;;  %v11692_v45 = vld [vmem:[%s21586_s3 + $0x408] sm:$0xff]  ;;  %v6675_v41 = vld [vmem:[#allocation3 + $0x10d] sm:$0xff] }
 0x31e   : > { %14629 = vmatprep.mubr.f32.mxu1 %v18330_v6  ;;  %14715 = vmatprep.mubr.f32.mxu0 %v6672_v12  ;;  %v18505_v9 = vpop.f32.mrf.mxu1  ;;  %v6674_v8 = vld [vmem:[#allocation3 + $0x105] sm:$0xff] }
 0x31f   : > { %v18507_v2 = vpop.f32.mrf.mxu0  ;;  %14756 = vmatprep.subr.mxu1 %v11693_v36  ;;  %v18509_v33 = vadd.f32 %v14334_v35, %v5275_v61 }
 0x320   : > { %14757 = vmatpush3.msra.mxu1 %v11693_v36 }
 0x321   : > { %v14251_v20 = vpop.f32.mrf.mxu1  ;;  %v14337_v39 = vpop.f32.mrf.mxu0  ;;  %14630 = vmatmul.mubr.f32.gmra.mxu1 %v18333_v42  ;;  %14716 = vmatmul.mubr.f32.gmra.mxu0 %v6673_v26  ;;  %v11691_v42 = vld [vmem:[%s21586_s3 + $0x400] sm:$0xff] }
 0x322   : > { %v5277_v6 = vadd.f32 %v14251_v20, %v18293_v21  ;;  %14632 = vmatprep.mubr.f32.mxu1 %v18344_v53  ;;  %14718 = vmatprep.mubr.f32.mxu0 %v6674_v8  ;;  %v6676_v53 = vld [vmem:[#allocation3 + $0x115] sm:$0xff]  ;;  %v6677_v26 = vld [vmem:[#allocation3 + $0x11d] sm:$0xff] }
 0x323   : > { %v5105_v25 = vpop.f32.mrf.mxu1  ;;  %v18517_v29 = vpop.f32.mrf.mxu0  ;;  %14758 = vmatprep.subr.mxu1 %v11692_v45  ;;  %v6346_v8 = vld [vmem:[#allocation3 + $0x134] sm:$0xff] }
 0x324   : > { %v18519_v47 = vadd.f32 %v14337_v39, %v5277_v6  ;;  %v18522_v7 = vadd.f32 %v5105_v25, %v18297_v24  ;;  %14759 = vmatpush3.msra.mxu1 %v11692_v45  ;;  %v6680_v6 = vld [vmem:[#allocation3 + $0x135] sm:$0xff] }
 0x325   : > { %v14254_v36 = vpop.f32.mrf.mxu1  ;;  %v14340_v21 = vpop.f32.mrf.mxu0  ;;  %14633 = vmatmul.mubr.f32.gmra.mxu1 %v18349_v54  ;;  %14719 = vmatmul.mubr.f32.gmra.mxu0 %v6675_v41  ;;  %v6345_v41 = vld [vmem:[#allocation3 + $0x12c] sm:$0xff] }
 0x326   : > { %v5279_v22 = vadd.f32 %v14254_v36, %v18341_v14  ;;  %14635 = vmatprep.mubr.f32.mxu1 %v18358_v23  ;;  %14721 = vmatprep.mubr.f32.mxu0 %v6676_v53  ;;  %v6678_v14 = vld [vmem:[#allocation3 + $0x125] sm:$0xff] }
 0x327   : > { %v5115_v35 = vpop.f32.mrf.mxu1  ;;  %v18530_v24 = vpop.f32.mrf.mxu0  ;;  %14760 = vmatprep.subr.mxu1 %v11691_v42 }
 0x328   : > { %v18532_v12 = vadd.f32 %v14340_v21, %v5279_v22  ;;  %v18535_v61 = vadd.f32 %v5115_v35, %v18347_v52  ;;  %14761 = vmatpush3.msra.mxu1 %v11691_v42  ;;  %v6679_v42 = vld [vmem:[#allocation3 + $0x12d] sm:$0xff]  ;;  %v6681_v21 = vld [vmem:[#allocation3 + $0x13d] sm:$0x3f] }
 0x329   : > { %v14257_v45 = vpop.f32.mrf.mxu1  ;;  %v14343_v54 = vpop.f32.mrf.mxu0  ;;  %14636 = vmatmul.mubr.f32.gmra.mxu1 %v18365_v62  ;;  %14722 = vmatmul.mubr.f32.gmra.mxu0 %v6677_v26 }
 0x32a   : > { %v5281_v23 = vadd.f32 %v14257_v45, %v18360_v44  ;;  %14638 = vmatprep.mubr.f32.mxu1 %v18368_v46  ;;  %14724 = vmatprep.mubr.f32.mxu0 %v6678_v14  ;;  %v6347_v46 = vld [vmem:[#allocation3 + $0x13c] sm:$0x3f] }
 0x32b   : > { %v5125_v20 = vpop.f32.mrf.mxu1  ;;  %v18540_v39 = vpop.f32.mrf.mxu0 }
 0x32c   : > { %v18542_v52 = vadd.f32 %v14343_v54, %v5281_v23  ;;  %v18545_v25 = vadd.f32 %v5125_v20, %v18363_v60 }
 0x32d   : > { %v14260_v62 = vpop.f32.mrf.mxu1  ;;  %v14346_v36 = vpop.f32.mrf.mxu0  ;;  %14639 = vmatmul.mubr.f32.gmra.mxu1 %v6345_v41  ;;  %14725 = vmatmul.mubr.f32.gmra.mxu0 %v6679_v42 }
 0x32e   : > { %v5283_v44 = vadd.f32 %v14260_v62, %v18370_v51  ;;  %14641 = vmatprep.mubr.f32.mxu1 %v6346_v8  ;;  %14727 = vmatprep.mubr.f32.mxu0 %v6680_v6 }
 0x32f   : > { %v5135_v53 = vpop.f32.mrf.mxu1  ;;  %v18548_v22 = vpop.f32.mrf.mxu0 }
 0x330   : > { %v18550_v35 = vadd.f32 %v14346_v36, %v5283_v44  ;;  %v18553_v60 = vadd.f32 %v5135_v53, %v18373_v57 }
 0x331   : > { %v14263_v26 = vpop.f32.mrf.mxu1  ;;  %v14349_v45 = vpop.f32.mrf.mxu0  ;;  %14642 = vmatmul.mubr.f32.gmra.mxu1 %v6347_v46  ;;  %14728 = vmatmul.mubr.f32.gmra.mxu0 %v6681_v21  ;;  %v21753_v46 = vld [vmem:[#allocation5_spill] sm:$0xff] }
 0x332   : > { %v5285_v54 = vadd.f32 %v14263_v26, %v18375_v56  ;;  %14762 = vmatprep.mubr.f32.mxu1 %v18082_v55 }
 0x333   : > { %v5145_v51 = vpop.f32.mrf.mxu1  ;;  %v18557_v14 = vpop.f32.mrf.mxu0 }
 0x334   : > { %v18559_v23 = vadd.f32 %v14349_v45, %v5285_v54  ;;  %v18562_v20 = vadd.f32 %v5145_v51, %v18379_v40  ;;  %v21752_v40 = vld [vmem:[#allocation27_spill] sm:$0xff]  ;;  %v21755_v54 = vld [vmem:[#allocation12_spill] sm:$0xff] }
 0x335   : > { %v14266_v8 = vpop.f32.mrf.mxu1  ;;  %v14352_v6 = vpop.f32.mrf.mxu0  ;;  %14763 = vmatmul.mubr.f32.vlgmr.msra.gmra.mxu1 %v18084_v63 }
 0x336   : > { %v5287_v57 = vadd.f32 %v14266_v8, %v18386_v31  ;;  %14765 = vmatprep.mubr.f32.mxu1 %v18086_v27 }
 0x337   : > { %v5155_v41 = vpop.f32.mrf.mxu1  ;;  %v18567_v56 = vpop.f32.mrf.mxu0 }
 0x338   : > { %v18569_v55 = vadd.f32 %v14352_v6, %v5287_v57  ;;  %v18572_v42 = vadd.f32 %v5155_v41, %v18390_v17  ;;  %v21754_v17 = vld [vmem:[#allocation10_spill] sm:$0xff] }
 0x339   : > { %v14269_v62 = vpop.f32.mrf.mxu1  ;;  %v14355_v36 = vpop.f32.mrf.mxu0  ;;  %14766 = vmatmul.mubr.f32.gmra.mxu1 %v21752_v40 }
 0x33a   : > { %v5289_v44 = vadd.f32 %v14269_v62, %v18396_v48  ;;  %14768 = vmatprep.mubr.f32.mxu1 %v21753_v46  ;;  %v6988_v62 = vld [vmem:[#allocation3 + $0x66] sm:$0xff] }
 0x33b   : > { %v5165_v63 = vpop.f32.mrf.mxu1  ;;  %v18577_v31 = vpop.f32.mrf.mxu0 }
 0x33c   : > { %v18579_v27 = vadd.f32 %v14355_v36, %v5289_v44  ;;  %v18582_v21 = vadd.f32 %v5165_v63, %v18400_v37  ;;  %v21756_v37 = vld [vmem:[#allocation45_spill] sm:$0xff] }
 0x33d   : > { %v14272_v53 = vpop.f32.mrf.mxu1  ;;  %v14358_v26 = vpop.f32.mrf.mxu0  ;;  %14769 = vmatmul.mubr.f32.gmra.mxu1 %v21754_v17  ;;  %v6989_v63 = vld [vmem:[#allocation3 + $0x6e] sm:$0xff] }
 0x33e   : > { %v5291_v45 = vadd.f32 %v14272_v53, %v18407_v1  ;;  %14771 = vmatprep.mubr.f32.mxu1 %v21755_v54 }
 0x33f   : > { %v5175_v51 = vpop.f32.mrf.mxu1  ;;  %v18587_v48 = vpop.f32.mrf.mxu0 }
 0x340   : > { %v18589_v8 = vadd.f32 %v14358_v26, %v5291_v45  ;;  %v18592_v6 = vadd.f32 %v5175_v51, %v18411_v49  ;;  %v6990_v26 = vld [vmem:[#allocation3 + $0x76] sm:$0xff] }
 0x341   : > { %v14275_v57 = vpop.f32.mrf.mxu1  ;;  %v14361_v41 = vpop.f32.mrf.mxu0  ;;  %14772 = vmatmul.mubr.f32.gmra.mxu1 %v21756_v37  ;;  %v6992_v37 = vld [vmem:[#allocation3 + $0x86] sm:$0xff] }
 0x342   : > { %v5293_v36 = vadd.f32 %v14275_v57, %v18418_v59  ;;  %14774 = vmatprep.mubr.f32.mxu1 %v6988_v62  ;;  %v6991_v57 = vld [vmem:[#allocation3 + $0x7e] sm:$0xff] }
 0x343   : > { %v5185_v40 = vpop.f32.mrf.mxu1  ;;  %v18596_v1 = vpop.f32.mrf.mxu0 }
 0x344   : > { %v18598_v44 = vadd.f32 %v14361_v41, %v5293_v36  ;;  %v18601_v46 = vadd.f32 %v5185_v40, %v18421_v38 }
 0x345   : > { %v14278_v53 = vpop.f32.mrf.mxu1  ;;  %v14364_v49 = vpop.f32.mrf.mxu0  ;;  %14775 = vmatmul.mubr.f32.gmra.mxu1 %v6989_v63 }
 0x346   : > { %v5295_v17 = vadd.f32 %v14278_v53, %v18427_v19  ;;  %14777 = vmatprep.mubr.f32.mxu1 %v6990_v26  ;;  %v6993_v53 = vld [vmem:[#allocation3 + $0x8e] sm:$0xff]  ;;  %v6994_v26 = vld [vmem:[#allocation3 + $0x96] sm:$0xff] }
 0x347   : > { %v5195_v45 = vpop.f32.mrf.mxu1  ;;  %v18604_v54 = vpop.f32.mrf.mxu0 }
 0x348   : > { %v18606_v59 = vadd.f32 %v14364_v49, %v5295_v17  ;;  %v18609_v51 = vadd.f32 %v5195_v45, %v18430_v4 }
 0x349   : > { %v14281_v41 = vpop.f32.mrf.mxu1  ;;  %v14367_v38 = vpop.f32.mrf.mxu0  ;;  %14778 = vmatmul.mubr.f32.gmra.mxu1 %v6991_v57 }
 0x34a   : > { %v5297_v62 = vadd.f32 %v14281_v41, %v18436_v28  ;;  %14780 = vmatprep.mubr.f32.mxu1 %v6992_v37 }
 0x34b   : > { %v5205_v36 = vpop.f32.mrf.mxu1  ;;  %v18612_v40 = vpop.f32.mrf.mxu0 }
 0x34c   : > { %21757 = vst [vmem:[#allocation11_spill] sm:$0xff] %v18612_v40  ;;  %v18614_v19 = vadd.f32 %v14367_v38, %v5297_v62  ;;  %v18617_v63 = vadd.f32 %v5205_v36, %v18439_v30  ;;  %v6995_v38 = vld [vmem:[#allocation3 + $0x9e] sm:$0xff]  ;;  %v6996_v62 = vld [vmem:[#allocation3 + $0xa6] sm:$0xff] }
 0x34d   : > { %v14284_v49 = vpop.f32.mrf.mxu1  ;;  %v14370_v4 = vpop.f32.mrf.mxu0  ;;  %14781 = vmatmul.mubr.f32.gmra.mxu1 %v6993_v53 }
 0x34e   : > { %21758 = vst [vmem:[#allocation14_spill] sm:$0xff] %v18617_v63  ;;  %v5299_v17 = vadd.f32 %v14284_v49, %v18445_v58  ;;  %14783 = vmatprep.mubr.f32.mxu1 %v6994_v26 }
 0x34f   : > { %v5215_v45 = vpop.f32.mrf.mxu1  ;;  %v18620_v57 = vpop.f32.mrf.mxu0 }
 0x350   : > { %21759 = vst [vmem:[#allocation30_spill] sm:$0xff] %v18620_v57  ;;  %v18622_v28 = vadd.f32 %v14370_v4, %v5299_v17  ;;  %v18625_v41 = vadd.f32 %v5215_v45, %v18448_v13  ;;  %v6997_v4 = vld [vmem:[#allocation3 + $0xae] sm:$0xff]  ;;  %v6998_v17 = vld [vmem:[#allocation3 + $0xb6] sm:$0xff] }
 0x351   : > { %v14287_v37 = vpop.f32.mrf.mxu1  ;;  %v14373_v30 = vpop.f32.mrf.mxu0  ;;  %14784 = vmatmul.mubr.f32.gmra.mxu1 %v6995_v38 }
 0x352   : > { %21760 = vst [vmem:[#allocation7_spill] sm:$0xff] %v18625_v41  ;;  %v5301_v36 = vadd.f32 %v14287_v37, %v18454_v16  ;;  %14786 = vmatprep.mubr.f32.mxu1 %v6996_v62 }
 0x353   : > { %v5225_v53 = vpop.f32.mrf.mxu1  ;;  %v18628_v40 = vpop.f32.mrf.mxu0 }
 0x354   : > { %21761 = vst [vmem:[#allocation13_spill] sm:$0xff] %v18628_v40  ;;  %v18630_v58 = vadd.f32 %v14373_v30, %v5301_v36  ;;  %v18633_v49 = vadd.f32 %v5225_v53, %v18457_v5  ;;  %v6999_v30 = vld [vmem:[#allocation3 + $0xbe] sm:$0xff]  ;;  %v7000_v36 = vld [vmem:[#allocation3 + $0xc6] sm:$0xff] }
 0x355   : > { %v14290_v26 = vpop.f32.mrf.mxu1  ;;  %v14376_v13 = vpop.f32.mrf.mxu0  ;;  %14787 = vmatmul.mubr.f32.gmra.mxu1 %v6997_v4 }
 0x356   : > { %21762 = vst [vmem:[#allocation32_spill] sm:$0xff] %v18633_v49  ;;  %v5303_v45 = vadd.f32 %v14290_v26, %v18463_v15  ;;  %14789 = vmatprep.mubr.f32.mxu1 %v6998_v17 }
 0x357   : > { %v5235_v38 = vpop.f32.mrf.mxu1  ;;  %v18636_v57 = vpop.f32.mrf.mxu0 }
 0x358   : > { %21763 = vst [vmem:[#allocation16_spill] sm:$0xff] %v18636_v57  ;;  %v18638_v16 = vadd.f32 %v14376_v13, %v5303_v45  ;;  %v18641_v37 = vadd.f32 %v5235_v38, %v18466_v34  ;;  %v7001_v13 = vld [vmem:[#allocation3 + $0xce] sm:$0xff]  ;;  %v7002_v45 = vld [vmem:[#allocation3 + $0xd6] sm:$0xff] }
 0x359   : > { %v14293_v62 = vpop.f32.mrf.mxu1  ;;  %v14379_v5 = vpop.f32.mrf.mxu0  ;;  %14790 = vmatmul.mubr.f32.gmra.mxu1 %v6999_v30 }
 0x35a   : > { %21764 = vst [vmem:[#allocation49_spill] sm:$0xff] %v18641_v37  ;;  %v5305_v53 = vadd.f32 %v14293_v62, %v18472_v0  ;;  %14792 = vmatprep.mubr.f32.mxu1 %v7000_v36  ;;  %v7003_v36 = vld [vmem:[#allocation3 + $0xde] sm:$0xff] }
 0x35b   : > { %v5245_v4 = vpop.f32.mrf.mxu1  ;;  %v18644_v40 = vpop.f32.mrf.mxu0 }
 0x35c   : > { %21765 = vst [vmem:[#allocation47_spill] sm:$0xff] %v18644_v40  ;;  %v18646_v15 = vadd.f32 %v14379_v5, %v5305_v53  ;;  %v18649_v26 = vadd.f32 %v5245_v4, %v18475_v10  ;;  %v7004_v10 = vld [vmem:[#allocation3 + $0xe6] sm:$0xff] }
 0x35d   : > { %v14296_v17 = vpop.f32.mrf.mxu1  ;;  %v14382_v34 = vpop.f32.mrf.mxu0  ;;  %14793 = vmatmul.mubr.f32.gmra.mxu1 %v7001_v13 }
 0x35e   : > { %21766 = vst [vmem:[#allocation8_spill] sm:$0xff] %v18649_v26  ;;  %v5307_v38 = vadd.f32 %v14296_v17, %v18481_v3  ;;  %14795 = vmatprep.mubr.f32.mxu1 %v7002_v45  ;;  %v7005_v17 = vld [vmem:[#allocation3 + $0xee] sm:$0xff] }
 0x35f   : > { %v18652_v30 = vpop.f32.mrf.mxu1  ;;  %v18654_v0 = vpop.f32.mrf.mxu0 }
 0x360   : > { %21767 = vst [vmem:[#allocation15_spill] sm:$0xff] %v18654_v0  ;;  %v18656_v62 = vadd.f32 %v14382_v34, %v5307_v38  ;;  %v7006_v34 = vld [vmem:[#allocation3 + $0xf6] sm:$0xff] }
 0x361   : > { %v14299_v5 = vpop.f32.mrf.mxu1  ;;  %v14385_v53 = vpop.f32.mrf.mxu0  ;;  %14796 = vmatmul.mubr.f32.gmra.mxu1 %v7003_v36 }
 0x362   : > { %v5309_v4 = vadd.f32 %v14299_v5, %v18492_v11  ;;  %14798 = vmatprep.mubr.f32.mxu1 %v7004_v10  ;;  %v7007_v5 = vld [vmem:[#allocation3 + $0xfe] sm:$0xff] }
 0x363   : > { %v18659_v40 = vpop.f32.mrf.mxu1  ;;  %v18661_v13 = vpop.f32.mrf.mxu0 }
 0x364   : > { %21768 = vst [vmem:[#allocation18_spill] sm:$0xff] %v18661_v13  ;;  %v18663_v3 = vadd.f32 %v14385_v53, %v5309_v4  ;;  %v7008_v53 = vld [vmem:[#allocation3 + $0x106] sm:$0xff] }
 0x365   : > { %v14420_v45 = vpop.f32.mrf.mxu1  ;;  %v14506_v26 = vpop.f32.mrf.mxu0  ;;  %14799 = vmatmul.mubr.f32.gmra.mxu1 %v7005_v17 }
 0x366   : > { %v5943_v38 = vadd.f32 %v14420_v45, %v18509_v33  ;;  %14801 = vmatprep.mubr.f32.mxu1 %v7006_v34  ;;  %v7009_v45 = vld [vmem:[#allocation3 + $0x10e] sm:$0xff] }
 0x367   : > { %v18666_v0 = vpop.f32.mrf.mxu1  ;;  %v18668_v36 = vpop.f32.mrf.mxu0 }
 0x368   : > { %21769 = vst [vmem:[#allocation34_spill] sm:$0xff] %v18668_v36  ;;  %v18670_v11 = vadd.f32 %v14506_v26, %v5943_v38  ;;  %v7010_v26 = vld [vmem:[#allocation3 + $0x116] sm:$0xff] }
 0x369   : > { %v14423_v10 = vpop.f32.mrf.mxu1  ;;  %v14509_v57 = vpop.f32.mrf.mxu0  ;;  %14802 = vmatmul.mubr.f32.gmra.mxu1 %v7007_v5 }
 0x36a   : > { %v5945_v4 = vadd.f32 %v14423_v10, %v18519_v47  ;;  %14804 = vmatprep.mubr.f32.mxu1 %v7008_v53  ;;  %v7011_v10 = vld [vmem:[#allocation3 + $0x11e] sm:$0xff] }
 0x36b   : > { %v18673_v13 = vpop.f32.mrf.mxu1  ;;  %v18675_v17 = vpop.f32.mrf.mxu0 }
 0x36c   : > { %21770 = vst [vmem:[#allocation73_spill] sm:$0xff] %v18675_v17  ;;  %v18677_v33 = vadd.f32 %v14509_v57, %v5945_v4  ;;  %v7012_v57 = vld [vmem:[#allocation3 + $0x126] sm:$0xff] }
 0x36d   : > { %v14426_v34 = vpop.f32.mrf.mxu1  ;;  %v14512_v37 = vpop.f32.mrf.mxu0  ;;  %14805 = vmatmul.mubr.f32.gmra.mxu1 %v7009_v45 }
 0x36e   : > { %v5947_v38 = vadd.f32 %v14426_v34, %v18532_v12  ;;  %14807 = vmatprep.mubr.f32.mxu1 %v7010_v26  ;;  %v7014_v12 = vld [vmem:[#allocation3 + $0x136] sm:$0xff]  ;;  %v7013_v26 = vld [vmem:[#allocation3 + $0x12e] sm:$0xff] }
 0x36f   : > { %v18680_v36 = vpop.f32.mrf.mxu1  ;;  %v18682_v5 = vpop.f32.mrf.mxu0 }
 0x370   : > { %21771 = vst [vmem:[#allocation36_spill] sm:$0xff] %v18682_v5  ;;  %v18684_v47 = vadd.f32 %v14512_v37, %v5947_v38  ;;  %v7015_v38 = vld [vmem:[#allocation3 + $0x13e] sm:$0x3f] }
 0x371   : > { %v14429_v53 = vpop.f32.mrf.mxu1  ;;  %v14515_v49 = vpop.f32.mrf.mxu0  ;;  %14808 = vmatmul.mubr.f32.gmra.mxu1 %v7011_v10 }
 0x372   : > { %v5949_v4 = vadd.f32 %v14429_v53, %v18542_v52  ;;  %14810 = vmatprep.mubr.f32.mxu1 %v7012_v57 }
 0x373   : > { %v18687_v17 = vpop.f32.mrf.mxu1  ;;  %v18689_v45 = vpop.f32.mrf.mxu0 }
 0x374   : > { %21772 = vst [vmem:[#allocation52_spill] sm:$0xff] %v18689_v45  ;;  %v18691_v34 = vadd.f32 %v14515_v49, %v5949_v4  ;;  %v18701_v4 = vld [vmem:[#allocation3 + $0x133] sm:$0xff] }
 0x375   : > { %v14432_v41 = vpop.f32.mrf.mxu1  ;;  %v14518_v5 = vpop.f32.mrf.mxu0  ;;  %14811 = vmatmul.mubr.f32.gmra.mxu1 %v7013_v26  ;;  %21775 = vst [vmem:[#allocation20_spill] sm:$0xff] %v18701_v4 }
 0x376   : > { %v5951_v37 = vadd.f32 %v14432_v41, %v18550_v35  ;;  %14813 = vmatprep.mubr.f32.mxu1 %v7014_v12 }
 0x377   : > { %v18694_v10 = vpop.f32.mrf.mxu1  ;;  %v18696_v63 = vpop.f32.mrf.mxu0 }
 0x378   : > { %21773 = vst [vmem:[#allocation23_spill] sm:$0xff] %v18694_v10  ;;  %21774 = vst [vmem:[#allocation50_spill] sm:$0xff] %v18696_v63  ;;  %v18698_v52 = vadd.f32 %v14518_v5, %v5951_v37  ;;  %v11723_v5 = vld [vmem:[%s21586_s3 + $0xf8] sm:$0xff] }
 0x379   : > { %v14435_v53 = vpop.f32.mrf.mxu1  ;;  %v14521_v57 = vpop.f32.mrf.mxu0  ;;  %14814 = vmatmul.mubr.f32.gmra.mxu1 %v7015_v38  ;;  %14816 = vmatprep.subr.mxu0 %v11723_v5 }
 0x37a   : > { %v5953_v49 = vadd.f32 %v14435_v53, %v18559_v23  ;;  %14895 = vmatprep.mubr.f32.mxu1 %v18701_v4  ;;  %14817 = vmatpush3.msra.mxu0 %v11723_v5 }
 0x37b   : > { %v18704_v26 = vpop.f32.mrf.mxu1  ;;  %v18706_v35 = vpop.f32.mrf.mxu0 }
 0x37c   : > { %21776 = vst [vmem:[#allocation55_spill] sm:$0xff] %v18704_v26  ;;  %21777 = vst [vmem:[#allocation53_spill] sm:$0xff] %v18706_v35  ;;  %v18708_v41 = vadd.f32 %v14521_v57, %v5953_v49  ;;  %v11722_v49 = vld [vmem:[%s21586_s3 + $0xf0] sm:$0xff] }
 0x37d   : > { %v14438_v12 = vpop.f32.mrf.mxu1  ;;  %v14524_v45 = vpop.f32.mrf.mxu0  ;;  %14818 = vmatprep.subr.mxu0 %v11722_v49 }
 0x37e   : > { %v5955_v37 = vadd.f32 %v14438_v12, %v18569_v55  ;;  %14819 = vmatpush3.msra.mxu0 %v11722_v49 }
 0x37f   : > { %v18714_v23 = vpop.f32.mrf.mxu1  ;;  %v18716_v38 = vpop.f32.mrf.mxu0 }
 0x380   : > { %21778 = vst [vmem:[#allocation9_spill] sm:$0xff] %v18714_v23  ;;  %21779 = vst [vmem:[#allocation17_spill] sm:$0xff] %v18716_v38  ;;  %v18718_v53 = vadd.f32 %v14524_v45, %v5955_v37 }
 0x381   : > { %v14441_v4 = vpop.f32.mrf.mxu1  ;;  %v14527_v35 = vpop.f32.mrf.mxu0 }
 0x382   : > { %v5957_v57 = vadd.f32 %v14441_v4, %v18579_v27 }
 0x383   : > { %v18724_v63 = vpop.f32.mrf.mxu1  ;;  %v18726_v26 = vpop.f32.mrf.mxu0 }
 0x384   : > { %21780 = vst [vmem:[#allocation22_spill] sm:$0xff] %v18724_v63  ;;  %21781 = vst [vmem:[#allocation38_spill] sm:$0xff] %v18726_v26  ;;  %v18728_v55 = vadd.f32 %v14527_v35, %v5957_v57  ;;  %v11721_v26 = vld [vmem:[%s21586_s3 + $0xe8] sm:$0xff] }
 0x385   : > { %v14444_v12 = vpop.f32.mrf.mxu1  ;;  %v14530_v5 = vpop.f32.mrf.mxu0  ;;  %14820 = vmatprep.subr.mxu0 %v11721_v26 }
 0x386   : > { %v5959_v45 = vadd.f32 %v14444_v12, %v18589_v8  ;;  %14821 = vmatpush3.msra.mxu0 %v11721_v26 }
 0x387   : > { %v18731_v37 = vpop.f32.mrf.mxu1  ;;  %v18733_v38 = vpop.f32.mrf.mxu0 }
 0x388   : > { %21782 = vst [vmem:[#allocation78_spill] sm:$0xff] %v18731_v37  ;;  %21783 = vst [vmem:[#allocation19_spill] sm:$0xff] %v18733_v38  ;;  %v18735_v27 = vadd.f32 %v14530_v5, %v5959_v45 }
 0x389   : > { %v14447_v4 = vpop.f32.mrf.mxu1  ;;  %v14533_v23 = vpop.f32.mrf.mxu0 }
 0x38a   : > { %v5961_v35 = vadd.f32 %v14447_v4, %v18598_v44 }
 0x38b   : > { %v18741_v57 = vpop.f32.mrf.mxu1  ;;  %v18743_v49 = vpop.f32.mrf.mxu0 }
 0x38c   : > { %21784 = vst [vmem:[#allocation40_spill] sm:$0xff] %v18741_v57  ;;  %21785 = vst [vmem:[#allocation58_spill] sm:$0xff] %v18743_v49  ;;  %v18745_v8 = vadd.f32 %v14533_v23, %v5961_v35 }
 0x38d   : > { %v14450_v12 = vpop.f32.mrf.mxu1  ;;  %v14536_v38 = vpop.f32.mrf.mxu0 }
 0x38e   : > { %v5963_v5 = vadd.f32 %v14450_v12, %v18606_v59 }
 0x38f   : > { %v18748_v45 = vpop.f32.mrf.mxu1  ;;  %v18750_v37 = vpop.f32.mrf.mxu0 }
 0x390   : > { %21786 = vst [vmem:[#allocation56_spill] sm:$0xff] %v18748_v45  ;;  %21787 = vst [vmem:[#allocation24_spill] sm:$0xff] %v18750_v37  ;;  %v18752_v63 = vadd.f32 %v14536_v38, %v5963_v5 }
 0x391   : > { %v14453_v10 = vpop.f32.mrf.mxu1  ;;  %v14539_v44 = vpop.f32.mrf.mxu0 }
 0x392   : > { %v5965_v4 = vadd.f32 %v14453_v10, %v18614_v19  ;;  %v7909_v19 = vld [vmem:[%s21586_s3 + $0x78] sm:$0xff]  ;;  %v11720_v10 = vld [vmem:[%s21586_s3 + $0xe0] sm:$0xff] }
 0x393   : > { %v18755_v57 = vpop.f32.mrf.mxu1  ;;  %v18757_v49 = vpop.f32.mrf.mxu0  ;;  %14863 = vmatprep.subr.mxu1 %v7909_v19  ;;  %14822 = vmatprep.subr.mxu0 %v11720_v10 }
 0x394   : > { %21788 = vst [vmem:[#allocation61_spill] sm:$0xff] %v18755_v57  ;;  %21789 = vst [vmem:[#allocation59_spill] sm:$0xff] %v18757_v49  ;;  %v18759_v26 = vadd.f32 %v14539_v44, %v5965_v4  ;;  %14864 = vmatpush3.msra.mxu1 %v7909_v19  ;;  %14823 = vmatpush3.msra.mxu0 %v11720_v10  ;;  %v7906_v19 = vld [vmem:[%s21586_s3 + $0x60] sm:$0xff] }
 0x395   : > { %v14456_v23 = vpop.f32.mrf.mxu1  ;;  %v14542_v35 = vpop.f32.mrf.mxu0 }
 0x396   : > { %v5967_v59 = vadd.f32 %v14456_v23, %v18622_v28  ;;  %v7908_v28 = vld [vmem:[%s21586_s3 + $0x70] sm:$0xff] }
 0x397   : > { %v18762_v12 = vpop.f32.mrf.mxu1  ;;  %v18764_v45 = vpop.f32.mrf.mxu0  ;;  %14865 = vmatprep.subr.mxu1 %v7908_v28 }
 0x398   : > { %21790 = vst [vmem:[#allocation21_spill] sm:$0xff] %v18762_v12  ;;  %21791 = vst [vmem:[#allocation25_spill] sm:$0xff] %v18764_v45  ;;  %v18766_v38 = vadd.f32 %v14542_v35, %v5967_v59  ;;  %v7907_v35 = vld [vmem:[%s21586_s3 + $0x68] sm:$0xff]  ;;  %v11719_v45 = vld [vmem:[%s21586_s3 + $0xd8] sm:$0xff]  ;;  %14866 = vmatpush3.msra.mxu1 %v7908_v28 }
 0x399   : > { %v14459_v5 = vpop.f32.mrf.mxu1  ;;  %v14545_v37 = vpop.f32.mrf.mxu0  ;;  %14824 = vmatprep.subr.mxu0 %v11719_v45  ;;  %14867 = vmatprep.subr.mxu1 %v7907_v35 }
 0x39a   : > { %v5969_v44 = vadd.f32 %v14459_v5, %v18630_v58  ;;  %14825 = vmatpush3.msra.mxu0 %v11719_v45  ;;  %14868 = vmatpush3.msra.mxu1 %v7907_v35 }
 0x39b   : > { %v18778_v4 = vpop.f32.mrf.mxu1  ;;  %v18780_v23 = vpop.f32.mrf.mxu0  ;;  %14869 = vmatprep.subr.mxu1 %v7906_v19 }
 0x39c   : > { %21792 = vst [vmem:[#allocation41_spill] sm:$0xff] %v18778_v4  ;;  %21793 = vst [vmem:[#allocation42_spill] sm:$0xff] %v18780_v23  ;;  %v18785_v59 = vadd.f32 %v14545_v37, %v5969_v44  ;;  %v7905_v44 = vld [vmem:[%s21586_s3 + $0x58] sm:$0xff]  ;;  %14870 = vmatpush3.msra.mxu1 %v7906_v19  ;;  %v7904_v19 = vld [vmem:[%s21586_s3 + $0x50] sm:$0xff] }
 0x39d   : > { %v14462_v58 = vpop.f32.mrf.mxu1  ;;  %v14548_v5 = vpop.f32.mrf.mxu0  ;;  %14871 = vmatprep.subr.mxu1 %v7905_v44 }
 0x39e   : > { %v5971_v10 = vadd.f32 %v14462_v58, %v18638_v16  ;;  %14872 = vmatpush3.msra.mxu1 %v7905_v44  ;;  %v11716_v44 = vld [vmem:[%s21586_s3 + $0xc0] sm:$0xff] }
 0x39f   : > { %v18794_v23 = vpop.f32.mrf.mxu1  ;;  %v18796_v37 = vpop.f32.mrf.mxu0  ;;  %14873 = vmatprep.subr.mxu1 %v7904_v19 }
 0x3a0   : > { %21794 = vst [vmem:[#allocation62_spill] sm:$0xff] %v18794_v23  ;;  %21795 = vst [vmem:[#allocation63_spill] sm:$0xff] %v18796_v37  ;;  %v18801_v49 = vadd.f32 %v14548_v5, %v5971_v10  ;;  %14874 = vmatpush3.msra.mxu1 %v7904_v19 }
 0x3a1   : > { %v14465_v28 = vpop.f32.mrf.mxu1  ;;  %v14551_v4 = vpop.f32.mrf.mxu0 }
 0x3a2   : > { %v5973_v12 = vadd.f32 %v14465_v28, %v18646_v15  ;;  %v11718_v15 = vld [vmem:[%s21586_s3 + $0xd0] sm:$0xff]  ;;  %v7902_v28 = vld [vmem:[%s21586_s3 + $0x40] sm:$0xff] }
 0x3a3   : > { %v18804_v16 = vpop.f32.mrf.mxu1  ;;  %v18806_v45 = vpop.f32.mrf.mxu0  ;;  %14826 = vmatprep.subr.mxu0 %v11718_v15 }
 0x3a4   : > { %21796 = vst [vmem:[#allocation66_spill] sm:$0xff] %v18806_v45  ;;  %v18808_v58 = vadd.f32 %v14551_v4, %v5973_v12  ;;  %v11717_v12 = vld [vmem:[%s21586_s3 + $0xc8] sm:$0xff]  ;;  %14827 = vmatpush3.msra.mxu0 %v11718_v15  ;;  %v7901_v15 = vld [vmem:[%s21586_s3 + $0x38] sm:$0xff] }
 0x3a5   : > { %v14468_v35 = vpop.f32.mrf.mxu1  ;;  %v14554_v37 = vpop.f32.mrf.mxu0  ;;  %14828 = vmatprep.subr.mxu0 %v11717_v12 }
 0x3a6   : > { %v5975_v23 = vadd.f32 %v14468_v35, %v18656_v62  ;;  %14829 = vmatpush3.msra.mxu0 %v11717_v12 }
 0x3a7   : > { %v18811_v5 = vpop.f32.mrf.mxu1  ;;  %v18813_v10 = vpop.f32.mrf.mxu0  ;;  %14830 = vmatprep.subr.mxu0 %v11716_v44 }
 0x3a8   : > { %21797 = vst [vmem:[#allocation65_spill] sm:$0xff] %v18813_v10  ;;  %v18815_v57 = vadd.f32 %v14554_v37, %v5975_v23  ;;  %v7903_v23 = vld [vmem:[%s21586_s3 + $0x48] sm:$0xff]  ;;  %14831 = vmatpush3.msra.mxu0 %v11716_v44  ;;  %v11714_v44 = vld [vmem:[%s21586_s3 + $0xb0] sm:$0xff] }
 0x3a9   : > { %v14471_v4 = vpop.f32.mrf.mxu1  ;;  %v14557_v62 = vpop.f32.mrf.mxu0  ;;  %14875 = vmatprep.subr.mxu1 %v7903_v23 }
 0x3aa   : > { %v5977_v37 = vadd.f32 %v14471_v4, %v18663_v3  ;;  %14876 = vmatpush3.msra.mxu1 %v7903_v23  ;;  %v11715_v3 = vld [vmem:[%s21586_s3 + $0xb8] sm:$0xff] }
 0x3ab   : > { %v18836_v35 = vpop.f32.mrf.mxu1  ;;  %v18838_v10 = vpop.f32.mrf.mxu0  ;;  %14877 = vmatprep.subr.mxu1 %v7902_v28  ;;  %14832 = vmatprep.subr.mxu0 %v11715_v3 }
 0x3ac   : > { %21798 = vst [vmem:[#allocation26_spill] sm:$0xff] %v18838_v10  ;;  %v18840_v45 = vadd.f32 %v14557_v62, %v5977_v37  ;;  %14878 = vmatpush3.msra.mxu1 %v7902_v28  ;;  %14833 = vmatpush3.msra.mxu0 %v11715_v3  ;;  %v7900_v28 = vld [vmem:[%s21586_s3 + $0x30] sm:$0xff]  ;;  %v11713_v3 = vld [vmem:[%s21586_s3 + $0xa8] sm:$0xff] }
 0x3ad   : > { %v14592_v19 = vpop.f32.mrf.mxu1  ;;  %v18848_v4 = vpop.f32.mrf.mxu0  ;;  %14879 = vmatprep.subr.mxu1 %v7901_v15  ;;  %14834 = vmatprep.subr.mxu0 %v11714_v44 }
 0x3ae   : > { %21799 = vst [vmem:[#allocation29_spill] sm:$0xff] %v18840_v45  ;;  %21800 = vst [vmem:[#allocation44_spill] sm:$0xff] %v18848_v4  ;;  %v18851_v10 = vadd.f32 %v14592_v19, %v18670_v11  ;;  %14880 = vmatpush3.msra.mxu1 %v7901_v15  ;;  %14835 = vmatpush3.msra.mxu0 %v11714_v44  ;;  %v11711_v44 = vld [vmem:[%s21586_s3 + $0x98] sm:$0xff] }
 0x3af   : > { %v18853_v12 = vpop.f32.mrf.mxu1  ;;  %v18855_v62 = vpop.f32.mrf.mxu0  ;;  %14881 = vmatprep.subr.mxu1 %v7900_v28  ;;  %14836 = vmatprep.subr.mxu0 %v11713_v3 }
 0x3b0   : > { %21801 = vst [vmem:[#allocation67_spill] sm:$0xff] %v18851_v10  ;;  %21802 = vst [vmem:[#allocation46_spill] sm:$0xff] %v18855_v62  ;;  %14882 = vmatpush3.msra.mxu1 %v7900_v28  ;;  %14837 = vmatpush3.msra.mxu0 %v11713_v3  ;;  %v7897_v28 = vld [vmem:[%s21586_s3 + $0x18] sm:$0xff] }
 0x3b1   : > { %v14595_v23 = vpop.f32.mrf.mxu1  ;;  %v18857_v37 = vpop.f32.mrf.mxu0 }
 0x3b2   : > { %21803 = vst [vmem:[#allocation68_spill] sm:$0xff] %v18857_v37  ;;  %v18860_v45 = vadd.f32 %v14595_v23, %v18677_v33  ;;  %v7899_v33 = vld [vmem:[%s21586_s3 + $0x28] sm:$0xff]  ;;  %v11712_v23 = vld [vmem:[%s21586_s3 + $0xa0] sm:$0xff] }
 0x3b3   : > { %v18862_v4 = vpop.f32.mrf.mxu1  ;;  %v18864_v11 = vpop.f32.mrf.mxu0  ;;  %14883 = vmatprep.subr.mxu1 %v7899_v33  ;;  %14838 = vmatprep.subr.mxu0 %v11712_v23 }
 0x3b4   : > { %21804 = vst [vmem:[#allocation70_spill] sm:$0xff] %v18860_v45  ;;  %21805 = vst [vmem:[#allocation69_spill] sm:$0xff] %v18864_v11  ;;  %v7898_v11 = vld [vmem:[%s21586_s3 + $0x20] sm:$0xff]  ;;  %14884 = vmatpush3.msra.mxu1 %v7899_v33  ;;  %14839 = vmatpush3.msra.mxu0 %v11712_v23 }
 0x3b5   : > { %v14598_v15 = vpop.f32.mrf.mxu1  ;;  %v18878_v19 = vpop.f32.mrf.mxu0  ;;  %14885 = vmatprep.subr.mxu1 %v7898_v11  ;;  %14840 = vmatprep.subr.mxu0 %v11711_v44 }
 0x3b6   : > { %21806 = vst [vmem:[#allocation31_spill] sm:$0xff] %v18878_v19  ;;  %v18887_v37 = vadd.f32 %v14598_v15, %v18684_v47  ;;  %14886 = vmatpush3.msra.mxu1 %v7898_v11  ;;  %14841 = vmatpush3.msra.mxu0 %v11711_v44  ;;  %v7896_v44 = vld [vmem:[%s21586_s3 + $0x10] sm:$0xff] }
 0x3b7   : > { %v18889_v45 = vpop.f32.mrf.mxu1  ;;  %v18891_v62 = vpop.f32.mrf.mxu0  ;;  %14887 = vmatprep.subr.mxu1 %v7897_v28 }
 0x3b8   : > { %21807 = vst [vmem:[#allocation33_spill] sm:$0xff] %v18887_v37  ;;  %21808 = vst [vmem:[#allocation48_spill] sm:$0xff] %v18891_v62  ;;  %14888 = vmatpush3.msra.mxu1 %v7897_v28  ;;  %v7895_v28 = vld [vmem:[%s21586_s3 + $0x8] sm:$0xff] }
 0x3b9   : > { %v14601_v47 = vpop.f32.mrf.mxu1  ;;  %v18899_v15 = vpop.f32.mrf.mxu0  ;;  %14889 = vmatprep.subr.mxu1 %v7896_v44 }
 0x3ba   : > { %21809 = vst [vmem:[#allocation71_spill] sm:$0xff] %v18899_v15  ;;  %v18902_v19 = vadd.f32 %v14601_v47, %v18691_v34  ;;  %v11710_v47 = vld [vmem:[%s21586_s3 + $0x90] sm:$0xff]  ;;  %14890 = vmatpush3.msra.mxu1 %v7896_v44 }
 0x3bb   : > { %v18904_v3 = vpop.f32.mrf.mxu1  ;;  %v18906_v33 = vpop.f32.mrf.mxu0  ;;  %14842 = vmatprep.subr.mxu0 %v11710_v47  ;;  %14891 = vmatprep.subr.mxu1 %v7895_v28 }
 0x3bc   : > { %21810 = vst [vmem:[#allocation51_spill] sm:$0xff] %v18902_v19  ;;  %21811 = vst [vmem:[#allocation72_spill] sm:$0xff] %v18906_v33  ;;  %14843 = vmatpush3.msra.mxu0 %v11710_v47  ;;  %14892 = vmatpush3.msra.mxu1 %v7895_v28 }
 0x3bd   : > { %v14604_v62 = vpop.f32.mrf.mxu1  ;;  %v18908_v37 = vpop.f32.mrf.mxu0 }
 0x3be   : > { %21812 = vst [vmem:[#allocation75_spill] sm:$0xff] %v18908_v37  ;;  %v18911_v10 = vadd.f32 %v14604_v62, %v18698_v52  ;;  %v11709_v52 = vld [vmem:[%s21586_s3 + $0x88] sm:$0xff]  ;;  %v11708_v37 = vld [vmem:[%s21586_s3 + $0x80] sm:$0xff] }
 0x3bf   : > { %v18913_v15 = vpop.f32.mrf.mxu1  ;;  %v18915_v11 = vpop.f32.mrf.mxu0  ;;  %14844 = vmatprep.subr.mxu0 %v11709_v52 }
 0x3c0   : > { %21813 = vst [vmem:[#allocation74_spill] sm:$0xff] %v18911_v10  ;;  %21814 = vst [vmem:[#allocation35_spill] sm:$0xff] %v18915_v11  ;;  %14845 = vmatpush3.msra.mxu0 %v11709_v52 }
 0x3c1   : > { %v14607_v34 = vpop.f32.mrf.mxu1  ;;  %v18917_v23 = vpop.f32.mrf.mxu0  ;;  %14846 = vmatprep.subr.mxu0 %v11708_v37 }
 0x3c2   : > { %21815 = vst [vmem:[#allocation37_spill] sm:$0xff] %v18917_v23  ;;  %v18929_v62 = vadd.f32 %v14607_v34, %v18708_v41  ;;  %v7894_v41 = vld [vmem:[%s21586_s3] sm:$0xff]  ;;  %v7910_v34 = vld [vmem:[#allocation3 + $0x1] sm:$0xff]  ;;  %14847 = vmatpush3.msra.mxu0 %v11708_v37 }
 0x3c3   : > { %v18934_v23 = vpop.f32.mrf.mxu1  ;;  %v18936_v11 = vpop.f32.mrf.mxu0  ;;  %14893 = vmatprep.subr.mxu1 %v7894_v41  ;;  %14848 = vmatprep.mubr.f32.mxu0 %v7910_v34 }
 0x3c4   : > { %21816 = vst [vmem:[#allocation54_spill] sm:$0xff] %v18929_v62  ;;  %21817 = vst [vmem:[#allocation76_spill] sm:$0xff] %v18934_v23  ;;  %14894 = vmatpush3.msra.mxu1 %v7894_v41 }
 0x3c5   : > { %21818 = vst [vmem:[#allocation57_spill] sm:$0xff] %v18936_v11  ;;  %v14610_v62 = vpop.f32.mrf.mxu1  ;;  %v18944_v10 = vpop.f32.mrf.mxu0 }
 0x3c6   : > { %21819 = vst [vmem:[#allocation77_spill] sm:$0xff] %v18944_v10  ;;  %v18947_v11 = vadd.f32 %v14610_v62, %v18718_v53 }
 0x3c7   : > { %v18949_v47 = vpop.f32.mrf.mxu1  ;;  %v18951_v44 = vpop.f32.mrf.mxu0 }
 0x3c8   : > { %21820 = vst [vmem:[#allocation39_spill] sm:$0xff] %v18947_v11  ;;  %21821 = vst [vmem:[#allocation60_spill] sm:$0xff] %v18951_v44 }
 0x3c9   : > { %v14613_v33 = vpop.f32.mrf.mxu1  ;;  %v18953_v19 = vpop.f32.mrf.mxu0 }
 0x3ca   : > { %21822 = vst [vmem:[#allocation28_spill] sm:$0xff] %v18953_v19  ;;  %v18956_v23 = vadd.f32 %v14613_v33, %v18728_v55 }
 0x3cb   : > { %v18958_v52 = vpop.f32.mrf.mxu1  ;;  %v18960_v28 = vpop.f32.mrf.mxu0 }
 0x3cc   : > { %21823 = vst [vmem:[#allocation64_spill] sm:$0xff] %v18956_v23  ;;  %21824 = vst [vmem:[#allocation27_spill] sm:$0xff] %v18960_v28 }
 0x3cd   : > { %v14616_v53 = vpop.f32.mrf.mxu1  ;;  %v18962_v62 = vpop.f32.mrf.mxu0 }
 0x3ce   : > { %21825 = vst [vmem:[#allocation5_spill] sm:$0xff] %v18962_v62  ;;  %v18965_v10 = vadd.f32 %v14616_v53, %v18735_v27 }
 0x3cf   : > { %v18967_v44 = vpop.f32.mrf.mxu1  ;;  %v18969_v37 = vpop.f32.mrf.mxu0 }
 0x3d0   : > { %21826 = vst [vmem:[#allocation10_spill] sm:$0xff] %v18965_v10  ;;  %21827 = vst [vmem:[#allocation12_spill] sm:$0xff] %v18969_v37 }
 0x3d1   : > { %v14619_v41 = vpop.f32.mrf.mxu1  ;;  %v18971_v34 = vpop.f32.mrf.mxu0 }
 0x3d2   : > { %21828 = vst [vmem:[#allocation45_spill] sm:$0xff] %v18971_v34  ;;  %v18974_v55 = vadd.f32 %v14619_v41, %v18745_v8  ;;  %v21834_v34 = vld [vmem:[#allocation43_spill] sm:$0xff]  ;;  %v21835_v8 = vld [vmem:[#allocation6_spill] sm:$0xff] }
 0x3d3   : > { %v18976_v33 = vpop.f32.mrf.mxu1  ;;  %v18978_v19 = vpop.f32.mrf.mxu0  ;;  %v4798_v41 = vadd.f32 %v21835_v8, %v21834_v34 }
 0x3d4   : > { %21829 = vst [vmem:[#allocation79_spill] sm:$0xff] %v18974_v55  ;;  %21830 = vst [vmem:[#allocation80_spill] sm:$0xff] %v18978_v19 }
 0x3d5   : > { %v14622_v28 = vpop.f32.mrf.mxu1  ;;  %v18980_v23 = vpop.f32.mrf.mxu0 }
 0x3d6   : > { %21831 = vst [vmem:[#allocation81_spill] sm:$0xff] %v18980_v23  ;;  %v18983_v27 = vadd.f32 %v14622_v28, %v18752_v63  ;;  %v5274_v23 = vadd.f32 %v18505_v9, %v4798_v41  ;;  %v5612_v9 = vadd.f32 %v18530_v24, %v18535_v61 }
 0x3d7   : > { %v18985_v53 = vpop.f32.mrf.mxu1  ;;  %v18987_v62 = vpop.f32.mrf.mxu0 }
 0x3d8   : > { %21832 = vst [vmem:[#allocation82_spill] sm:$0xff] %v18987_v62  ;;  %v4958_v62 = vadd.f32 %v18486_v18, %v18484_v50  ;;  %v5616_v50 = vadd.f32 %v18548_v22, %v18553_v60  ;;  %v5618_v18 = vadd.f32 %v18557_v14, %v18562_v20  ;;  %v5946_v60 = vadd.f32 %v18680_v36, %v5612_v9  ;;  %v21849_v9 = vld [vmem:[#allocation55_spill] sm:$0xff] }
 0x3d9   : > { %v14625_v37 = vpop.f32.mrf.mxu1  ;;  %v18989_v10 = vpop.f32.mrf.mxu0  ;;  %v5628_v20 = vadd.f32 %v18604_v54, %v18609_v51  ;;  %v21846_v54 = vld [vmem:[#allocation47_spill] sm:$0xff] }
 0x3da   : > { %21833 = vst [vmem:[#allocation83_spill] sm:$0xff] %v18989_v10  ;;  %v18994_v55 = vadd.f32 %v14625_v37, %v18759_v26  ;;  %v4968_v10 = vadd.f32 %v18497_v32, %v18495_v43  ;;  %v5608_v26 = vadd.f32 %v18507_v2, %v5274_v23  ;;  %v5610_v37 = vadd.f32 %v18517_v29, %v18522_v7 }
 0x3db   : > { %v18996_v19 = vpop.f32.mrf.mxu1  ;;  %v18999_v11 = vpop.f32.mrf.mxu0  ;;  %v5620_v43 = vadd.f32 %v18567_v56, %v18572_v42  ;;  %v5622_v32 = vadd.f32 %v18577_v31, %v18582_v21  ;;  %v5624_v29 = vadd.f32 %v18587_v48, %v18592_v6  ;;  %v5306_v7 = vadd.f32 %v18652_v30, %v4958_v62  ;;  %v21836_v56 = vld [vmem:[#allocation14_spill] sm:$0xff]  ;;  %v21837_v42 = vld [vmem:[#allocation11_spill] sm:$0xff]  ;;  %v21845_v62 = vld [vmem:[#allocation8_spill] sm:$0xff] }
 0x3dc   : > { %v5308_v24 = vadd.f32 %v18659_v40, %v4968_v10  ;;  %v5944_v22 = vadd.f32 %v18673_v13, %v5610_v37  ;;  %v5630_v31 = vadd.f32 %v21837_v42, %v21836_v56  ;;  %v21838_v48 = vld [vmem:[#allocation23_spill] sm:$0xff]  ;;  %v21842_v13 = vld [vmem:[#allocation13_spill] sm:$0xff]  ;;  %v21844_v10 = vld [vmem:[#allocation16_spill] sm:$0xff]  ;;  %v5638_v51 = vadd.f32 %v21846_v54, %v21845_v62 }
 0x3dd   : > { %v14628_v63 = vpop.f32.mrf.mxu1  ;;  %v19017_v8 = vpop.f32.mrf.mxu0  ;;  %v5950_v6 = vadd.f32 %v21838_v48, %v5616_v50  ;;  %v21851_v42 = vld [vmem:[#allocation73_spill] sm:$0xff] }
 0x3de   : > { %v19002_v28 = vadd.f32 %v14628_v63, %v18766_v38  ;;  %v5614_v38 = vadd.f32 %v18540_v39, %v18545_v25  ;;  %v5626_v39 = vadd.f32 %v18596_v1, %v18601_v46  ;;  %v5942_v25 = vadd.f32 %v18666_v0, %v5608_v26  ;;  %v21839_v1 = vld [vmem:[#allocation7_spill] sm:$0xff]  ;;  %v21840_v46 = vld [vmem:[#allocation30_spill] sm:$0xff]  ;;  %v21841_v0 = vld [vmem:[#allocation32_spill] sm:$0xff] }
 0x3df   : > { %v19008_v34 = vpop.f32.mrf.mxu1  ;;  %v19047_v40 = vpop.f32.mrf.mxu0  ;;  %v5632_v30 = vadd.f32 %v21840_v46, %v21839_v1  ;;  %v5634_v36 = vadd.f32 %v21842_v13, %v21841_v0  ;;  %v21847_v63 = vld [vmem:[#allocation15_spill] sm:$0xff]  ;;  %v6278_v48 = vadd.f32 %v21851_v42, %v5944_v22  ;;  %v21852_v1 = vld [vmem:[#allocation36_spill] sm:$0xff]  ;;  %v21853_v0 = vld [vmem:[#allocation9_spill] sm:$0xff] }
 0x3e0   : > { %v5948_v21 = vadd.f32 %v18687_v17, %v5614_v38  ;;  %v5640_v26 = vadd.f32 %v21847_v63, %v5306_v7  ;;  %v21848_v17 = vld [vmem:[#allocation18_spill] sm:$0xff]  ;;  %v5952_v38 = vadd.f32 %v21849_v9, %v5618_v18  ;;  %v6280_v46 = vadd.f32 %v21852_v1, %v5946_v60  ;;  %v21860_v22 = vld [vmem:[#allocation40_spill] sm:$0xff]  ;;  %v21864_v42 = vld [vmem:[#allocation21_spill] sm:$0xff] }
 0x3e1   : > { %v14631_v2 = vpop.f32.mrf.mxu1  ;;  %v5642_v37 = vadd.f32 %v21848_v17, %v5308_v24  ;;  %v5954_v13 = vadd.f32 %v21853_v0, %v5620_v43  ;;  %v21855_v7 = vld [vmem:[#allocation50_spill] sm:$0xff]  ;;  %v5960_v60 = vadd.f32 %v21860_v22, %v5626_v39  ;;  %v5966_v1 = vadd.f32 %v21864_v42, %v5632_v30  ;;  %v21865_v0 = vld [vmem:[#allocation41_spill] sm:$0xff]  ;;  %v21871_v42 = vld [vmem:[#allocation24_spill] sm:$0xff] }
 0x3e2   : > { %v19032_v61 = vadd.f32 %v14631_v2, %v18785_v59  ;;  %v21843_v59 = vld [vmem:[#allocation49_spill] sm:$0xff]  ;;  %v21850_v2 = vld [vmem:[#allocation34_spill] sm:$0xff]  ;;  %v6284_v54 = vadd.f32 %v21855_v7, %v5950_v6  ;;  %v5974_v22 = vadd.f32 %v18811_v5, %v5640_v26  ;;  %v6612_v5 = vadd.f32 %v18862_v4, %v6278_v48 }
 0x3e3   : > { %v19039_v14 = vpop.f32.mrf.mxu1  ;;  %v5636_v23 = vadd.f32 %v21844_v10, %v21843_v59  ;;  %v6276_v56 = vadd.f32 %v21850_v2, %v5942_v25  ;;  %v21854_v10 = vld [vmem:[#allocation52_spill] sm:$0xff]  ;;  %v21856_v24 = vld [vmem:[#allocation22_spill] sm:$0xff]  ;;  %v5976_v30 = vadd.f32 %v18836_v35, %v5642_v37  ;;  %v21873_v26 = vld [vmem:[#allocation25_spill] sm:$0xff] }
 0x3e4   : > { %v6282_v62 = vadd.f32 %v21854_v10, %v5948_v21  ;;  %v5956_v63 = vadd.f32 %v21856_v24, %v5622_v32  ;;  %v21857_v18 = vld [vmem:[#allocation78_spill] sm:$0xff]  ;;  %v21861_v21 = vld [vmem:[#allocation56_spill] sm:$0xff]  ;;  %v5968_v10 = vadd.f32 %v21865_v0, %v5634_v36  ;;  %v21866_v24 = vld [vmem:[#allocation17_spill] sm:$0xff] }
 0x3e5   : > { %v14634_v41 = vpop.f32.mrf.mxu1  ;;  %v5958_v17 = vadd.f32 %v21857_v18, %v5624_v29  ;;  %v19078_v25 = vld [vmem:[%s21586_s3 + $0x178] sm:$0xff]  ;;  %v5962_v6 = vadd.f32 %v21861_v21, %v5628_v20  ;;  %v21863_v29 = vld [vmem:[#allocation53_spill] sm:$0xff]  ;;  %v6288_v39 = vadd.f32 %v21866_v24, %v5954_v13  ;;  %v6610_v36 = vadd.f32 %v18853_v12, %v6276_v56  ;;  %v21872_v0 = vld [vmem:[#allocation59_spill] sm:$0xff] }
 0x3e6   : > { %v19061_v50 = vadd.f32 %v14634_v41, %v18801_v49  ;;  %v19073_v49 = vpop.f32.mrf.mxu0  ;;  %21858 = vst [vmem:[#allocation43_spill] sm:$0xff] %v19078_v25  ;;  %v19083_v43 = vld [vmem:[%s21586_s3 + $0x1f8] sm:$0xff]  ;;  %v21862_v41 = vld [vmem:[#allocation61_spill] sm:$0xff]  ;;  %14910 = vmatprep.subr.mxu0 %v19078_v25  ;;  %v6286_v2 = vadd.f32 %v21863_v29, %v5952_v38  ;;  %v21869_v38 = vld [vmem:[#allocation19_spill] sm:$0xff]  ;;  %v6300_v24 = vadd.f32 %v21873_v26, %v5966_v1 }
 0x3e7   : > { %v19067_v59 = vpop.f32.mrf.mxu1  ;;  %21859 = vst [vmem:[#allocation6_spill] sm:$0xff] %v19083_v43  ;;  %v5964_v32 = vadd.f32 %v21862_v41, %v5630_v31  ;;  %14957 = vmatprep.subr.mxu1 %v19083_v43  ;;  %v21867_v18 = vld [vmem:[#allocation62_spill] sm:$0xff]  ;;  %v5972_v31 = vadd.f32 %v18804_v16, %v5638_v51  ;;  %v6292_v29 = vadd.f32 %v21869_v38, %v5958_v17  ;;  %v21875_v12 = vld [vmem:[#allocation63_spill] sm:$0xff] }
 0x3e8   : > { %v5970_v20 = vadd.f32 %v21867_v18, %v5636_v23  ;;  %v21868_v41 = vld [vmem:[#allocation38_spill] sm:$0xff]  ;;  %v6296_v23 = vadd.f32 %v21871_v42, %v5962_v6  ;;  %v6614_v17 = vadd.f32 %v18889_v45, %v6280_v46  ;;  %v21877_v6 = vld [vmem:[#allocation65_spill] sm:$0xff]  ;;  %v6616_v4 = vadd.f32 %v18904_v3, %v6282_v62  ;;  %v21880_v45 = vld [vmem:[#allocation44_spill] sm:$0xff] }
 0x3e9   : > { %v14637_v9 = vpop.f32.mrf.mxu1  ;;  %v6290_v43 = vadd.f32 %v21868_v41, %v5956_v63  ;;  %v6298_v16 = vadd.f32 %v21872_v0, %v5964_v32  ;;  %v21874_v63 = vld [vmem:[#allocation42_spill] sm:$0xff]  ;;  %v19123_v41 = vadd.f32 %v21877_v6, %v5974_v22  ;;  %v21883_v42 = vld [vmem:[#allocation68_spill] sm:$0xff]  ;;  %v21884_v0 = vld [vmem:[#allocation69_spill] sm:$0xff] }
 0x3ea   : > { %v19094_v7 = vadd.f32 %v14637_v9, %v18808_v58  ;;  %v19106_v58 = vpop.f32.mrf.mxu0  ;;  %v21870_v9 = vld [vmem:[#allocation58_spill] sm:$0xff]  ;;  %v6302_v18 = vadd.f32 %v21874_v63, %v5968_v10  ;;  %v6304_v37 = vadd.f32 %v21875_v12, %v5970_v20  ;;  %v21879_v10 = vld [vmem:[#allocation67_spill] sm:$0xff]  ;;  %v6618_v20 = vadd.f32 %v18913_v15, %v6284_v54  ;;  %v21885_v3 = vld [vmem:[#allocation76_spill] sm:$0xff] }
 0x3eb   : > { %v19100_v21 = vpop.f32.mrf.mxu1  ;;  %v6294_v13 = vadd.f32 %v21870_v9, %v5960_v60  ;;  %v21876_v56 = vld [vmem:[#allocation66_spill] sm:$0xff]  ;;  %v6945_v46 = vadd.f32 %v21880_v45, %v21879_v10  ;;  %v6620_v62 = vadd.f32 %v21885_v3, %v6286_v2  ;;  %v21886_v63 = vld [vmem:[#allocation33_spill] sm:$0xff]  ;;  %v21887_v12 = vld [vmem:[#allocation31_spill] sm:$0xff]  ;;  %v6624_v15 = vadd.f32 %v18958_v52, %v6290_v43 }
 0x3ec   : > { %v19120_v60 = vadd.f32 %v21876_v56, %v5972_v31  ;;  %v21878_v32 = vld [vmem:[#allocation26_spill] sm:$0xff]  ;;  %v19135_v9 = vpop.f32.mrf.mxu0  ;;  %v19146_v56 = vadd.f32 %v21887_v12, %v21886_v63  ;;  %v21889_v54 = vld [vmem:[#allocation29_spill] sm:$0xff]  ;;  %v21892_v45 = vld [vmem:[#allocation71_spill] sm:$0xff] }
 0x3ed   : > { %v14640_v51 = vpop.f32.mrf.mxu1  ;;  %v19129_v1 = vadd.f32 %v21878_v32, %v5976_v30  ;;  %v21882_v31 = vld [vmem:[#allocation70_spill] sm:$0xff]  ;;  %v6622_v30 = vadd.f32 %v18949_v47, %v6288_v39  ;;  %v19155_v10 = vld [vmem:[#allocation3 + $0x2] sm:$0xff]  ;;  %v21896_v43 = vld [vmem:[#allocation75_spill] sm:$0xff] }
 0x3ee   : > { %v19116_v35 = vadd.f32 %v14640_v51, %v18815_v57  ;;  %v21881_v57 = vld [vmem:[#allocation46_spill] sm:$0xff]  ;;  %v6947_v22 = vadd.f32 %v21883_v42, %v21882_v31  ;;  %v19140_v51 = vadd.f32 %v21884_v0, %v6612_v5  ;;  %21890 = vst [vmem:[#allocation14_spill] sm:$0xff] %v19155_v10  ;;  %v21891_v5 = vld [vmem:[#allocation51_spill] sm:$0xff]  ;;  %v21893_v47 = vld [vmem:[#allocation72_spill] sm:$0xff]  ;;  %v6628_v31 = vadd.f32 %v18976_v33, %v6294_v13 }
 0x3ef   : > { %v19126_v48 = vpop.f32.mrf.mxu1  ;;  %v6944_v38 = vadd.f32 %v21881_v57, %v6610_v36  ;;  %v21888_v36 = vld [vmem:[#allocation48_spill] sm:$0xff]  ;;  %v19159_v2 = vadd.f32 %v21892_v45, %v21891_v5  ;;  %v19162_v39 = vadd.f32 %v21893_v47, %v6616_v4  ;;  %v6626_v57 = vadd.f32 %v18967_v44, %v6292_v29  ;;  %v21895_v52 = vld [vmem:[#allocation74_spill] sm:$0xff]  ;;  %v21897_v3 = vld [vmem:[#allocation35_spill] sm:$0xff]  ;;  %v6905_v44 = vpop.f32.mrf.mxu0 }
 0x3f0   : > { %v19149_v6 = vadd.f32 %v21888_v36, %v6614_v17  ;;  %v21894_v42 = vld [vmem:[#allocation20_spill] sm:$0xff]  ;;  %v19171_v0 = vadd.f32 %v21896_v43, %v21895_v52  ;;  %v21898_v63 = vld [vmem:[#allocation54_spill] sm:$0xff]  ;;  %v21899_v12 = vld [vmem:[#allocation37_spill] sm:$0xff]  ;;  %v6630_v4 = vadd.f32 %v18985_v53, %v6296_v23 }
 0x3f1   : > { %v14643_v26 = vpop.f32.mrf.mxu1  ;;  %9372 = vst [vmem:[#allocation3] sm:$0x7f] %v21894_v42  ;;  %v19178_v36 = vadd.f32 %v21899_v12, %v21898_v63  ;;  %v21900_v29 = vld [vmem:[#allocation57_spill] sm:$0xff]  ;;  %v21901_v13 = vld [vmem:[#allocation39_spill] sm:$0xff]  ;;  %v21903_v45 = vld [vmem:[#allocation60_spill] sm:$0xff] }
 0x3f2   : > { %v19153_v32 = vadd.f32 %v14643_v26, %v21889_v54  ;;  %v19174_v26 = vadd.f32 %v21897_v3, %v6618_v20  ;;  %v19182_v33 = vadd.f32 %v21900_v29, %v6620_v62  ;;  %v21902_v54 = vld [vmem:[#allocation77_spill] sm:$0xff]  ;;  %v19189_v47 = vadd.f32 %v21903_v45, %v6622_v30  ;;  %v19195_v52 = vld [vmem:[%s21587_s4] ss:$0 sm:$0xff]  ;;  %v21904_v53 = vld [vmem:[#allocation64_spill] sm:$0xff] }
 0x3f3   : > { %v19166_v17 = vpop.f32.mrf.mxu1  ;;  %v19186_v5 = vadd.f32 %v21902_v54, %v21901_v13  ;;  %v6632_v20 = vadd.f32 %v18996_v19, %v6298_v16  ;;  %v21905_v23 = vld [vmem:[#allocation28_spill] sm:$0xff]  ;;  %v21906_v62 = vld [vmem:[#allocation27_spill] sm:$0xff]  ;;  %v21907_v63 = vld [vmem:[#allocation10_spill] sm:$0xff] }
 0x3f4   : > { %v19199_v43 = vadd.f32 %v21905_v23, %v21904_v53  ;;  %v19202_v3 = vadd.f32 %v21906_v62, %v6624_v15  ;;  %v21908_v12 = vld [vmem:[#allocation5_spill] sm:$0xff]  ;;  %v21909_v19 = vld [vmem:[#allocation12_spill] sm:$0xff]  ;;  %v21910_v13 = vld [vmem:[#allocation79_spill] sm:$0xff]  ;;  %v6634_v53 = vadd.f32 %v19008_v34, %v6300_v24  ;;  %v6636_v34 = vadd.f32 %v19039_v14, %v6302_v18 }
 0x3f5   : > { %v14764_v42 = vpop.f32.mrf.mxu1  ;;  %v19206_v29 = vadd.f32 %v21908_v12, %v21907_v63  ;;  %v19209_v16 = vadd.f32 %v21909_v19, %v6626_v57  ;;  %v21911_v54 = vld [vmem:[#allocation45_spill] sm:$0xff]  ;;  %v21912_v10 = vld [vmem:[#allocation80_spill] sm:$0xff]  ;;  %v21914_v63 = vld [vmem:[#allocation82_spill] sm:$0xff]  ;;  %v6638_v24 = vadd.f32 %v19067_v59, %v6304_v37  ;;  %v6640_v14 = vadd.f32 %v19100_v21, %v19120_v60 }
 0x3f6   : > { %v7279_v30 = vadd.f32 %v14764_v42, %v6945_v46  ;;  %v19213_v45 = vadd.f32 %v21911_v54, %v21910_v13  ;;  %v19216_v25 = vadd.f32 %v21912_v10, %v6628_v31  ;;  %v21913_v23 = vld [vmem:[#allocation81_spill] sm:$0xff]  ;;  %v19224_v46 = vadd.f32 %v21914_v63, %v6630_v4  ;;  %v14723_v42 = vpop.f32.mrf.mxu0  ;;  %v21915_v19 = vld [vmem:[#allocation83_spill] sm:$0xff] }
 0x3f7   : > { %v7099_v15 = vpop.f32.mrf.mxu1  ;;  %v19221_v62 = vadd.f32 %v21913_v23, %v18983_v27  ;;  %v19229_v13 = vadd.f32 %v21915_v19, %v18994_v55  ;;  %v19232_v10 = vadd.f32 %v18999_v11, %v6632_v20  ;;  %v19242_v55 = vadd.f32 %v19047_v40, %v6634_v53 }
 0x3f8   : > { %v7322_v57 = vadd.f32 %v19195_v52, %v7279_v30  ;;  %v7278_v12 = vadd.f32 %v7099_v15, %v6944_v38  ;;  %v19239_v38 = vadd.f32 %v19017_v8, %v19002_v28  ;;  %v19246_v11 = vadd.f32 %v19073_v49, %v19032_v61  ;;  %v6915_v18 = vpop.f32.mrf.mxu0 }
 0x3f9   : > { %v14767_v27 = vpop.f32.mrf.mxu1  ;;  %v19254_v28 = vadd.f32 %v19106_v58, %v6636_v34  ;;  %v19258_v8 = vadd.f32 %v19135_v9, %v19061_v50  ;;  %v19260_v61 = vadd.f32 %v6905_v44, %v6638_v24  ;;  %v19267_v53 = vadd.f32 %v14723_v42, %v19094_v7 }
 0x3fa   : > { %vm7358_vm9 = vcmp.ge.f32.partialorder %v7322_v57, 0.0  ;;  %v7394_v31 = vmul.f32 0.01, %v7322_v57  ;;  %v7321_v4 = vadd.f32 %v19195_v52, %v7278_v12  ;;  %v7281_v54 = vadd.f32 %v14767_v27, %v6947_v22 }
 0x3fb   : > { %v7109_v59 = vpop.f32.mrf.mxu1  ;;  %v19272_v44 = vadd.f32 %v6915_v18, %v6640_v14 }
 0x3fc   : > { %v19250_v37 = vsel %vm7358_vm9, %v7322_v57, %v7394_v31  ;;  %vm7357_vm10 = vcmp.ge.f32.partialorder %v7321_v4, 0.0  ;;  %v7393_v22 = vmul.f32 0.01, %v7321_v4  ;;  %v7324_v20 = vadd.f32 %v19195_v52, %v7281_v54 }
 0x3fd   : > { %v7280_v40 = vadd.f32 %v7109_v59, %v19140_v51  ;;  %v14770_v49 = vpop.f32.mrf.mxu1  ;;  %v7503_v58 = vrot.slane %v19250_v37, 1  ;;  %v14726_v51 = vpop.f32.mrf.mxu0 }
 0x3fe   : > { %v19263_v21 = vsel %vm7357_vm10, %v7321_v4, %v7393_v22  ;;  %vm7360_vm11 = vcmp.ge.f32.partialorder %v7324_v20, 0.0  ;;  %v7396_v60 = vmul.f32 0.01, %v7324_v20  ;;  %v7283_v30 = vadd.f32 %v14770_v49, %v19146_v56 }
 0x3ff   : > { %v7502_v15 = vrot.slane %v19263_v21, 1  ;;  %v7323_v50 = vadd.f32 %v19195_v52, %v7280_v40  ;;  %v7119_v9 = vpop.f32.mrf.mxu1  ;;  %v6642_v56 = vadd.f32 %v19126_v48, %v19123_v41  ;;  %v19285_v27 = vadd.f32 %v14726_v51, %v19116_v35  ;;  %v6925_v4 = vpop.f32.mrf.mxu0 }
 0x400   : > { %v7432_v23 = vsel %vm7360_vm11, %v7324_v20, %v7396_v60  ;;  %v7326_v63 = vadd.f32 %v19195_v52, %v7283_v30  ;;  %v7282_v57 = vadd.f32 %v7119_v9, %v19149_v6 }
 0x401   : > { %v19279_v7 = vsel %vm7501_vm8, %v7502_v15, %v7503_v58  ;;  %vm7359_vm12 = vcmp.ge.f32.partialorder %v7323_v50, 0.0  ;;  %v7395_v42 = vmul.f32 0.01, %v7323_v50  ;;  %v14773_v12 = vpop.f32.mrf.mxu1  ;;  %v7507_v6 = vrot.slane %v7432_v23, 1  ;;  %v14729_v49 = vpop.f32.mrf.mxu0 }
 0x402   : > { %v7609_v19 = vmax.f32 %v19263_v21, %v19279_v7  ;;  %vm7362_vm13 = vcmp.ge.f32.partialorder %v7326_v63, 0.0  ;;  %v7398_v34 = vmul.f32 0.01, %v7326_v63  ;;  %v7325_v24 = vadd.f32 %v19195_v52, %v7282_v57 }
 0x403   : > { %v7431_v31 = vsel %vm7359_vm12, %v7323_v50, %v7395_v42  ;;  %v7285_v41 = vadd.f32 %v14773_v12, %v19159_v2  ;;  %v7129_v48 = vpop.f32.mrf.mxu1  ;;  %v19290_v18 = vadd.f32 %v6925_v4, %v6642_v56  ;;  %v19307_v7 = vadd.f32 %v14729_v49, %v19153_v32 }
 0x404   : > { %v7505_v54 = vrot.slane %v7431_v31, 1  ;;  %v19288_v14 = vsel %vm7362_vm13, %v7326_v63, %v7398_v34  ;;  %vm7361_vm15 = vcmp.ge.f32.partialorder %v7325_v24, 0.0  ;;  %v7397_v59 = vmul.f32 0.01, %v7325_v24 }
 0x405   : > { %v7511_v22 = vrot.slane %v19288_v14, 1  ;;  %v7328_v20 = vadd.f32 %v19195_v52, %v7285_v41  ;;  %v7284_v35 = vadd.f32 %v7129_v48, %v19162_v39  ;;  %v14776_v40 = vpop.f32.mrf.mxu1 }
 0x406   : > { %v7506_v21 = vsel %vm7501_vm8, %v7503_v58, %v7505_v54  ;;  %v7508_v2 = vsel %vm7501_vm8, %v7505_v54, %v7507_v6  ;;  %v7433_v60 = vsel %vm7361_vm15, %v7325_v24, %v7397_v59  ;;  %v7287_v30 = vadd.f32 %v14776_v40, %v19171_v0 }
 0x407   : > { %v7610_v15 = vmax.f32 %v19250_v37, %v7506_v21  ;;  %v7611_v50 = vmax.f32 %v7431_v31, %v7508_v2  ;;  %v7509_v9 = vrot.slane %v7433_v60, 1  ;;  %vm7364_vm0 = vcmp.ge.f32.partialorder %v7328_v20, 0.0  ;;  %v7139_v51 = vpop.f32.mrf.mxu1 }
 0x408   : > { %v7400_v63 = vmul.f32 0.01, %v7328_v20  ;;  %v7327_v57 = vadd.f32 %v19195_v52, %v7284_v35  ;;  %v7330_v39 = vadd.f32 %v19195_v52, %v7287_v30  ;;  %v7286_v56 = vadd.f32 %v7139_v51, %v19174_v26 }
 0x409   : > { %v19304_v58 = vadd.f32 %v19166_v17, %v19129_v1  ;;  %v7510_v0 = vsel %vm7501_vm8, %v7507_v6, %v7509_v9  ;;  %v7512_v37 = vsel %vm7501_vm8, %v7509_v9, %v7511_v22  ;;  %v14779_v42 = vpop.f32.mrf.mxu1  ;;  %v7680_v31 = vrot.slane %v7611_v50, 2 }
 0x40a   : > { %v7612_v12 = vmax.f32 %v7432_v23, %v7510_v0  ;;  %v19311_v34 = vmax.f32 %v7433_v60, %v7512_v37  ;;  %v7436_v24 = vsel %vm7364_vm0, %v7328_v20, %v7400_v63  ;;  %vm7363_vm1 = vcmp.ge.f32.partialorder %v7327_v57, 0.0 }
 0x40b   : > { %v7399_v41 = vmul.f32 0.01, %v7327_v57  ;;  %vm7366_vm2 = vcmp.ge.f32.partialorder %v7330_v39, 0.0  ;;  %v7402_v26 = vmul.f32 0.01, %v7330_v39  ;;  %v7149_v48 = vpop.f32.mrf.mxu1  ;;  %v7329_v32 = vadd.f32 %v19195_v52, %v7286_v56 }
 0x40c   : > { %v7681_v1 = vrot.slane %v7612_v12, 2  ;;  %v7683_v17 = vrot.slane %v19311_v34, 2  ;;  %v7289_v6 = vadd.f32 %v14779_v42, %v19178_v36  ;;  %v7515_v4 = vrot.slane %v7436_v24, 1 }
 0x40d   : > { %v7435_v54 = vsel %vm7363_vm1, %v7327_v57, %v7399_v41  ;;  %v7438_v59 = vsel %vm7366_vm2, %v7330_v39, %v7402_v26  ;;  %v7288_v23 = vadd.f32 %v7149_v48, %v19182_v33  ;;  %v14782_v35 = vpop.f32.mrf.mxu1  ;;  %vm7365_vm3 = vcmp.ge.f32.partialorder %v7329_v32, 0.0 }
 0x40e   : > { %v7682_v20 = vsel %vm7679_vm14, %v7680_v31, %v7681_v1  ;;  %v7684_v40 = vsel %vm7679_vm14, %v7681_v1, %v7683_v17  ;;  %v7513_v49 = vrot.slane %v7435_v54, 1  ;;  %v7519_v21 = vrot.slane %v7438_v59, 1 }
 0x40f   : > { %v7781_v2 = vmax.f32 %v7609_v19, %v7682_v20  ;;  %v7782_v60 = vmax.f32 %v7610_v15, %v7684_v40  ;;  %v7401_v30 = vmul.f32 0.01, %v7329_v32  ;;  %v7159_v50 = vpop.f32.mrf.mxu1  ;;  %v7332_v51 = vadd.f32 %v19195_v52, %v7289_v6 }
 0x410   : > { %v7514_v9 = vsel %vm7501_vm8, %v7511_v22, %v7513_v49  ;;  %v7516_v36 = vsel %vm7501_vm8, %v7513_v49, %v7515_v4  ;;  %v7331_v33 = vadd.f32 %v19195_v52, %v7288_v23  ;;  %v7291_v19 = vadd.f32 %v14782_v35, %v19186_v5 }
 0x411   : > { %7815 = vst [vmem:[#allocation4] sm:$0xff] %v7781_v2  ;;  %7816 = vst [vmem:[#allocation4 + $0x8] sm:$0xff] %v7782_v60  ;;  %v7614_v63 = vmax.f32 %v19288_v14, %v7514_v9  ;;  %v19324_v57 = vmax.f32 %v7435_v54, %v7516_v36  ;;  %v7437_v39 = vsel %vm7365_vm3, %v7329_v32, %v7401_v30  ;;  %v14785_v15 = vpop.f32.mrf.mxu1  ;;  %vm7368_vm4 = vcmp.ge.f32.partialorder %v7332_v51, 0.0 }
 0x412   : > { %v7517_v56 = vrot.slane %v7437_v39, 1  ;;  %v7404_v0 = vmul.f32 0.01, %v7332_v51  ;;  %vm7367_vm5 = vcmp.ge.f32.partialorder %v7331_v33, 0.0  ;;  %v7403_v37 = vmul.f32 0.01, %v7331_v33 }
 0x413   : > { %v7687_v22 = vrot.slane %v19324_v57, 2  ;;  %v7334_v42 = vadd.f32 %v19195_v52, %v7291_v19  ;;  %v7290_v12 = vadd.f32 %v7159_v50, %v19189_v47  ;;  %v7169_v31 = vpop.f32.mrf.mxu1  ;;  %v7293_v5 = vadd.f32 %v14785_v15, %v19199_v43 }
 0x414   : > { %v7518_v14 = vsel %vm7501_vm8, %v7515_v4, %v7517_v56  ;;  %v7520_v41 = vsel %vm7501_vm8, %v7517_v56, %v7519_v21  ;;  %v7440_v26 = vsel %vm7368_vm4, %v7332_v51, %v7404_v0  ;;  %v7439_v32 = vsel %vm7367_vm5, %v7331_v33, %v7403_v37 }
 0x415   : > { %v7616_v48 = vmax.f32 %v7436_v24, %v7518_v14  ;;  %v19333_v1 = vmax.f32 %v7437_v39, %v7520_v41  ;;  %v7523_v17 = vrot.slane %v7440_v26, 1  ;;  %v14788_v6 = vpop.f32.mrf.mxu1  ;;  %v7521_v54 = vrot.slane %v7439_v32, 1 }
 0x416   : > { %vm7370_vm6 = vcmp.ge.f32.partialorder %v7334_v42, 0.0  ;;  %v7406_v23 = vmul.f32 0.01, %v7334_v42  ;;  %v7333_v35 = vadd.f32 %v19195_v52, %v7290_v12  ;;  %v7336_v4 = vadd.f32 %v19195_v52, %v7293_v5 }
 0x417   : > { %v7689_v47 = vrot.slane %v7616_v48, 2  ;;  %v7691_v20 = vrot.slane %v19333_v1, 2  ;;  %v7292_v40 = vadd.f32 %v7169_v31, %v19202_v3  ;;  %v7179_v49 = vpop.f32.mrf.mxu1  ;;  %v7522_v24 = vsel %vm7501_vm8, %v7519_v21, %v7521_v54 }
 0x418   : > { %v7851_v43 = vld [vmem:[#allocation4] ss:$2 sm:$0xff]  ;;  %v7524_v2 = vsel %vm7501_vm8, %v7521_v54, %v7523_v17  ;;  %v19341_v60 = vsel %vm7370_vm6, %v7334_v42, %v7406_v23  ;;  %vm7369_vm7 = vcmp.ge.f32.partialorder %v7333_v35, 0.0  ;;  %v19345_v9 = vmax.f32 %v7438_v59, %v7522_v24 }
 0x419   : > { %7852 = vst [vmem:[#allocation3 + $0xb] sm:$0xff] %v7851_v43  ;;  %v7690_v30 = vsel %vm7679_vm14, %v7687_v22, %v7689_v47  ;;  %v7692_v50 = vsel %vm7679_vm14, %v7689_v47, %v7691_v20  ;;  %v19347_v36 = vmax.f32 %v7439_v32, %v7524_v2  ;;  %v14791_v51 = vpop.f32.mrf.mxu1  ;;  %v7527_v21 = vrot.slane %v19341_v60, 1 }
 0x41a   : > { %v7785_v3 = vmax.f32 %v19311_v34, %v7690_v30  ;;  %v7786_v33 = vmax.f32 %v7614_v63, %v7692_v50  ;;  %v7405_v39 = vmul.f32 0.01, %v7333_v35  ;;  %v7693_v19 = vrot.slane %v19345_v9, 2 }
 0x41b   : > { %v7695_v15 = vrot.slane %v19347_v36, 2  ;;  %vm7372_vm9 = vcmp.ge.f32.partialorder %v7336_v4, 0.0  ;;  %v7408_v56 = vmul.f32 0.01, %v7336_v4  ;;  %v19353_v0 = vpop.f32.mrf.mxu1  ;;  %v7335_v22 = vadd.f32 %v19195_v52, %v7292_v40  ;;  %v11737_v40 = vld [vmem:[%s21586_s3 + $0x168] sm:$0xff] }
 0x41c   : > { %7819 = vst [vmem:[#allocation4 + $0x20] sm:$0xff] %v7785_v3  ;;  %7820 = vst [vmem:[#allocation4 + $0x28] sm:$0xff] %v7786_v33  ;;  %v7441_v59 = vsel %vm7369_vm7, %v7333_v35, %v7405_v39  ;;  %v7295_v34 = vadd.f32 %v14788_v6, %v19206_v29  ;;  %v7294_v63 = vadd.f32 %v7179_v49, %v19209_v16  ;;  %v21916_v3 = vld [vmem:[#allocation43_spill] sm:$0xff]  ;;  %v21917_v33 = vld [vmem:[#allocation6_spill] sm:$0xff] }
 0x41d   : > { %v7694_v37 = vsel %vm7679_vm14, %v7691_v20, %v7693_v19  ;;  %v7525_v42 = vrot.slane %v7441_v59, 1  ;;  %v19360_v12 = vsel %vm7372_vm9, %v7336_v4, %v7408_v56  ;;  %v7297_v31 = vadd.f32 %v14791_v51, %v19213_v45  ;;  %v19363_v14 = vpop.f32.mrf.mxu1  ;;  %v11738_v45 = vld [vmem:[%s21586_s3 + $0x170] sm:$0xff] }
 0x41e   : > { %v7787_v41 = vmax.f32 %v19324_v57, %v7694_v37  ;;  %v7531_v5 = vrot.slane %v19360_v12, 1  ;;  %vm7371_vm10 = vcmp.ge.f32.partialorder %v7335_v22, 0.0  ;;  %v7407_v48 = vmul.f32 0.01, %v7335_v22  ;;  %v11754_v57 = vld [vmem:[%s21586_s3 + $0x1f0] sm:$0xff]  ;;  %v19409_v37 = vld [vmem:[#allocation3 + $0x133] sm:$0xff] }
 0x41f   : > { %v7526_v32 = vsel %vm7501_vm8, %v7523_v17, %v7525_v42  ;;  %v7528_v29 = vsel %vm7501_vm8, %v7525_v42, %v7527_v21  ;;  %v7338_v16 = vadd.f32 %v19195_v52, %v7295_v34  ;;  %v7337_v6 = vadd.f32 %v19195_v52, %v7294_v63  ;;  %v19371_v54 = vpop.f32.mrf.mxu1  ;;  %v11753_v63 = vld [vmem:[%s21586_s3 + $0x1e8] sm:$0xff] }
 0x420   : > { %7821 = vst [vmem:[#allocation4 + $0x30] sm:$0xff] %v7787_v41  ;;  %v19379_v23 = vmax.f32 %v7440_v26, %v7526_v32  ;;  %v19381_v17 = vmax.f32 %v7441_v59, %v7528_v29  ;;  %v7443_v35 = vsel %vm7371_vm10, %v7335_v22, %v7407_v48  ;;  %v7340_v47 = vadd.f32 %v19195_v52, %v7297_v31  ;;  %v7911_v20 = vld [vmem:[#allocation3 + $0x9] sm:$0xff]  ;;  %v11736_v48 = vld [vmem:[%s21586_s3 + $0x160] sm:$0xff] }
 0x421   : > { %v7885_v4 = vld [vmem:[#allocation3 + $0x8] sm:$0xff]  ;;  %v7529_v43 = vrot.slane %v7443_v35, 1  ;;  %vm7374_vm11 = vcmp.ge.f32.partialorder %v7338_v16, 0.0  ;;  %v7410_v24 = vmul.f32 0.01, %v7338_v16  ;;  %vm7373_vm12 = vcmp.ge.f32.partialorder %v7337_v6, 0.0  ;;  %v19389_v2 = vpop.f32.mrf.mxu1  ;;  %14849 = vmatmul.mubr.f32.vlgmr.msra.gmra.mxu0 %v7911_v20 }
 0x422   : > { %v19387_v49 = vld [vmem:[#allocation3 + $0xa] sm:$0xff]  ;;  %14896 = vmatmul.mubr.f32.vlgmr.msra.gmra.mxu1 %v7885_v4  ;;  %v7697_v30 = vrot.slane %v19379_v23, 2  ;;  %v7699_v50 = vrot.slane %v19381_v17, 2  ;;  %v7409_v51 = vmul.f32 0.01, %v7337_v6  ;;  %vm7376_vm13 = vcmp.ge.f32.partialorder %v7340_v47, 0.0  ;;  %14911 = vmatpush3.msra.mxu0 %v21916_v3 }
 0x423   : > { %v19391_v26 = vld [vmem:[#allocation3 + $0xb] sm:$0xff]  ;;  %14958 = vmatpush3.msra.mxu1 %v21917_v33  ;;  %v7530_v19 = vsel %vm7501_vm8, %v7527_v21, %v7529_v43  ;;  %v7532_v56 = vsel %vm7501_vm8, %v7529_v43, %v7531_v5  ;;  %v19404_v59 = vsel %vm7374_vm11, %v7338_v16, %v7410_v24  ;;  %v7412_v22 = vmul.f32 0.01, %v7340_v47  ;;  %v7209_v34 = vpop.f32.mrf.mxu1  ;;  %14912 = vmatprep.subr.mxu0 %v11738_v45 }
 0x424   : > { %v19397_v39 = vld [vmem:[#allocation3 + $0xc] sm:$0xff]  ;;  %14959 = vmatprep.subr.mxu1 %v11754_v57  ;;  %v7698_v21 = vsel %vm7679_vm14, %v7695_v15, %v7697_v30  ;;  %v7700_v42 = vsel %vm7679_vm14, %v7697_v30, %v7699_v50  ;;  %v19415_v31 = vmax.f32 %v19341_v60, %v7530_v19  ;;  %v19417_v41 = vmax.f32 %v7443_v35, %v7532_v56  ;;  %v11752_v60 = vld [vmem:[%s21586_s3 + $0x1e0] sm:$0xff] }
 0x425   : > { %9375 = vst [vmem:[#allocation3 + $0xb] sm:$0x3] %v19409_v37  ;;  %14913 = vmatpush3.msra.mxu0 %v11738_v45  ;;  %v7789_v32 = vmax.f32 %v19333_v1, %v7698_v21  ;;  %v7790_v29 = vmax.f32 %v19345_v9, %v7700_v42  ;;  %v7535_v16 = vrot.slane %v19404_v59, 1  ;;  %v7445_v15 = vsel %vm7373_vm12, %v7337_v6, %v7409_v51  ;;  %v14800_v20 = vpop.f32.mrf.mxu1 }
 0x426   : > { %14960 = vmatpush3.msra.mxu1 %v11754_v57  ;;  %14914 = vmatprep.subr.mxu0 %v11737_v40  ;;  %v7701_v45 = vrot.slane %v19415_v31, 2  ;;  %v7703_v35 = vrot.slane %v19417_v41, 2  ;;  %v7533_v4 = vrot.slane %v7445_v15, 1  ;;  %v19432_v1 = vsel %vm7376_vm13, %v7340_v47, %v7412_v22 }
 0x427   : > { %14961 = vmatprep.subr.mxu1 %v11753_v63  ;;  %14915 = vmatpush3.msra.mxu0 %v11737_v40  ;;  %v7855_v9 = vld [vmem:[#allocation4 + $0x24] ss:$2 sm:$0xff]  ;;  %7824 = vst [vmem:[#allocation4 + $0x48] sm:$0xff] %v7790_v29  ;;  %7823 = vst [vmem:[#allocation4 + $0x40] sm:$0xff] %v7789_v32  ;;  %v7539_v6 = vrot.slane %v19432_v1, 1  ;;  %v7296_v57 = vadd.f32 %v19353_v0, %v19216_v25  ;;  %v7299_v43 = vadd.f32 %v19363_v14, %v19221_v62  ;;  %v19441_v30 = vpop.f32.mrf.mxu1 }
 0x428   : > { %v7298_v24 = vadd.f32 %v19371_v54, %v19224_v46  ;;  %14962 = vmatpush3.msra.mxu1 %v11753_v63  ;;  %14916 = vmatprep.subr.mxu0 %v11736_v48  ;;  %7856 = vst [vmem:[#allocation3 + $0x15] sm:$0xff] %v7855_v9  ;;  %v7702_v47 = vsel %vm7679_vm14, %v7699_v50, %v7701_v45  ;;  %v11735_v62 = vld [vmem:[%s21586_s3 + $0x158] sm:$0xff] }
 0x429   : > { %v7704_v40 = vsel %vm7679_vm14, %v7701_v45, %v7703_v35  ;;  %v7534_v51 = vsel %vm7501_vm8, %v7531_v5, %v7533_v4  ;;  %v7536_v25 = vsel %vm7501_vm8, %v7533_v4, %v7535_v16  ;;  %14963 = vmatprep.subr.mxu1 %v11752_v60  ;;  %v11751_v46 = vld [vmem:[%s21586_s3 + $0x1d8] sm:$0xff]  ;;  %v7791_v0 = vmax.f32 %v19347_v36, %v7702_v47  ;;  %v19464_v50 = vpop.f32.mrf.mxu1  ;;  %v11734_v36 = vld [vmem:[%s21586_s3 + $0x150] sm:$0xff]  ;;  %v11749_v45 = vld [vmem:[%s21586_s3 + $0x1c8] sm:$0xff] }
 0x42a   : > { %v7792_v14 = vmax.f32 %v19379_v23, %v7704_v40  ;;  %v19460_v54 = vmax.f32 %v19360_v12, %v7534_v51  ;;  %v19462_v5 = vmax.f32 %v7445_v15, %v7536_v25  ;;  %14917 = vmatpush3.msra.mxu0 %v11736_v48  ;;  %v7339_v3 = vadd.f32 %v19195_v52, %v7296_v57  ;;  %v11750_v12 = vld [vmem:[%s21586_s3 + $0x1d0] sm:$0xff]  ;;  %v11732_v25 = vld [vmem:[%s21586_s3 + $0x140] sm:$0xff] }
 0x42b   : > { %v7342_v33 = vadd.f32 %v19195_v52, %v7299_v43  ;;  %v7341_v19 = vadd.f32 %v19195_v52, %v7298_v24  ;;  %v7301_v56 = vadd.f32 %v19389_v2, %v19229_v13  ;;  %14964 = vmatpush3.msra.mxu1 %v11752_v60  ;;  %7825 = vst [vmem:[#allocation4 + $0x50] sm:$0xff] %v7791_v0  ;;  %v19481_v13 = vpop.f32.mrf.mxu1  ;;  %v11733_v2 = vld [vmem:[%s21586_s3 + $0x148] sm:$0xff] }
 0x42c   : > { %7826 = vst [vmem:[#allocation4 + $0x58] sm:$0xff] %v7792_v14  ;;  %v7705_v23 = vrot.slane %v19460_v54, 2  ;;  %v7707_v22 = vrot.slane %v19462_v5, 2  ;;  %v7300_v63 = vadd.f32 %v7209_v34, %v19232_v10  ;;  %v7303_v21 = vadd.f32 %v14800_v20, %v19239_v38  ;;  %14918 = vmatprep.subr.mxu0 %v11735_v62  ;;  %14965 = vmatprep.subr.mxu1 %v11751_v46 }
 0x42d   : > { %vm7375_vm15 = vcmp.ge.f32.partialorder %v7339_v3, 0.0  ;;  %v7411_v42 = vmul.f32 0.01, %v7339_v3  ;;  %vm7378_vm0 = vcmp.ge.f32.partialorder %v7342_v33, 0.0  ;;  %v7414_v48 = vmul.f32 0.01, %v7342_v33  ;;  %14919 = vmatpush3.msra.mxu0 %v11735_v62  ;;  %14966 = vmatpush3.msra.mxu1 %v11751_v46  ;;  %v19490_v34 = vpop.f32.mrf.mxu1 }
 0x42e   : > { %v7706_v32 = vsel %vm7679_vm14, %v7703_v35, %v7705_v23  ;;  %v7708_v10 = vsel %vm7679_vm14, %v7705_v23, %v7707_v22  ;;  %vm7377_vm1 = vcmp.ge.f32.partialorder %v7341_v19, 0.0  ;;  %v7413_v38 = vmul.f32 0.01, %v7341_v19  ;;  %14920 = vmatprep.subr.mxu0 %v11734_v36  ;;  %14967 = vmatprep.subr.mxu1 %v11750_v12  ;;  %v11748_v62 = vld [vmem:[%s21586_s3 + $0x1c0] sm:$0xff] }
 0x42f   : > { %v7793_v29 = vmax.f32 %v19381_v17, %v7706_v32  ;;  %v7794_v15 = vmax.f32 %v19415_v31, %v7708_v10  ;;  %v7447_v20 = vsel %vm7375_vm15, %v7339_v3, %v7411_v42  ;;  %v19494_v60 = vsel %vm7378_vm0, %v7342_v33, %v7414_v48  ;;  %14921 = vmatpush3.msra.mxu0 %v11734_v36  ;;  %v7912_v43 = vld [vmem:[#allocation3 + $0x11] sm:$0xff]  ;;  %v19520_v0 = vpop.f32.mrf.mxu1 }
 0x430   : > { %v7537_v35 = vrot.slane %v7447_v20, 1  ;;  %v7543_v4 = vrot.slane %v19494_v60, 1  ;;  %v7449_v9 = vsel %vm7377_vm1, %v7341_v19, %v7413_v38  ;;  %v7344_v57 = vadd.f32 %v19195_v52, %v7301_v56  ;;  %v7886_v24 = vld [vmem:[#allocation3 + $0x10] sm:$0xff]  ;;  %14968 = vmatpush3.msra.mxu1 %v11750_v12  ;;  %14922 = vmatprep.subr.mxu0 %v11733_v2  ;;  %v11746_v38 = vld [vmem:[%s21586_s3 + $0x1b0] sm:$0xff] }
 0x431   : > { %v19501_v17 = vld [vmem:[#allocation3 + $0x12] sm:$0xff]  ;;  %7827 = vst [vmem:[#allocation4 + $0x60] sm:$0xff] %v7793_v29  ;;  %7828 = vst [vmem:[#allocation4 + $0x68] sm:$0xff] %v7794_v15  ;;  %v7541_v31 = vrot.slane %v7449_v9, 1  ;;  %v7343_v47 = vadd.f32 %v19195_v52, %v7300_v63  ;;  %v7346_v40 = vadd.f32 %v19195_v52, %v7303_v21  ;;  %v7302_v51 = vadd.f32 %v19441_v30, %v19242_v55  ;;  %v19552_v10 = vpop.f32.mrf.mxu1 }
 0x432   : > { %14851 = vmatprep.mubr.f32.mxu0 %v7912_v43  ;;  %14898 = vmatprep.mubr.f32.mxu1 %v7886_v24  ;;  %9379 = vst [vmem:[#allocation3 + $0x11] sm:$0x3] %v19409_v37  ;;  %v7538_v46 = vsel %vm7501_vm8, %v7535_v16, %v7537_v35  ;;  %v7540_v55 = vsel %vm7501_vm8, %v7537_v35, %v7539_v6  ;;  %vm7380_vm2 = vcmp.ge.f32.partialorder %v7344_v57, 0.0  ;;  %v7416_v30 = vmul.f32 0.01, %v7344_v57  ;;  %v11731_v56 = vld [vmem:[%s21586_s3 + $0x138] sm:$0xff] }
 0x433   : > { %14969 = vmatprep.subr.mxu1 %v11749_v45  ;;  %14923 = vmatpush3.msra.mxu0 %v11733_v2  ;;  %v7859_v14 = vld [vmem:[#allocation4 + $0x48] ss:$2 sm:$0xff]  ;;  %v7626_v3 = vmax.f32 %v19404_v59, %v7538_v46  ;;  %v19523_v33 = vmax.f32 %v7447_v20, %v7540_v55  ;;  %v7542_v19 = vsel %vm7501_vm8, %v7539_v6, %v7541_v31  ;;  %vm7379_vm3 = vcmp.ge.f32.partialorder %v7343_v47, 0.0  ;;  %v19586_v46 = vpop.f32.mrf.mxu1 }
 0x434   : > { %v7544_v16 = vsel %vm7501_vm8, %v7541_v31, %v7543_v4  ;;  %14970 = vmatpush3.msra.mxu1 %v11749_v45  ;;  %v11747_v36 = vld [vmem:[%s21586_s3 + $0x1b8] sm:$0xff]  ;;  %7860 = vst [vmem:[#allocation3 + $0x1f] sm:$0xff] %v7859_v14  ;;  %v19538_v59 = vmax.f32 %v19432_v1, %v7542_v19  ;;  %v19543_v6 = vsel %vm7380_vm2, %v7344_v57, %v7416_v30  ;;  %v7415_v2 = vmul.f32 0.01, %v7343_v47  ;;  %v11730_v1 = vld [vmem:[%s21586_s3 + $0x130] sm:$0xff] }
 0x435   : > { %v19540_v12 = vmax.f32 %v7449_v9, %v7544_v16  ;;  %14924 = vmatprep.subr.mxu0 %v11732_v25  ;;  %14971 = vmatprep.subr.mxu1 %v11748_v62  ;;  %v7709_v23 = vrot.slane %v7626_v3, 2  ;;  %v7711_v63 = vrot.slane %v19523_v33, 2  ;;  %v7547_v21 = vrot.slane %v19543_v6, 1  ;;  %v19588_v55 = vld [vmem:[#allocation3 + $0x15] sm:$0xff] }
 0x436   : > { %14925 = vmatpush3.msra.mxu0 %v11732_v25  ;;  %14972 = vmatpush3.msra.mxu1 %v11748_v62  ;;  %v7713_v42 = vrot.slane %v19538_v59, 2  ;;  %vm7382_vm4 = vcmp.ge.f32.partialorder %v7346_v40, 0.0  ;;  %v7418_v32 = vmul.f32 0.01, %v7346_v40  ;;  %v7451_v20 = vsel %vm7379_vm3, %v7343_v47, %v7415_v2  ;;  %v19581_v25 = vld [vmem:[#allocation3 + $0x14] sm:$0xff] }
 0x437   : > { %v7715_v48 = vrot.slane %v19540_v12, 2  ;;  %14926 = vmatprep.subr.mxu0 %v11731_v56  ;;  %14973 = vmatprep.subr.mxu1 %v11747_v36  ;;  %v7710_v29 = vsel %vm7679_vm14, %v7707_v22, %v7709_v23  ;;  %v7712_v15 = vsel %vm7679_vm14, %v7709_v23, %v7711_v63  ;;  %v7345_v45 = vadd.f32 %v19195_v52, %v7302_v51  ;;  %v11729_v22 = vld [vmem:[%s21586_s3 + $0x128] sm:$0xff]  ;;  %v19590_v30 = vld [vmem:[#allocation3 + $0x16] sm:$0xff] }
 0x438   : > { %14927 = vmatpush3.msra.mxu0 %v11731_v56  ;;  %v7795_v35 = vmax.f32 %v19417_v41, %v7710_v29  ;;  %v7796_v9 = vmax.f32 %v19460_v54, %v7712_v15  ;;  %v7714_v57 = vsel %vm7679_vm14, %v7711_v63, %v7713_v42  ;;  %14974 = vmatpush3.msra.mxu1 %v11747_v36  ;;  %v7545_v47 = vrot.slane %v7451_v20, 1  ;;  %v11745_v41 = vld [vmem:[%s21586_s3 + $0x1a8] sm:$0xff]  ;;  %v19579_v54 = vld [vmem:[#allocation3 + $0x13] sm:$0xff] }
 0x439   : > { %v7716_v43 = vsel %vm7679_vm14, %v7713_v42, %v7715_v48  ;;  %v7797_v24 = vmax.f32 %v19462_v5, %v7714_v57  ;;  %v19574_v51 = vsel %vm7382_vm4, %v7346_v40, %v7418_v32  ;;  %14928 = vmatprep.subr.mxu0 %v11730_v1  ;;  %14975 = vmatprep.subr.mxu1 %v11746_v38  ;;  %vm7381_vm5 = vcmp.ge.f32.partialorder %v7345_v45, 0.0 }
 0x43a   : > { %v7798_v31 = vmax.f32 %v7626_v3, %v7716_v43  ;;  %7829 = vst [vmem:[#allocation4 + $0x70] sm:$0xff] %v7795_v35  ;;  %7830 = vst [vmem:[#allocation4 + $0x78] sm:$0xff] %v7796_v9  ;;  %v7551_v62 = vrot.slane %v19574_v51, 1  ;;  %v7417_v5 = vmul.f32 0.01, %v7345_v45  ;;  %v7305_v40 = vadd.f32 %v19464_v50, %v19246_v11  ;;  %14929 = vmatpush3.msra.mxu0 %v11730_v1 }
 0x43b   : > { %14976 = vmatpush3.msra.mxu1 %v11746_v38  ;;  %7831 = vst [vmem:[#allocation4 + $0x80] sm:$0xff] %v7797_v24  ;;  %v7546_v14 = vsel %vm7501_vm8, %v7543_v4, %v7545_v47  ;;  %v7548_v3 = vsel %vm7501_vm8, %v7545_v47, %v7547_v21  ;;  %v7304_v11 = vadd.f32 %v19481_v13, %v19254_v28  ;;  %v7913_v19 = vld [vmem:[#allocation3 + $0x19] sm:$0xff]  ;;  %v7914_v56 = vld [vmem:[#allocation3 + $0x21] sm:$0xff]  ;;  %v19621_v38 = vpop.f32.mrf.mxu1  ;;  %vm15963_vm2 = vmmov 0  }
 0x43c   : > { %7832 = vst [vmem:[#allocation4 + $0x88] sm:$0xff] %v7798_v31  ;;  %v7307_v50 = vadd.f32 %v19490_v34, %v19258_v8  ;;  %v7887_v16 = vld [vmem:[#allocation3 + $0x18] sm:$0xff]  ;;  %14930 = vmatprep.subr.mxu0 %v11729_v22  ;;  %v19603_v36 = vmax.f32 %v19494_v60, %v7546_v14  ;;  %v19605_v23 = vmax.f32 %v7451_v20, %v7548_v3  ;;  %v7888_v2 = vld [vmem:[#allocation3 + $0x20] sm:$0xff]  ;;  %v11743_v20 = vld [vmem:[%s21586_s3 + $0x198] sm:$0xff] }
 0x43d   : > { %v7453_v4 = vsel %vm7381_vm5, %v7345_v45, %v7417_v5  ;;  %v7348_v63 = vadd.f32 %v19195_v52, %v7305_v40  ;;  %14852 = vmatmul.mubr.f32.gmra.mxu0 %v7913_v19  ;;  %9383 = vst [vmem:[#allocation3 + $0x17] sm:$0x3] %v19409_v37  ;;  %v7347_v8 = vadd.f32 %v19195_v52, %v7304_v11  ;;  %v11728_v60 = vld [vmem:[%s21586_s3 + $0x120] sm:$0xff]  ;;  %v11727_v40 = vld [vmem:[%s21586_s3 + $0x118] sm:$0xff]  ;;  %v19667_v11 = vpop.f32.mrf.mxu1 }
 0x43e   : > { %v7549_v28 = vrot.slane %v7453_v4, 1  ;;  %v19612_v13 = vadd.f32 %v19195_v52, %v7307_v50  ;;  %v7306_v34 = vadd.f32 %v19520_v0, %v19260_v61  ;;  %14899 = vmatmul.mubr.f32.gmra.mxu1 %v7887_v16  ;;  %14854 = vmatprep.mubr.f32.mxu0 %v7914_v56  ;;  %v7717_v1 = vrot.slane %v19603_v36, 2  ;;  %v11744_v61 = vld [vmem:[%s21586_s3 + $0x1a0] sm:$0xff]  ;;  %v11726_v56 = vld [vmem:[%s21586_s3 + $0x110] sm:$0xff] }
 0x43f   : > { %v7719_v42 = vrot.slane %v19605_v23, 2  ;;  %vm7384_vm6 = vcmp.ge.f32.partialorder %v7348_v63, 0.0  ;;  %v7420_v32 = vmul.f32 0.01, %v7348_v63  ;;  %14901 = vmatprep.mubr.f32.mxu1 %v7888_v2  ;;  %14977 = vmatprep.subr.mxu1 %v11745_v41  ;;  %vm7383_vm7 = vcmp.ge.f32.partialorder %v7347_v8, 0.0  ;;  %v19635_v45 = vld [vmem:[#allocation3 + $0x1a] sm:$0xff] }
 0x440   : > { %v7550_v0 = vsel %vm7501_vm8, %v7547_v21, %v7549_v28  ;;  %v7552_v29 = vsel %vm7501_vm8, %v7549_v28, %v7551_v62  ;;  %v7419_v15 = vmul.f32 0.01, %v7347_v8  ;;  %14931 = vmatpush3.msra.mxu0 %v11729_v22  ;;  %14978 = vmatpush3.msra.mxu1 %v11745_v41  ;;  %v19637_v35 = vld [vmem:[#allocation3 + $0x1b] sm:$0xff]  ;;  %v7718_v21 = vsel %vm7679_vm14, %v7715_v48, %v7717_v1 }
 0x441   : > { %v7720_v9 = vsel %vm7679_vm14, %v7717_v1, %v7719_v42  ;;  %v19644_v57 = vmax.f32 %v19543_v6, %v7550_v0  ;;  %v19646_v43 = vmax.f32 %v7453_v4, %v7552_v29  ;;  %14932 = vmatprep.subr.mxu0 %v11728_v60  ;;  %v19648_v22 = vld [vmem:[#allocation3 + $0x1c] sm:$0xff]  ;;  %v7799_v41 = vmax.f32 %v19523_v33, %v7718_v21 }
 0x442   : > { %v19650_v24 = vld [vmem:[#allocation3 + $0x1d] sm:$0xff]  ;;  %v7800_v5 = vmax.f32 %v19538_v59, %v7720_v9  ;;  %v19657_v48 = vsel %vm7384_vm6, %v7348_v63, %v7420_v32  ;;  %v7455_v6 = vsel %vm7383_vm7, %v7347_v8, %v7419_v15  ;;  %14979 = vmatprep.subr.mxu1 %v11744_v61  ;;  %vm7386_vm9 = vcmp.ge.f32.partialorder %v19612_v13, 0.0  ;;  %14933 = vmatpush3.msra.mxu0 %v11728_v60  ;;  %v6935_v32 = vpop.f32.mrf.mxu0 }
 0x443   : > { %v19652_v31 = vld [vmem:[#allocation3 + $0x1e] sm:$0xff]  ;;  %v7721_v14 = vrot.slane %v19644_v57, 2  ;;  %v7723_v3 = vrot.slane %v19646_v43, 2  ;;  %v7555_v33 = vrot.slane %v19657_v48, 1  ;;  %v7553_v59 = vrot.slane %v7455_v6, 1  ;;  %14980 = vmatpush3.msra.mxu1 %v11744_v61  ;;  %7833 = vst [vmem:[#allocation4 + $0x90] sm:$0xff] %v7799_v41  ;;  %14934 = vmatprep.subr.mxu0 %v11727_v40 }
 0x444   : > { %v7863_v47 = vld [vmem:[#allocation4 + $0x6c] ss:$2 sm:$0xff]  ;;  %9387 = vst [vmem:[#allocation3 + $0x1d] sm:$0x3] %v19409_v37  ;;  %7834 = vst [vmem:[#allocation4 + $0x98] sm:$0xff] %v7800_v5  ;;  %v7349_v19 = vadd.f32 %v19195_v52, %v7306_v34  ;;  %v7309_v16 = vadd.f32 %v19552_v10, %v19267_v53  ;;  %14981 = vmatprep.subr.mxu1 %v11743_v20  ;;  %v11742_v53 = vld [vmem:[%s21586_s3 + $0x190] sm:$0xff]  ;;  %14935 = vmatpush3.msra.mxu0 %v11727_v40 }
 0x445   : > { %7864 = vst [vmem:[#allocation3 + $0x29] sm:$0xff] %v7863_v47  ;;  %14855 = vmatmul.mubr.f32.gmra.mxu0 %v7863_v47  ;;  %v7422_v50 = vmul.f32 0.01, %v19612_v13  ;;  %v7722_v4 = vsel %vm7679_vm14, %v7719_v42, %v7721_v14  ;;  %v7724_v63 = vsel %vm7679_vm14, %v7721_v14, %v7723_v3  ;;  %v7554_v2 = vsel %vm7501_vm8, %v7551_v62, %v7553_v59  ;;  %v11725_v62 = vld [vmem:[%s21586_s3 + $0x108] sm:$0xff]  ;;  %v11724_v21 = vld [vmem:[%s21586_s3 + $0x100] sm:$0xff] }
 0x446   : > { %v7556_v28 = vsel %vm7501_vm8, %v7553_v59, %v7555_v33  ;;  %v7801_v10 = vmax.f32 %v19540_v12, %v7722_v4  ;;  %v7802_v8 = vmax.f32 %v19603_v36, %v7724_v63  ;;  %v19691_v34 = vmax.f32 %v19574_v51, %v7554_v2  ;;  %v14815_v36 = vpop.f32.mrf.mxu1  ;;  %14982 = vmatpush3.msra.mxu1 %v11743_v20  ;;  %v11741_v51 = vld [vmem:[%s21586_s3 + $0x188] sm:$0xff]  ;;  %v15950_v47 = vld [vmem:[%s21587_s4] ss:$0 sm:$0xff] }
 0x447   : > { %v19693_v60 = vmax.f32 %v7455_v6, %v7556_v28  ;;  %v19701_v1 = vsel %vm7386_vm9, %v19612_v13, %v7422_v50  ;;  %vm7385_vm10 = vcmp.ge.f32.partialorder %v7349_v19, 0.0  ;;  %v7421_v42 = vmul.f32 0.01, %v7349_v19  ;;  %14936 = vmatprep.subr.mxu0 %v11726_v56  ;;  %14983 = vmatprep.subr.mxu1 %v11742_v53 }
 0x448   : > { %v7352_v12 = vadd.f32 %v19195_v52, %v7309_v16  ;;  %7835 = vst [vmem:[#allocation4 + $0xa0] sm:$0xff] %v7801_v10  ;;  %7836 = vst [vmem:[#allocation4 + $0xa8] sm:$0xff] %v7802_v8  ;;  %v7725_v61 = vrot.slane %v19691_v34, 2  ;;  %v7559_v13 = vrot.slane %v19701_v1, 1  ;;  %v7308_v29 = vadd.f32 %v19586_v46, %v19272_v44  ;;  %14937 = vmatpush3.msra.mxu0 %v11726_v56  ;;  %v7269_v50 = vpop.f32.mrf.mxu1 }
 0x449   : > { %v7727_v0 = vrot.slane %v19693_v60, 2  ;;  %v7457_v52 = vsel %vm7385_vm10, %v7349_v19, %v7421_v42  ;;  %v7311_v20 = vadd.f32 %v19621_v38, %v19285_v27  ;;  %14984 = vmatpush3.msra.mxu1 %v11742_v53  ;;  %14938 = vmatprep.subr.mxu0 %v11725_v62  ;;  %v11740_v27 = vld [vmem:[%s21586_s3 + $0x180] sm:$0xff]  ;;  %v19731_v38 = vld [vmem:[%s21586_s3 + $0x278] sm:$0xff]  ;;  %v6978_v6 = vadd.f32 %v6935_v32, %v19304_v58 }
 0x44a   : > { %vm7388_vm11 = vcmp.ge.f32.partialorder %v7352_v12, 0.0  ;;  %v7424_v15 = vmul.f32 0.01, %v7352_v12  ;;  %v7726_v9 = vsel %vm7679_vm14, %v7723_v3, %v7725_v61  ;;  %v7557_v46 = vrot.slane %v7457_v52, 1  ;;  %14985 = vmatprep.subr.mxu1 %v11741_v51  ;;  %14939 = vmatpush3.msra.mxu0 %v11725_v62 }
 0x44b   : > { %v7728_v44 = vsel %vm7679_vm14, %v7725_v61, %v7727_v0  ;;  %v7351_v41 = vadd.f32 %v15950_v47, %v7308_v29  ;;  %v19734_v40 = vld [vmem:[#allocation4 + $0x90] ss:$2 sm:$0xff]  ;;  %v7803_v14 = vmax.f32 %v19605_v23, %v7726_v9  ;;  %v7354_v59 = vadd.f32 %v15950_v47, %v7311_v20  ;;  %14986 = vmatpush3.msra.mxu1 %v11741_v51 }
 0x44c   : > { %v7889_v5 = vld [vmem:[#allocation3 + $0x28] sm:$0xff]  ;;  %v7804_v3 = vmax.f32 %v19644_v57, %v7728_v44  ;;  %7868 = vst [vmem:[#allocation3 + $0x33] sm:$0xff] %v19734_v40  ;;  %v7558_v56 = vsel %vm7501_vm8, %v7555_v33, %v7557_v46  ;;  %v7560_v58 = vsel %vm7501_vm8, %v7557_v46, %v7559_v13  ;;  %v19750_v23 = vsel %vm7388_vm11, %v7352_v12, %v7424_v15  ;;  %v19755_v57 = vld [vmem:[%s21586_s3 + $0x2f8] sm:$0xff] }
 0x44d   : > { %14902 = vmatmul.mubr.f32.gmra.mxu1 %v7889_v5  ;;  %v19738_v19 = vld [vmem:[#allocation3 + $0x22] sm:$0xff]  ;;  %vm7387_vm12 = vcmp.ge.f32.partialorder %v7351_v41, 0.0  ;;  %14940 = vmatprep.subr.mxu0 %v11724_v21  ;;  %7837 = vst [vmem:[#allocation4 + $0xb0] sm:$0xff] %v7803_v14  ;;  %v7636_v33 = vmax.f32 %v19657_v48, %v7558_v56  ;;  %v19759_v4 = vmax.f32 %v7457_v52, %v7560_v58  ;;  %v7423_v63 = vmul.f32 0.01, %v7351_v41 }
 0x44e   : > { %v19740_v16 = vld [vmem:[#allocation3 + $0x23] sm:$0xff]  ;;  %7838 = vst [vmem:[#allocation4 + $0xb8] sm:$0xff] %v7804_v3  ;;  %vm7390_vm13 = vcmp.ge.f32.partialorder %v7354_v59, 0.0  ;;  %14987 = vmatprep.subr.mxu1 %v11740_v27  ;;  %14941 = vmatpush3.msra.mxu0 %v11724_v21  ;;  %v7426_v2 = vmul.f32 0.01, %v7354_v59  ;;  %v7310_v28 = vadd.f32 %v19667_v11, %v19290_v18  ;;  %v7313_v53 = vadd.f32 %v14815_v36, %v19307_v7 }
 0x44f   : > { %9388 = vst [vmem:[#allocation3 + $0x1f] sm:$0x1f] %v19409_v37  ;;  %v7312_v10 = vadd.f32 %v7269_v50, %v6978_v6  ;;  %14988 = vmatpush3.msra.mxu1 %v11740_v27  ;;  %15004 = vmatprep.subr.mxu0 %v19731_v38  ;;  %v7729_v37 = vrot.slane %v7636_v33, 2  ;;  %v7731_v8 = vrot.slane %v19759_v4, 2  ;;  %v7459_v48 = vsel %vm7387_vm12, %v7351_v41, %v7423_v63 }
 0x450   : > { %15051 = vmatprep.subr.mxu1 %v19755_v57  ;;  %v7563_v62 = vrot.slane %v19750_v23, 1  ;;  %v7561_v42 = vrot.slane %v7459_v48, 1  ;;  %v7353_v12 = vadd.f32 %v15950_v47, %v7310_v28  ;;  %v7356_v51 = vadd.f32 %v15950_v47, %v7313_v53 }
 0x451   : > { %v7730_v18 = vsel %vm7679_vm14, %v7727_v0, %v7729_v37  ;;  %v7732_v7 = vsel %vm7679_vm14, %v7729_v37, %v7731_v8  ;;  %v7462_v11 = vsel %vm7390_vm13, %v7354_v59, %v7426_v2  ;;  %v7355_v36 = vadd.f32 %v15950_v47, %v7312_v10 }
 0x452   : > { %v7805_v32 = vmax.f32 %v19646_v43, %v7730_v18  ;;  %v7806_v61 = vmax.f32 %v19691_v34, %v7732_v7  ;;  %v7562_v29 = vsel %vm7501_vm8, %v7559_v13, %v7561_v42  ;;  %v7564_v52 = vsel %vm7501_vm8, %v7561_v42, %v7563_v62 }
 0x453   : > { %v7638_v15 = vmax.f32 %v19701_v1, %v7562_v29  ;;  %v7639_v20 = vmax.f32 %v7459_v48, %v7564_v52  ;;  %vm7389_vm15 = vcmp.ge.f32.partialorder %v7353_v12, 0.0  ;;  %v7425_v0 = vmul.f32 0.01, %v7353_v12  ;;  %v7916_v21 = vld [vmem:[#allocation3 + $0x31] sm:$0xff] }
 0x454   : > { %v7890_v9 = vld [vmem:[#allocation3 + $0x30] sm:$0xff]  ;;  %7839 = vst [vmem:[#allocation4 + $0xc0] sm:$0xff] %v7805_v32  ;;  %7840 = vst [vmem:[#allocation4 + $0xc8] sm:$0xff] %v7806_v61  ;;  %vm7392_vm0 = vcmp.ge.f32.partialorder %v7356_v51, 0.0  ;;  %v7428_v44 = vmul.f32 0.01, %v7356_v51  ;;  %14857 = vmatprep.mubr.f32.mxu0 %v7916_v21 }
 0x455   : > { %vm7391_vm1 = vcmp.ge.f32.partialorder %v7355_v36, 0.0  ;;  %v7427_v43 = vmul.f32 0.01, %v7355_v36  ;;  %14904 = vmatprep.mubr.f32.mxu1 %v7890_v9  ;;  %v7733_v34 = vrot.slane %v7638_v15, 2  ;;  %v7735_v46 = vrot.slane %v7639_v20, 2 }
 0x456   : > { %v7461_v13 = vsel %vm7389_vm15, %v7353_v12, %v7425_v0  ;;  %v7567_v47 = vrot.slane %v7462_v11, 1  ;;  %v7464_v5 = vsel %vm7392_vm0, %v7356_v51, %v7428_v44 }
 0x457   : > { %v7565_v41 = vrot.slane %v7461_v13, 1  ;;  %v7463_v1 = vsel %vm7391_vm1, %v7355_v36, %v7427_v43  ;;  %v7734_v27 = vsel %vm7679_vm14, %v7731_v8, %v7733_v34  ;;  %v7736_v6 = vsel %vm7679_vm14, %v7733_v34, %v7735_v46 }
 0x458   : > { %v7571_v14 = vrot.slane %v7464_v5, 1  ;;  %v7569_v3 = vrot.slane %v7463_v1, 1  ;;  %v7807_v59 = vmax.f32 %v19693_v60, %v7734_v27  ;;  %v7808_v50 = vmax.f32 %v7636_v33, %v7736_v6  ;;  %v11782_v27 = vld [vmem:[%s21586_s3 + $0x2d0] sm:$0xff] }
 0x459   : > { %v7566_v56 = vsel %vm7501_vm8, %v7563_v62, %v7565_v41  ;;  %v7568_v58 = vsel %vm7501_vm8, %v7565_v41, %v7567_v47  ;;  %v11785_v41 = vld [vmem:[%s21586_s3 + $0x2e8] sm:$0xff]  ;;  %vm10337_vm1 = vcmask 1041408  }
 0x45a   : > { %v7640_v63 = vmax.f32 %v19750_v23, %v7566_v56  ;;  %v7641_v2 = vmax.f32 %v7461_v13, %v7568_v58  ;;  %v7644_v28 = vmax.f32 %v7464_v5, %v7571_v14  ;;  %v7570_v53 = vsel %vm7501_vm8, %v7567_v47, %v7569_v3  ;;  %7841 = vst [vmem:[#allocation4 + $0xd0] sm:$0xff] %v7807_v59  ;;  %v11770_v13 = vld [vmem:[%s21586_s3 + $0x270] sm:$0xff]  ;;  %v11783_v5 = vld [vmem:[%s21586_s3 + $0x2d8] sm:$0xff]  ;;  %v11780_v56 = vld [vmem:[%s21586_s3 + $0x2c0] sm:$0xff] }
 0x45b   : > { %7842 = vst [vmem:[#allocation4 + $0xd8] sm:$0xff] %v7808_v50  ;;  %v7572_v10 = vsel %vm7501_vm8, %v7569_v3, %v7571_v14  ;;  %v7642_v37 = vmax.f32 %v7462_v11, %v7570_v53  ;;  %v7871_v8 = vld [vmem:[#allocation4 + $0xb4] ss:$2 sm:$0xff] }
 0x45c   : > { %v7737_v48 = vrot.slane %v7640_v63, 2  ;;  %v7739_v42 = vrot.slane %v7641_v2, 2  ;;  %v7745_v60 = vrot.slane %v7644_v28, 2  ;;  %v7643_v33 = vmax.f32 %v7463_v1, %v7572_v10  ;;  %7872 = vst [vmem:[#allocation3 + $0x3d] sm:$0xff] %v7871_v8  ;;  %v11786_v47 = vld [vmem:[%s21586_s3 + $0x2f0] sm:$0xff]  ;;  %v8322_v1 = vld [vmem:[#allocation3 + $0x32] sm:$0xff] }
 0x45d   : > { %v7741_v62 = vrot.slane %v7642_v37, 2  ;;  %v11765_v14 = vld [vmem:[%s21586_s3 + $0x248] sm:$0xff]  ;;  %v11764_v50 = vld [vmem:[%s21586_s3 + $0x240] sm:$0xff]  ;;  %v11762_v10 = vld [vmem:[%s21586_s3 + $0x230] sm:$0xff] }
 0x45e   : > { %v7738_v12 = vsel %vm7679_vm14, %v7735_v46, %v7737_v48  ;;  %v7740_v23 = vsel %vm7679_vm14, %v7737_v48, %v7739_v42  ;;  %v7743_v51 = vrot.slane %v7643_v33, 2  ;;  %v7814_v18 = vmax.f32 %v7642_v37, %v7745_v60  ;;  %v21918_v46 = vld [vmem:[#allocation14_spill] sm:$0xff]  ;;  %v11781_v3 = vld [vmem:[%s21586_s3 + $0x2c8] sm:$0xff]  ;;  %v11778_v37 = vld [vmem:[%s21586_s3 + $0x2b0] sm:$0xff] }
 0x45f   : > { %v7809_v7 = vmax.f32 %v19759_v4, %v7738_v12  ;;  %v7810_v36 = vmax.f32 %v7638_v15, %v7740_v23  ;;  %v7742_v32 = vsel %vm7679_vm14, %v7739_v42, %v7741_v62  ;;  %v11761_v8 = vld [vmem:[%s21586_s3 + $0x228] sm:$0xff]  ;;  %v11760_v42 = vld [vmem:[%s21586_s3 + $0x220] sm:$0xff]  ;;  %v11758_v33 = vld [vmem:[%s21586_s3 + $0x210] sm:$0xff] }
 0x460   : > { %v7744_v11 = vsel %vm7679_vm14, %v7741_v62, %v7743_v51  ;;  %v7746_v61 = vsel %vm7679_vm14, %v7743_v51, %v7745_v60  ;;  %v7811_v29 = vmax.f32 %v7639_v20, %v7742_v32  ;;  %7848 = vst [vmem:[#allocation4 + $0x108] sm:$0x7] %v7814_v18  ;;  %v11777_v48 = vld [vmem:[%s21586_s3 + $0x2a8] sm:$0xff]  ;;  %v11759_v60 = vld [vmem:[%s21586_s3 + $0x218] sm:$0xff]  ;;  %v11774_v62 = vld [vmem:[%s21586_s3 + $0x290] sm:$0xff] }
 0x461   : > { %7843 = vst [vmem:[#allocation4 + $0xe0] sm:$0xff] %v7809_v7  ;;  %7844 = vst [vmem:[#allocation4 + $0xe8] sm:$0xff] %v7810_v36  ;;  %v7812_v52 = vmax.f32 %v7640_v63, %v7744_v11  ;;  %v7813_v0 = vmax.f32 %v7641_v2, %v7746_v61  ;;  %v11763_v63 = vld [vmem:[%s21586_s3 + $0x238] sm:$0xff]  ;;  %v11757_v12 = vld [vmem:[%s21586_s3 + $0x208] sm:$0xff] }
 0x462   : > { %7845 = vst [vmem:[#allocation4 + $0xf0] sm:$0xff] %v7811_v29  ;;  %v11779_v2 = vld [vmem:[%s21586_s3 + $0x2b8] sm:$0xff]  ;;  %v11773_v23 = vld [vmem:[%s21586_s3 + $0x288] sm:$0xff]  ;;  %v11756_v51 = vld [vmem:[%s21586_s3 + $0x200] sm:$0xff] }
 0x463   : > { %7846 = vst [vmem:[#allocation4 + $0xf8] sm:$0xff] %v7812_v52  ;;  %7847 = vst [vmem:[#allocation4 + $0x100] sm:$0xff] %v7813_v0  ;;  %v7917_v21 = vld [vmem:[#allocation3 + $0x39] sm:$0xff]  ;;  %v11803_v7 = vld [vmem:[%s21586_s3 + $0x378] sm:$0xff] }
 0x464   : > { %v7891_v9 = vld [vmem:[#allocation3 + $0x38] sm:$0xff]  ;;  %14858 = vmatmul.mubr.f32.gmra.mxu0 %v7917_v21  ;;  %v11819_v36 = vld [vmem:[%s21586_s3 + $0x3f8] sm:$0xff]  ;;  %v11802_v32 = vld [vmem:[%s21586_s3 + $0x370] sm:$0xff] }
 0x465   : > { %14905 = vmatmul.mubr.f32.gmra.mxu1 %v7891_v9  ;;  %v8323_v6 = vld [vmem:[#allocation3 + $0x3a] sm:$0xff]  ;;  %v11818_v11 = vld [vmem:[%s21586_s3 + $0x3f0] sm:$0xff]  ;;  %v11815_v9 = vld [vmem:[%s21586_s3 + $0x3d8] sm:$0xff] }
 0x466   : > { %v11772_v18 = vld [vmem:[%s21586_s3 + $0x280] sm:$0xff]  ;;  %v11817_v61 = vld [vmem:[%s21586_s3 + $0x3e8] sm:$0xff]  ;;  %v8472_v52 = vld [vmem:[#allocation3 + $0x2b] sm:$0xff] }
 0x467   : > { %v19920_v29 = vld [vmem:[#allocation3 + $0x24] sm:$0xff]  ;;  %v19927_v0 = vld [vmem:[#allocation3 + $0x2c] sm:$0xff]  ;;  %v11816_v21 = vld [vmem:[%s21586_s3 + $0x3e0] sm:$0xff] }
 0x468   : > { %v7875_v4 = vld [vmem:[#allocation4 + $0xd8] ss:$2 sm:$0xff] }
 0x469   : > { %7876 = vst [vmem:[#allocation3 + $0x47] sm:$0xff] %v7875_v4  ;;  %v19939_v4 = vld [vmem:[#allocation3 + $0x34] sm:$0xff] }
 0x46a   : > { %v7879_v15 = vld [vmem:[#allocation4 + $0xfc] ss:$2 sm:$0xff] }
 0x46b   : > { %7880 = vst [vmem:[#allocation3 + $0x51] sm:$0xff] %v7879_v15  ;;  %v11798_v15 = vld [vmem:[%s21586_s3 + $0x350] sm:$0xff] }
 0x470   : > { %v7918_v44 = vld [vmem:[#allocation3 + $0x41] sm:$0xff]  ;;  %v7919_v34 = vld [vmem:[#allocation3 + $0x49] sm:$0x3f] }
 0x471   : > { %v7892_v43 = vld [vmem:[#allocation3 + $0x40] sm:$0xff]  ;;  %14860 = vmatprep.mubr.f32.mxu0 %v7918_v44  ;;  %v7893_v20 = vld [vmem:[#allocation3 + $0x48] sm:$0x3f] }
 0x472   : > { %14907 = vmatprep.mubr.f32.mxu1 %v7892_v43  ;;  %14861 = vmatmul.mubr.f32.gmra.mxu0 %v7919_v34  ;;  %v8324_v59 = vld [vmem:[#allocation3 + $0x42] sm:$0xff]  ;;  %v8325_v58 = vld [vmem:[#allocation3 + $0x4a] sm:$0xff]  ;;  %v8326_v53 = vld [vmem:[#allocation3 + $0x52] sm:$0x3f] }
 0x473   : > { %14908 = vmatmul.mubr.f32.gmra.mxu1 %v7893_v20  ;;  %14942 = vmatprep.mubr.f32.mxu0 %v21918_v46  ;;  %v8175_v28 = vld [vmem:[#allocation3 + $0x4a] sm:$0x3f]  ;;  %v8474_v44 = vld [vmem:[#allocation3 + $0x3b] sm:$0xff] }
 0x474   : > { %14989 = vmatprep.mubr.f32.mxu1 %v19387_v49  ;;  %v19946_v43 = vld [vmem:[#allocation3 + $0x3c] sm:$0xff]  ;;  %v11814_v34 = vld [vmem:[%s21586_s3 + $0x3d0] sm:$0xff] }
 0x475   : > { %v11813_v20 = vld [vmem:[%s21586_s3 + $0x3c8] sm:$0xff] }
 0x476   : > { %14943 = vmatmul.mubr.f32.vlgmr.msra.gmra.mxu0 %v19387_v49  ;;  %v11769_v49 = vld [vmem:[%s21586_s3 + $0x268] sm:$0xff] }
 0x477   : > { %14990 = vmatmul.mubr.f32.vlgmr.msra.gmra.mxu1 %v19501_v17  ;;  %15005 = vmatpush3.msra.mxu0 %v19731_v38  ;;  %v11784_v38 = vld [vmem:[%s21586_s3 + $0x2e0] sm:$0xff]  ;;  %v8475_v46 = vld [vmem:[#allocation3 + $0x43] sm:$0xff] }
 0x478   : > { %15052 = vmatpush3.msra.mxu1 %v19755_v57  ;;  %14945 = vmatprep.mubr.f32.mxu0 %v19501_v17  ;;  %v11768_v17 = vld [vmem:[%s21586_s3 + $0x260] sm:$0xff]  ;;  %v8321_v57 = vld [vmem:[#allocation3 + $0x2a] sm:$0xff] }
 0x479   : > { %14992 = vmatprep.mubr.f32.mxu1 %v19635_v45  ;;  %15006 = vmatprep.subr.mxu0 %v11770_v13 }
 0x47a   : > { %15053 = vmatprep.subr.mxu1 %v11786_v47  ;;  %15007 = vmatpush3.msra.mxu0 %v11770_v13  ;;  %v19958_v13 = vld [vmem:[#allocation3 + $0x44] sm:$0xff] }
 0x47b   : > { %15054 = vmatpush3.msra.mxu1 %v11786_v47  ;;  %15008 = vmatprep.subr.mxu0 %v11769_v49  ;;  %v11796_v47 = vld [vmem:[%s21586_s3 + $0x340] sm:$0xff] }
 0x47c   : > { %15055 = vmatprep.subr.mxu1 %v11785_v41  ;;  %14946 = vmatmul.mubr.f32.gmra.mxu0 %v19635_v45  ;;  %v11767_v45 = vld [vmem:[%s21586_s3 + $0x258] sm:$0xff] }
 0x47d   : > { %14993 = vmatmul.mubr.f32.gmra.mxu1 %v19738_v19  ;;  %15009 = vmatpush3.msra.mxu0 %v11769_v49  ;;  %v8476_v49 = vld [vmem:[#allocation3 + $0x4b] sm:$0xff] }
 0x47e   : > { %15056 = vmatpush3.msra.mxu1 %v11785_v41  ;;  %14948 = vmatprep.mubr.f32.mxu0 %v19738_v19  ;;  %v11766_v19 = vld [vmem:[%s21586_s3 + $0x250] sm:$0xff] }
 0x47f   : > { %14995 = vmatprep.mubr.f32.mxu1 %v8321_v57  ;;  %15010 = vmatprep.subr.mxu0 %v11768_v17  ;;  %v19964_v41 = vld [vmem:[#allocation3 + $0x4c] sm:$0xff] }
 0x480   : > { %15057 = vmatprep.subr.mxu1 %v11784_v38  ;;  %15011 = vmatpush3.msra.mxu0 %v11768_v17  ;;  %v11812_v17 = vld [vmem:[%s21586_s3 + $0x3c0] sm:$0xff] }
 0x481   : > { %15058 = vmatpush3.msra.mxu1 %v11784_v38  ;;  %15012 = vmatprep.subr.mxu0 %v11767_v45  ;;  %v11795_v38 = vld [vmem:[%s21586_s3 + $0x338] sm:$0xff] }
 0x482   : > { %15059 = vmatprep.subr.mxu1 %v11783_v5  ;;  %14949 = vmatmul.mubr.f32.gmra.mxu0 %v8321_v57  ;;  %v11811_v57 = vld [vmem:[%s21586_s3 + $0x3b8] sm:$0xff] }
 0x483   : > { %14996 = vmatmul.mubr.f32.gmra.mxu1 %v8322_v1  ;;  %15013 = vmatpush3.msra.mxu0 %v11767_v45  ;;  %v8477_v45 = vld [vmem:[#allocation3 + $0x53] sm:$0x3f] }
 0x484   : > { %15060 = vmatpush3.msra.mxu1 %v11783_v5  ;;  %14951 = vmatprep.mubr.f32.mxu0 %v8322_v1  ;;  %v8628_v5 = vld [vmem:[#allocation3 + $0x54] sm:$0x3f]  ;;  %v11794_v1 = vld [vmem:[%s21586_s3 + $0x330] sm:$0xff] }
 0x485   : > { %14998 = vmatprep.mubr.f32.mxu1 %v8323_v6  ;;  %15014 = vmatprep.subr.mxu0 %v11766_v19 }
 0x486   : > { %15061 = vmatprep.subr.mxu1 %v11782_v27  ;;  %15015 = vmatpush3.msra.mxu0 %v11766_v19  ;;  %v11810_v19 = vld [vmem:[%s21586_s3 + $0x3b0] sm:$0xff] }
 0x487   : > { %15062 = vmatpush3.msra.mxu1 %v11782_v27  ;;  %15016 = vmatprep.subr.mxu0 %v11765_v14  ;;  %v11793_v27 = vld [vmem:[%s21586_s3 + $0x328] sm:$0xff] }
 0x488   : > { %15063 = vmatprep.subr.mxu1 %v11781_v3  ;;  %14952 = vmatmul.mubr.f32.gmra.mxu0 %v8323_v6  ;;  %v11809_v6 = vld [vmem:[%s21586_s3 + $0x3a8] sm:$0xff] }
 0x489   : > { %14999 = vmatmul.mubr.f32.gmra.mxu1 %v8324_v59  ;;  %15017 = vmatpush3.msra.mxu0 %v11765_v14  ;;  %v11792_v14 = vld [vmem:[%s21586_s3 + $0x320] sm:$0xff] }
 0x48a   : > { %15064 = vmatpush3.msra.mxu1 %v11781_v3  ;;  %14954 = vmatprep.mubr.f32.mxu0 %v8324_v59  ;;  %v11807_v3 = vld [vmem:[%s21586_s3 + $0x398] sm:$0xff]  ;;  %v11790_v59 = vld [vmem:[%s21586_s3 + $0x310] sm:$0xff] }
 0x48b   : > { %15001 = vmatprep.mubr.f32.mxu1 %v8325_v58  ;;  %15018 = vmatprep.subr.mxu0 %v11764_v50  ;;  %v11805_v58 = vld [vmem:[%s21586_s3 + $0x388] sm:$0xff] }
 0x48c   : > { %15065 = vmatprep.subr.mxu1 %v11780_v56  ;;  %15019 = vmatpush3.msra.mxu0 %v11764_v50  ;;  %v11806_v50 = vld [vmem:[%s21586_s3 + $0x390] sm:$0xff] }
 0x48d   : > { %15066 = vmatpush3.msra.mxu1 %v11780_v56  ;;  %15020 = vmatprep.subr.mxu0 %v11763_v63  ;;  %v11789_v56 = vld [vmem:[%s21586_s3 + $0x308] sm:$0xff] }
 0x48e   : > { %15067 = vmatprep.subr.mxu1 %v11779_v2  ;;  %14955 = vmatmul.mubr.f32.gmra.mxu0 %v8175_v28  ;;  %v11835_v28 = vld [vmem:[%s21586_s3 + $0x478] sm:$0xff] }
 0x48f   : > { %15002 = vmatmul.mubr.f32.gmra.mxu1 %v8326_v53  ;;  %15021 = vmatpush3.msra.mxu0 %v11763_v63  ;;  %v11788_v63 = vld [vmem:[%s21586_s3 + $0x300] sm:$0xff]  ;;  %v11834_v53 = vld [vmem:[%s21586_s3 + $0x470] sm:$0xff] }
 0x490   : > { %15068 = vmatpush3.msra.mxu1 %v11779_v2  ;;  %15022 = vmatprep.subr.mxu0 %v11762_v10  ;;  %v11804_v2 = vld [vmem:[%s21586_s3 + $0x380] sm:$0xff] }
 0x491   : > { %15036 = vmatprep.mubr.f32.mxu0 %v19391_v26  ;;  %15069 = vmatprep.subr.mxu1 %v11778_v37  ;;  %v11776_v26 = vld [vmem:[%s21586_s3 + $0x2a0] sm:$0xff] }
 0x492   : > { %15083 = vmatprep.mubr.f32.mxu1 %v19397_v39  ;;  %15023 = vmatpush3.msra.mxu0 %v11762_v10  ;;  %v11775_v39 = vld [vmem:[%s21586_s3 + $0x298] sm:$0xff]  ;;  %v8923_v10 = vld [vmem:[#allocation3 + $0x25] sm:$0xff] }
 0x493   : > { %15070 = vmatpush3.msra.mxu1 %v11778_v37  ;;  %15024 = vmatprep.subr.mxu0 %v11761_v8  ;;  %v11833_v37 = vld [vmem:[%s21586_s3 + $0x468] sm:$0xff] }
 0x494   : > { %15071 = vmatprep.subr.mxu1 %v11777_v48  ;;  %15025 = vmatpush3.msra.mxu0 %v11761_v8  ;;  %v8924_v8 = vld [vmem:[#allocation3 + $0x2d] sm:$0xff] }
 0x495   : > { %15072 = vmatpush3.msra.mxu1 %v11777_v48  ;;  %15026 = vmatprep.subr.mxu0 %v11760_v42  ;;  %v20032_v48 = vld [vmem:[#allocation3 + $0x133] sm:$0xff] }
 0x496   : > { %15073 = vmatprep.subr.mxu1 %v11776_v26  ;;  %15027 = vmatpush3.msra.mxu0 %v11760_v42  ;;  %21919 = vst [vmem:[#allocation11_spill] sm:$0xff] %v20032_v48  ;;  %v8926_v42 = vld [vmem:[#allocation3 + $0x3d] sm:$0xff] }
 0x497   : > { %15074 = vmatpush3.msra.mxu1 %v11776_v26  ;;  %15028 = vmatprep.subr.mxu0 %v11759_v60  ;;  %v11831_v26 = vld [vmem:[%s21586_s3 + $0x458] sm:$0xff] }
 0x498   : > { %15075 = vmatprep.subr.mxu1 %v11775_v39  ;;  %15029 = vmatpush3.msra.mxu0 %v11759_v60  ;;  %v8927_v60 = vld [vmem:[#allocation3 + $0x45] sm:$0xff] }
 0x499   : > { %15076 = vmatpush3.msra.mxu1 %v11775_v39  ;;  %15030 = vmatprep.subr.mxu0 %v11758_v33  ;;  %v11830_v39 = vld [vmem:[%s21586_s3 + $0x450] sm:$0xff] }
 0x49a   : > { %15077 = vmatprep.subr.mxu1 %v11774_v62  ;;  %15031 = vmatpush3.msra.mxu0 %v11758_v33  ;;  %v8928_v33 = vld [vmem:[#allocation3 + $0x4d] sm:$0xff] }
 0x49b   : > { %15078 = vmatpush3.msra.mxu1 %v11774_v62  ;;  %15032 = vmatprep.subr.mxu0 %v11757_v12  ;;  %v11829_v62 = vld [vmem:[%s21586_s3 + $0x448] sm:$0xff] }
 0x49c   : > { %15079 = vmatprep.subr.mxu1 %v11773_v23  ;;  %15033 = vmatpush3.msra.mxu0 %v11757_v12  ;;  %v8929_v12 = vld [vmem:[#allocation3 + $0x55] sm:$0xff] }
 0x49d   : > { %15080 = vmatpush3.msra.mxu1 %v11773_v23  ;;  %15034 = vmatprep.subr.mxu0 %v11756_v51  ;;  %v11828_v23 = vld [vmem:[%s21586_s3 + $0x440] sm:$0xff] }
 0x49e   : > { %15081 = vmatprep.subr.mxu1 %v11772_v18  ;;  %15035 = vmatpush3.msra.mxu0 %v11756_v51  ;;  %v8930_v51 = vld [vmem:[#allocation3 + $0x5d] sm:$0x3f] }
 0x49f   : > { %15082 = vmatpush3.msra.mxu1 %v11772_v18  ;;  %15037 = vmatmul.mubr.f32.vlgmr.msra.gmra.mxu0 %v19579_v54  ;;  %v11801_v54 = vld [vmem:[%s21586_s3 + $0x368] sm:$0xff]  ;;  %v8778_v18 = vld [vmem:[#allocation3 + $0x54] sm:$0xff] }
 0x4a0   : > { %15084 = vmatmul.mubr.f32.vlgmr.msra.gmra.mxu1 %v19581_v25  ;;  %15098 = vmatprep.subr.mxu0 %v11803_v7 }
 0x4a1   : > { %15145 = vmatprep.subr.mxu1 %v11819_v36  ;;  %15039 = vmatprep.mubr.f32.mxu0 %v19637_v35  ;;  %v11800_v35 = vld [vmem:[%s21586_s3 + $0x360] sm:$0xff] }
 0x4a2   : > { %15086 = vmatprep.mubr.f32.mxu1 %v19648_v22  ;;  %15099 = vmatpush3.msra.mxu0 %v11803_v7  ;;  %v8779_v7 = vld [vmem:[#allocation3 + $0x5c] sm:$0x3f] }
 0x4a3   : > { %15146 = vmatpush3.msra.mxu1 %v11819_v36  ;;  %15100 = vmatprep.subr.mxu0 %v11802_v32  ;;  %v11827_v36 = vld [vmem:[%s21586_s3 + $0x438] sm:$0xff] }
 0x4a4   : > { %15147 = vmatprep.subr.mxu1 %v11818_v11  ;;  %15101 = vmatpush3.msra.mxu0 %v11802_v32  ;;  %v11826_v32 = vld [vmem:[%s21586_s3 + $0x430] sm:$0xff] }
 0x4a5   : > { %15148 = vmatpush3.msra.mxu1 %v11818_v11  ;;  %15040 = vmatmul.mubr.f32.gmra.mxu0 %v19740_v16  ;;  %v11799_v16 = vld [vmem:[%s21586_s3 + $0x358] sm:$0xff]  ;;  %v11825_v11 = vld [vmem:[%s21586_s3 + $0x428] sm:$0xff] }
 0x4a6   : > { %15087 = vmatmul.mubr.f32.gmra.mxu1 %v19920_v29  ;;  %15102 = vmatprep.subr.mxu0 %v11801_v54 }
 0x4a7   : > { %15149 = vmatprep.subr.mxu1 %v11817_v61  ;;  %15042 = vmatprep.mubr.f32.mxu0 %v8472_v52  ;;  %v9074_v52 = vld [vmem:[#allocation3 + $0x26] sm:$0xff] }
 0x4a8   : > { %15089 = vmatprep.mubr.f32.mxu1 %v19927_v0  ;;  %15103 = vmatpush3.msra.mxu0 %v11801_v54  ;;  %v11824_v54 = vld [vmem:[%s21586_s3 + $0x420] sm:$0xff] }
 0x4a9   : > { %15150 = vmatpush3.msra.mxu1 %v11817_v61  ;;  %15104 = vmatprep.subr.mxu0 %v11800_v35  ;;  %v11823_v61 = vld [vmem:[%s21586_s3 + $0x418] sm:$0xff] }
 0x4aa   : > { %15151 = vmatprep.subr.mxu1 %v11816_v21  ;;  %15105 = vmatpush3.msra.mxu0 %v11800_v35  ;;  %v11820_v35 = vld [vmem:[%s21586_s3 + $0x400] sm:$0xff] }
 0x4ab   : > { %15152 = vmatpush3.msra.mxu1 %v11816_v21  ;;  %15043 = vmatmul.mubr.f32.gmra.mxu0 %v19734_v40  ;;  %v11797_v40 = vld [vmem:[%s21586_s3 + $0x348] sm:$0xff]  ;;  %v9076_v21 = vld [vmem:[#allocation3 + $0x36] sm:$0xff] }
 0x4ac   : > { %15090 = vmatmul.mubr.f32.gmra.mxu1 %v19939_v4  ;;  %15106 = vmatprep.subr.mxu0 %v11799_v16 }
 0x4ad   : > { %15153 = vmatprep.subr.mxu1 %v11815_v9  ;;  %15045 = vmatprep.mubr.f32.mxu0 %v8474_v44  ;;  %v9081_v44 = vld [vmem:[#allocation3 + $0x5e] sm:$0x3f] }
 0x4ae   : > { %15092 = vmatprep.mubr.f32.mxu1 %v19946_v43  ;;  %15107 = vmatpush3.msra.mxu0 %v11799_v16  ;;  %v9077_v16 = vld [vmem:[#allocation3 + $0x3e] sm:$0xff] }
 0x4af   : > { %15154 = vmatpush3.msra.mxu1 %v11815_v9  ;;  %15108 = vmatprep.subr.mxu0 %v11798_v15  ;;  %v9078_v9 = vld [vmem:[#allocation3 + $0x46] sm:$0xff] }
 0x4b0   : > { %15155 = vmatprep.subr.mxu1 %v11814_v34  ;;  %15109 = vmatpush3.msra.mxu0 %v11798_v15  ;;  %v9080_v15 = vld [vmem:[#allocation3 + $0x56] sm:$0xff] }
 0x4b1   : > { %15156 = vmatpush3.msra.mxu1 %v11814_v34  ;;  %15046 = vmatmul.mubr.f32.gmra.mxu0 %v8475_v46 }
 0x4b2   : > { %15093 = vmatmul.mubr.f32.gmra.mxu1 %v19958_v13  ;;  %15110 = vmatprep.subr.mxu0 %v11797_v40 }
 0x4b3   : > { %15157 = vmatprep.subr.mxu1 %v11813_v20  ;;  %15048 = vmatprep.mubr.f32.mxu0 %v8476_v49 }
 0x4b4   : > { %15095 = vmatprep.mubr.f32.mxu1 %v19964_v41  ;;  %15111 = vmatpush3.msra.mxu0 %v11797_v40 }
 0x4b5   : > { %15158 = vmatpush3.msra.mxu1 %v11813_v20  ;;  %15112 = vmatprep.subr.mxu0 %v11796_v47 }
 0x4b6   : > { %15159 = vmatprep.subr.mxu1 %v11812_v17  ;;  %15113 = vmatpush3.msra.mxu0 %v11796_v47 }
 0x4b7   : > { %15160 = vmatpush3.msra.mxu1 %v11812_v17  ;;  %15049 = vmatmul.mubr.f32.gmra.mxu0 %v8477_v45 }
 0x4b8   : > { %15096 = vmatmul.mubr.f32.gmra.mxu1 %v8628_v5  ;;  %15114 = vmatprep.subr.mxu0 %v11795_v38 }
 0x4b9   : > { %15161 = vmatprep.subr.mxu1 %v11811_v57  ;;  %15115 = vmatpush3.msra.mxu0 %v11795_v38 }
 0x4ba   : > { %15130 = vmatprep.mubr.f32.mxu0 %v19581_v25  ;;  %15162 = vmatpush3.msra.mxu1 %v11811_v57  ;;  %v11808_v25 = vld [vmem:[%s21586_s3 + $0x3a0] sm:$0xff] }
 0x4bb   : > { %15177 = vmatprep.mubr.f32.mxu1 %v19588_v55  ;;  %15116 = vmatprep.subr.mxu0 %v11794_v1  ;;  %v11791_v55 = vld [vmem:[%s21586_s3 + $0x318] sm:$0xff] }
 0x4bc   : > { %15163 = vmatprep.subr.mxu1 %v11810_v19  ;;  %15117 = vmatpush3.msra.mxu0 %v11794_v1 }
 0x4bd   : > { %15164 = vmatpush3.msra.mxu1 %v11810_v19  ;;  %15118 = vmatprep.subr.mxu0 %v11793_v27 }
 0x4be   : > { %15165 = vmatprep.subr.mxu1 %v11809_v6  ;;  %15119 = vmatpush3.msra.mxu0 %v11793_v27 }
 0x4bf   : > { %15166 = vmatpush3.msra.mxu1 %v11809_v6  ;;  %15120 = vmatprep.subr.mxu0 %v11792_v14 }
 0x4c0   : > { %15167 = vmatprep.subr.mxu1 %v11808_v25  ;;  %15121 = vmatpush3.msra.mxu0 %v11792_v14 }
 0x4c1   : > { %15168 = vmatpush3.msra.mxu1 %v11808_v25  ;;  %15122 = vmatprep.subr.mxu0 %v11791_v55 }
 0x4c2   : > { %15169 = vmatprep.subr.mxu1 %v11807_v3  ;;  %15123 = vmatpush3.msra.mxu0 %v11791_v55 }
 0x4c3   : > { %15170 = vmatpush3.msra.mxu1 %v11807_v3  ;;  %15124 = vmatprep.subr.mxu0 %v11790_v59 }
 0x4c4   : > { %15171 = vmatprep.subr.mxu1 %v11806_v50  ;;  %15125 = vmatpush3.msra.mxu0 %v11790_v59 }
 0x4c5   : > { %15172 = vmatpush3.msra.mxu1 %v11806_v50  ;;  %15126 = vmatprep.subr.mxu0 %v11789_v56 }
 0x4c6   : > { %15173 = vmatprep.subr.mxu1 %v11805_v58  ;;  %15127 = vmatpush3.msra.mxu0 %v11789_v56  ;;  %v11852_v56 = vld [vmem:[%s21586_s3 + $0xf8] sm:$0xff] }
 0x4c7   : > { %15174 = vmatpush3.msra.mxu1 %v11805_v58  ;;  %15128 = vmatprep.subr.mxu0 %v11788_v63  ;;  %v9407_v58 = vld [vmem:[%s21586_s3 + $0x78] sm:$0xff] }
 0x4c8   : > { %15175 = vmatprep.subr.mxu1 %v11804_v2  ;;  %15129 = vmatpush3.msra.mxu0 %v11788_v63  ;;  %v11851_v63 = vld [vmem:[%s21586_s3 + $0xf0] sm:$0xff] }
 0x4c9   : > { %15176 = vmatpush3.msra.mxu1 %v11804_v2  ;;  %15131 = vmatmul.mubr.f32.vlgmr.msra.gmra.mxu0 %v19648_v22  ;;  %v8925_v22 = vld [vmem:[#allocation3 + $0x35] sm:$0xff] }
 0x4ca   : > { %15178 = vmatmul.mubr.f32.vlgmr.msra.gmra.mxu1 %v19650_v24  ;;  %15192 = vmatprep.subr.mxu0 %v11835_v28  ;;  %v11832_v24 = vld [vmem:[%s21586_s3 + $0x460] sm:$0xff] }
 0x4cb   : > { %15133 = vmatprep.mubr.f32.mxu0 %v19920_v29  ;;  %15180 = vmatprep.mubr.f32.mxu1 %v8923_v10  ;;  %v11821_v29 = vld [vmem:[%s21586_s3 + $0x408] sm:$0xff] }
 0x4cc   : > { %15193 = vmatpush3.msra.mxu0 %v11835_v28  ;;  %15239 = vmatprep.subr.mxu1 %v20032_v48  ;;  %v9406_v28 = vld [vmem:[%s21586_s3 + $0x70] sm:$0xff]  ;;  %v11850_v10 = vld [vmem:[%s21586_s3 + $0xe8] sm:$0xff] }
 0x4cd   : > { %15194 = vmatprep.subr.mxu0 %v11834_v53  ;;  %15134 = vmatmul.mubr.f32.gmra.mxu0 %v19927_v0  ;;  %v9075_v0 = vld [vmem:[#allocation3 + $0x2e] sm:$0xff] }
 0x4ce   : > { %15195 = vmatpush3.msra.mxu0 %v11834_v53  ;;  %15181 = vmatmul.mubr.f32.gmra.mxu1 %v8924_v8 }
 0x4cf   : > { %15196 = vmatprep.subr.mxu0 %v11833_v37  ;;  %15136 = vmatprep.mubr.f32.mxu0 %v19939_v4  ;;  %v9079_v4 = vld [vmem:[#allocation3 + $0x4e] sm:$0xff] }
 0x4d0   : > { %15183 = vmatprep.mubr.f32.mxu1 %v8925_v22  ;;  %15197 = vmatpush3.msra.mxu0 %v11833_v37  ;;  %v9405_v37 = vld [vmem:[%s21586_s3 + $0x68] sm:$0xff] }
 0x4d1   : > { %15198 = vmatprep.subr.mxu0 %v11832_v24  ;;  %15137 = vmatmul.mubr.f32.gmra.mxu0 %v19946_v43 }
 0x4d2   : > { %15184 = vmatmul.mubr.f32.gmra.mxu1 %v8926_v42  ;;  %15199 = vmatpush3.msra.mxu0 %v11832_v24 }
 0x4d3   : > { %15186 = vmatprep.mubr.f32.mxu1 %v8927_v60  ;;  %15200 = vmatprep.subr.mxu0 %v11831_v26  ;;  %v9404_v60 = vld [vmem:[%s21586_s3 + $0x60] sm:$0xff] }
 0x4d4   : > { %15139 = vmatprep.mubr.f32.mxu0 %v19958_v13  ;;  %15201 = vmatpush3.msra.mxu0 %v11831_v26  ;;  %v11849_v26 = vld [vmem:[%s21586_s3 + $0xe0] sm:$0xff] }
 0x4d5   : > { %15202 = vmatprep.subr.mxu0 %v11830_v39  ;;  %15140 = vmatmul.mubr.f32.gmra.mxu0 %v19964_v41 }
 0x4d6   : > { %15187 = vmatmul.mubr.f32.gmra.mxu1 %v8928_v33  ;;  %15203 = vmatpush3.msra.mxu0 %v11830_v39  ;;  %v11848_v39 = vld [vmem:[%s21586_s3 + $0xd8] sm:$0xff] }
 0x4d7   : > { %15189 = vmatprep.mubr.f32.mxu1 %v8929_v12  ;;  %15204 = vmatprep.subr.mxu0 %v11829_v62  ;;  %v9403_v33 = vld [vmem:[%s21586_s3 + $0x58] sm:$0xff] }
 0x4d8   : > { %15142 = vmatprep.mubr.f32.mxu0 %v8778_v18  ;;  %15205 = vmatpush3.msra.mxu0 %v11829_v62  ;;  %v11846_v18 = vld [vmem:[%s21586_s3 + $0xc8] sm:$0xff] }
 0x4d9   : > { %15206 = vmatprep.subr.mxu0 %v11828_v23  ;;  %15143 = vmatmul.mubr.f32.gmra.mxu0 %v8779_v7  ;;  %v9401_v7 = vld [vmem:[%s21586_s3 + $0x48] sm:$0xff] }
 0x4da   : > { %15190 = vmatmul.mubr.f32.gmra.mxu1 %v8930_v51  ;;  %15207 = vmatpush3.msra.mxu0 %v11828_v23  ;;  %v11847_v23 = vld [vmem:[%s21586_s3 + $0xd0] sm:$0xff] }
 0x4db   : > { %15208 = vmatprep.subr.mxu0 %v11827_v36  ;;  %15224 = vmatprep.mubr.f32.mxu0 %v19590_v30  ;;  %v11822_v30 = vld [vmem:[%s21586_s3 + $0x410] sm:$0xff] }
 0x4dc   : > { %15209 = vmatpush3.msra.mxu0 %v11827_v36  ;;  %15240 = vmatpush3.msra.mxu1 %v11852_v56  ;;  %v9402_v51 = vld [vmem:[%s21586_s3 + $0x50] sm:$0xff] }
 0x4dd   : > { %15210 = vmatprep.subr.mxu0 %v11826_v32  ;;  %15241 = vmatprep.subr.mxu1 %v20032_v48 }
 0x4de   : > { %15211 = vmatpush3.msra.mxu0 %v11826_v32  ;;  %15242 = vmatpush3.msra.mxu1 %v11851_v63  ;;  %v11845_v32 = vld [vmem:[%s21586_s3 + $0xc0] sm:$0xff]  ;;  %v9395_v63 = vld [vmem:[%s21586_s3 + $0x18] sm:$0xff] }
 0x4df   : > { %15212 = vmatprep.subr.mxu0 %v11825_v11  ;;  %15243 = vmatprep.subr.mxu1 %v20032_v48 }
 0x4e0   : > { %15213 = vmatpush3.msra.mxu0 %v11825_v11  ;;  %15244 = vmatpush3.msra.mxu1 %v11850_v10  ;;  %v9400_v11 = vld [vmem:[%s21586_s3 + $0x40] sm:$0xff]  ;;  %v9394_v10 = vld [vmem:[%s21586_s3 + $0x10] sm:$0xff] }
 0x4e1   : > { %15214 = vmatprep.subr.mxu0 %v11824_v54  ;;  %v20082_v43 = vpop.f32.mrf.mxu0  ;;  %15245 = vmatprep.subr.mxu1 %v20032_v48 }
 0x4e2   : > { %15215 = vmatpush3.msra.mxu0 %v11824_v54  ;;  %v20092_v46 = vpop.f32.mrf.mxu1  ;;  %15246 = vmatpush3.msra.mxu1 %v11849_v26 }
 0x4e3   : > { %15216 = vmatprep.subr.mxu0 %v11823_v61  ;;  %15247 = vmatprep.subr.mxu1 %v20032_v48 }
 0x4e4   : > { %15217 = vmatpush3.msra.mxu0 %v11823_v61  ;;  %v20096_v47 = vpop.f32.mrf.mxu1  ;;  %15248 = vmatpush3.msra.mxu1 %v11848_v39  ;;  %v11844_v61 = vld [vmem:[%s21586_s3 + $0xb8] sm:$0xff]  ;;  %v9393_v39 = vld [vmem:[%s21586_s3 + $0x8] sm:$0xff] }
 0x4e5   : > { %15218 = vmatprep.subr.mxu0 %v11822_v30  ;;  %15249 = vmatprep.subr.mxu1 %v20032_v48 }
 0x4e6   : > { %15219 = vmatpush3.msra.mxu0 %v11822_v30  ;;  %15250 = vmatpush3.msra.mxu1 %v11847_v23  ;;  %v9399_v30 = vld [vmem:[%s21586_s3 + $0x38] sm:$0xff]  ;;  %v9392_v23 = vld [vmem:[%s21586_s3] sm:$0xff] }
 0x4e7   : > { %15220 = vmatprep.subr.mxu0 %v11821_v29  ;;  %15251 = vmatprep.subr.mxu1 %v20032_v48 }
 0x4e8   : > { %15221 = vmatpush3.msra.mxu0 %v11821_v29  ;;  %15252 = vmatpush3.msra.mxu1 %v11846_v18 }
 0x4e9   : > { %15222 = vmatprep.subr.mxu0 %v11820_v35  ;;  %15253 = vmatprep.subr.mxu1 %v20032_v48 }
 0x4ea   : > { %15223 = vmatpush3.msra.mxu0 %v11820_v35  ;;  %15254 = vmatpush3.msra.mxu1 %v11845_v32  ;;  %v11843_v35 = vld [vmem:[%s21586_s3 + $0xb0] sm:$0xff] }
 0x4eb   : > { %15225 = vmatmul.mubr.f32.vlgmr.msra.gmra.mxu0 %v19652_v31  ;;  %15280 = vmatprep.subr.mxu0 %v20032_v48  ;;  %v20084_v31 = vpop.f32.mrf.mxu0 }
 0x4ec   : > { %15227 = vmatprep.mubr.f32.mxu0 %v9074_v52  ;;  %15281 = vmatpush3.msra.mxu0 %v9407_v58  ;;  %v9398_v52 = vld [vmem:[%s21586_s3 + $0x30] sm:$0xff]  ;;  %v11840_v58 = vld [vmem:[%s21586_s3 + $0x98] sm:$0xff] }
 0x4ed   : > { %15282 = vmatprep.subr.mxu0 %v20032_v48  ;;  %15255 = vmatprep.subr.mxu1 %v20032_v48 }
 0x4ee   : > { %15283 = vmatpush3.msra.mxu0 %v9406_v28  ;;  %15256 = vmatpush3.msra.mxu1 %v11844_v61  ;;  %v11839_v28 = vld [vmem:[%s21586_s3 + $0x90] sm:$0xff] }
 0x4ef   : > { %15228 = vmatmul.mubr.f32.gmra.mxu0 %v9075_v0  ;;  %15284 = vmatprep.subr.mxu0 %v20032_v48 }
 0x4f0   : > { %15230 = vmatprep.mubr.f32.mxu0 %v9076_v21  ;;  %15285 = vmatpush3.msra.mxu0 %v9405_v37 }
 0x4f1   : > { %15286 = vmatprep.subr.mxu0 %v20032_v48  ;;  %15257 = vmatprep.subr.mxu1 %v20032_v48 }
 0x4f2   : > { %15287 = vmatpush3.msra.mxu0 %v9404_v60  ;;  %15258 = vmatpush3.msra.mxu1 %v11843_v35  ;;  %v11838_v60 = vld [vmem:[%s21586_s3 + $0x88] sm:$0xff] }
 0x4f3   : > { %15231 = vmatmul.mubr.f32.gmra.mxu0 %v9077_v16  ;;  %15288 = vmatprep.subr.mxu0 %v20032_v48  ;;  %v11842_v16 = vld [vmem:[%s21586_s3 + $0xa8] sm:$0xff] }
 0x4f4   : > { %15233 = vmatprep.mubr.f32.mxu0 %v9078_v9  ;;  %15289 = vmatpush3.msra.mxu0 %v9403_v33  ;;  %v9397_v9 = vld [vmem:[%s21586_s3 + $0x28] sm:$0xff]  ;;  %v11837_v33 = vld [vmem:[%s21586_s3 + $0x80] sm:$0xff] }
 0x4f5   : > { %15290 = vmatprep.subr.mxu0 %v20032_v48  ;;  %15259 = vmatprep.subr.mxu1 %v20032_v48 }
 0x4f6   : > { %15291 = vmatpush3.msra.mxu0 %v9402_v51  ;;  %15260 = vmatpush3.msra.mxu1 %v11842_v16 }
 0x4f7   : > { %15234 = vmatmul.mubr.f32.gmra.mxu0 %v9079_v4  ;;  %15292 = vmatprep.subr.mxu0 %v20032_v48  ;;  %v11841_v4 = vld [vmem:[%s21586_s3 + $0xa0] sm:$0xff] }
 0x4f8   : > { %15236 = vmatprep.mubr.f32.mxu0 %v9080_v15  ;;  %15293 = vmatpush3.msra.mxu0 %v9401_v7  ;;  %v9396_v15 = vld [vmem:[%s21586_s3 + $0x20] sm:$0xff] }
 0x4f9   : > { %15294 = vmatprep.subr.mxu0 %v20032_v48  ;;  %15261 = vmatprep.subr.mxu1 %v20032_v48 }
 0x4fa   : > { %15295 = vmatpush3.msra.mxu0 %v9400_v11  ;;  %15262 = vmatpush3.msra.mxu1 %v11841_v4 }
 0x4fb   : > { %15237 = vmatmul.mubr.f32.gmra.mxu0 %v9081_v44  ;;  %15296 = vmatprep.subr.mxu0 %v20032_v48 }
 0x4fc   : > { %15297 = vmatpush3.msra.mxu0 %v9399_v30  ;;  %15263 = vmatprep.subr.mxu1 %v20032_v48 }
 0x4fd   : > { %v20086_v34 = vpop.f32.mrf.mxu0  ;;  %15298 = vmatprep.subr.mxu0 %v20032_v48  ;;  %15264 = vmatpush3.msra.mxu1 %v11840_v58 }
 0x4fe   : > { %v20100_v41 = vpop.f32.mrf.mxu1  ;;  %15299 = vmatpush3.msra.mxu0 %v9398_v52  ;;  %15265 = vmatprep.subr.mxu1 %v20032_v48 }
 0x4ff   : > { %v20088_v40 = vpop.f32.mrf.mxu0  ;;  %15300 = vmatprep.subr.mxu0 %v20032_v48  ;;  %15266 = vmatpush3.msra.mxu1 %v11839_v28 }
 0x500   : > { %v20104_v38 = vpop.f32.mrf.mxu1  ;;  %15301 = vmatpush3.msra.mxu0 %v9397_v9  ;;  %15267 = vmatprep.subr.mxu1 %v20032_v48 }
 0x501   : > { %15302 = vmatprep.subr.mxu0 %v20032_v48  ;;  %15268 = vmatpush3.msra.mxu1 %v11838_v60 }
 0x502   : > { %15303 = vmatpush3.msra.mxu0 %v9396_v15  ;;  %15269 = vmatprep.subr.mxu1 %v20032_v48 }
 0x503   : > { %15304 = vmatprep.subr.mxu0 %v20032_v48  ;;  %15270 = vmatpush3.msra.mxu1 %v11837_v33 }
 0x504   : > { %15305 = vmatpush3.msra.mxu0 %v9395_v63  ;;  %15271 = vmatprep.mubr.msk.f32.mxu1 %vm15963_vm2, %v20032_v48 }
 0x505   : > { %v20090_v20 = vpop.f32.mrf.mxu0  ;;  %15306 = vmatprep.subr.mxu0 %v20032_v48  ;;  %15312 = vmatprep.mubr.msk.f32.mxu0 %vm15963_vm2, %v20032_v48 }
 0x506   : > { %15307 = vmatpush3.msra.mxu0 %v9394_v10  ;;  %15321 = vmatprep.subr.mxu1 %v20032_v48 }
 0x507   : > { %v20094_v13 = vpop.f32.mrf.mxu0  ;;  %15308 = vmatprep.subr.mxu0 %v20032_v48 }
 0x508   : > { %15309 = vmatpush3.msra.mxu0 %v9393_v39 }
 0x509   : > { %15310 = vmatprep.subr.mxu0 %v20032_v48 }
 0x50a   : > { %15311 = vmatpush3.msra.mxu0 %v9392_v23 }
 0x50b   : > { %15362 = vmatprep.subr.mxu0 %v20032_v48 }
 0x50d   : > { %v20108_v45 = vpop.f32.mrf.mxu1 }
 0x50f   : > { %v20112_v1 = vpop.f32.mrf.mxu1 }
 0x524   : > { %v20098_v49 = vpop.f32.mrf.mxu0 }
 0x525   : > { %v20114_v19 = vpop.f32.mrf.mxu1 }
 0x526   : > { %v20102_v17 = vpop.f32.mrf.mxu0 }
 0x527   : > { %v20118_v6 = vpop.f32.mrf.mxu1 }
 0x532   : > { %v20106_v57 = vpop.f32.mrf.mxu0 }
 0x533   : > { %v20122_v25 = vpop.f32.mrf.mxu1 }
 0x534   : > { %v20110_v5 = vpop.f32.mrf.mxu0 }
 0x535   : > { %v20126_v3 = vpop.f32.mrf.mxu1 }
 0x536   : > { %v20116_v27 = vpop.f32.mrf.mxu0 }
 0x537   : > { %v20130_v50 = vpop.f32.mrf.mxu1 }
 0x538   : > { %v20120_v14 = vpop.f32.mrf.mxu0 }
 0x539   : > { %v20146_v53 = vpop.f32.mrf.mxu1 }
 0x53c   : > { %v20124_v55 = vpop.f32.mrf.mxu0 }
 0x53d   : > { %v20160_v22 = vpop.f32.mrf.mxu1 }
 0x53e   : > { %v20128_v59 = vpop.f32.mrf.mxu0 }
 0x53f   : > { %v20166_v42 = vpop.f32.mrf.mxu1 }
 0x542   : > { %v20141_v2 = vpop.f32.mrf.mxu0 }
 0x543   : > { %v20184_v12 = vpop.f32.mrf.mxu1 }
 0x544   : > { %v20158_v8 = vpop.f32.mrf.mxu0 }
 0x545   : > { %v20210_v54 = vpop.f32.mrf.mxu1 }
 0x548   : > { %v20164_v24 = vpop.f32.mrf.mxu0 }
 0x549   : > { %v20230_v0 = vpop.f32.mrf.mxu1 }
 0x54a   : > { %v20182_v62 = vpop.f32.mrf.mxu0 }
 0x54b   : > { %v20250_v44 = vpop.f32.mrf.mxu1 }
 0x54e   : > { %v20200_v36 = vpop.f32.mrf.mxu0 }
 0x54f   : > { %v20270_v37 = vpop.f32.mrf.mxu1 }
 0x550   : > { %v20220_v29 = vpop.f32.mrf.mxu0 }
 0x551   : > { %v20290_v51 = vpop.f32.mrf.mxu1 }
 0x552   : > { %21920 = vst [vmem:[#allocation23_spill] sm:$0xff] %v20290_v51 }
 0x55f   : > { %v20232_v21 = vpop.f32.mrf.mxu0 }
 0x560   : > { %v15085_v7 = vpop.f32.mrf.mxu1 }
 0x561   : > { %v20252_v56 = vpop.f32.mrf.mxu0 }
 0x562   : > { %v8711_v11 = vpop.f32.mrf.mxu1 }
 0x565   : > { %v20272_v26 = vpop.f32.mrf.mxu0 }
 0x566   : > { %v15088_v30 = vpop.f32.mrf.mxu1 }
 0x567   : > { %v20292_v18 = vpop.f32.mrf.mxu0 }
 0x568   : > { %v20306_v52 = vpop.f32.mrf.mxu1 }
 0x56b   : > { %v15044_v32 = vpop.f32.mrf.mxu0 }
 0x56c   : > { %v20310_v9 = vpop.f32.mrf.mxu1 }
 0x56d   : > { %v20302_v61 = vpop.f32.mrf.mxu0  ;;  %21922 = vst [vmem:[#allocation30_spill] sm:$0xff] %v20310_v9 }
 0x56e   : > { %v20314_v15 = vpop.f32.mrf.mxu1 }
 0x56f   : > { %21924 = vst [vmem:[#allocation13_spill] sm:$0xff] %v20314_v15  ;;  %v8123_v15 = vadd.f32 %v20092_v46, %v20082_v43  ;;  %v8128_v46 = vadd.f32 %v20104_v38, %v20088_v40 }
 0x571   : > { %v20304_v35 = vpop.f32.mrf.mxu0 }
 0x572   : > { %v20318_v63 = vpop.f32.mrf.mxu1 }
 0x573   : > { %v20308_v16 = vpop.f32.mrf.mxu0  ;;  %21926 = vst [vmem:[#allocation16_spill] sm:$0xff] %v20318_v63  ;;  %v8118_v63 = vadd.f32 %v20096_v47, %v20084_v31  ;;  %v8143_v31 = vadd.f32 %v20108_v45, %v20090_v20  ;;  %v8138_v47 = vadd.f32 %v20112_v1, %v20094_v13  ;;  %v8148_v45 = vadd.f32 %v20118_v6, %v20102_v17 }
 0x574   : > { %21921 = vst [vmem:[#allocation7_spill] sm:$0xff] %v20308_v16  ;;  %v20320_v60 = vpop.f32.mrf.mxu1 }
 0x575   : > { %21927 = vst [vmem:[#allocation8_spill] sm:$0xff] %v20320_v60  ;;  %v8308_v60 = vadd.f32 %v20116_v27, %v8123_v15  ;;  %v8153_v27 = vadd.f32 %v20114_v19, %v20098_v49  ;;  %v8311_v20 = vadd.f32 %v20158_v8, %v8138_v47  ;;  %v8163_v19 = vadd.f32 %v20122_v25, %v20106_v57 }
 0x576   : > { %v8313_v8 = vadd.f32 %v20182_v62, %v8148_v45 }
 0x577   : > { %v20312_v4 = vpop.f32.mrf.mxu0  ;;  %v8314_v1 = vadd.f32 %v20164_v24, %v8153_v27  ;;  %v8462_v17 = vadd.f32 %v20210_v54, %v8311_v20  ;;  %v8316_v57 = vadd.f32 %v20200_v36, %v8163_v19 }
 0x578   : > { %21923 = vst [vmem:[#allocation32_spill] sm:$0xff] %v20312_v4  ;;  %v20322_v33 = vpop.f32.mrf.mxu1 }
 0x579   : > { %v20316_v58 = vpop.f32.mrf.mxu0  ;;  %21928 = vst [vmem:[#allocation47_spill] sm:$0xff] %v20322_v33  ;;  %v8133_v33 = vadd.f32 %v20100_v41, %v20086_v34 }
 0x57a   : > { %21925 = vst [vmem:[#allocation49_spill] sm:$0xff] %v20316_v58  ;;  %v20326_v48 = vpop.f32.mrf.mxu1 }
 0x57b   : > { %21930 = vst [vmem:[#allocation18_spill] sm:$0xff] %v20326_v48  ;;  %v8310_v9 = vadd.f32 %v20124_v55, %v8133_v33  ;;  %v8312_v55 = vadd.f32 %v20141_v2, %v8143_v31 }
 0x57d   : > { %v8461_v40 = vadd.f32 %v20160_v22, %v8310_v9  ;;  %v8463_v2 = vadd.f32 %v20184_v12, %v8312_v55 }
 0x57f   : > { %v8612_v49 = vadd.f32 %v20272_v26, %v8461_v40  ;;  %v8465_v26 = vadd.f32 %v20230_v0, %v8314_v1  ;;  %v8467_v0 = vadd.f32 %v20270_v37, %v8316_v57  ;;  %v21937_v33 = vld [vmem:[#allocation32_spill] sm:$0xff] }
 0x580   : > { %v21940_v40 = vld [vmem:[#allocation8_spill] sm:$0xff] }
 0x581   : > { %v8763_v62 = vadd.f32 %v15088_v30, %v8612_v49 }
 0x589   : > { %v15132_v28 = vpop.f32.mrf.mxu0 }
 0x58a   : > { %v15179_v4 = vpop.f32.mrf.mxu1 }
 0x58b   : > { %v8862_v10 = vpop.f32.mrf.mxu0 }
 0x58c   : > { %v9013_v16 = vpop.f32.mrf.mxu1 }
 0x58d   : > { %v15135_v39 = vpop.f32.mrf.mxu0 }
 0x58e   : > { %v15182_v43 = vpop.f32.mrf.mxu1  ;;  %v8914_v9 = vadd.f32 %v15135_v39, %v8763_v62  ;;  %v21936_v39 = vld [vmem:[#allocation16_spill] sm:$0xff] }
 0x58f   : > { %v20324_v23 = vpop.f32.mrf.mxu0 }
 0x590   : > { %21929 = vst [vmem:[#allocation15_spill] sm:$0xff] %v20324_v23  ;;  %v8307_v23 = vadd.f32 %v20120_v14, %v8118_v63  ;;  %v8309_v14 = vadd.f32 %v20128_v59, %v8128_v46  ;;  %v9023_v13 = vpop.f32.mrf.mxu1  ;;  %v21933_v63 = vld [vmem:[#allocation7_spill] sm:$0xff] }
 0x591   : > { %v20328_v51 = vpop.f32.mrf.mxu0 }
 0x592   : > { %21931 = vst [vmem:[#allocation55_spill] sm:$0xff] %v20328_v51  ;;  %v8459_v51 = vadd.f32 %v20130_v50, %v8308_v60  ;;  %v8458_v34 = vadd.f32 %v20146_v53, %v8307_v23  ;;  %v8460_v59 = vadd.f32 %v20166_v42, %v8309_v14  ;;  %v8614_v42 = vadd.f32 %v15044_v32, %v8463_v2  ;;  %v21942_v2 = vld [vmem:[#allocation47_spill] sm:$0xff] }
 0x593   : > { %v20332_v58 = vpop.f32.mrf.mxu0 }
 0x594   : > { %v8610_v41 = vadd.f32 %v20232_v21, %v8459_v51  ;;  %v8609_v38 = vadd.f32 %v20252_v56, %v8458_v34  ;;  %v8158_v21 = vadd.f32 %v20126_v3, %v20110_v5  ;;  %v15185_v56 = vpop.f32.mrf.mxu1  ;;  %v8611_v25 = vadd.f32 %v20292_v18, %v8460_v59  ;;  %v21932_v18 = vld [vmem:[#allocation30_spill] sm:$0xff] }
 0x595   : > { %v20340_v48 = vpop.f32.mrf.mxu0  ;;  %v8613_v51 = vadd.f32 %v20302_v61, %v8462_v17  ;;  %v8464_v5 = vadd.f32 %v20250_v44, %v8313_v8  ;;  %v8616_v3 = vadd.f32 %v20304_v35, %v8465_v26  ;;  %v8765_v32 = vadd.f32 %v21932_v18, %v8614_v42  ;;  %v20389_v61 = vld [vmem:[%s21587_s4] ss:$0 sm:$0xff] }
 0x596   : > { %v8761_v53 = vadd.f32 %v15085_v7, %v8610_v41  ;;  %v8760_v6 = vadd.f32 %v8711_v11, %v8609_v38  ;;  %v8315_v12 = vadd.f32 %v20220_v29, %v8158_v21  ;;  %v9033_v15 = vpop.f32.mrf.mxu1  ;;  %v8762_v36 = vadd.f32 %v20306_v52, %v8611_v25  ;;  %v21934_v44 = vld [vmem:[#allocation23_spill] sm:$0xff]  ;;  %v21941_v38 = vld [vmem:[#allocation49_spill] sm:$0xff] }
 0x597   : > { %v20356_v50 = vpop.f32.mrf.mxu0  ;;  %v8615_v29 = vadd.f32 %v21933_v63, %v8464_v5  ;;  %v8767_v37 = vadd.f32 %v21936_v39, %v8616_v3  ;;  %v8618_v52 = vadd.f32 %v21937_v33, %v8467_v0  ;;  %v21938_v23 = vld [vmem:[#allocation15_spill] sm:$0xff]  ;;  %v9065_v41 = vadd.f32 %v15182_v43, %v8914_v9 }
 0x598   : > { %v8912_v24 = vadd.f32 %v15132_v28, %v8761_v53  ;;  %v8911_v7 = vadd.f32 %v8862_v10, %v8760_v6  ;;  %v8466_v35 = vadd.f32 %v21934_v44, %v8315_v12  ;;  %v21935_v28 = vld [vmem:[#allocation13_spill] sm:$0xff]  ;;  %v8913_v46 = vadd.f32 %v21938_v23, %v8762_v36  ;;  %v15188_v27 = vpop.f32.mrf.mxu1 }
 0x599   : > { %v20370_v22 = vpop.f32.mrf.mxu0  ;;  %v21939_v31 = vld [vmem:[#allocation55_spill] sm:$0xff]  ;;  %v8766_v20 = vadd.f32 %v21940_v40, %v8615_v29  ;;  %v8918_v1 = vadd.f32 %v20340_v48, %v8767_v37  ;;  %v8769_v43 = vadd.f32 %v21942_v2, %v8618_v52  ;;  %v21943_v48 = vld [vmem:[#allocation18_spill] sm:$0xff] }
 0x59a   : > { %v9063_v11 = vadd.f32 %v15179_v4, %v8912_v24  ;;  %v8764_v4 = vadd.f32 %v21935_v28, %v8613_v51  ;;  %v9062_v10 = vadd.f32 %v9013_v16, %v8911_v7  ;;  %v8916_v47 = vadd.f32 %v21939_v31, %v8765_v32  ;;  %v9043_v24 = vpop.f32.mrf.mxu1 }
 0x59b   : > { %v8902_v54 = vpop.f32.mrf.mxu0  ;;  %v8617_v45 = vadd.f32 %v21941_v38, %v8466_v35  ;;  %v9064_v8 = vadd.f32 %v9023_v13, %v8913_v46  ;;  %v8917_v17 = vadd.f32 %v20356_v50, %v8766_v20  ;;  %v9069_v12 = vadd.f32 %v15188_v27, %v8918_v1 }
 0x59c   : > { %v8915_v16 = vadd.f32 %v20332_v58, %v8764_v4  ;;  %v9067_v21 = vadd.f32 %v15185_v56, %v8916_v47  ;;  %v15191_v7 = vpop.f32.mrf.mxu1  ;;  %v8920_v50 = vadd.f32 %v20370_v22, %v8769_v43 }
 0x59d   : > { %v8768_v25 = vadd.f32 %v21943_v48, %v8617_v45  ;;  %v9068_v36 = vadd.f32 %v9043_v24, %v8917_v17 }
 0x59e   : > { %v9066_v42 = vadd.f32 %v9033_v15, %v8915_v16  ;;  %v9053_v35 = vpop.f32.mrf.mxu1 }
 0x59f   : > { %v8919_v63 = vadd.f32 %v8902_v54, %v8768_v25 }
 0x5a1   : > { %v9070_v46 = vadd.f32 %v9053_v35, %v8919_v63 }
 0x5ab   : > { %v15226_v30 = vpop.f32.mrf.mxu0 }
 0x5ac   : > { %v9214_v60 = vadd.f32 %v15226_v30, %v9063_v11 }
 0x5ad   : > { %v9164_v34 = vpop.f32.mrf.mxu0 }
 0x5ae   : > { %v9231_v14 = vadd.f32 %v20389_v61, %v9214_v60  ;;  %v9213_v55 = vadd.f32 %v9164_v34, %v9062_v10  ;;  %v9071_v10 = vadd.f32 %v15191_v7, %v8920_v50 }
 0x5af   : > { %v15229_v53 = vpop.f32.mrf.mxu0 }
 0x5b0   : > { %vm9241_vm3 = vcmp.ge.f32.partialorder %v9231_v14, 0.0  ;;  %v9251_v49 = vmul.f32 0.01, %v9231_v14  ;;  %v9230_v19 = vadd.f32 %v20389_v61, %v9213_v55  ;;  %v9216_v59 = vadd.f32 %v15229_v53, %v9065_v41 }
 0x5b1   : > { %v9174_v6 = vpop.f32.mrf.mxu0 }
 0x5b2   : > { %v9261_v26 = vsel %vm9241_vm3, %v9231_v14, %v9251_v49  ;;  %vm9240_vm4 = vcmp.ge.f32.partialorder %v9230_v19, 0.0  ;;  %v9250_v57 = vmul.f32 0.01, %v9230_v19  ;;  %v9233_v58 = vadd.f32 %v20389_v61, %v9216_v59 }
 0x5b3   : > { %v9215_v62 = vadd.f32 %v9174_v6, %v9064_v8  ;;  %v15232_v51 = vpop.f32.mrf.mxu0  ;;  %v9281_v3 = vrot.slane %v9261_v26, 1 }
 0x5b4   : > { %v9260_v5 = vsel %vm9240_vm4, %v9230_v19, %v9250_v57  ;;  %vm9243_vm5 = vcmp.ge.f32.partialorder %v9233_v58, 0.0  ;;  %v9253_v13 = vmul.f32 0.01, %v9233_v58  ;;  %v9218_v56 = vadd.f32 %v15232_v51, %v9067_v21 }
 0x5b5   : > { %v9280_v11 = vrot.slane %v9260_v5, 1  ;;  %v9232_v9 = vadd.f32 %v20389_v61, %v9215_v62  ;;  %v9184_v0 = vpop.f32.mrf.mxu0 }
 0x5b6   : > { %v9263_v18 = vsel %vm9243_vm5, %v9233_v58, %v9253_v13  ;;  %v9235_v32 = vadd.f32 %v20389_v61, %v9218_v56  ;;  %v9217_v15 = vadd.f32 %v9184_v0, %v9066_v42 }
 0x5b7   : > { %v9282_v29 = vsel %vm7501_vm8, %v9280_v11, %v9281_v3  ;;  %vm9242_vm6 = vcmp.ge.f32.partialorder %v9232_v9, 0.0  ;;  %v9252_v30 = vmul.f32 0.01, %v9232_v9  ;;  %v15235_v44 = vpop.f32.mrf.mxu0  ;;  %v9285_v60 = vrot.slane %v9263_v18, 1 }
 0x5b8   : > { %v9309_v28 = vmax.f32 %v9260_v5, %v9282_v29  ;;  %vm9245_vm7 = vcmp.ge.f32.partialorder %v9235_v32, 0.0  ;;  %v9255_v22 = vmul.f32 0.01, %v9235_v32  ;;  %v9234_v4 = vadd.f32 %v20389_v61, %v9217_v15 }
 0x5b9   : > { %v9262_v39 = vsel %vm9242_vm6, %v9232_v9, %v9252_v30  ;;  %v9220_v37 = vadd.f32 %v15235_v44, %v9069_v12  ;;  %v9194_v33 = vpop.f32.mrf.mxu0 }
 0x5ba   : > { %v9283_v52 = vrot.slane %v9262_v39, 1  ;;  %v9265_v23 = vsel %vm9245_vm7, %v9235_v32, %v9255_v22  ;;  %vm9244_vm9 = vcmp.ge.f32.partialorder %v9234_v4, 0.0  ;;  %v9254_v54 = vmul.f32 0.01, %v9234_v4 }
 0x5bb   : > { %v9289_v31 = vrot.slane %v9265_v23, 1  ;;  %v9237_v47 = vadd.f32 %v20389_v61, %v9220_v37  ;;  %v9219_v34 = vadd.f32 %v9194_v33, %v9068_v36  ;;  %v15238_v41 = vpop.f32.mrf.mxu0 }
 0x5bc   : > { %v9284_v27 = vsel %vm7501_vm8, %v9281_v3, %v9283_v52  ;;  %v9286_v14 = vsel %vm7501_vm8, %v9283_v52, %v9285_v60  ;;  %v9264_v55 = vsel %vm9244_vm9, %v9234_v4, %v9254_v54  ;;  %v9222_v40 = vadd.f32 %v15238_v41, %v9071_v10 }
 0x5bd   : > { %v9310_v20 = vmax.f32 %v9261_v26, %v9284_v27  ;;  %v9311_v38 = vmax.f32 %v9262_v39, %v9286_v14  ;;  %v9287_v45 = vrot.slane %v9264_v55, 1  ;;  %vm9247_vm10 = vcmp.ge.f32.partialorder %v9237_v47, 0.0  ;;  %v9204_v16 = vpop.f32.mrf.mxu0  ;;  %v11868_v27 = vld [vmem:[%s21586_s3 + $0x178] sm:$0xff] }
 0x5be   : > { %v9257_v1 = vmul.f32 0.01, %v9237_v47  ;;  %v9236_v53 = vadd.f32 %v20389_v61, %v9219_v34  ;;  %v9239_v49 = vadd.f32 %v20389_v61, %v9222_v40  ;;  %v9221_v19 = vadd.f32 %v9204_v16, %v9070_v46  ;;  %v11884_v14 = vld [vmem:[%s21586_s3 + $0x1f8] sm:$0xff]  ;;  %v21944_v16 = vld [vmem:[#allocation11_spill] sm:$0xff] }
 0x5bf   : > { %v9328_v59 = vrot.slane %v9310_v20, 2  ;;  %v9329_v2 = vrot.slane %v9311_v38, 2  ;;  %v9288_v43 = vsel %vm7501_vm8, %v9285_v60, %v9287_v45  ;;  %v9290_v8 = vsel %vm7501_vm8, %v9287_v45, %v9289_v31  ;;  %v11883_v45 = vld [vmem:[%s21586_s3 + $0x1f0] sm:$0xff] }
 0x5c0   : > { %v9312_v21 = vmax.f32 %v9263_v18, %v9288_v43  ;;  %v9313_v17 = vmax.f32 %v9264_v55, %v9290_v8  ;;  %v9267_v6 = vsel %vm9247_vm10, %v9237_v47, %v9257_v1  ;;  %vm9246_vm11 = vcmp.ge.f32.partialorder %v9236_v53, 0.0  ;;  %v11864_v8 = vld [vmem:[%s21586_s3 + $0x158] sm:$0xff] }
 0x5c1   : > { %v9330_v24 = vsel %vm7679_vm14, %v9328_v59, %v9329_v2  ;;  %v9256_v26 = vmul.f32 0.01, %v9236_v53  ;;  %vm9249_vm12 = vcmp.ge.f32.partialorder %v9239_v49, 0.0  ;;  %v9259_v25 = vmul.f32 0.01, %v9239_v49  ;;  %v11881_v59 = vld [vmem:[%s21586_s3 + $0x1e0] sm:$0xff] }
 0x5c2   : > { %v9354_v57 = vmax.f32 %v9309_v28, %v9330_v24  ;;  %v9331_v58 = vrot.slane %v9312_v21, 2  ;;  %v9333_v48 = vrot.slane %v9313_v17, 2  ;;  %v9293_v42 = vrot.slane %v9267_v6, 1  ;;  %v11863_v24 = vld [vmem:[%s21586_s3 + $0x150] sm:$0xff] }
 0x5c3   : > { %v9266_v12 = vsel %vm9246_vm11, %v9236_v53, %v9256_v26  ;;  %v9238_v62 = vadd.f32 %v20389_v61, %v9221_v19  ;;  %v9269_v13 = vsel %vm9249_vm12, %v9239_v49, %v9259_v25  ;;  %v11866_v53 = vld [vmem:[%s21586_s3 + $0x168] sm:$0xff]  ;;  %v11865_v19 = vld [vmem:[%s21586_s3 + $0x160] sm:$0xff]  ;;  %v11879_v26 = vld [vmem:[%s21586_s3 + $0x1d0] sm:$0xff] }
 0x5c4   : > { %9363 = vst [vmem:[#allocation4] sm:$0xff] %v9354_v57  ;;  %v9332_v51 = vsel %vm7679_vm14, %v9329_v2, %v9331_v58  ;;  %v9334_v7 = vsel %vm7679_vm14, %v9331_v58, %v9333_v48  ;;  %v9291_v5 = vrot.slane %v9266_v12, 1  ;;  %v9297_v3 = vrot.slane %v9269_v13, 1  ;;  %v11882_v49 = vld [vmem:[%s21586_s3 + $0x1e8] sm:$0xff] }
 0x5c5   : > { %v9355_v56 = vmax.f32 %v9310_v20, %v9332_v51  ;;  %v9356_v50 = vmax.f32 %v9311_v38, %v9334_v7  ;;  %vm9248_vm13 = vcmp.ge.f32.partialorder %v9238_v62, 0.0  ;;  %v9258_v0 = vmul.f32 0.01, %v9238_v62  ;;  %v11867_v38 = vld [vmem:[%s21586_s3 + $0x170] sm:$0xff]  ;;  %v11862_v25 = vld [vmem:[%s21586_s3 + $0x148] sm:$0xff]  ;;  %v11861_v51 = vld [vmem:[%s21586_s3 + $0x140] sm:$0xff] }
 0x5c6   : > { %v9292_v11 = vsel %vm7501_vm8, %v9289_v31, %v9291_v5  ;;  %v9294_v9 = vsel %vm7501_vm8, %v9291_v5, %v9293_v42  ;;  %v9318_v18 = vmax.f32 %v9269_v13, %v9297_v3  ;;  %v11877_v7 = vld [vmem:[%s21586_s3 + $0x1c0] sm:$0xff] }
 0x5c7   : > { %9365 = vst [vmem:[#allocation4 + $0x10] sm:$0xff] %v9356_v50  ;;  %9364 = vst [vmem:[#allocation4 + $0x8] sm:$0xff] %v9355_v56  ;;  %v9314_v36 = vmax.f32 %v9265_v23, %v9292_v11  ;;  %v9315_v61 = vmax.f32 %v9266_v12, %v9294_v9  ;;  %v9268_v32 = vsel %vm9248_vm13, %v9238_v62, %v9258_v0  ;;  %v11878_v62 = vld [vmem:[%s21586_s3 + $0x1c8] sm:$0xff]  ;;  %v11860_v11 = vld [vmem:[%s21586_s3 + $0x138] sm:$0xff] }
 0x5c8   : > { %v9295_v29 = vrot.slane %v9268_v32, 1  ;;  %v9343_v30 = vrot.slane %v9318_v18, 2  ;;  %v11876_v9 = vld [vmem:[%s21586_s3 + $0x1b8] sm:$0xff]  ;;  %v11859_v0 = vld [vmem:[%s21586_s3 + $0x130] sm:$0xff]  ;;  %v11874_v18 = vld [vmem:[%s21586_s3 + $0x1a8] sm:$0xff] }
 0x5c9   : > { %v9335_v15 = vrot.slane %v9314_v36, 2  ;;  %v9337_v63 = vrot.slane %v9315_v61, 2 }
 0x5ca   : > { %v9296_v22 = vsel %vm7501_vm8, %v9293_v42, %v9295_v29  ;;  %v9298_v4 = vsel %vm7501_vm8, %v9295_v29, %v9297_v3  ;;  %v11872_v29 = vld [vmem:[%s21586_s3 + $0x198] sm:$0xff] }
 0x5cb   : > { %v9373_v44 = vld [vmem:[#allocation4] ss:$2 sm:$0xf]  ;;  %v9336_v35 = vsel %vm7679_vm14, %v9333_v48, %v9335_v15  ;;  %v9338_v28 = vsel %vm7679_vm14, %v9335_v15, %v9337_v63  ;;  %v9316_v39 = vmax.f32 %v9267_v6, %v9296_v22  ;;  %v9317_v37 = vmax.f32 %v9268_v32, %v9298_v4  ;;  %v20492_v48 = vld [vmem:[#allocation3 + $0x133] sm:$0xff] }
 0x5cc   : > { %9374 = vst [vmem:[#allocation3 + $0x7] sm:$0xf] %v9373_v44  ;;  %v9357_v10 = vmax.f32 %v9312_v21, %v9336_v35  ;;  %v9358_v60 = vmax.f32 %v9313_v17, %v9338_v28  ;;  %v11880_v21 = vld [vmem:[%s21586_s3 + $0x1d8] sm:$0xff]  ;;  %v11857_v32 = vld [vmem:[%s21586_s3 + $0x120] sm:$0xff]  ;;  %v11871_v44 = vld [vmem:[%s21586_s3 + $0x190] sm:$0xff] }
 0x5cd   : > { %v9339_v33 = vrot.slane %v9316_v39, 2  ;;  %v9341_v52 = vrot.slane %v9317_v37, 2  ;;  %v9362_v23 = vmax.f32 %v9317_v37, %v9343_v30  ;;  %v11873_v15 = vld [vmem:[%s21586_s3 + $0x1a0] sm:$0xff]  ;;  %v11854_v35 = vld [vmem:[%s21586_s3 + $0x108] sm:$0xff]  ;;  %v11915_v37 = vld [vmem:[%s21586_s3 + $0x2f0] sm:$0xff] }
 0x5ce   : > { %9366 = vst [vmem:[#allocation4 + $0x18] sm:$0xff] %v9357_v10  ;;  %9367 = vst [vmem:[#allocation4 + $0x20] sm:$0xff] %v9358_v60  ;;  %v11870_v28 = vld [vmem:[%s21586_s3 + $0x188] sm:$0xff]  ;;  %v11853_v22 = vld [vmem:[%s21586_s3 + $0x100] sm:$0xff] }
 0x5cf   : > { %v9340_v54 = vsel %vm7679_vm14, %v9337_v63, %v9339_v33  ;;  %v9342_v46 = vsel %vm7679_vm14, %v9339_v33, %v9341_v52  ;;  %v9344_v31 = vsel %vm7679_vm14, %v9341_v52, %v9343_v30  ;;  %9371 = vst [vmem:[#allocation4 + $0x40] sm:$0x7] %v9362_v23  ;;  %v11856_v63 = vld [vmem:[%s21586_s3 + $0x118] sm:$0xff]  ;;  %v11855_v30 = vld [vmem:[%s21586_s3 + $0x110] sm:$0xff]  ;;  %v11869_v4 = vld [vmem:[%s21586_s3 + $0x180] sm:$0xff] }
 0x5d0   : > { %v9359_v47 = vmax.f32 %v9314_v36, %v9340_v54  ;;  %v9360_v34 = vmax.f32 %v9315_v61, %v9342_v46  ;;  %v9361_v41 = vmax.f32 %v9316_v39, %v9344_v31  ;;  %v11875_v36 = vld [vmem:[%s21586_s3 + $0x1b0] sm:$0xff]  ;;  %v11858_v61 = vld [vmem:[%s21586_s3 + $0x128] sm:$0xff]  ;;  %v11900_v10 = vld [vmem:[%s21586_s3 + $0x278] sm:$0xff] }
 0x5d1   : > { %v11916_v60 = vld [vmem:[%s21586_s3 + $0x2f8] sm:$0xff]  ;;  %v11899_v39 = vld [vmem:[%s21586_s3 + $0x270] sm:$0xff]  ;;  %v11898_v33 = vld [vmem:[%s21586_s3 + $0x268] sm:$0xff] }
 0x5d2   : > { %9368 = vst [vmem:[#allocation4 + $0x28] sm:$0xff] %v9359_v47  ;;  %9369 = vst [vmem:[#allocation4 + $0x30] sm:$0xff] %v9360_v34  ;;  %v11914_v52 = vld [vmem:[%s21586_s3 + $0x2e8] sm:$0xff]  ;;  %v11897_v23 = vld [vmem:[%s21586_s3 + $0x260] sm:$0xff] }
 0x5d3   : > { %9370 = vst [vmem:[#allocation4 + $0x38] sm:$0xff] %v9361_v41  ;;  %v9408_v55 = vld [vmem:[#allocation3 + $0x1] sm:$0xff]  ;;  %v11913_v54 = vld [vmem:[%s21586_s3 + $0x2e0] sm:$0xff]  ;;  %v11896_v46 = vld [vmem:[%s21586_s3 + $0x258] sm:$0xff] }
 0x5d4   : > { %v9389_v40 = vld [vmem:[#allocation3] sm:$0xff]  ;;  %15272 = vmatmul.mubr.f32.vlgmr.msra.gmra.mxu1 %v9408_v55  ;;  %v11912_v34 = vld [vmem:[%s21586_s3 + $0x2d8] sm:$0xff]  ;;  %v11895_v41 = vld [vmem:[%s21586_s3 + $0x250] sm:$0xff] }
 0x5d5   : > { %v20438_v20 = vld [vmem:[#allocation3 + $0x2] sm:$0xff]  ;;  %15313 = vmatmul.mubr.f32.vlgmr.msra.gmra.mxu0 %v9389_v40  ;;  %15322 = vmatpush3.msra.mxu1 %v11868_v27  ;;  %v11893_v40 = vld [vmem:[%s21586_s3 + $0x240] sm:$0xff] }
 0x5d6   : > { %10349 = vst [vmem:[#allocation3] sm:$0x1f] %v21944_v16  ;;  %v9377_v1 = vld [vmem:[#allocation4 + $0x14] ss:$2 sm:$0xf]  ;;  %15363 = vmatpush3.msra.mxu0 %v11884_v14  ;;  %15323 = vmatprep.subr.mxu1 %v21944_v16  ;;  %v11911_v27 = vld [vmem:[%s21586_s3 + $0x2d0] sm:$0xff] }
 0x5d7   : > { %9378 = vst [vmem:[#allocation3 + $0xd] sm:$0xf] %v9377_v1  ;;  %15364 = vmatprep.subr.mxu0 %v21944_v16  ;;  %15324 = vmatpush3.msra.mxu1 %v11867_v38  ;;  %v11894_v14 = vld [vmem:[%s21586_s3 + $0x248] sm:$0xff]  ;;  %v11892_v38 = vld [vmem:[%s21586_s3 + $0x238] sm:$0xff]  ;;  %v11907_v1 = vld [vmem:[%s21586_s3 + $0x2b0] sm:$0xff] }
 0x5d8   : > { %15365 = vmatpush3.msra.mxu0 %v11883_v45  ;;  %15325 = vmatprep.subr.mxu1 %v21944_v16  ;;  %v11910_v55 = vld [vmem:[%s21586_s3 + $0x2c8] sm:$0xff]  ;;  %v11908_v45 = vld [vmem:[%s21586_s3 + $0x2b8] sm:$0xff] }
 0x5d9   : > { %15366 = vmatprep.subr.mxu0 %v21944_v16  ;;  %15326 = vmatpush3.msra.mxu1 %v11866_v53  ;;  %v9381_v2 = vld [vmem:[#allocation4 + $0x28] ss:$2 sm:$0xf]  ;;  %v11890_v53 = vld [vmem:[%s21586_s3 + $0x228] sm:$0xff] }
 0x5da   : > { %15367 = vmatpush3.msra.mxu0 %v11882_v49  ;;  %v9385_v43 = vld [vmem:[#allocation4 + $0x3c] ss:$2 sm:$0xf]  ;;  %15327 = vmatprep.subr.mxu1 %v21944_v16  ;;  %9382 = vst [vmem:[#allocation3 + $0x13] sm:$0xf] %v9381_v2  ;;  %v11888_v2 = vld [vmem:[%s21586_s3 + $0x218] sm:$0xff] }
 0x5db   : > { %15368 = vmatprep.subr.mxu0 %v21944_v16  ;;  %9386 = vst [vmem:[#allocation3 + $0x19] sm:$0xf] %v9385_v43  ;;  %15328 = vmatpush3.msra.mxu1 %v11865_v19  ;;  %v11906_v49 = vld [vmem:[%s21586_s3 + $0x2a8] sm:$0xff]  ;;  %v11889_v19 = vld [vmem:[%s21586_s3 + $0x220] sm:$0xff]  ;;  %v11904_v43 = vld [vmem:[%s21586_s3 + $0x298] sm:$0xff] }
 0x5dc   : > { %15369 = vmatpush3.msra.mxu0 %v11881_v59  ;;  %15274 = vmatprep.mubr.msk.f32.mxu1 %vm15963_vm2, %v21944_v16  ;;  %v11905_v59 = vld [vmem:[%s21586_s3 + $0x2a0] sm:$0xff] }
 0x5dd   : > { %15315 = vmatprep.mubr.msk.f32.mxu0 %vm15963_vm2, %v21944_v16  ;;  %15329 = vmatprep.subr.mxu1 %v21944_v16 }
 0x5de   : > { %15370 = vmatprep.subr.mxu0 %v21944_v16  ;;  %v9409_v17 = vld [vmem:[#allocation3 + $0x9] sm:$0xff]  ;;  %15330 = vmatpush3.msra.mxu1 %v11864_v8 }
 0x5df   : > { %v20477_v6 = vld [vmem:[#allocation3 + $0x8] sm:$0xff]  ;;  %15275 = vmatmul.mubr.f32.gmra.mxu1 %v9409_v17  ;;  %15371 = vmatpush3.msra.mxu0 %v11880_v21  ;;  %v11886_v17 = vld [vmem:[%s21586_s3 + $0x208] sm:$0xff] }
 0x5e0   : > { %15316 = vmatmul.mubr.f32.gmra.mxu0 %v20477_v6  ;;  %v20486_v57 = vld [vmem:[#allocation3 + $0x6] sm:$0xff]  ;;  %15331 = vmatprep.subr.mxu1 %v21944_v16 }
 0x5e1   : > { %v20488_v58 = vld [vmem:[#allocation3 + $0x7] sm:$0xff]  ;;  %15372 = vmatprep.subr.mxu0 %v20492_v48  ;;  %15332 = vmatpush3.msra.mxu1 %v11863_v24  ;;  %v9410_v42 = vld [vmem:[#allocation3 + $0x11] sm:$0x3f] }
 0x5e2   : > { %10352 = vst [vmem:[#allocation3 + $0x7] sm:$0x3] %v21944_v16  ;;  %15373 = vmatpush3.msra.mxu0 %v11879_v26  ;;  %15277 = vmatprep.mubr.msk.f32.mxu1 %vm15963_vm2, %v20492_v48  ;;  %v9391_v12 = vld [vmem:[#allocation3 + $0x10] sm:$0x3f]  ;;  %v9691_v47 = vld [vmem:[#allocation3 + $0x16] sm:$0x3f] }
 0x5e3   : > { %15318 = vmatprep.mubr.msk.f32.mxu0 %vm15963_vm2, %v20492_v48  ;;  %15333 = vmatprep.subr.mxu1 %v20492_v48  ;;  %v20513_v5 = vld [vmem:[#allocation3 + $0xa] sm:$0xff]  ;;  %v9589_v31 = vld [vmem:[#allocation3 + $0x12] sm:$0x3f]  ;;  %v11902_v24 = vld [vmem:[%s21586_s3 + $0x288] sm:$0xff] }
 0x5e4   : > { %15374 = vmatprep.subr.mxu0 %v20492_v48  ;;  %15278 = vmatmul.mubr.f32.gmra.mxu1 %v9410_v42  ;;  %v20515_v13 = vld [vmem:[#allocation3 + $0xe] sm:$0xff]  ;;  %v11885_v26 = vld [vmem:[%s21586_s3 + $0x200] sm:$0xff] }
 0x5e5   : > { %15319 = vmatmul.mubr.f32.gmra.mxu0 %v9391_v12  ;;  %15334 = vmatpush3.msra.mxu1 %v11862_v25  ;;  %v20517_v56 = vld [vmem:[#allocation3 + $0xf] sm:$0xff] }
 0x5e6   : > { %15375 = vmatpush3.msra.mxu0 %v11878_v62  ;;  %v20519_v50 = vld [vmem:[#allocation3 + $0xc] sm:$0xff]  ;;  %15335 = vmatprep.subr.mxu1 %v20492_v48 }
 0x5e7   : > { %v20521_v3 = vld [vmem:[#allocation3 + $0xd] sm:$0xff]  ;;  %15376 = vmatprep.subr.mxu0 %v20492_v48  ;;  %10356 = vst [vmem:[#allocation3 + $0xb] sm:$0x3] %v20492_v48  ;;  %15336 = vmatpush3.msra.mxu1 %v11861_v51  ;;  %v11946_v51 = vld [vmem:[%s21586_s3 + $0x3e8] sm:$0xff] }
 0x5e8   : > { %10357 = vst [vmem:[#allocation3 + $0xd] sm:$0x7] %v20492_v48  ;;  %15377 = vmatpush3.msra.mxu0 %v11877_v7  ;;  %15337 = vmatprep.subr.mxu1 %v20492_v48  ;;  %v11891_v16 = vld [vmem:[%s21586_s3 + $0x230] sm:$0xff]  ;;  %v11932_v25 = vld [vmem:[%s21586_s3 + $0x378] sm:$0xff]  ;;  %v11929_v7 = vld [vmem:[%s21586_s3 + $0x360] sm:$0xff] }
 0x5e9   : > { %15378 = vmatprep.subr.mxu0 %v20492_v48  ;;  %15338 = vmatpush3.msra.mxu1 %v11860_v11  ;;  %v11887_v8 = vld [vmem:[%s21586_s3 + $0x210] sm:$0xff]  ;;  %v11948_v42 = vld [vmem:[%s21586_s3 + $0x3f8] sm:$0xff] }
 0x5ea   : > { %15379 = vmatpush3.msra.mxu0 %v11876_v9  ;;  %15339 = vmatprep.subr.mxu1 %v20492_v48  ;;  %v11903_v21 = vld [vmem:[%s21586_s3 + $0x290] sm:$0xff]  ;;  %v9793_v11 = vld [vmem:[#allocation3 + $0x17] sm:$0x3f] }
 0x5eb   : > { %15380 = vmatprep.subr.mxu0 %v20492_v48  ;;  %15340 = vmatpush3.msra.mxu1 %v11859_v0  ;;  %v11931_v12 = vld [vmem:[%s21586_s3 + $0x370] sm:$0xff]  ;;  %v9895_v9 = vld [vmem:[#allocation3 + $0x18] sm:$0x3f]  ;;  %v11944_v0 = vld [vmem:[%s21586_s3 + $0x3d8] sm:$0xff] }
 0x5ec   : > { %15381 = vmatpush3.msra.mxu0 %v11875_v36  ;;  %15341 = vmatprep.subr.mxu1 %v20492_v48  ;;  %v11947_v62 = vld [vmem:[%s21586_s3 + $0x3f0] sm:$0xff] }
 0x5ed   : > { %15382 = vmatprep.subr.mxu0 %v20492_v48  ;;  %15342 = vmatpush3.msra.mxu1 %v11858_v61  ;;  %v11927_v36 = vld [vmem:[%s21586_s3 + $0x350] sm:$0xff] }
 0x5ee   : > { %15383 = vmatpush3.msra.mxu0 %v11874_v18  ;;  %15343 = vmatprep.subr.mxu1 %v20492_v48  ;;  %v11943_v61 = vld [vmem:[%s21586_s3 + $0x3d0] sm:$0xff]  ;;  %v11926_v18 = vld [vmem:[%s21586_s3 + $0x348] sm:$0xff] }
 0x5ef   : > { %15384 = vmatprep.subr.mxu0 %v20492_v48  ;;  %15344 = vmatpush3.msra.mxu1 %v11857_v32  ;;  %v11942_v32 = vld [vmem:[%s21586_s3 + $0x3c8] sm:$0xff] }
 0x5f0   : > { %15385 = vmatpush3.msra.mxu0 %v11873_v15  ;;  %15345 = vmatprep.subr.mxu1 %v20492_v48  ;;  %v11925_v15 = vld [vmem:[%s21586_s3 + $0x340] sm:$0xff] }
 0x5f1   : > { %15386 = vmatprep.subr.mxu0 %v20492_v48  ;;  %15346 = vmatpush3.msra.mxu1 %v11856_v63  ;;  %v11941_v63 = vld [vmem:[%s21586_s3 + $0x3c0] sm:$0xff] }
 0x5f2   : > { %15387 = vmatpush3.msra.mxu0 %v11872_v29  ;;  %15347 = vmatprep.subr.mxu1 %v20492_v48  ;;  %v11924_v29 = vld [vmem:[%s21586_s3 + $0x338] sm:$0xff] }
 0x5f3   : > { %15388 = vmatprep.subr.mxu0 %v20492_v48  ;;  %15348 = vmatpush3.msra.mxu1 %v11855_v30  ;;  %v11940_v30 = vld [vmem:[%s21586_s3 + $0x3b8] sm:$0xff] }
 0x5f4   : > { %15389 = vmatpush3.msra.mxu0 %v11871_v44  ;;  %15349 = vmatprep.subr.mxu1 %v20492_v48  ;;  %v11923_v44 = vld [vmem:[%s21586_s3 + $0x330] sm:$0xff] }
 0x5f5   : > { %15390 = vmatprep.subr.mxu0 %v20492_v48  ;;  %15350 = vmatpush3.msra.mxu1 %v11854_v35  ;;  %v11939_v35 = vld [vmem:[%s21586_s3 + $0x3b0] sm:$0xff] }
 0x5f6   : > { %15391 = vmatpush3.msra.mxu0 %v11870_v28  ;;  %15351 = vmatprep.subr.mxu1 %v20492_v48  ;;  %v11922_v28 = vld [vmem:[%s21586_s3 + $0x328] sm:$0xff] }
 0x5f7   : > { %15392 = vmatprep.subr.mxu0 %v20492_v48  ;;  %15352 = vmatpush3.msra.mxu1 %v11853_v22  ;;  %v11938_v22 = vld [vmem:[%s21586_s3 + $0x3a8] sm:$0xff] }
 0x5f8   : > { %15353 = vmatprep.mubr.msk.f32.mxu1 %vm15963_vm2, %v20492_v48  ;;  %15393 = vmatpush3.msra.mxu0 %v11869_v4  ;;  %v11921_v4 = vld [vmem:[%s21586_s3 + $0x320] sm:$0xff] }
 0x5f9   : > { %15394 = vmatprep.mubr.msk.f32.mxu0 %vm15963_vm2, %v20492_v48  ;;  %15354 = vmatmul.mubr.f32.vlgmr.msra.gmra.mxu1 %v20438_v20  ;;  %v11909_v20 = vld [vmem:[%s21586_s3 + $0x2c0] sm:$0xff] }
 0x5fa   : > { %15395 = vmatmul.mubr.f32.vlgmr.msra.gmra.mxu0 %v20486_v57  ;;  %15403 = vmatprep.subr.mxu1 %v20492_v48  ;;  %v11901_v57 = vld [vmem:[%s21586_s3 + $0x280] sm:$0xff] }
 0x5fb   : > { %15444 = vmatprep.subr.mxu0 %v20492_v48  ;;  %15404 = vmatpush3.msra.mxu1 %v11900_v10  ;;  %v11937_v10 = vld [vmem:[%s21586_s3 + $0x3a0] sm:$0xff] }
 0x5fc   : > { %15445 = vmatpush3.msra.mxu0 %v11916_v60  ;;  %15405 = vmatprep.subr.mxu1 %v20492_v48  ;;  %v11920_v60 = vld [vmem:[%s21586_s3 + $0x318] sm:$0xff] }
 0x5fd   : > { %15446 = vmatprep.subr.mxu0 %v20492_v48  ;;  %15356 = vmatprep.mubr.msk.f32.mxu1 %vm15963_vm2, %v20492_v48 }
 0x5fe   : > { %15397 = vmatprep.mubr.msk.f32.mxu0 %vm15963_vm2, %v20492_v48  ;;  %15406 = vmatpush3.msra.mxu1 %v11899_v39  ;;  %v11936_v39 = vld [vmem:[%s21586_s3 + $0x398] sm:$0xff] }
 0x5ff   : > { %15447 = vmatpush3.msra.mxu0 %v11915_v37  ;;  %15357 = vmatmul.mubr.f32.gmra.mxu1 %v20513_v5  ;;  %v11945_v5 = vld [vmem:[%s21586_s3 + $0x3e0] sm:$0xff]  ;;  %v11919_v37 = vld [vmem:[%s21586_s3 + $0x310] sm:$0xff] }
 0x600   : > { %15398 = vmatmul.mubr.f32.gmra.mxu0 %v20515_v13  ;;  %15407 = vmatprep.subr.mxu1 %v20492_v48 }
 0x601   : > { %15448 = vmatprep.subr.mxu0 %v20492_v48  ;;  %15408 = vmatpush3.msra.mxu1 %v11898_v33  ;;  %v11935_v33 = vld [vmem:[%s21586_s3 + $0x390] sm:$0xff] }
 0x602   : > { %15449 = vmatpush3.msra.mxu0 %v11914_v52  ;;  %15409 = vmatprep.subr.mxu1 %v20492_v48  ;;  %v11918_v52 = vld [vmem:[%s21586_s3 + $0x308] sm:$0xff] }
 0x603   : > { %15450 = vmatprep.subr.mxu0 %v20492_v48  ;;  %15359 = vmatprep.mubr.msk.f32.mxu1 %vm15963_vm2, %v20492_v48 }
 0x604   : > { %15400 = vmatprep.mubr.msk.f32.mxu0 %vm15963_vm2, %v20492_v48  ;;  %15410 = vmatpush3.msra.mxu1 %v11897_v23  ;;  %v11934_v23 = vld [vmem:[%s21586_s3 + $0x388] sm:$0xff] }
 0x605   : > { %15451 = vmatpush3.msra.mxu0 %v11913_v54  ;;  %15360 = vmatmul.mubr.f32.gmra.mxu1 %v9589_v31  ;;  %v11917_v54 = vld [vmem:[%s21586_s3 + $0x300] sm:$0xff]  ;;  %v11964_v31 = vld [vmem:[%s21586_s3 + $0x478] sm:$0xff] }
 0x606   : > { %15401 = vmatmul.mubr.f32.gmra.mxu0 %v9691_v47  ;;  %15411 = vmatprep.subr.mxu1 %v20492_v48  ;;  %v11963_v47 = vld [vmem:[%s21586_s3 + $0x470] sm:$0xff] }
 0x607   : > { %15452 = vmatprep.subr.mxu0 %v20492_v48  ;;  %15412 = vmatpush3.msra.mxu1 %v11896_v46  ;;  %v11933_v46 = vld [vmem:[%s21586_s3 + $0x380] sm:$0xff] }
 0x608   : > { %15453 = vmatpush3.msra.mxu0 %v11912_v34  ;;  %15413 = vmatprep.subr.mxu1 %v20492_v48  ;;  %v10098_v34 = vld [vmem:[#allocation3 + $0x15] sm:$0xff] }
 0x609   : > { %15454 = vmatprep.subr.mxu0 %v20492_v48  ;;  %15414 = vmatpush3.msra.mxu1 %v11895_v41  ;;  %v11961_v41 = vld [vmem:[%s21586_s3 + $0x460] sm:$0xff] }
 0x60a   : > { %15455 = vmatpush3.msra.mxu0 %v11911_v27  ;;  %15415 = vmatprep.subr.mxu1 %v20492_v48  ;;  %v10099_v27 = vld [vmem:[#allocation3 + $0x1d] sm:$0x3f] }
 0x60b   : > { %15456 = vmatprep.subr.mxu0 %v20492_v48  ;;  %15416 = vmatpush3.msra.mxu1 %v11894_v14  ;;  %v11960_v14 = vld [vmem:[%s21586_s3 + $0x458] sm:$0xff] }
 0x60c   : > { %15457 = vmatpush3.msra.mxu0 %v11910_v55  ;;  %15417 = vmatprep.subr.mxu1 %v20492_v48  ;;  %v9997_v55 = vld [vmem:[#allocation3 + $0x1c] sm:$0x3f] }
 0x60d   : > { %15458 = vmatprep.subr.mxu0 %v20492_v48  ;;  %15418 = vmatpush3.msra.mxu1 %v11893_v40  ;;  %v11959_v40 = vld [vmem:[%s21586_s3 + $0x450] sm:$0xff] }
 0x60e   : > { %15459 = vmatpush3.msra.mxu0 %v11909_v20  ;;  %15419 = vmatprep.subr.mxu1 %v20492_v48  ;;  %v11958_v20 = vld [vmem:[%s21586_s3 + $0x448] sm:$0xff] }
 0x60f   : > { %15460 = vmatprep.subr.mxu0 %v20492_v48  ;;  %15420 = vmatpush3.msra.mxu1 %v11892_v38  ;;  %v11957_v38 = vld [vmem:[%s21586_s3 + $0x440] sm:$0xff] }
 0x610   : > { %15461 = vmatpush3.msra.mxu0 %v11908_v45  ;;  %15421 = vmatprep.subr.mxu1 %v20492_v48  ;;  %v11956_v45 = vld [vmem:[%s21586_s3 + $0x438] sm:$0xff] }
 0x611   : > { %15462 = vmatprep.subr.mxu0 %v20492_v48  ;;  %15422 = vmatpush3.msra.mxu1 %v11891_v16  ;;  %v11955_v16 = vld [vmem:[%s21586_s3 + $0x430] sm:$0xff] }
 0x612   : > { %15463 = vmatpush3.msra.mxu0 %v11907_v1  ;;  %15423 = vmatprep.subr.mxu1 %v20492_v48  ;;  %v11954_v1 = vld [vmem:[%s21586_s3 + $0x428] sm:$0xff] }
 0x613   : > { %15464 = vmatprep.subr.mxu0 %v20492_v48  ;;  %15424 = vmatpush3.msra.mxu1 %v11890_v53  ;;  %v11953_v53 = vld [vmem:[%s21586_s3 + $0x420] sm:$0xff] }
 0x614   : > { %15465 = vmatpush3.msra.mxu0 %v11906_v49  ;;  %15425 = vmatprep.subr.mxu1 %v20492_v48  ;;  %v11952_v49 = vld [vmem:[%s21586_s3 + $0x418] sm:$0xff] }
 0x615   : > { %15466 = vmatprep.subr.mxu0 %v20492_v48  ;;  %15426 = vmatpush3.msra.mxu1 %v11889_v19  ;;  %v11951_v19 = vld [vmem:[%s21586_s3 + $0x410] sm:$0xff] }
 0x616   : > { %15467 = vmatpush3.msra.mxu0 %v11905_v59  ;;  %15427 = vmatprep.subr.mxu1 %v20492_v48  ;;  %v11950_v59 = vld [vmem:[%s21586_s3 + $0x408] sm:$0xff] }
 0x617   : > { %15468 = vmatprep.subr.mxu0 %v20492_v48  ;;  %15428 = vmatpush3.msra.mxu1 %v11888_v2  ;;  %v11949_v2 = vld [vmem:[%s21586_s3 + $0x400] sm:$0xff] }
 0x618   : > { %15469 = vmatpush3.msra.mxu0 %v11904_v43  ;;  %15429 = vmatprep.subr.mxu1 %v20492_v48  ;;  %v10200_v43 = vld [vmem:[#allocation3 + $0x16] sm:$0xff] }
 0x619   : > { %15470 = vmatprep.subr.mxu0 %v20492_v48  ;;  %15430 = vmatpush3.msra.mxu1 %v11887_v8  ;;  %v10201_v8 = vld [vmem:[#allocation3 + $0x1e] sm:$0x3f] }
 0x61a   : > { %15471 = vmatpush3.msra.mxu0 %v11903_v21  ;;  %15431 = vmatprep.subr.mxu1 %v20492_v48 }
 0x61b   : > { %15472 = vmatprep.subr.mxu0 %v20492_v48  ;;  %15432 = vmatpush3.msra.mxu1 %v11886_v17 }
 0x61c   : > { %15473 = vmatpush3.msra.mxu0 %v11902_v24  ;;  %15433 = vmatprep.subr.mxu1 %v20492_v48 }
 0x61d   : > { %15474 = vmatprep.subr.mxu0 %v20492_v48  ;;  %15434 = vmatpush3.msra.mxu1 %v11885_v26 }
 0x61e   : > { %15435 = vmatprep.mubr.msk.f32.mxu1 %vm15963_vm2, %v20492_v48  ;;  %15475 = vmatpush3.msra.mxu0 %v11901_v57 }
 0x61f   : > { %15476 = vmatprep.mubr.msk.f32.mxu0 %vm15963_vm2, %v20492_v48  ;;  %15436 = vmatmul.mubr.f32.vlgmr.msra.gmra.mxu1 %v20488_v58  ;;  %v11930_v58 = vld [vmem:[%s21586_s3 + $0x368] sm:$0xff] }
 0x620   : > { %15477 = vmatmul.mubr.f32.vlgmr.msra.gmra.mxu0 %v20477_v6  ;;  %15485 = vmatprep.subr.mxu1 %v20492_v48  ;;  %v9894_v6 = vld [vmem:[#allocation3 + $0x10] sm:$0xff] }
 0x621   : > { %15526 = vmatprep.subr.mxu0 %v20492_v48  ;;  %15486 = vmatpush3.msra.mxu1 %v11932_v25 }
 0x622   : > { %15527 = vmatpush3.msra.mxu0 %v11948_v42  ;;  %15487 = vmatprep.subr.mxu1 %v20492_v48 }
 0x623   : > { %15528 = vmatprep.subr.mxu0 %v20492_v48  ;;  %15438 = vmatprep.mubr.msk.f32.mxu1 %vm15963_vm2, %v20492_v48 }
 0x624   : > { %15479 = vmatprep.mubr.msk.f32.mxu0 %vm15963_vm2, %v20492_v48  ;;  %15488 = vmatpush3.msra.mxu1 %v11931_v12 }
 0x625   : > { %15529 = vmatpush3.msra.mxu0 %v11947_v62  ;;  %15439 = vmatmul.mubr.f32.gmra.mxu1 %v20517_v56  ;;  %v11928_v56 = vld [vmem:[%s21586_s3 + $0x358] sm:$0xff] }
 0x626   : > { %15480 = vmatmul.mubr.f32.gmra.mxu0 %v9894_v6  ;;  %15489 = vmatprep.subr.mxu1 %v20492_v48 }
 0x627   : > { %15530 = vmatprep.subr.mxu0 %v20492_v48  ;;  %15490 = vmatpush3.msra.mxu1 %v11930_v58 }
 0x628   : > { %15531 = vmatpush3.msra.mxu0 %v11946_v51  ;;  %15491 = vmatprep.subr.mxu1 %v20492_v48 }
 0x629   : > { %15532 = vmatprep.subr.mxu0 %v20492_v48  ;;  %15441 = vmatprep.mubr.msk.f32.mxu1 %vm15963_vm2, %v20492_v48 }
 0x62a   : > { %15482 = vmatprep.mubr.msk.f32.mxu0 %vm15963_vm2, %v20492_v48  ;;  %15492 = vmatpush3.msra.mxu1 %v11929_v7 }
 0x62b   : > { %15533 = vmatpush3.msra.mxu0 %v11945_v5  ;;  %15442 = vmatmul.mubr.f32.gmra.mxu1 %v9793_v11 }
 0x62c   : > { %15483 = vmatmul.mubr.f32.gmra.mxu0 %v9895_v9  ;;  %15493 = vmatprep.subr.mxu1 %v20492_v48 }
 0x62d   : > { %15534 = vmatprep.subr.mxu0 %v20492_v48  ;;  %15494 = vmatpush3.msra.mxu1 %v11928_v56 }
 0x62e   : > { %15535 = vmatpush3.msra.mxu0 %v11944_v0  ;;  %15495 = vmatprep.subr.mxu1 %v20492_v48 }
 0x62f   : > { %15536 = vmatprep.subr.mxu0 %v20492_v48  ;;  %15496 = vmatpush3.msra.mxu1 %v11927_v36 }
 0x630   : > { %15537 = vmatpush3.msra.mxu0 %v11943_v61  ;;  %15497 = vmatprep.subr.mxu1 %v20492_v48 }
 0x631   : > { %15538 = vmatprep.subr.mxu0 %v20492_v48  ;;  %15498 = vmatpush3.msra.mxu1 %v11926_v18 }
 0x632   : > { %15539 = vmatpush3.msra.mxu0 %v11942_v32  ;;  %15499 = vmatprep.subr.mxu1 %v20492_v48 }
 0x633   : > { %15540 = vmatprep.subr.mxu0 %v20492_v48  ;;  %15500 = vmatpush3.msra.mxu1 %v11925_v15 }
 0x634   : > { %15541 = vmatpush3.msra.mxu0 %v11941_v63  ;;  %15501 = vmatprep.subr.mxu1 %v20492_v48 }
 0x635   : > { %15542 = vmatprep.subr.mxu0 %v20492_v48  ;;  %15502 = vmatpush3.msra.mxu1 %v11924_v29 }
 0x636   : > { %15543 = vmatpush3.msra.mxu0 %v11940_v30  ;;  %15503 = vmatprep.subr.mxu1 %v20492_v48 }
 0x637   : > { %15544 = vmatprep.subr.mxu0 %v20492_v48  ;;  %15504 = vmatpush3.msra.mxu1 %v11923_v44  ;;  %v11981_v44 = vld [vmem:[%s21586_s3 + $0xf8] sm:$0xff] }
 0x638   : > { %15545 = vmatpush3.msra.mxu0 %v11939_v35  ;;  %15505 = vmatprep.subr.mxu1 %v20492_v48  ;;  %v10374_v35 = vld [vmem:[%s21586_s3 + $0x78] sm:$0xff] }
 0x639   : > { %15546 = vmatprep.subr.mxu0 %v20492_v48  ;;  %15506 = vmatpush3.msra.mxu1 %v11922_v28  ;;  %v11980_v28 = vld [vmem:[%s21586_s3 + $0xf0] sm:$0xff] }
 0x63a   : > { %15547 = vmatpush3.msra.mxu0 %v11938_v22  ;;  %15507 = vmatprep.subr.mxu1 %v20492_v48  ;;  %v10373_v22 = vld [vmem:[%s21586_s3 + $0x70] sm:$0xff] }
 0x63b   : > { %15548 = vmatprep.subr.mxu0 %v20492_v48  ;;  %15508 = vmatpush3.msra.mxu1 %v11921_v4 }
 0x63c   : > { %15549 = vmatpush3.msra.mxu0 %v11937_v10  ;;  %15509 = vmatprep.subr.mxu1 %v20492_v48 }
 0x63d   : > { %15550 = vmatprep.subr.mxu0 %v20492_v48  ;;  %15510 = vmatpush3.msra.mxu1 %v11920_v60 }
 0x63e   : > { %15551 = vmatpush3.msra.mxu0 %v11936_v39  ;;  %15511 = vmatprep.subr.mxu1 %v20492_v48  ;;  %v11979_v39 = vld [vmem:[%s21586_s3 + $0xe8] sm:$0xff] }
 0x63f   : > { %15552 = vmatprep.subr.mxu0 %v20492_v48  ;;  %15512 = vmatpush3.msra.mxu1 %v11919_v37  ;;  %v10372_v37 = vld [vmem:[%s21586_s3 + $0x68] sm:$0xff] }
 0x640   : > { %15553 = vmatpush3.msra.mxu0 %v11935_v33  ;;  %15513 = vmatprep.subr.mxu1 %v20492_v48 }
 0x641   : > { %15554 = vmatprep.subr.mxu0 %v20492_v48  ;;  %15514 = vmatpush3.msra.mxu1 %v11918_v52 }
 0x642   : > { %15555 = vmatpush3.msra.mxu0 %v11934_v23  ;;  %15515 = vmatprep.subr.mxu1 %v20492_v48 }
 0x643   : > { %15556 = vmatprep.subr.mxu0 %v20492_v48  ;;  %15516 = vmatpush3.msra.mxu1 %v11917_v54  ;;  %v11978_v54 = vld [vmem:[%s21586_s3 + $0xe0] sm:$0xff] }
 0x644   : > { %15517 = vmatprep.mubr.msk.f32.mxu1 %vm15963_vm2, %v20492_v48  ;;  %15557 = vmatpush3.msra.mxu0 %v11933_v46  ;;  %v10371_v46 = vld [vmem:[%s21586_s3 + $0x60] sm:$0xff] }
 0x645   : > { %15558 = vmatprep.mubr.msk.f32.mxu0 %vm15963_vm2, %v20492_v48  ;;  %15518 = vmatmul.mubr.f32.vlgmr.msra.gmra.mxu1 %v20519_v50  ;;  %v11962_v50 = vld [vmem:[%s21586_s3 + $0x468] sm:$0xff] }
 0x646   : > { %15559 = vmatmul.mubr.f32.vlgmr.msra.gmra.mxu0 %v20521_v3  ;;  %15567 = vmatprep.subr.mxu1 %v20492_v48  ;;  %v9996_v3 = vld [vmem:[#allocation3 + $0x14] sm:$0xff] }
 0x647   : > { %15520 = vmatprep.mubr.msk.f32.mxu1 %vm15963_vm2, %v20492_v48  ;;  %15568 = vmatpush3.msra.mxu1 %v11964_v31  ;;  %v11977_v31 = vld [vmem:[%s21586_s3 + $0xd8] sm:$0xff] }
 0x648   : > { %15561 = vmatprep.mubr.msk.f32.mxu0 %vm15963_vm2, %v20492_v48  ;;  %15569 = vmatprep.subr.mxu1 %v20492_v48 }
 0x649   : > { %15608 = vmatprep.subr.mxu0 %v20492_v48  ;;  %15570 = vmatpush3.msra.mxu1 %v11963_v47  ;;  %v10370_v47 = vld [vmem:[%s21586_s3 + $0x58] sm:$0xff] }
 0x64a   : > { %15562 = vmatmul.mubr.f32.gmra.mxu0 %v10098_v34  ;;  %15521 = vmatmul.mubr.f32.gmra.mxu1 %v9996_v3  ;;  %v11976_v34 = vld [vmem:[%s21586_s3 + $0xd0] sm:$0xff]  ;;  %v11975_v3 = vld [vmem:[%s21586_s3 + $0xc8] sm:$0xff] }
 0x64b   : > { %15571 = vmatprep.subr.mxu1 %v20492_v48  ;;  %15523 = vmatprep.mubr.msk.f32.mxu1 %vm15963_vm2, %v20492_v48 }
 0x64c   : > { %15572 = vmatpush3.msra.mxu1 %v11962_v50  ;;  %15564 = vmatprep.mubr.msk.f32.mxu0 %vm15963_vm2, %v20492_v48  ;;  %v10369_v50 = vld [vmem:[%s21586_s3 + $0x50] sm:$0xff] }
 0x64d   : > { %15573 = vmatprep.subr.mxu1 %v20492_v48  ;;  %15609 = vmatpush3.msra.mxu0 %v11981_v44 }
 0x64e   : > { %15574 = vmatpush3.msra.mxu1 %v11961_v41  ;;  %15565 = vmatmul.mubr.f32.gmra.mxu0 %v10099_v27  ;;  %v10368_v41 = vld [vmem:[%s21586_s3 + $0x48] sm:$0xff]  ;;  %v11974_v27 = vld [vmem:[%s21586_s3 + $0xc0] sm:$0xff] }
 0x64f   : > { %15524 = vmatmul.mubr.f32.gmra.mxu1 %v9997_v55  ;;  %15575 = vmatprep.subr.mxu1 %v20492_v48  ;;  %v11973_v55 = vld [vmem:[%s21586_s3 + $0xb8] sm:$0xff] }
 0x650   : > { %15576 = vmatpush3.msra.mxu1 %v11960_v14  ;;  %15599 = vmatprep.mubr.msk.f32.mxu1 %vm15963_vm2, %v20492_v48  ;;  %v10367_v14 = vld [vmem:[%s21586_s3 + $0x40] sm:$0xff] }
 0x651   : > { %15577 = vmatprep.subr.mxu1 %v20492_v48  ;;  %15640 = vmatprep.mubr.msk.f32.mxu0 %vm15963_vm2, %v20492_v48 }
 0x652   : > { %15578 = vmatpush3.msra.mxu1 %v11959_v40  ;;  %15610 = vmatprep.subr.mxu0 %v20492_v48  ;;  %v10366_v40 = vld [vmem:[%s21586_s3 + $0x38] sm:$0xff] }
 0x653   : > { %15579 = vmatprep.subr.mxu1 %v20492_v48  ;;  %15611 = vmatpush3.msra.mxu0 %v11980_v28 }
 0x654   : > { %15580 = vmatpush3.msra.mxu1 %v11958_v20  ;;  %15612 = vmatprep.subr.mxu0 %v20492_v48  ;;  %v11972_v20 = vld [vmem:[%s21586_s3 + $0xb0] sm:$0xff] }
 0x655   : > { %15581 = vmatprep.subr.mxu1 %v20492_v48  ;;  %15613 = vmatpush3.msra.mxu0 %v11979_v39  ;;  %v11965_v39 = vld [vmem:[%s21587_s4] ss:$0 sm:$0xff] }
 0x656   : > { %15582 = vmatpush3.msra.mxu1 %v11957_v38  ;;  %15614 = vmatprep.subr.mxu0 %v20492_v48  ;;  %v10365_v38 = vld [vmem:[%s21586_s3 + $0x30] sm:$0xff] }
 0x657   : > { %15583 = vmatprep.subr.mxu1 %v20492_v48  ;;  %15615 = vmatpush3.msra.mxu0 %v11978_v54 }
 0x658   : > { %15584 = vmatpush3.msra.mxu1 %v11956_v45  ;;  %15616 = vmatprep.subr.mxu0 %v20492_v48  ;;  %v11971_v45 = vld [vmem:[%s21586_s3 + $0xa8] sm:$0xff] }
 0x659   : > { %15585 = vmatprep.subr.mxu1 %v20492_v48  ;;  %15617 = vmatpush3.msra.mxu0 %v11977_v31 }
 0x65a   : > { %15586 = vmatpush3.msra.mxu1 %v11955_v16  ;;  %15618 = vmatprep.subr.mxu0 %v20492_v48  ;;  %v10364_v16 = vld [vmem:[%s21586_s3 + $0x28] sm:$0xff] }
 0x65b   : > { %15587 = vmatprep.subr.mxu1 %v20492_v48  ;;  %15619 = vmatpush3.msra.mxu0 %v11976_v34 }
 0x65c   : > { %15588 = vmatpush3.msra.mxu1 %v11954_v1  ;;  %15620 = vmatprep.subr.mxu0 %v20492_v48  ;;  %v11970_v1 = vld [vmem:[%s21586_s3 + $0xa0] sm:$0xff] }
 0x65d   : > { %15589 = vmatprep.subr.mxu1 %v20492_v48  ;;  %15621 = vmatpush3.msra.mxu0 %v11975_v3 }
 0x65e   : > { %15590 = vmatpush3.msra.mxu1 %v11953_v53  ;;  %15622 = vmatprep.subr.mxu0 %v20492_v48  ;;  %v10363_v53 = vld [vmem:[%s21586_s3 + $0x20] sm:$0xff] }
 0x65f   : > { %15591 = vmatprep.subr.mxu1 %v20492_v48  ;;  %15623 = vmatpush3.msra.mxu0 %v11974_v27 }
 0x660   : > { %15592 = vmatpush3.msra.mxu1 %v11952_v49  ;;  %15624 = vmatprep.subr.mxu0 %v20492_v48  ;;  %v11969_v49 = vld [vmem:[%s21586_s3 + $0x98] sm:$0xff] }
 0x661   : > { %15593 = vmatprep.subr.mxu1 %v20492_v48  ;;  %15625 = vmatpush3.msra.mxu0 %v11973_v55 }
 0x662   : > { %15594 = vmatpush3.msra.mxu1 %v11951_v19  ;;  %15626 = vmatprep.subr.mxu0 %v20492_v48  ;;  %v10362_v19 = vld [vmem:[%s21586_s3 + $0x18] sm:$0xff] }
 0x663   : > { %15595 = vmatprep.subr.mxu1 %v20492_v48  ;;  %15627 = vmatpush3.msra.mxu0 %v11972_v20 }
 0x664   : > { %15596 = vmatpush3.msra.mxu1 %v11950_v59  ;;  %15628 = vmatprep.subr.mxu0 %v20492_v48  ;;  %v11968_v59 = vld [vmem:[%s21586_s3 + $0x90] sm:$0xff] }
 0x665   : > { %15597 = vmatprep.subr.mxu1 %v20492_v48  ;;  %15629 = vmatpush3.msra.mxu0 %v11971_v45 }
 0x666   : > { %15598 = vmatpush3.msra.mxu1 %v11949_v2  ;;  %15630 = vmatprep.subr.mxu0 %v20492_v48  ;;  %v10361_v2 = vld [vmem:[%s21586_s3 + $0x10] sm:$0xff] }
 0x667   : > { %15600 = vmatmul.mubr.f32.vlgmr.msra.gmra.mxu1 %v20515_v13  ;;  %15643 = vmatprep.subr.mxu1 %v20492_v48 }
 0x668   : > { %15602 = vmatprep.mubr.msk.f32.mxu1 %vm15963_vm2, %v20492_v48  ;;  %15644 = vmatpush3.msra.mxu1 %v10374_v35 }
 0x669   : > { %15645 = vmatprep.subr.mxu1 %v20492_v48  ;;  %15631 = vmatpush3.msra.mxu0 %v11970_v1 }
 0x66a   : > { %15646 = vmatpush3.msra.mxu1 %v10373_v22  ;;  %15632 = vmatprep.subr.mxu0 %v20492_v48 }
 0x66b   : > { %15603 = vmatmul.mubr.f32.gmra.mxu1 %v10200_v43  ;;  %15647 = vmatprep.subr.mxu1 %v20492_v48  ;;  %v11967_v43 = vld [vmem:[%s21586_s3 + $0x88] sm:$0xff] }
 0x66c   : > { %15605 = vmatprep.mubr.msk.f32.mxu1 %vm15963_vm2, %v20492_v48  ;;  %15648 = vmatpush3.msra.mxu1 %v10372_v37 }
 0x66d   : > { %15649 = vmatprep.subr.mxu1 %v20492_v48  ;;  %15633 = vmatpush3.msra.mxu0 %v11969_v49 }
 0x66e   : > { %15650 = vmatpush3.msra.mxu1 %v10371_v46  ;;  %15634 = vmatprep.subr.mxu0 %v20492_v48 }
 0x66f   : > { %15606 = vmatmul.mubr.f32.gmra.mxu1 %v10201_v8  ;;  %15651 = vmatprep.subr.mxu1 %v20492_v48  ;;  %v10360_v8 = vld [vmem:[%s21586_s3 + $0x8] sm:$0xff] }
 0x670   : > { %15675 = vmatprep.mubr.msk.f32.mxu1 %vm15963_vm2, %v20492_v48  ;;  %15652 = vmatpush3.msra.mxu1 %v10370_v47 }
 0x671   : > { %15653 = vmatprep.subr.mxu1 %v20492_v48  ;;  %15635 = vmatpush3.msra.mxu0 %v11968_v59 }
 0x672   : > { %15654 = vmatpush3.msra.mxu1 %v10369_v50  ;;  %15636 = vmatprep.subr.mxu0 %v20492_v48 }
 0x673   : > { %15655 = vmatprep.subr.mxu1 %v20492_v48  ;;  %15637 = vmatpush3.msra.mxu0 %v11967_v43 }
 0x674   : > { %15656 = vmatpush3.msra.mxu1 %v10368_v41  ;;  %15638 = vmatprep.subr.mxu0 %v20492_v48 }
 0x675   : > { %15657 = vmatprep.subr.mxu1 %v20492_v48 }
 0x676   : > { %15658 = vmatpush3.msra.mxu1 %v10367_v14 }
 0x677   : > { %15659 = vmatprep.subr.mxu1 %v20492_v48 }
 0x678   : > { %15660 = vmatpush3.msra.mxu1 %v10366_v40 }
 0x679   : > { %15661 = vmatprep.subr.mxu1 %v20492_v48 }
 0x67a   : > { %15662 = vmatpush3.msra.mxu1 %v10365_v38 }
 0x67b   : > { %15663 = vmatprep.subr.mxu1 %v20492_v48 }
 0x67c   : > { %15664 = vmatpush3.msra.mxu1 %v10364_v16 }
 0x67d   : > { %15665 = vmatprep.subr.mxu1 %v20492_v48 }
 0x67e   : > { %15666 = vmatpush3.msra.mxu1 %v10363_v53 }
 0x67f   : > { %15667 = vmatprep.subr.mxu1 %v20492_v48 }
 0x680   : > { %15668 = vmatpush3.msra.mxu1 %v10362_v19 }
 0x681   : > { %15669 = vmatprep.subr.mxu1 %v20492_v48 }
 0x682   : > { %15670 = vmatpush3.msra.mxu1 %v10361_v2 }
 0x683   : > { %15671 = vmatprep.subr.mxu1 %v20492_v48 }
 0x684   : > { %15672 = vmatpush3.msra.mxu1 %v10360_v8 }
 0x685   : > { %15673 = vmatprep.subr.mxu1 %v20492_v48 }
 0x694   : > { %v9493_v21 = vpop.f32.mrf.mxu1 }
 0x695   : > { %v9573_v17 = vpop.f32.mrf.mxu0 }
 0x696   : > { %v9574_v24 = vadd.f32 %v9573_v17, %v9493_v21  ;;  %v15273_v26 = vpop.f32.mrf.mxu1  ;;  %v11966_v21 = vld [vmem:[%s21586_s3 + $0x80] sm:$0xff] }
 0x697   : > { %v15314_v13 = vpop.f32.mrf.mxu0  ;;  %v10359_v17 = vld [vmem:[%s21586_s3] sm:$0xff]  ;;  %15639 = vmatpush3.msra.mxu0 %v11966_v21 }
 0x698   : > { %15674 = vmatpush3.msra.mxu1 %v10359_v17  ;;  %15678 = vmatprep.subr.mxu0 %v20492_v48 }
 0x699   : > { %15713 = vmatprep.subr.mxu1 %v20492_v48 }
 0x69f   : > { %v9498_v57 = vpop.f32.mrf.mxu1 }
 0x6a0   : > { %v9578_v25 = vpop.f32.mrf.mxu0 }
 0x6a1   : > { %v9579_v42 = vadd.f32 %v9578_v25, %v9498_v57  ;;  %v15276_v12 = vpop.f32.mrf.mxu1 }
 0x6a2   : > { %v15317_v62 = vpop.f32.mrf.mxu0 }
 0x6a4   : > { %v9503_v6 = vpop.f32.mrf.mxu1 }
 0x6a5   : > { %v9583_v58 = vpop.f32.mrf.mxu0 }
 0x6a6   : > { %v9584_v51 = vadd.f32 %v9583_v58, %v9503_v6  ;;  %v15279_v7 = vpop.f32.mrf.mxu1 }
 0x6a7   : > { %v15320_v5 = vpop.f32.mrf.mxu0 }
 0x6b9   : > { %v9672_v56 = vpop.f32.mrf.mxu1 }
 0x6ba   : > { %v9774_v11 = vpop.f32.mrf.mxu0  ;;  %v9686_v9 = vadd.f32 %v9672_v56, %v9574_v24 }
 0x6bb   : > { %v15355_v0 = vpop.f32.mrf.mxu1 }
 0x6bc   : > { %v15396_v36 = vpop.f32.mrf.mxu0  ;;  %v20969_v61 = vadd.f32 %v9774_v11, %v9686_v9 }
 0x6bf   : > { %v9677_v18 = vpop.f32.mrf.mxu1 }
 0x6c0   : > { %v9779_v32 = vpop.f32.mrf.mxu0  ;;  %v9687_v15 = vadd.f32 %v9677_v18, %v9579_v42 }
 0x6c1   : > { %v15358_v63 = vpop.f32.mrf.mxu1 }
 0x6c2   : > { %v15399_v29 = vpop.f32.mrf.mxu0  ;;  %v20971_v30 = vadd.f32 %v9779_v32, %v9687_v15 }
 0x6c5   : > { %v9682_v4 = vpop.f32.mrf.mxu1 }
 0x6c6   : > { %v9784_v10 = vpop.f32.mrf.mxu0  ;;  %v9688_v60 = vadd.f32 %v9682_v4, %v9584_v51 }
 0x6c7   : > { %v15361_v33 = vpop.f32.mrf.mxu1 }
 0x6c8   : > { %v15402_v52 = vpop.f32.mrf.mxu0  ;;  %v20995_v23 = vadd.f32 %v9784_v10, %v9688_v60 }
 0x6df   : > { %v9876_v24 = vpop.f32.mrf.mxu1 }
 0x6e0   : > { %v9978_v26 = vpop.f32.mrf.mxu0  ;;  %v9890_v13 = vadd.f32 %v9876_v24, %v20969_v61 }
 0x6e1   : > { %v15437_v57 = vpop.f32.mrf.mxu1 }
 0x6e2   : > { %v15478_v25 = vpop.f32.mrf.mxu0  ;;  %v9992_v42 = vadd.f32 %v9978_v26, %v9890_v13 }
 0x6e5   : > { %v9881_v12 = vpop.f32.mrf.mxu1 }
 0x6e6   : > { %v9983_v62 = vpop.f32.mrf.mxu0  ;;  %v9891_v6 = vadd.f32 %v9881_v12, %v20971_v30 }
 0x6e7   : > { %v15440_v58 = vpop.f32.mrf.mxu1 }
 0x6e8   : > { %v15481_v51 = vpop.f32.mrf.mxu0  ;;  %v9993_v7 = vadd.f32 %v9983_v62, %v9891_v6  ;;  %v11997_v6 = vld [vmem:[%s21586_s3 + $0x178] sm:$0xff] }
 0x6e9   : > { %v12013_v58 = vld [vmem:[%s21586_s3 + $0x1f8] sm:$0xff] }
 0x6eb   : > { %v9886_v5 = vpop.f32.mrf.mxu1 }
 0x6ec   : > { %v9988_v56 = vpop.f32.mrf.mxu0  ;;  %v9892_v22 = vadd.f32 %v9886_v5, %v20995_v23  ;;  %v11996_v5 = vld [vmem:[%s21586_s3 + $0x170] sm:$0xff] }
 0x6ed   : > { %v15443_v11 = vpop.f32.mrf.mxu1 }
 0x6ee   : > { %v15484_v9 = vpop.f32.mrf.mxu0  ;;  %v9994_v37 = vadd.f32 %v9988_v56, %v9892_v22  ;;  %v12012_v56 = vld [vmem:[%s21586_s3 + $0x1f0] sm:$0xff]  ;;  %v21123_v11 = vld [vmem:[#allocation3 + $0x133] sm:$0xff] }
 0x6ef   : > { %v11995_v9 = vld [vmem:[%s21586_s3 + $0x168] sm:$0xff]  ;;  %v11988_v22 = vld [vmem:[%s21586_s3 + $0x130] sm:$0xff] }
 0x705   : > { %v10080_v0 = vpop.f32.mrf.mxu1 }
 0x706   : > { %v10182_v36 = vpop.f32.mrf.mxu0  ;;  %v10094_v30 = vadd.f32 %v10080_v0, %v9992_v42  ;;  %v12011_v0 = vld [vmem:[%s21586_s3 + $0x1e8] sm:$0xff] }
 0x707   : > { %v15519_v61 = vpop.f32.mrf.mxu1 }
 0x708   : > { %v15560_v18 = vpop.f32.mrf.mxu0  ;;  %v10196_v4 = vadd.f32 %v10182_v36, %v10094_v30  ;;  %v11994_v36 = vld [vmem:[%s21586_s3 + $0x160] sm:$0xff]  ;;  %v12005_v30 = vld [vmem:[%s21586_s3 + $0x1b8] sm:$0xff] }
 0x709   : > { %v12010_v61 = vld [vmem:[%s21586_s3 + $0x1e0] sm:$0xff]  ;;  %v11993_v18 = vld [vmem:[%s21586_s3 + $0x158] sm:$0xff] }
 0x70a   : > { %v10187_v32 = vpop.f32.mrf.mxu0  ;;  %v10085_v15 = vpop.f32.mrf.mxu1 }
 0x70b   : > { %v10095_v10 = vadd.f32 %v10085_v15, %v9993_v7  ;;  %v11992_v15 = vld [vmem:[%s21586_s3 + $0x150] sm:$0xff] }
 0x70c   : > { %v15563_v63 = vpop.f32.mrf.mxu0  ;;  %v15522_v29 = vpop.f32.mrf.mxu1 }
 0x70d   : > { %v10197_v54 = vadd.f32 %v10187_v32, %v10095_v10  ;;  %v12009_v32 = vld [vmem:[%s21586_s3 + $0x1d8] sm:$0xff]  ;;  %v12008_v63 = vld [vmem:[%s21586_s3 + $0x1d0] sm:$0xff]  ;;  %v11991_v29 = vld [vmem:[%s21586_s3 + $0x148] sm:$0xff] }
 0x70e   : > { %v10192_v48 = vpop.f32.mrf.mxu0  ;;  %v11987_v10 = vld [vmem:[%s21586_s3 + $0x128] sm:$0xff] }
 0x70f   : > { %v10090_v44 = vpop.f32.mrf.mxu1 }
 0x710   : > { %v15566_v35 = vpop.f32.mrf.mxu0  ;;  %v10096_v46 = vadd.f32 %v10090_v44, %v9994_v37  ;;  %v11990_v44 = vld [vmem:[%s21586_s3 + $0x140] sm:$0xff] }
 0x711   : > { %v15525_v28 = vpop.f32.mrf.mxu1  ;;  %v12006_v35 = vld [vmem:[%s21586_s3 + $0x1c0] sm:$0xff] }
 0x712   : > { %v10198_v41 = vadd.f32 %v10192_v48, %v10096_v46  ;;  %v12007_v48 = vld [vmem:[%s21586_s3 + $0x1c8] sm:$0xff]  ;;  %v11989_v28 = vld [vmem:[%s21586_s3 + $0x138] sm:$0xff]  ;;  %v12002_v37 = vld [vmem:[%s21586_s3 + $0x1a0] sm:$0xff] }
 0x713   : > { %v12000_v46 = vld [vmem:[%s21586_s3 + $0x190] sm:$0xff] }
 0x727   : > { %v10284_v60 = vpop.f32.mrf.mxu1 }
 0x728   : > { %v10298_v33 = vadd.f32 %v10284_v60, %v10196_v4  ;;  %v12004_v4 = vld [vmem:[%s21586_s3 + $0x1b0] sm:$0xff]  ;;  %v12003_v60 = vld [vmem:[%s21586_s3 + $0x1a8] sm:$0xff] }
 0x729   : > { %v15601_v52 = vpop.f32.mrf.mxu1 }
 0x72a   : > { %v10308_v31 = vadd.f32 %v11965_v39, %v10298_v33  ;;  %v11985_v33 = vld [vmem:[%s21586_s3 + $0x118] sm:$0xff] }
 0x72b   : > { %v10289_v47 = vpop.f32.mrf.mxu1  ;;  %v12001_v52 = vld [vmem:[%s21586_s3 + $0x198] sm:$0xff] }
 0x72c   : > { %v10314_v34 = vmul.f32 0.01, %v10308_v31  ;;  %v10299_v50 = vadd.f32 %v10289_v47, %v10197_v54  ;;  %vm10311_vm14 = vcmp.ge.f32.partialorder %v10308_v31, 0.0  ;;  %v11984_v54 = vld [vmem:[%s21586_s3 + $0x110] sm:$0xff]  ;;  %v11999_v47 = vld [vmem:[%s21586_s3 + $0x188] sm:$0xff] }
 0x72d   : > { %v15604_v3 = vpop.f32.mrf.mxu1 }
 0x72e   : > { %v10309_v23 = vadd.f32 %v11965_v39, %v10299_v50  ;;  %v10317_v14 = vsel %vm10311_vm14, %v10308_v31, %v10314_v34  ;;  %v11983_v31 = vld [vmem:[%s21586_s3 + $0x108] sm:$0xff]  ;;  %v11982_v34 = vld [vmem:[%s21586_s3 + $0x100] sm:$0xff]  ;;  %v12029_v3 = vld [vmem:[%s21586_s3 + $0x278] sm:$0xff] }
 0x72f   : > { %v10294_v27 = vpop.f32.mrf.mxu1  ;;  %v10323_v16 = vrot.slane %v10317_v14, 1  ;;  %v11998_v50 = vld [vmem:[%s21586_s3 + $0x180] sm:$0xff] }
 0x730   : > { %vm10312_vm15 = vcmp.ge.f32.partialorder %v10309_v23, 0.0  ;;  %v10315_v55 = vmul.f32 0.01, %v10309_v23  ;;  %v10300_v40 = vadd.f32 %v10294_v27, %v10198_v41  ;;  %v12045_v27 = vld [vmem:[%s21586_s3 + $0x2f8] sm:$0xff] }
 0x731   : > { %v15607_v20 = vpop.f32.mrf.mxu1 }
 0x732   : > { %v10318_v38 = vsel %vm10312_vm15, %v10309_v23, %v10315_v55  ;;  %v10310_v45 = vadd.f32 %v11965_v39, %v10300_v40  ;;  %v11986_v39 = vld [vmem:[%s21586_s3 + $0x120] sm:$0xff]  ;;  %v12044_v55 = vld [vmem:[%s21586_s3 + $0x2f0] sm:$0xff]  ;;  %v12027_v40 = vld [vmem:[%s21586_s3 + $0x268] sm:$0xff] }
 0x733   : > { %v10324_v1 = vrot.slane %v10318_v38, 1  ;;  %v12043_v20 = vld [vmem:[%s21586_s3 + $0x2e8] sm:$0xff] }
 0x734   : > { %vm10313_vm0 = vcmp.ge.f32.partialorder %v10310_v45, 0.0  ;;  %v10316_v53 = vmul.f32 0.01, %v10310_v45 }
 0x735   : > { %v10325_v49 = vsel %vm7501_vm8, %v10323_v16, %v10324_v1  ;;  %v12025_v16 = vld [vmem:[%s21586_s3 + $0x258] sm:$0xff] }
 0x736   : > { %v10331_v19 = vmax.f32 %v10317_v14, %v10325_v49  ;;  %v10319_v59 = vsel %vm10313_vm0, %v10310_v45, %v10316_v53  ;;  %v12028_v14 = vld [vmem:[%s21586_s3 + $0x270] sm:$0xff]  ;;  %v12042_v45 = vld [vmem:[%s21586_s3 + $0x2e0] sm:$0xff] }
 0x737   : > { %v10326_v2 = vrot.slane %v10319_v59, 1  ;;  %v12024_v53 = vld [vmem:[%s21586_s3 + $0x250] sm:$0xff] }
 0x738   : > { %v10338_v24 = vrot.slane %v10331_v19, 6  ;;  %v12040_v49 = vld [vmem:[%s21586_s3 + $0x2d0] sm:$0xff] }
 0x739   : > { %v10327_v43 = vsel %vm7501_vm8, %v10324_v1, %v10326_v2  ;;  %v10333_v8 = vmax.f32 %v10319_v59, %v10326_v2  ;;  %v12041_v1 = vld [vmem:[%s21586_s3 + $0x2d8] sm:$0xff]  ;;  %v12039_v59 = vld [vmem:[%s21586_s3 + $0x2c8] sm:$0xff]  ;;  %v12022_v2 = vld [vmem:[%s21586_s3 + $0x240] sm:$0xff] }
 0x73a   : > { %v10332_v21 = vmax.f32 %v10318_v38, %v10327_v43  ;;  %v12026_v38 = vld [vmem:[%s21586_s3 + $0x260] sm:$0xff] }
 0x73b   : > { %v10341_v17 = vrot.slane %v10333_v8, 6  ;;  %v12038_v43 = vld [vmem:[%s21586_s3 + $0x2c0] sm:$0xff]  ;;  %v12021_v8 = vld [vmem:[%s21586_s3 + $0x238] sm:$0xff] }
 0x73c   : > { %v10339_v26 = vrot.slane %v10332_v21, 6 }
 0x73e   : > { %v10340_v13 = vsel %vm10337_vm1, %v10338_v24, %v10339_v26  ;;  %v10342_v57 = vsel %vm10337_vm1, %v10339_v26, %v10341_v17  ;;  %v12020_v17 = vld [vmem:[%s21586_s3 + $0x230] sm:$0xff]  ;;  %v12019_v26 = vld [vmem:[%s21586_s3 + $0x228] sm:$0xff] }
 0x73f   : > { %v10345_v25 = vmax.f32 %v10331_v19, %v10340_v13  ;;  %v10346_v42 = vmax.f32 %v10332_v21, %v10342_v57  ;;  %v12023_v19 = vld [vmem:[%s21586_s3 + $0x248] sm:$0xff]  ;;  %v12037_v21 = vld [vmem:[%s21586_s3 + $0x2b8] sm:$0xff]  ;;  %v12036_v24 = vld [vmem:[%s21586_s3 + $0x2b0] sm:$0xff] }
 0x740   : > { %v12035_v13 = vld [vmem:[%s21586_s3 + $0x2a8] sm:$0xff]  ;;  %v12018_v57 = vld [vmem:[%s21586_s3 + $0x220] sm:$0xff] }
 0x741   : > { %10347 = vst [vmem:[#allocation4] sm:$0xff] %v10345_v25  ;;  %10348 = vst [vmem:[#allocation4 + $0x8] sm:$0x7f] %v10346_v42  ;;  %v12034_v25 = vld [vmem:[%s21586_s3 + $0x2a0] sm:$0xff]  ;;  %v12017_v42 = vld [vmem:[%s21586_s3 + $0x218] sm:$0xff] }
 0x748   : > { %v10350_v12 = vld [vmem:[#allocation4] ss:$2 sm:$0x3]  ;;  %v10354_v62 = vld [vmem:[#allocation4 + $0xc] ss:$2 sm:$0x3] }
 0x749   : > { %10351 = vst [vmem:[#allocation3 + $0x5] sm:$0x3] %v10350_v12  ;;  %10355 = vst [vmem:[#allocation3 + $0x9] sm:$0x3] %v10354_v62  ;;  %v12033_v12 = vld [vmem:[%s21586_s3 + $0x298] sm:$0xff]  ;;  %v12016_v62 = vld [vmem:[%s21586_s3 + $0x210] sm:$0xff] }
 0x750   : > { %v10375_v51 = vld [vmem:[#allocation3 + $0x1] sm:$0x3f] }
 0x751   : > { %v10358_v7 = vld [vmem:[#allocation3] sm:$0x3f]  ;;  %15641 = vmatmul.mubr.f32.vlgmr.msra.gmra.mxu0 %v10375_v51 }
 0x752   : > { %15676 = vmatmul.mubr.f32.vlgmr.msra.gmra.mxu1 %v10358_v7  ;;  %15679 = vmatpush3.msra.mxu0 %v11997_v6  ;;  %v10532_v41 = vld [vmem:[#allocation3 + $0x2] sm:$0x3f]  ;;  %v12032_v6 = vld [vmem:[%s21586_s3 + $0x290] sm:$0xff]  ;;  %v12014_v7 = vld [vmem:[%s21586_s3 + $0x200] sm:$0xff] }
 0x753   : > { %15714 = vmatpush3.msra.mxu1 %v12013_v58  ;;  %15680 = vmatprep.subr.mxu0 %v21123_v11  ;;  %v10620_v23 = vld [vmem:[#allocation3 + $0x4] sm:$0x3f] }
 0x754   : > { %15715 = vmatprep.subr.mxu1 %v21123_v11  ;;  %15681 = vmatpush3.msra.mxu0 %v11996_v5  ;;  %v12015_v58 = vld [vmem:[%s21586_s3 + $0x208] sm:$0xff]  ;;  %v12030_v5 = vld [vmem:[%s21586_s3 + $0x280] sm:$0xff] }
 0x755   : > { %15716 = vmatpush3.msra.mxu1 %v12012_v56  ;;  %15682 = vmatprep.subr.mxu0 %v21123_v11  ;;  %v12031_v51 = vld [vmem:[%s21586_s3 + $0x288] sm:$0xff]  ;;  %v12061_v56 = vld [vmem:[%s21586_s3 + $0x378] sm:$0xff] }
 0x756   : > { %15717 = vmatprep.subr.mxu1 %v21123_v11  ;;  %15683 = vmatpush3.msra.mxu0 %v11995_v9  ;;  %v10708_v9 = vld [vmem:[#allocation3 + $0x5] sm:$0x3f] }
 0x757   : > { %15718 = vmatpush3.msra.mxu1 %v12011_v0  ;;  %15684 = vmatprep.subr.mxu0 %v21123_v11  ;;  %v10796_v0 = vld [vmem:[#allocation3 + $0x6] sm:$0x3f] }
 0x758   : > { %15719 = vmatprep.subr.mxu1 %v21123_v11  ;;  %15685 = vmatpush3.msra.mxu0 %v11994_v36  ;;  %v12077_v36 = vld [vmem:[%s21586_s3 + $0x3f8] sm:$0xff] }
 0x759   : > { %15720 = vmatpush3.msra.mxu1 %v12010_v61  ;;  %15686 = vmatprep.subr.mxu0 %v21123_v11  ;;  %v12060_v61 = vld [vmem:[%s21586_s3 + $0x370] sm:$0xff] }
 0x75a   : > { %15721 = vmatprep.subr.mxu1 %v21123_v11  ;;  %15687 = vmatpush3.msra.mxu0 %v11993_v18  ;;  %v12076_v18 = vld [vmem:[%s21586_s3 + $0x3f0] sm:$0xff] }
 0x75b   : > { %15722 = vmatpush3.msra.mxu1 %v12009_v32  ;;  %15688 = vmatprep.subr.mxu0 %v21123_v11  ;;  %v12059_v32 = vld [vmem:[%s21586_s3 + $0x368] sm:$0xff] }
 0x75c   : > { %15723 = vmatprep.subr.mxu1 %v21123_v11  ;;  %15689 = vmatpush3.msra.mxu0 %v11992_v15  ;;  %v12075_v15 = vld [vmem:[%s21586_s3 + $0x3e8] sm:$0xff] }
 0x75d   : > { %15724 = vmatpush3.msra.mxu1 %v12008_v63  ;;  %15690 = vmatprep.subr.mxu0 %v21123_v11  ;;  %v12058_v63 = vld [vmem:[%s21586_s3 + $0x360] sm:$0xff] }
 0x75e   : > { %15725 = vmatprep.subr.mxu1 %v21123_v11  ;;  %15691 = vmatpush3.msra.mxu0 %v11991_v29  ;;  %v12074_v29 = vld [vmem:[%s21586_s3 + $0x3e0] sm:$0xff] }
 0x75f   : > { %15726 = vmatpush3.msra.mxu1 %v12007_v48  ;;  %15692 = vmatprep.subr.mxu0 %v21123_v11  ;;  %v12057_v48 = vld [vmem:[%s21586_s3 + $0x358] sm:$0xff] }
 0x760   : > { %15727 = vmatprep.subr.mxu1 %v21123_v11  ;;  %15693 = vmatpush3.msra.mxu0 %v11990_v44  ;;  %v12073_v44 = vld [vmem:[%s21586_s3 + $0x3d8] sm:$0xff] }
 0x761   : > { %15728 = vmatpush3.msra.mxu1 %v12006_v35  ;;  %15694 = vmatprep.subr.mxu0 %v21123_v11  ;;  %v12056_v35 = vld [vmem:[%s21586_s3 + $0x350] sm:$0xff] }
 0x762   : > { %15729 = vmatprep.subr.mxu1 %v21123_v11  ;;  %15695 = vmatpush3.msra.mxu0 %v11989_v28  ;;  %v12072_v28 = vld [vmem:[%s21586_s3 + $0x3d0] sm:$0xff] }
 0x763   : > { %15730 = vmatpush3.msra.mxu1 %v12005_v30  ;;  %15696 = vmatprep.subr.mxu0 %v21123_v11  ;;  %v12055_v30 = vld [vmem:[%s21586_s3 + $0x348] sm:$0xff] }
 0x764   : > { %15731 = vmatprep.subr.mxu1 %v21123_v11  ;;  %15697 = vmatpush3.msra.mxu0 %v11988_v22  ;;  %v12071_v22 = vld [vmem:[%s21586_s3 + $0x3c8] sm:$0xff] }
 0x765   : > { %15732 = vmatpush3.msra.mxu1 %v12004_v4  ;;  %15698 = vmatprep.subr.mxu0 %v21123_v11  ;;  %v12054_v4 = vld [vmem:[%s21586_s3 + $0x340] sm:$0xff] }
 0x766   : > { %15733 = vmatprep.subr.mxu1 %v21123_v11  ;;  %15699 = vmatpush3.msra.mxu0 %v11987_v10  ;;  %v12070_v10 = vld [vmem:[%s21586_s3 + $0x3c0] sm:$0xff] }
 0x767   : > { %15734 = vmatpush3.msra.mxu1 %v12003_v60  ;;  %15700 = vmatprep.subr.mxu0 %v21123_v11  ;;  %v12053_v60 = vld [vmem:[%s21586_s3 + $0x338] sm:$0xff] }
 0x768   : > { %15735 = vmatprep.subr.mxu1 %v21123_v11  ;;  %15701 = vmatpush3.msra.mxu0 %v11986_v39  ;;  %v12069_v39 = vld [vmem:[%s21586_s3 + $0x3b8] sm:$0xff] }
 0x769   : > { %15736 = vmatpush3.msra.mxu1 %v12002_v37  ;;  %15702 = vmatprep.subr.mxu0 %v21123_v11  ;;  %v12052_v37 = vld [vmem:[%s21586_s3 + $0x330] sm:$0xff] }
 0x76a   : > { %15737 = vmatprep.subr.mxu1 %v21123_v11  ;;  %15703 = vmatpush3.msra.mxu0 %v11985_v33  ;;  %v12068_v33 = vld [vmem:[%s21586_s3 + $0x3b0] sm:$0xff] }
 0x76b   : > { %15738 = vmatpush3.msra.mxu1 %v12001_v52  ;;  %15704 = vmatprep.subr.mxu0 %v21123_v11  ;;  %v12051_v52 = vld [vmem:[%s21586_s3 + $0x328] sm:$0xff] }
 0x76c   : > { %15739 = vmatprep.subr.mxu1 %v21123_v11  ;;  %15705 = vmatpush3.msra.mxu0 %v11984_v54  ;;  %v12067_v54 = vld [vmem:[%s21586_s3 + $0x3a8] sm:$0xff] }
 0x76d   : > { %15740 = vmatpush3.msra.mxu1 %v12000_v46  ;;  %15706 = vmatprep.subr.mxu0 %v21123_v11  ;;  %v12050_v46 = vld [vmem:[%s21586_s3 + $0x320] sm:$0xff] }
 0x76e   : > { %15741 = vmatprep.subr.mxu1 %v21123_v11  ;;  %15707 = vmatpush3.msra.mxu0 %v11983_v31  ;;  %v12066_v31 = vld [vmem:[%s21586_s3 + $0x3a0] sm:$0xff] }
 0x76f   : > { %15742 = vmatpush3.msra.mxu1 %v11999_v47  ;;  %15708 = vmatprep.subr.mxu0 %v21123_v11  ;;  %v12049_v47 = vld [vmem:[%s21586_s3 + $0x318] sm:$0xff] }
 0x770   : > { %15743 = vmatprep.subr.mxu1 %v21123_v11  ;;  %15709 = vmatpush3.msra.mxu0 %v11982_v34  ;;  %v12065_v34 = vld [vmem:[%s21586_s3 + $0x398] sm:$0xff] }
 0x771   : > { %15710 = vmatprep.mubr.msk.f32.mxu0 %vm15963_vm2, %v21123_v11  ;;  %15744 = vmatpush3.msra.mxu1 %v11998_v50  ;;  %v12048_v50 = vld [vmem:[%s21586_s3 + $0x310] sm:$0xff] }
 0x772   : > { %15745 = vmatprep.mubr.msk.f32.mxu1 %vm15963_vm2, %v21123_v11  ;;  %15711 = vmatmul.mubr.f32.vlgmr.msra.gmra.mxu0 %v10532_v41  ;;  %v12047_v41 = vld [vmem:[%s21586_s3 + $0x308] sm:$0xff] }
 0x773   : > { %15746 = vmatmul.mubr.f32.vlgmr.msra.gmra.mxu1 %v10620_v23  ;;  %15748 = vmatprep.subr.mxu0 %v21123_v11  ;;  %v12063_v23 = vld [vmem:[%s21586_s3 + $0x388] sm:$0xff] }
 0x774   : > { %15783 = vmatprep.subr.mxu1 %v21123_v11  ;;  %15749 = vmatpush3.msra.mxu0 %v12029_v3  ;;  %v12064_v3 = vld [vmem:[%s21586_s3 + $0x390] sm:$0xff] }
 0x775   : > { %15784 = vmatpush3.msra.mxu1 %v12045_v27  ;;  %15750 = vmatprep.subr.mxu0 %v21123_v11  ;;  %v12046_v27 = vld [vmem:[%s21586_s3 + $0x300] sm:$0xff] }
 0x776   : > { %15785 = vmatprep.subr.mxu1 %v21123_v11  ;;  %15751 = vmatpush3.msra.mxu0 %v12028_v14  ;;  %v12062_v14 = vld [vmem:[%s21586_s3 + $0x380] sm:$0xff] }
 0x777   : > { %15786 = vmatpush3.msra.mxu1 %v12044_v55  ;;  %15752 = vmatprep.subr.mxu0 %v21123_v11  ;;  %v10884_v55 = vld [vmem:[#allocation3 + $0x8] sm:$0x3f] }
 0x778   : > { %15787 = vmatprep.subr.mxu1 %v21123_v11  ;;  %15753 = vmatpush3.msra.mxu0 %v12027_v40  ;;  %v10972_v40 = vld [vmem:[#allocation3 + $0x9] sm:$0x3f] }
 0x779   : > { %15788 = vmatpush3.msra.mxu1 %v12043_v20  ;;  %15754 = vmatprep.subr.mxu0 %v21123_v11  ;;  %v12093_v20 = vld [vmem:[%s21586_s3 + $0x478] sm:$0xff] }
 0x77a   : > { %15789 = vmatprep.subr.mxu1 %v21123_v11  ;;  %15755 = vmatpush3.msra.mxu0 %v12026_v38  ;;  %v12092_v38 = vld [vmem:[%s21586_s3 + $0x470] sm:$0xff] }
 0x77b   : > { %15790 = vmatpush3.msra.mxu1 %v12042_v45  ;;  %15756 = vmatprep.subr.mxu0 %v21123_v11  ;;  %v12091_v45 = vld [vmem:[%s21586_s3 + $0x468] sm:$0xff] }
 0x77c   : > { %15791 = vmatprep.subr.mxu1 %v21123_v11  ;;  %15757 = vmatpush3.msra.mxu0 %v12025_v16  ;;  %v12090_v16 = vld [vmem:[%s21586_s3 + $0x460] sm:$0xff] }
 0x77d   : > { %15792 = vmatpush3.msra.mxu1 %v12041_v1  ;;  %15758 = vmatprep.subr.mxu0 %v21123_v11  ;;  %v12089_v1 = vld [vmem:[%s21586_s3 + $0x458] sm:$0xff] }
 0x77e   : > { %15793 = vmatprep.subr.mxu1 %v21123_v11  ;;  %15759 = vmatpush3.msra.mxu0 %v12024_v53  ;;  %v12088_v53 = vld [vmem:[%s21586_s3 + $0x450] sm:$0xff] }
 0x77f   : > { %15794 = vmatpush3.msra.mxu1 %v12040_v49  ;;  %15760 = vmatprep.subr.mxu0 %v21123_v11  ;;  %v12087_v49 = vld [vmem:[%s21586_s3 + $0x448] sm:$0xff] }
 0x780   : > { %15795 = vmatprep.subr.mxu1 %v21123_v11  ;;  %15761 = vmatpush3.msra.mxu0 %v12023_v19  ;;  %v12086_v19 = vld [vmem:[%s21586_s3 + $0x440] sm:$0xff] }
 0x781   : > { %15796 = vmatpush3.msra.mxu1 %v12039_v59  ;;  %15762 = vmatprep.subr.mxu0 %v21123_v11  ;;  %v12085_v59 = vld [vmem:[%s21586_s3 + $0x438] sm:$0xff] }
 0x782   : > { %15797 = vmatprep.subr.mxu1 %v21123_v11  ;;  %15763 = vmatpush3.msra.mxu0 %v12022_v2  ;;  %v12084_v2 = vld [vmem:[%s21586_s3 + $0x430] sm:$0xff] }
 0x783   : > { %15798 = vmatpush3.msra.mxu1 %v12038_v43  ;;  %15764 = vmatprep.subr.mxu0 %v21123_v11  ;;  %v12083_v43 = vld [vmem:[%s21586_s3 + $0x428] sm:$0xff] }
 0x784   : > { %15799 = vmatprep.subr.mxu1 %v21123_v11  ;;  %15765 = vmatpush3.msra.mxu0 %v12021_v8  ;;  %v12082_v8 = vld [vmem:[%s21586_s3 + $0x420] sm:$0xff] }
 0x785   : > { %15800 = vmatpush3.msra.mxu1 %v12037_v21  ;;  %15766 = vmatprep.subr.mxu0 %v21123_v11  ;;  %v12081_v21 = vld [vmem:[%s21586_s3 + $0x418] sm:$0xff] }
 0x786   : > { %15801 = vmatprep.subr.mxu1 %v21123_v11  ;;  %15767 = vmatpush3.msra.mxu0 %v12020_v17  ;;  %v12080_v17 = vld [vmem:[%s21586_s3 + $0x410] sm:$0xff] }
 0x787   : > { %15802 = vmatpush3.msra.mxu1 %v12036_v24  ;;  %15768 = vmatprep.subr.mxu0 %v21123_v11  ;;  %v12079_v24 = vld [vmem:[%s21586_s3 + $0x408] sm:$0xff] }
 0x788   : > { %15803 = vmatprep.subr.mxu1 %v21123_v11  ;;  %15769 = vmatpush3.msra.mxu0 %v12019_v26  ;;  %v12078_v26 = vld [vmem:[%s21586_s3 + $0x400] sm:$0xff] }
 0x789   : > { %15804 = vmatpush3.msra.mxu1 %v12035_v13  ;;  %15770 = vmatprep.subr.mxu0 %v21123_v11  ;;  %v11060_v13 = vld [vmem:[#allocation3 + $0xa] sm:$0x3f] }
 0x78a   : > { %15805 = vmatprep.subr.mxu1 %v21123_v11  ;;  %15771 = vmatpush3.msra.mxu0 %v12018_v57 }
 0x78b   : > { %15806 = vmatpush3.msra.mxu1 %v12034_v25  ;;  %15772 = vmatprep.subr.mxu0 %v21123_v11 }
 0x78c   : > { %15807 = vmatprep.subr.mxu1 %v21123_v11  ;;  %15773 = vmatpush3.msra.mxu0 %v12017_v42 }
 0x78d   : > { %15808 = vmatpush3.msra.mxu1 %v12033_v12  ;;  %15774 = vmatprep.subr.mxu0 %v21123_v11 }
 0x78e   : > { %15809 = vmatprep.subr.mxu1 %v21123_v11  ;;  %15775 = vmatpush3.msra.mxu0 %v12016_v62 }
 0x78f   : > { %15810 = vmatpush3.msra.mxu1 %v12032_v6  ;;  %15776 = vmatprep.subr.mxu0 %v21123_v11 }
 0x790   : > { %15811 = vmatprep.subr.mxu1 %v21123_v11  ;;  %15777 = vmatpush3.msra.mxu0 %v12015_v58 }
 0x791   : > { %15812 = vmatpush3.msra.mxu1 %v12031_v51  ;;  %15778 = vmatprep.subr.mxu0 %v21123_v11 }
 0x792   : > { %15813 = vmatprep.subr.mxu1 %v21123_v11  ;;  %15779 = vmatpush3.msra.mxu0 %v12014_v7 }
 0x793   : > { %15780 = vmatprep.mubr.msk.f32.mxu0 %vm15963_vm2, %v21123_v11  ;;  %15814 = vmatpush3.msra.mxu1 %v12030_v5 }
 0x794   : > { %15815 = vmatprep.mubr.msk.f32.mxu1 %vm15963_vm2, %v21123_v11  ;;  %15781 = vmatmul.mubr.f32.vlgmr.msra.gmra.mxu0 %v10708_v9 }
 0x795   : > { %15816 = vmatmul.mubr.f32.vlgmr.msra.gmra.mxu1 %v10796_v0  ;;  %15818 = vmatprep.subr.mxu0 %v21123_v11 }
 0x796   : > { %15853 = vmatprep.subr.mxu1 %v21123_v11  ;;  %15819 = vmatpush3.msra.mxu0 %v12061_v56 }
 0x797   : > { %15854 = vmatpush3.msra.mxu1 %v12077_v36  ;;  %15820 = vmatprep.subr.mxu0 %v21123_v11 }
 0x798   : > { %15855 = vmatprep.subr.mxu1 %v21123_v11  ;;  %15821 = vmatpush3.msra.mxu0 %v12060_v61 }
 0x799   : > { %15856 = vmatpush3.msra.mxu1 %v12076_v18  ;;  %15822 = vmatprep.subr.mxu0 %v21123_v11 }
 0x79a   : > { %15857 = vmatprep.subr.mxu1 %v21123_v11  ;;  %15823 = vmatpush3.msra.mxu0 %v12059_v32 }
 0x79b   : > { %15858 = vmatpush3.msra.mxu1 %v12075_v15  ;;  %15824 = vmatprep.subr.mxu0 %v21123_v11 }
 0x79c   : > { %15859 = vmatprep.subr.mxu1 %v21123_v11  ;;  %15825 = vmatpush3.msra.mxu0 %v12058_v63 }
 0x79d   : > { %15860 = vmatpush3.msra.mxu1 %v12074_v29  ;;  %15826 = vmatprep.subr.mxu0 %v21123_v11 }
 0x79e   : > { %15861 = vmatprep.subr.mxu1 %v21123_v11  ;;  %15827 = vmatpush3.msra.mxu0 %v12057_v48 }
 0x79f   : > { %15862 = vmatpush3.msra.mxu1 %v12073_v44  ;;  %15828 = vmatprep.subr.mxu0 %v21123_v11 }
 0x7a0   : > { %15863 = vmatprep.subr.mxu1 %v21123_v11  ;;  %15829 = vmatpush3.msra.mxu0 %v12056_v35 }
 0x7a1   : > { %15864 = vmatpush3.msra.mxu1 %v12072_v28  ;;  %15830 = vmatprep.subr.mxu0 %v21123_v11  ;;  %v12094_v28 = vld [vmem:[%s21587_s4] ss:$0 sm:$0xff] }
 0x7a2   : > { %15865 = vmatprep.subr.mxu1 %v21123_v11  ;;  %15831 = vmatpush3.msra.mxu0 %v12055_v30 }
 0x7a3   : > { %15866 = vmatpush3.msra.mxu1 %v12071_v22  ;;  %15832 = vmatprep.subr.mxu0 %v21123_v11 }
 0x7a4   : > { %15867 = vmatprep.subr.mxu1 %v21123_v11  ;;  %15833 = vmatpush3.msra.mxu0 %v12054_v4 }
 0x7a5   : > { %15868 = vmatpush3.msra.mxu1 %v12070_v10  ;;  %15834 = vmatprep.subr.mxu0 %v21123_v11 }
 0x7a6   : > { %15869 = vmatprep.subr.mxu1 %v21123_v11  ;;  %15835 = vmatpush3.msra.mxu0 %v12053_v60 }
 0x7a7   : > { %15870 = vmatpush3.msra.mxu1 %v12069_v39  ;;  %15836 = vmatprep.subr.mxu0 %v21123_v11 }
 0x7a8   : > { %15871 = vmatprep.subr.mxu1 %v21123_v11  ;;  %15837 = vmatpush3.msra.mxu0 %v12052_v37 }
 0x7a9   : > { %15872 = vmatpush3.msra.mxu1 %v12068_v33  ;;  %15838 = vmatprep.subr.mxu0 %v21123_v11 }
 0x7aa   : > { %15873 = vmatprep.subr.mxu1 %v21123_v11  ;;  %15839 = vmatpush3.msra.mxu0 %v12051_v52 }
 0x7ab   : > { %15874 = vmatpush3.msra.mxu1 %v12067_v54  ;;  %15840 = vmatprep.subr.mxu0 %v21123_v11 }
 0x7ac   : > { %15875 = vmatprep.subr.mxu1 %v21123_v11  ;;  %15841 = vmatpush3.msra.mxu0 %v12050_v46 }
 0x7ad   : > { %15876 = vmatpush3.msra.mxu1 %v12066_v31  ;;  %15842 = vmatprep.subr.mxu0 %v21123_v11 }
 0x7ae   : > { %15877 = vmatprep.subr.mxu1 %v21123_v11  ;;  %15843 = vmatpush3.msra.mxu0 %v12049_v47 }
 0x7af   : > { %15878 = vmatpush3.msra.mxu1 %v12065_v34  ;;  %15844 = vmatprep.subr.mxu0 %v21123_v11 }
 0x7b0   : > { %15879 = vmatprep.subr.mxu1 %v21123_v11  ;;  %15845 = vmatpush3.msra.mxu0 %v12048_v50 }
 0x7b1   : > { %15880 = vmatpush3.msra.mxu1 %v12064_v3  ;;  %15846 = vmatprep.subr.mxu0 %v21123_v11 }
 0x7b2   : > { %15881 = vmatprep.subr.mxu1 %v21123_v11  ;;  %15847 = vmatpush3.msra.mxu0 %v12047_v41 }
 0x7b3   : > { %15882 = vmatpush3.msra.mxu1 %v12063_v23  ;;  %15848 = vmatprep.subr.mxu0 %v21123_v11 }
 0x7b4   : > { %15883 = vmatprep.subr.mxu1 %v21123_v11  ;;  %15849 = vmatpush3.msra.mxu0 %v12046_v27 }
 0x7b5   : > { %15850 = vmatprep.mubr.msk.f32.mxu0 %vm15963_vm2, %v21123_v11  ;;  %15884 = vmatpush3.msra.mxu1 %v12062_v14 }
 0x7b6   : > { %15885 = vmatprep.mubr.msk.f32.mxu1 %vm15963_vm2, %v21123_v11  ;;  %15851 = vmatmul.mubr.f32.vlgmr.msra.gmra.mxu0 %v10884_v55 }
 0x7b7   : > { %15886 = vmatmul.mubr.f32.vlgmr.msra.gmra.mxu1 %v10972_v40  ;;  %15888 = vmatprep.subr.mxu0 %v21123_v11 }
 0x7b8   : > { %15920 = vmatprep.mubr.msk.f32.mxu0 %vm15963_vm2, %v21123_v11  ;;  %15889 = vmatpush3.msra.mxu0 %v12093_v20 }
 0x7b9   : > { %15890 = vmatprep.subr.mxu0 %v21123_v11 }
 0x7ba   : > { %15891 = vmatpush3.msra.mxu0 %v12092_v38 }
 0x7bb   : > { %15892 = vmatprep.subr.mxu0 %v21123_v11 }
 0x7bc   : > { %15893 = vmatpush3.msra.mxu0 %v12091_v45 }
 0x7bd   : > { %15894 = vmatprep.subr.mxu0 %v21123_v11 }
 0x7be   : > { %15895 = vmatpush3.msra.mxu0 %v12090_v16 }
 0x7bf   : > { %15896 = vmatprep.subr.mxu0 %v21123_v11 }
 0x7c0   : > { %15897 = vmatpush3.msra.mxu0 %v12089_v1 }
 0x7c1   : > { %15898 = vmatprep.subr.mxu0 %v21123_v11 }
 0x7c2   : > { %15899 = vmatpush3.msra.mxu0 %v12088_v53 }
 0x7c3   : > { %15900 = vmatprep.subr.mxu0 %v21123_v11 }
 0x7c4   : > { %15901 = vmatpush3.msra.mxu0 %v12087_v49 }
 0x7c5   : > { %15902 = vmatprep.subr.mxu0 %v21123_v11 }
 0x7c6   : > { %15903 = vmatpush3.msra.mxu0 %v12086_v19 }
 0x7c7   : > { %15904 = vmatprep.subr.mxu0 %v21123_v11 }
 0x7c8   : > { %15905 = vmatpush3.msra.mxu0 %v12085_v59 }
 0x7c9   : > { %15906 = vmatprep.subr.mxu0 %v21123_v11 }
 0x7ca   : > { %15907 = vmatpush3.msra.mxu0 %v12084_v2 }
 0x7cb   : > { %15908 = vmatprep.subr.mxu0 %v21123_v11 }
 0x7cc   : > { %15909 = vmatpush3.msra.mxu0 %v12083_v43 }
 0x7cd   : > { %15910 = vmatprep.subr.mxu0 %v21123_v11 }
 0x7ce   : > { %15911 = vmatpush3.msra.mxu0 %v12082_v8 }
 0x7cf   : > { %15912 = vmatprep.subr.mxu0 %v21123_v11 }
 0x7d0   : > { %15913 = vmatpush3.msra.mxu0 %v12081_v21 }
 0x7d1   : > { %15914 = vmatprep.subr.mxu0 %v21123_v11 }
 0x7d2   : > { %15915 = vmatpush3.msra.mxu0 %v12080_v17 }
 0x7d3   : > { %15916 = vmatprep.subr.mxu0 %v21123_v11 }
 0x7d4   : > { %15917 = vmatpush3.msra.mxu0 %v12079_v24 }
 0x7d5   : > { %15918 = vmatprep.subr.mxu0 %v21123_v11 }
 0x7d6   : > { %15919 = vmatpush3.msra.mxu0 %v12078_v26 }
 0x7d7   : > { %15921 = vmatmul.mubr.f32.vlgmr.msra.gmra.mxu0 %v11060_v13 }
 0x811   : > { %v10458_v57 = vpop.f32.mrf.mxu0 }
 0x812   : > { %v10528_v25 = vpop.f32.mrf.mxu1 }
 0x813   : > { %v10529_v42 = vadd.f32 %v10528_v25, %v10458_v57  ;;  %v15642_v12 = vpop.f32.mrf.mxu0 }
 0x814   : > { %v15677_v62 = vpop.f32.mrf.mxu1 }
 0x832   : > { %v10615_v6 = vpop.f32.mrf.mxu0 }
 0x833   : > { %v10703_v58 = vpop.f32.mrf.mxu1  ;;  %v10619_v51 = vadd.f32 %v10615_v6, %v10529_v42 }
 0x834   : > { %v15712_v7 = vpop.f32.mrf.mxu0 }
 0x835   : > { %v15747_v5 = vpop.f32.mrf.mxu1  ;;  %v10707_v56 = vadd.f32 %v10703_v58, %v10619_v51 }
 0x854   : > { %v10791_v9 = vpop.f32.mrf.mxu0 }
 0x855   : > { %v10879_v0 = vpop.f32.mrf.mxu1  ;;  %v10795_v63 = vadd.f32 %v10791_v9, %v10707_v56 }
 0x856   : > { %v15782_v36 = vpop.f32.mrf.mxu0 }
 0x857   : > { %v15817_v61 = vpop.f32.mrf.mxu1  ;;  %v10883_v29 = vadd.f32 %v10879_v0, %v10795_v63 }
 0x876   : > { %v10967_v18 = vpop.f32.mrf.mxu0 }
 0x877   : > { %v11055_v11 = vpop.f32.mrf.mxu1  ;;  %v10971_v48 = vadd.f32 %v10967_v18, %v10883_v29 }
 0x878   : > { %v15852_v32 = vpop.f32.mrf.mxu0 }
 0x879   : > { %v15887_v15 = vpop.f32.mrf.mxu1  ;;  %v11059_v44 = vadd.f32 %v11055_v11, %v10971_v48 }
 0x897   : > { %v11143_v35 = vpop.f32.mrf.mxu0 }
 0x898   : > { %v11147_v30 = vadd.f32 %v11143_v35, %v11059_v44 }
 0x899   : > { %v15922_v22 = vpop.f32.mrf.mxu0 }
 0x89a   : > { %v11155_v4 = vadd.f32 %v12094_v28, %v11147_v30 }
 0x89c   : > { %vm11156_vm8 = vcmp.ge.f32.partialorder %v11155_v4, 0.0  ;;  %v11157_v10 = vmul.f32 0.01, %v11155_v4 }
 0x89e   : > { %v11158_v60 = vsel %vm11156_vm8, %v11155_v4, %v11157_v10 }
 0x89f   : > { %v11160_v39 = vrot.slane %v11158_v60, 1 }
 0x8a1   : > { %v11162_v37 = vmax.f32 %v11158_v60, %v11160_v39 }
 0x8a3   : > { %v11164_v33 = vrot.slane %v11162_v37, 4 }
 0x8a5   : > { %v11166_v52 = vmax.f32 %v11162_v37, %v11164_v33 }
 0x8a7   : > { %11167 = vst [vmem:[%s220_s25] sm:$0x1] %v11166_v52 }
 0x8a8 PF: > { %s15_s18 = sadd.s32 1, %s15960_s18  }
 0x8a9   : > { %p12_p4 = scmp.ge.s32.totalorder %s15_s18, 4  }
 0x8ab   :  { %14 = sbr.rel (!%p12_p4) target bundleno = 1 (0x1), region = 97 }

</bundles_post_ra>
